<compile_context>
chip_gen: v6e
topology: v6e:2x2x1
jax: 0.10.0
libtpu: 0.0.40
codegen_flags: <defaults>
</compile_context>

<pallas_src>
import functools

import jax
import jax.numpy as jnp
from jax.experimental import pallas as pl
from jax.experimental.pallas import tpu as pltpu

LANE = 128       # TPU lane width (last dim alignment)
SUBLANE_BF16 = 16  # bf16 sublane pack (second-to-last dim alignment)


def _round_up(n, m):
    return ((n + m - 1) // m) * m


def _next_pow2(n):
    n = max(int(n), 1)
    return 1 << (n - 1).bit_length()


@functools.lru_cache(maxsize=None)
def _vmem_limit_bytes():
    """Generation-aware scoped-VMEM request (fits v5e/v6e 128 MiB and v7x 64 MiB)."""
    try:
        cap = int(pltpu.get_tpu_info().vmem_capacity_bytes)
    except Exception:
        cap = 64 * 1024 * 1024  # conservative (v7x-sized) fallback
    # Never ask for more than half of physical VMEM, cap at 48 MiB.  The
    # kernel needs ~19 MiB at TM=512 (bf16 weights ~8.4 MiB single-buffered).
    return max(min(48 * 1024 * 1024, cap // 2), 32 * 1024 * 1024)


def _mlp_kernel(x_ref, w1_ref, b1_ref, w2_ref, b2_ref, w3_ref, b3_ref, o_ref):
    """Fused 3-layer MLP forward on one batch tile.

    x:  [TM, 896]  bf16     w1: [896, 1600]   bf16   b1: [1, 1600]  f32
                            w2: [1600, 1600]  bf16   b2: [1, 1600]  f32
                            w3: [1600, 128]   bf16   b3: [1, 128]   f32
    o:  [TM, 128] f32   (cols 10..127 are zero; sliced off in the wrapper)
    """
    # fc1 + ReLU: bf16 MXU matmul, f32 accumulate; f32 bias/ReLU on the VPU.
    h1 = jnp.dot(x_ref[...], w1_ref[...], preferred_element_type=jnp.float32)
    h1 = jnp.maximum(h1 + b1_ref[...], 0.0)

    # fc2 + ReLU
    h2 = jnp.dot(h1.astype(jnp.bfloat16), w2_ref[...],
                 preferred_element_type=jnp.float32)
    h2 = jnp.maximum(h2 + b2_ref[...], 0.0)

    # fc3 (no activation) — lane-dense 128-wide output slab => unmasked stores.
    out = jnp.dot(h2.astype(jnp.bfloat16), w3_ref[...],
                  preferred_element_type=jnp.float32)
    o_ref[...] = (out + b3_ref[...]).astype(o_ref.dtype)


def prepare_params(w1, b1, w2, b2, w3, b3):
    """One-time weight prep: cast to bf16 and zero-pad to lane-aligned shapes.

    Done outside the per-call forward so the padded/cast weights are what
    lives in HBM (no per-call cast traffic).
    """
    k_in, n_out = int(w1.shape[0]), int(w3.shape[1])
    k_pad = _round_up(k_in, LANE)    # 784 -> 896
    n_pad = _round_up(n_out, LANE)   # 10  -> 128

    w1p = jnp.pad(w1, ((0, k_pad - k_in), (0, 0))).astype(jnp.bfloat16)
    w2p = w2.astype(jnp.bfloat16)
    w3p = jnp.pad(w3, ((0, 0), (0, n_pad - n_out))).astype(jnp.bfloat16)
    b1p = b1.reshape(1, -1).astype(jnp.float32)
    b2p = b2.reshape(1, -1).astype(jnp.float32)
    b3p = jnp.pad(b3.reshape(1, -1), ((0, 0), (0, n_pad - n_out))).astype(jnp.float32)

    return dict(w1=w1p, b1=b1p, w2=w2p, b2=b2p, w3=w3p, b3=b3p,
                n_in=k_in, n_out=n_out)


@functools.partial(jax.jit, static_argnames=("tm", "b_pad", "n_out", "vmem_limit"))
def _forward_impl(x, w1, b1, w2, b2, w3, b3, *, tm, b_pad, n_out, vmem_limit):
    B = x.shape[0]
    k_pad = w1.shape[0]                                    # 896
    hidden = w1.shape[1]                                   # 1600
    n_pad = w3.shape[1]                                    # 128

    x2d = x.reshape(B, -1).astype(jnp.float32)             # torch.flatten(x, 1)
    # Zero-pad batch (to the tile multiple) and features (784 -> 896), then
    # cast to bf16 once in the wrapper.  Zero rows/cols contribute nothing
    # and padded output rows are sliced off below.
    x2d = jnp.pad(x2d, ((0, b_pad - B), (0, k_pad - x2d.shape[1]))).astype(jnp.bfloat16)

    n_steps = b_pad // tm
    # Constant-index weight/bias blocks: single buffer (no re-fetch anyway).
    resident = dict(pipeline_mode=pl.Buffered(1))

    out = pl.pallas_call(
        _mlp_kernel,
        out_shape=jax.ShapeDtypeStruct((b_pad, n_pad), jnp.float32),
        grid=(n_steps,),
        in_specs=[
            pl.BlockSpec((tm, k_pad), lambda i: (i, 0)),               # x tile (pipelined)
            pl.BlockSpec((k_pad, hidden), lambda i: (0, 0), **resident),  # w1 (resident)
            pl.BlockSpec((1, hidden), lambda i: (0, 0), **resident),      # b1
            pl.BlockSpec((hidden, hidden), lambda i: (0, 0), **resident), # w2 (resident)
            pl.BlockSpec((1, hidden), lambda i: (0, 0), **resident),      # b2
            pl.BlockSpec((hidden, n_pad), lambda i: (0, 0), **resident),  # w3 (resident)
            pl.BlockSpec((1, n_pad), lambda i: (0, 0), **resident),       # b3
        ],
        out_specs=pl.BlockSpec((tm, n_pad), lambda i: (i, 0)),
        compiler_params=pltpu.CompilerParams(
            # Megacore-shard the batch grid only when there is enough work to
            # amortize the duplicated per-core weight fetch (v7x).
            dimension_semantics=("parallel",) if n_steps >= 8 else ("arbitrary",),
            vmem_limit_bytes=vmem_limit,
        ),
    )(x2d, w1, b1, w2, b2, w3, b3)
    return out[:B, :n_out]


def _choose_tiling(batch):
    """Bucketed (tm, b_pad) so serving batch-size jitter doesn't recompile."""
    b_align = _round_up(batch, SUBLANE_BF16)       # bf16 sublane pack
    if b_align <= 512:
        b_pad = max(SUBLANE_BF16, _next_pow2(b_align))   # single-tile buckets
        return b_pad, b_pad
    tm = 512
    return tm, _round_up(b_align, tm)


def fc_net3_forward(x, params):
    """Public forward: NCHW input, prepared (padded bf16) params."""
    tm, b_pad = _choose_tiling(x.shape[0])
    return _forward_impl(
        x, params["w1"], params["b1"], params["w2"], params["b2"],
        params["w3"], params["b3"],
        tm=tm, b_pad=b_pad, n_out=params["n_out"],
        vmem_limit=_vmem_limit_bytes(),
    )


def _init_linear(key, fan_in, fan_out):
    """Deterministic init mimicking torch.nn.Linear defaults (uniform ±1/sqrt(fan_in)).

    Returned weight is (fan_in, fan_out) so the kernel computes x @ W + b.
    """
    kw, kb = jax.random.split(key)
    bound = 1.0 / (fan_in ** 0.5)
    w = jax.random.uniform(kw, (fan_in, fan_out), jnp.float32, -bound, bound)
    b = jax.random.uniform(kb, (1, fan_out), jnp.float32, -bound, bound)
    return w, b


if __name__ == "__main__":
    root = jax.random.PRNGKey(0)
    k_x, k1, k2, k3 = jax.random.split(root, 4)

    # MNIST-like input implied by the 784-wide fc1: NCHW [B, 1, 28, 28].
    B = 2
    x = jax.random.normal(k_x, (B, 1, 28, 28), jnp.float32)

    w1, b1 = _init_linear(k1, 784, 1600)
    w2, b2 = _init_linear(k2, 1600, 1600)
    w3, b3 = _init_linear(k3, 1600, 10)

    params = prepare_params(w1, b1, w2, b2, w3, b3)
    out = fc_net3_forward(x, params)
    out = jax.block_until_ready(out)

    # Reference with the same bf16 weight/activation quantization (f32 accum)
    # so the tolerance stays tight; the f32 PyTorch forward differs from this
    # only by bf16 rounding (~1e-2 relative).
    bf = jnp.bfloat16
    xf = x.reshape(B, -1)
    h = jnp.maximum(jnp.dot(xf.astype(bf), w1.astype(bf),
                            preferred_element_type=jnp.float32) + b1, 0.0)
    h = jnp.maximum(jnp.dot(h.astype(bf), w2.astype(bf),
                            preferred_element_type=jnp.float32) + b2, 0.0)
    ref = jnp.dot(h.astype(bf), w3.astype(bf),
                  preferred_element_type=jnp.float32) + b3

    assert out.shape == (B, 10)
    assert jnp.allclose(out, ref, atol=2e-2, rtol=2e-2), "mismatch vs JAX reference"

    print("KERNEL_OK")
</pallas_src>

<mosaic_0001>
module attributes {stable_mosaic.version = 11 : i64} {
  func.func @_mlp_kernel(%arg0: i32, %arg1: memref<16x896xbf16, #tpu.memory_space<vmem>>, %arg2: memref<896x1600xbf16, #tpu.memory_space<vmem>>, %arg3: memref<1x1600xf32, #tpu.memory_space<vmem>>, %arg4: memref<1600x1600xbf16, #tpu.memory_space<vmem>>, %arg5: memref<1x1600xf32, #tpu.memory_space<vmem>>, %arg6: memref<1600x128xbf16, #tpu.memory_space<vmem>>, %arg7: memref<1x128xf32, #tpu.memory_space<vmem>>, %arg8: memref<16x128xf32, #tpu.memory_space<vmem>>) attributes {dimension_semantics = [#tpu.dimension_semantics<arbitrary>], iteration_bounds = array<i64: 1>, scalar_prefetch = 0 : i64, scratch_operands = 0 : i64, tpu.core_type = #tpu.core_type<tc>, window_params = [{transform_indices = @transform_0, window_bounds = array<i64: 16, 896>}, {pipeline_mode = #tpu.pipeline_mode<synchronous>, transform_indices = @transform_1, window_bounds = array<i64: 896, 1600>}, {pipeline_mode = #tpu.pipeline_mode<synchronous>, transform_indices = @transform_2, window_bounds = array<i64: 1, 1600>}, {pipeline_mode = #tpu.pipeline_mode<synchronous>, transform_indices = @transform_3, window_bounds = array<i64: 1600, 1600>}, {pipeline_mode = #tpu.pipeline_mode<synchronous>, transform_indices = @transform_4, window_bounds = array<i64: 1, 1600>}, {pipeline_mode = #tpu.pipeline_mode<synchronous>, transform_indices = @transform_5, window_bounds = array<i64: 1600, 128>}, {pipeline_mode = #tpu.pipeline_mode<synchronous>, transform_indices = @transform_6, window_bounds = array<i64: 1, 128>}, {transform_indices = @transform_7, window_bounds = array<i64: 16, 128>}]} {
    %c0 = arith.constant 0 : index
    %c0_0 = arith.constant 0 : index
    %0 = vector.load %arg1[%c0, %c0_0] : memref<16x896xbf16, #tpu.memory_space<vmem>>, vector<16x896xbf16>
    %c0_1 = arith.constant 0 : index
    %c0_2 = arith.constant 0 : index
    %1 = vector.load %arg2[%c0_1, %c0_2] : memref<896x1600xbf16, #tpu.memory_space<vmem>>, vector<896x1600xbf16>
    %cst = arith.constant dense<0.000000e+00> : vector<16x1600xf32>
    %2 = tpu.matmul %0, %1, %cst {dimension_numbers = #tpu.dot_dimension_numbers<[1], [0], [0], [1], [0, 0, 1, 1], [], []>} : vector<16x896xbf16>, vector<896x1600xbf16>, vector<16x1600xf32> -> vector<16x1600xf32>
    %c0_3 = arith.constant 0 : index
    %c0_4 = arith.constant 0 : index
    %3 = vector.load %arg3[%c0_3, %c0_4] : memref<1x1600xf32, #tpu.memory_space<vmem>>, vector<1x1600xf32>
    %4 = vector.broadcast %3 : vector<1x1600xf32> to vector<16x1600xf32>
    %5 = arith.addf %2, %4 : vector<16x1600xf32>
    %cst_5 = arith.constant 0.000000e+00 : f32
    %6 = vector.broadcast %cst_5 : f32 to vector<16x1600xf32>
    %7 = arith.maximumf %5, %6 : vector<16x1600xf32>
    %8 = arith.truncf %7 : vector<16x1600xf32> to vector<16x1600xbf16>
    %c0_6 = arith.constant 0 : index
    %c0_7 = arith.constant 0 : index
    %9 = vector.load %arg4[%c0_6, %c0_7] : memref<1600x1600xbf16, #tpu.memory_space<vmem>>, vector<1600x1600xbf16>
    %cst_8 = arith.constant dense<0.000000e+00> : vector<16x1600xf32>
    %10 = tpu.matmul %8, %9, %cst_8 {dimension_numbers = #tpu.dot_dimension_numbers<[1], [0], [0], [1], [0, 0, 1, 1], [], []>} : vector<16x1600xbf16>, vector<1600x1600xbf16>, vector<16x1600xf32> -> vector<16x1600xf32>
    %c0_9 = arith.constant 0 : index
    %c0_10 = arith.constant 0 : index
    %11 = vector.load %arg5[%c0_9, %c0_10] : memref<1x1600xf32, #tpu.memory_space<vmem>>, vector<1x1600xf32>
    %12 = vector.broadcast %11 : vector<1x1600xf32> to vector<16x1600xf32>
    %13 = arith.addf %10, %12 : vector<16x1600xf32>
    %cst_11 = arith.constant 0.000000e+00 : f32
    %14 = vector.broadcast %cst_11 : f32 to vector<16x1600xf32>
    %15 = arith.maximumf %13, %14 : vector<16x1600xf32>
    %16 = arith.truncf %15 : vector<16x1600xf32> to vector<16x1600xbf16>
    %c0_12 = arith.constant 0 : index
    %c0_13 = arith.constant 0 : index
    %17 = vector.load %arg6[%c0_12, %c0_13] : memref<1600x128xbf16, #tpu.memory_space<vmem>>, vector<1600x128xbf16>
    %cst_14 = arith.constant dense<0.000000e+00> : vector<16x128xf32>
    %18 = tpu.matmul %16, %17, %cst_14 {dimension_numbers = #tpu.dot_dimension_numbers<[1], [0], [0], [1], [0, 0, 1, 1], [], []>} : vector<16x1600xbf16>, vector<1600x128xbf16>, vector<16x128xf32> -> vector<16x128xf32>
    %c0_15 = arith.constant 0 : index
    %c0_16 = arith.constant 0 : index
    %19 = vector.load %arg7[%c0_15, %c0_16] : memref<1x128xf32, #tpu.memory_space<vmem>>, vector<1x128xf32>
    %20 = vector.broadcast %19 : vector<1x128xf32> to vector<16x128xf32>
    %21 = arith.addf %18, %20 : vector<16x128xf32>
    %c0_17 = arith.constant 0 : index
    %c0_18 = arith.constant 0 : index
    %22 = vector.load %arg8[%c0_17, %c0_18] : memref<16x128xf32, #tpu.memory_space<vmem>>, vector<16x128xf32>
    tpu.vector_store %arg8[%c0_17, %c0_18], %21 {strides = array<i32>} : memref<16x128xf32, #tpu.memory_space<vmem>>, vector<16x128xf32>,
    return
  }
  func.func @transform_0(%arg0: i32) -> (i32, i32) {
    %c0_i32 = arith.constant 0 : i32
    %c0_i32_0 = arith.constant 0 : i32
    return %arg0, %c0_i32 : i32, i32
  }
  func.func @transform_1(%arg0: i32) -> (i32, i32) {
    %c0_i32 = arith.constant 0 : i32
    %c0_i32_0 = arith.constant 0 : i32
    %c0_i32_1 = arith.constant 0 : i32
    return %c0_i32, %c0_i32_0 : i32, i32
  }
  func.func @transform_2(%arg0: i32) -> (i32, i32) {
    %c0_i32 = arith.constant 0 : i32
    %c0_i32_0 = arith.constant 0 : i32
    %c0_i32_1 = arith.constant 0 : i32
    return %c0_i32, %c0_i32_0 : i32, i32
  }
  func.func @transform_3(%arg0: i32) -> (i32, i32) {
    %c0_i32 = arith.constant 0 : i32
    %c0_i32_0 = arith.constant 0 : i32
    %c0_i32_1 = arith.constant 0 : i32
    return %c0_i32, %c0_i32_0 : i32, i32
  }
  func.func @transform_4(%arg0: i32) -> (i32, i32) {
    %c0_i32 = arith.constant 0 : i32
    %c0_i32_0 = arith.constant 0 : i32
    %c0_i32_1 = arith.constant 0 : i32
    return %c0_i32, %c0_i32_0 : i32, i32
  }
  func.func @transform_5(%arg0: i32) -> (i32, i32) {
    %c0_i32 = arith.constant 0 : i32
    %c0_i32_0 = arith.constant 0 : i32
    %c0_i32_1 = arith.constant 0 : i32
    return %c0_i32, %c0_i32_0 : i32, i32
  }
  func.func @transform_6(%arg0: i32) -> (i32, i32) {
    %c0_i32 = arith.constant 0 : i32
    %c0_i32_0 = arith.constant 0 : i32
    %c0_i32_1 = arith.constant 0 : i32
    return %c0_i32, %c0_i32_0 : i32, i32
  }
  func.func @transform_7(%arg0: i32) -> (i32, i32) {
    %c0_i32 = arith.constant 0 : i32
    %c0_i32_0 = arith.constant 0 : i32
    return %arg0, %c0_i32 : i32, i32
  }
}

</mosaic_0001>

<bundles_post_ra>
// kernel: _forward_impl.1
= control target key start
LH: loop header
LB: loop body
LE: loop exit
PB: predicated region body
PF: predicated region fallthrough
CT: control target
= control target key end

     0   :  { %vm22807_vm0 = vmmov 0   ;;  %vm13924_vm1 = vcmask 523264   ;;  %s30201_s1 = inlined_call_operand.vmem [shape: bf16[896,1600], index: 1, kind: input, shape index: {}]   ;;  %s30202_s0 = inlined_call_operand.vmem [shape: bf16[16,896], index: 0, kind: input, shape index: {}]   ;;  %s30203_s2 = inlined_call_operand.vmem [shape: f32[1,1600], index: 2, kind: input, shape index: {}]   ;;  %s30204_s3 = inlined_call_operand.vmem [shape: bf16[1600,1600], index: 3, kind: input, shape index: {}]   ;;  %s30205_s4 = inlined_call_operand.vmem [shape: f32[1,1600], index: 4, kind: input, shape index: {}]   ;;  %s30206_s5 = inlined_call_operand.vmem [shape: bf16[1600,128], index: 5, kind: input, shape index: {}]   ;;  %s30207_s6 = inlined_call_operand.vmem [shape: f32[1,128], index: 6, kind: input, shape index: {}]   ;;  %s30208_s7 = inlined_call_operand.vmem [shape: f32[16,128], index: 7, kind: output, shape index: {}]  }
   0x1   :  { %v19703_v0 = vld [vmem:[%s30201_s1 + $0x2dc] ss:$52 sps:$4 sm:$0xff]   ;;  %v19707_v2 = vld [vmem:[%s30201_s1 + $0x2d8] ss:$52 sps:$4 sm:$0xff]   ;;  %v19709_v4 = vld [vmem:[%s30201_s1 + $0x274] ss:$52 sps:$4 sm:$0xff]  }
   0x2   :  { %v19705_v1 = vld [vmem:[%s30201_s1 + $0x95c] ss:$52 sps:$4 sm:$0xff]   ;;  %4620 = vmatprep.subr.bf16.mxu0 %v19703_v0  ;;  %v19708_v3 = vld [vmem:[%s30201_s1 + $0x958] ss:$52 sps:$4 sm:$0xff]   ;;  %v19711_v5 = vld [vmem:[%s30201_s1 + $0x8f4] ss:$52 sps:$4 sm:$0xff]  }
   0x3   :  { %4663 = vmatprep.subr.bf16.mxu1 %v19705_v1  ;;  %4621 = vmatpush1.bf16.msra.mxu0 %v19707_v2  ;;  %v19713_v6 = vld [vmem:[%s30201_s1 + $0x270] ss:$52 sps:$4 sm:$0xff]   ;;  %v19715_v8 = vld [vmem:[%s30201_s1 + $0x20c] ss:$52 sps:$4 sm:$0xff]   ;;  %v19719_v10 = vld [vmem:[%s30201_s1 + $0x208] ss:$52 sps:$4 sm:$0xff]  }
   0x4   :  { %4664 = vmatpush1.bf16.msra.mxu1 %v19708_v3  ;;  %4622 = vmatprep.subr.bf16.mxu0 %v19709_v4  ;;  %v19714_v7 = vld [vmem:[%s30201_s1 + $0x8f0] ss:$52 sps:$4 sm:$0xff]   ;;  %v19717_v9 = vld [vmem:[%s30201_s1 + $0x88c] ss:$52 sps:$4 sm:$0xff]   ;;  %v19720_v11 = vld [vmem:[%s30201_s1 + $0x888] ss:$52 sps:$4 sm:$0xff]  }
   0x5   :  { %4665 = vmatprep.subr.bf16.mxu1 %v19711_v5  ;;  %v19721_v12 = vld [vmem:[%s30201_s1 + $0x1a4] ss:$52 sps:$4 sm:$0xff]   ;;  %v19725_v14 = vld [vmem:[%s30201_s1 + $0x1a0] ss:$52 sps:$4 sm:$0xff]   ;;  %v19727_v16 = vld [vmem:[%s30201_s1 + $0x13c] ss:$52 sps:$4 sm:$0xff]  }
   0x6   :  { %v19723_v13 = vld [vmem:[%s30201_s1 + $0x824] ss:$52 sps:$4 sm:$0xff]   ;;  %v19726_v15 = vld [vmem:[%s30201_s1 + $0x820] ss:$52 sps:$4 sm:$0xff]   ;;  %v19729_v17 = vld [vmem:[%s30201_s1 + $0x7bc] ss:$52 sps:$4 sm:$0xff]  }
   0x7   :  { %4623 = vmatpush1.bf16.msra.mxu0 %v19713_v6  ;;  %v19731_v18 = vld [vmem:[%s30201_s1 + $0x138] ss:$52 sps:$4 sm:$0xff]   ;;  %v19733_v20 = vld [vmem:[%s30201_s1 + $0xd4] ss:$52 sps:$4 sm:$0xff]   ;;  %v19737_v22 = vld [vmem:[%s30201_s1 + $0xd0] ss:$52 sps:$4 sm:$0xff]  }
   0x8   :  { %4666 = vmatpush1.bf16.msra.mxu1 %v19714_v7  ;;  %4624 = vmatprep.subr.bf16.mxu0 %v19715_v8  ;;  %v19732_v19 = vld [vmem:[%s30201_s1 + $0x7b8] ss:$52 sps:$4 sm:$0xff]   ;;  %v19735_v21 = vld [vmem:[%s30201_s1 + $0x754] ss:$52 sps:$4 sm:$0xff]   ;;  %v19738_v23 = vld [vmem:[%s30201_s1 + $0x750] ss:$52 sps:$4 sm:$0xff]  }
   0x9   :  { %4667 = vmatprep.subr.bf16.mxu1 %v19717_v9  ;;  %v19739_v24 = vld [vmem:[%s30201_s1 + $0x6c] ss:$52 sps:$4 sm:$0xff]   ;;  %v19743_v26 = vld [vmem:[%s30201_s1 + $0x68] ss:$52 sps:$4 sm:$0xff]   ;;  %v19745_v28 = vld [vmem:[%s30201_s1 + $0x4] ss:$52 sps:$4 sm:$0xff]  }
   0xa   :  { %v19741_v25 = vld [vmem:[%s30201_s1 + $0x6ec] ss:$52 sps:$4 sm:$0xff]   ;;  %v19744_v27 = vld [vmem:[%s30201_s1 + $0x6e8] ss:$52 sps:$4 sm:$0xff]   ;;  %v19747_v29 = vld [vmem:[%s30201_s1 + $0x684] ss:$52 sps:$4 sm:$0xff]  }
   0xb   :  { %4625 = vmatpush1.bf16.msra.mxu0 %v19719_v10  ;;  %v19749_v30 = vld [vmem:[%s30201_s1] ss:$52 sps:$4 sm:$0xff]   ;;  %v19751_v32 = vld [vmem:[%s30201_s1 + $0x61c] ss:$52 sps:$4 sm:$0xff]   ;;  %v19755_v34 = vld [vmem:[%s30201_s1 + $0x618] ss:$52 sps:$4 sm:$0xff]  }
   0xc   :  { %4668 = vmatpush1.bf16.msra.mxu1 %v19720_v11  ;;  %4626 = vmatprep.subr.bf16.mxu0 %v19721_v12  ;;  %v19750_v31 = vld [vmem:[%s30201_s1 + $0x680] ss:$52 sps:$4 sm:$0xff]   ;;  %v19753_v33 = vld [vmem:[%s30201_s1 + $0xc9c] ss:$52 sps:$4 sm:$0xff]   ;;  %v19756_v35 = vld [vmem:[%s30201_s1 + $0xc98] ss:$52 sps:$4 sm:$0xff]  }
   0xd   :  { %4669 = vmatprep.subr.bf16.mxu1 %v19723_v13  ;;  %v19757_v36 = vld [vmem:[%s30201_s1 + $0x5b4] ss:$52 sps:$4 sm:$0xff]   ;;  %v19761_v38 = vld [vmem:[%s30201_s1 + $0x5b0] ss:$52 sps:$4 sm:$0xff]   ;;  %v19763_v40 = vld [vmem:[%s30201_s1 + $0x54c] ss:$52 sps:$4 sm:$0xff]  }
   0xe   :  { %v19759_v37 = vld [vmem:[%s30201_s1 + $0xc34] ss:$52 sps:$4 sm:$0xff]   ;;  %v19762_v39 = vld [vmem:[%s30201_s1 + $0xc30] ss:$52 sps:$4 sm:$0xff]   ;;  %v19765_v41 = vld [vmem:[%s30201_s1 + $0xbcc] ss:$52 sps:$4 sm:$0xff]  }
   0xf   :  { %4627 = vmatpush1.bf16.msra.mxu0 %v19725_v14  ;;  %v19767_v42 = vld [vmem:[%s30201_s1 + $0x548] ss:$52 sps:$4 sm:$0xff]   ;;  %v19769_v44 = vld [vmem:[%s30201_s1 + $0x4e4] ss:$52 sps:$4 sm:$0xff]   ;;  %v19773_v46 = vld [vmem:[%s30201_s1 + $0x4e0] ss:$52 sps:$4 sm:$0xff]  }
  0x10   :  { %4670 = vmatpush1.bf16.msra.mxu1 %v19726_v15  ;;  %4628 = vmatprep.subr.bf16.mxu0 %v19727_v16  ;;  %v19768_v43 = vld [vmem:[%s30201_s1 + $0xbc8] ss:$52 sps:$4 sm:$0xff]   ;;  %v19771_v45 = vld [vmem:[%s30201_s1 + $0xb64] ss:$52 sps:$4 sm:$0xff]   ;;  %v19774_v47 = vld [vmem:[%s30201_s1 + $0xb60] ss:$52 sps:$4 sm:$0xff]  }
  0x11   :  { %4671 = vmatprep.subr.bf16.mxu1 %v19729_v17  ;;  %v19775_v48 = vld [vmem:[%s30201_s1 + $0x47c] ss:$52 sps:$4 sm:$0xff]   ;;  %v22998_v49 = vld [vmem:[%s30202_s0 + $0x4] ss:$28 sps:$4 sm:$0xff]   ;;  %v23003_v50 = vld [vmem:[%s30202_s0 + $0xc] ss:$28 sps:$4 sm:$0xff]  }
  0x12   :  { %v19777_v51 = vld [vmem:[%s30201_s1 + $0xafc] ss:$52 sps:$4 sm:$0xff]   ;;  %4652 = vmatprep.mubr.bf16.mxu0 %v22998_v49  ;;  %4695 = vmatprep.mubr.bf16.mxu1 %v23003_v50  ;;  %v19779_v52 = vld [vmem:[%s30201_s1 + $0x478] ss:$52 sps:$4 sm:$0xff]   ;;  %v19781_v54 = vld [vmem:[%s30201_s1 + $0x414] ss:$52 sps:$4 sm:$0xff]  }
  0x13   :  { %4629 = vmatpush1.bf16.msra.mxu0 %v19731_v18  ;;  %v19780_v53 = vld [vmem:[%s30201_s1 + $0xaf8] ss:$52 sps:$4 sm:$0xff]   ;;  %v19783_v55 = vld [vmem:[%s30201_s1 + $0xa94] ss:$52 sps:$4 sm:$0xff]   ;;  %v19785_v56 = vld [vmem:[%s30201_s1 + $0x410] ss:$52 sps:$4 sm:$0xff]  }
  0x14   :  { %4672 = vmatpush1.bf16.msra.mxu1 %v19732_v19  ;;  %4630 = vmatprep.subr.bf16.mxu0 %v19733_v20  ;;  %v19786_v57 = vld [vmem:[%s30201_s1 + $0xa90] ss:$52 sps:$4 sm:$0xff]   ;;  %v19787_v58 = vld [vmem:[%s30201_s1 + $0x3ac] ss:$52 sps:$4 sm:$0xff]   ;;  %v19791_v60 = vld [vmem:[%s30201_s1 + $0x3a8] ss:$52 sps:$4 sm:$0xff]  }
  0x15   :  { %4673 = vmatprep.subr.bf16.mxu1 %v19735_v21  ;;  %v19789_v59 = vld [vmem:[%s30201_s1 + $0xa2c] ss:$52 sps:$4 sm:$0xff]   ;;  %v19792_v61 = vld [vmem:[%s30201_s1 + $0xa28] ss:$52 sps:$4 sm:$0xff]   ;;  %v19793_v62 = vld [vmem:[%s30201_s1 + $0x344] ss:$52 sps:$4 sm:$0xff]  }
  0x16   :  { %v19795_v63 = vld [vmem:[%s30201_s1 + $0x9c4] ss:$52 sps:$4 sm:$0xff]   ;;  %v19797_v0 = vld [vmem:[%s30201_s1 + $0x340] ss:$52 sps:$4 sm:$0xff]   ;;  %v19806_v2 = vld [vmem:[%s30201_s1 + $0xfdc] ss:$52 sps:$4 sm:$0xff]  }
  0x17   :  { %4631 = vmatpush1.bf16.msra.mxu0 %v19737_v22  ;;  %v19798_v1 = vld [vmem:[%s30201_s1 + $0x9c0] ss:$52 sps:$4 sm:$0xff]   ;;  %v19809_v3 = vld [vmem:[%s30201_s1 + $0x165c] ss:$52 sps:$4 sm:$0xff]   ;;  %v19804_v5 = vld [vmem:[%s30201_s1 + $0xfd8] ss:$52 sps:$4 sm:$0xff]  }
  0x18   :  { %4674 = vmatpush1.bf16.msra.mxu1 %v19738_v23  ;;  %4632 = vmatprep.subr.bf16.mxu0 %v19739_v24  ;;  %v23061_v4 = vld [vmem:[%s30202_s0] ss:$28 sps:$4 sm:$0xff]   ;;  %v19807_v6 = vld [vmem:[%s30201_s1 + $0x1658] ss:$52 sps:$4 sm:$0xff]   ;;  %v23072_v7 = vld [vmem:[%s30202_s0 + $0x8] ss:$28 sps:$4 sm:$0xff]  }
  0x19   :  { %4675 = vmatprep.subr.bf16.mxu1 %v19741_v25  ;;  %v19813_v8 = vld [vmem:[%s30201_s1 + $0xf74] ss:$52 sps:$4 sm:$0xff]   ;;  %v19811_v10 = vld [vmem:[%s30201_s1 + $0xf70] ss:$52 sps:$4 sm:$0xff]   ;;  %v19819_v12 = vld [vmem:[%s30201_s1 + $0xf0c] ss:$52 sps:$4 sm:$0xff]  }
  0x1a   :  { %v19816_v9 = vld [vmem:[%s30201_s1 + $0x15f4] ss:$52 sps:$4 sm:$0xff]   ;;  %v19814_v11 = vld [vmem:[%s30201_s1 + $0x15f0] ss:$52 sps:$4 sm:$0xff]   ;;  %v19822_v13 = vld [vmem:[%s30201_s1 + $0x158c] ss:$52 sps:$4 sm:$0xff]  }
  0x1b   :  { %4633 = vmatpush1.bf16.msra.mxu0 %v19743_v26  ;;  %v30214_v14 = vmov 0   ;;  %v19817_v15 = vld [vmem:[%s30201_s1 + $0xf08] ss:$52 sps:$4 sm:$0xff]   ;;  %v19825_v17 = vld [vmem:[%s30201_s1 + $0xea4] ss:$52 sps:$4 sm:$0xff]  }
  0x1c   :  { %4676 = vmatpush1.bf16.msra.mxu1 %v19744_v27  ;;  %4634 = vmatprep.subr.bf16.mxu0 %v19745_v28  ;;  %v19820_v16 = vld [vmem:[%s30201_s1 + $0x1588] ss:$52 sps:$4 sm:$0xff]   ;;  %v19828_v18 = vld [vmem:[%s30201_s1 + $0x1524] ss:$52 sps:$4 sm:$0xff]   ;;  %v19823_v19 = vld [vmem:[%s30201_s1 + $0xea0] ss:$52 sps:$4 sm:$0xff]  }
  0x1d   :  { %4677 = vmatprep.subr.bf16.mxu1 %v19747_v29  ;;  %v19826_v20 = vld [vmem:[%s30201_s1 + $0x1520] ss:$52 sps:$4 sm:$0xff]   ;;  %v19831_v21 = vld [vmem:[%s30201_s1 + $0xe3c] ss:$52 sps:$4 sm:$0xff]   ;;  %v19829_v23 = vld [vmem:[%s30201_s1 + $0xe38] ss:$52 sps:$4 sm:$0xff]  }
  0x1e   :  { %v19834_v22 = vld [vmem:[%s30201_s1 + $0x14bc] ss:$52 sps:$4 sm:$0xff]   ;;  %v19832_v24 = vld [vmem:[%s30201_s1 + $0x14b8] ss:$52 sps:$4 sm:$0xff]   ;;  %v19837_v25 = vld [vmem:[%s30201_s1 + $0xdd4] ss:$52 sps:$4 sm:$0xff]  }
  0x1f   :  { %4635 = vmatpush1.bf16.msra.mxu0 %v19749_v30  ;;  %v19840_v26 = vld [vmem:[%s30201_s1 + $0x1454] ss:$52 sps:$4 sm:$0xff]   ;;  %v19835_v27 = vld [vmem:[%s30201_s1 + $0xdd0] ss:$52 sps:$4 sm:$0xff]   ;;  %v19843_v29 = vld [vmem:[%s30201_s1 + $0xd6c] ss:$52 sps:$4 sm:$0xff]  }
  0x20   :  { %4678 = vmatpush1.bf16.msra.mxu1 %v19750_v31  ;;  %4636 = vmatprep.subr.bf16.mxu0 %v19751_v32  ;;  %v19838_v28 = vld [vmem:[%s30201_s1 + $0x1450] ss:$52 sps:$4 sm:$0xff]   ;;  %v19846_v30 = vld [vmem:[%s30201_s1 + $0x13ec] ss:$52 sps:$4 sm:$0xff]   ;;  %v19841_v31 = vld [vmem:[%s30201_s1 + $0xd68] ss:$52 sps:$4 sm:$0xff]  }
  0x21   :  { %4679 = vmatprep.subr.bf16.mxu1 %v19753_v33  ;;  %v19844_v32 = vld [vmem:[%s30201_s1 + $0x13e8] ss:$52 sps:$4 sm:$0xff]   ;;  %v19849_v33 = vld [vmem:[%s30201_s1 + $0xd04] ss:$52 sps:$4 sm:$0xff]  }
  0x23   :  { %4637 = vmatpush2.bf16.msra.mxu0 %v19755_v34  ;;  %v19852_v34 = vld [vmem:[%s30201_s1 + $0x1384] ss:$52 sps:$4 sm:$0xff]  }
  0x24   :  { %4680 = vmatpush2.bf16.msra.mxu1 %v19756_v35  ;;  %4638 = vmatprep.subr.bf16.mxu0 %v19757_v36  ;;  %v23158_v35 = vld [vmem:[%s30202_s0 + $0x14] ss:$28 sps:$4 sm:$0xff]  }
  0x25   :  { %4681 = vmatprep.subr.bf16.mxu1 %v19759_v37  ;;  %v19847_v36 = vld [vmem:[%s30201_s1 + $0xd00] ss:$52 sps:$4 sm:$0xff]  }
  0x26   :  { %v19850_v37 = vld [vmem:[%s30201_s1 + $0x1380] ss:$52 sps:$4 sm:$0xff]  }
  0x27   :  { %4639 = vmatpush2.bf16.msra.mxu0 %v19761_v38  ;;  %v19855_v38 = vld [vmem:[%s30201_s1 + $0x131c] ss:$52 sps:$4 sm:$0xff]  }
  0x28   :  { %4682 = vmatpush2.bf16.msra.mxu1 %v19762_v39  ;;  %4640 = vmatprep.subr.bf16.mxu0 %v19763_v40  ;;  %v19858_v39 = vld [vmem:[%s30201_s1 + $0x2e4] ss:$52 sps:$4 sm:$0xff]  }
  0x29   :  { %4683 = vmatprep.subr.bf16.mxu1 %v19765_v41  ;;  %v19853_v40 = vld [vmem:[%s30201_s1 + $0x1318] ss:$52 sps:$4 sm:$0xff]  }
  0x2a   :  { %v23179_v41 = vld [vmem:[%s30202_s0 + $0x18] ss:$28 sps:$4 sm:$0xff]  }
  0x2b   :  { %4641 = vmatpush2.bf16.msra.mxu0 %v19767_v42  ;;  %v19856_v42 = vld [vmem:[%s30201_s1 + $0x2e0] ss:$52 sps:$4 sm:$0xff]  }
  0x2c   :  { %4684 = vmatpush2.bf16.msra.mxu1 %v19768_v43  ;;  %4642 = vmatprep.subr.bf16.mxu0 %v19769_v44  ;;  %v19862_v43 = vld [vmem:[%s30201_s1 + $0x12b4] ss:$52 sps:$4 sm:$0xff]   ;;  %v19865_v44 = vld [vmem:[%s30201_s1 + $0x27c] ss:$52 sps:$4 sm:$0xff]  }
  0x2d   :  { %4685 = vmatprep.subr.bf16.mxu1 %v19771_v45  ;;  %v19860_v45 = vld [vmem:[%s30201_s1 + $0x12b0] ss:$52 sps:$4 sm:$0xff]  }
  0x2f   :  { %4643 = vmatpush2.bf16.msra.mxu0 %v19773_v46  ;;  %v19863_v46 = vld [vmem:[%s30201_s1 + $0x278] ss:$52 sps:$4 sm:$0xff]  }
  0x30   :  { %4686 = vmatpush2.bf16.msra.mxu1 %v19774_v47  ;;  %4644 = vmatprep.subr.bf16.mxu0 %v19775_v48  ;;  %v19868_v47 = vld [vmem:[%s30201_s1 + $0x124c] ss:$52 sps:$4 sm:$0xff]   ;;  %v19871_v48 = vld [vmem:[%s30201_s1 + $0x214] ss:$52 sps:$4 sm:$0xff]  }
  0x31   :  { %4687 = vmatprep.subr.bf16.mxu1 %v19777_v51  ;;  %v19866_v51 = vld [vmem:[%s30201_s1 + $0x1248] ss:$52 sps:$4 sm:$0xff]  }
  0x33   :  { %4645 = vmatpush2.bf16.msra.mxu0 %v19779_v52  ;;  %v19869_v52 = vld [vmem:[%s30201_s1 + $0x210] ss:$52 sps:$4 sm:$0xff]  }
  0x34   :  { %4688 = vmatpush2.bf16.msra.mxu1 %v19780_v53  ;;  %4646 = vmatprep.subr.bf16.mxu0 %v19781_v54  ;;  %v19874_v53 = vld [vmem:[%s30201_s1 + $0x11e4] ss:$52 sps:$4 sm:$0xff]   ;;  %v19872_v54 = vld [vmem:[%s30201_s1 + $0x11e0] ss:$52 sps:$4 sm:$0xff]  }
  0x35   :  { %4689 = vmatprep.subr.bf16.mxu1 %v19783_v55  ;;  %v19875_v55 = vld [vmem:[%s30201_s1 + $0x1a8] ss:$52 sps:$4 sm:$0xff]  }
  0x37   :  { %4647 = vmatpush2.bf16.msra.mxu0 %v19785_v56  ;;  %v19880_v56 = vld [vmem:[%s30201_s1 + $0x117c] ss:$52 sps:$4 sm:$0xff]  }
  0x38   :  { %4690 = vmatpush2.bf16.msra.mxu1 %v19786_v57  ;;  %4648 = vmatprep.subr.bf16.mxu0 %v19787_v58  ;;  %v19883_v57 = vld [vmem:[%s30201_s1 + $0x144] ss:$52 sps:$4 sm:$0xff]  }
  0x39   :  { %4691 = vmatprep.subr.bf16.mxu1 %v19789_v59  ;;  %v19878_v58 = vld [vmem:[%s30201_s1 + $0x1178] ss:$52 sps:$4 sm:$0xff]   ;;  %v19881_v59 = vld [vmem:[%s30201_s1 + $0x140] ss:$52 sps:$4 sm:$0xff]  }
  0x3b   :  { %4649 = vmatpush2.bf16.msra.mxu0 %v19791_v60  ;;  %v19886_v60 = vld [vmem:[%s30201_s1 + $0x1114] ss:$52 sps:$4 sm:$0xff]  }
  0x3c   :  { %4692 = vmatpush2.bf16.msra.mxu1 %v19792_v61  ;;  %4650 = vmatprep.subr.bf16.mxu0 %v19793_v62  ;;  %v19889_v61 = vld [vmem:[%s30201_s1 + $0xdc] ss:$52 sps:$4 sm:$0xff]  }
  0x3d   :  { %4693 = vmatprep.subr.bf16.mxu1 %v19795_v63  ;;  %v19884_v62 = vld [vmem:[%s30201_s1 + $0x1110] ss:$52 sps:$4 sm:$0xff]   ;;  %v19887_v63 = vld [vmem:[%s30201_s1 + $0xd8] ss:$52 sps:$4 sm:$0xff]  }
  0x3f   :  { %4651 = vmatpush2.bf16.msra.mxu0 %v19797_v0  ;;  %v19892_v0 = vld [vmem:[%s30201_s1 + $0x10ac] ss:$52 sps:$4 sm:$0xff]  }
  0x40   :  { %4694 = vmatpush2.bf16.msra.mxu1 %v19798_v1  ;;  %4706 = vmatprep.subr.bf16.mxu0 %v19806_v2  ;;  %v19895_v1 = vld [vmem:[%s30201_s1 + $0x74] ss:$52 sps:$4 sm:$0xff]  }
  0x41   :  { %4749 = vmatprep.subr.bf16.mxu1 %v19809_v3  ;;  %v19890_v2 = vld [vmem:[%s30201_s1 + $0x10a8] ss:$52 sps:$4 sm:$0xff]   ;;  %v19893_v3 = vld [vmem:[%s30201_s1 + $0x70] ss:$52 sps:$4 sm:$0xff]  }
  0x42   :  { %4653 = vmatmul.mubr.bf16.vlgmr.msra.gmra.mxu0 %v23061_v4 }
  0x43   :  { %4696 = vmatmul.mubr.bf16.vlgmr.msra.gmra.mxu1 %v23072_v7  ;;  %4707 = vmatpush1.bf16.msra.mxu0 %v19804_v5  ;;  %v19898_v5 = vld [vmem:[%s30201_s1 + $0x1044] ss:$52 sps:$4 sm:$0xff]  }
  0x44   :  { %4750 = vmatpush1.bf16.msra.mxu1 %v19807_v6  ;;  %4708 = vmatprep.subr.bf16.mxu0 %v19813_v8  ;;  %v19901_v6 = vld [vmem:[%s30201_s1 + $0xc] ss:$52 sps:$4 sm:$0xff]  }
  0x45   :  { %4751 = vmatprep.subr.bf16.mxu1 %v19816_v9  ;;  %4781 = vmatprep.mubr.bf16.mxu1 %v30214_v14  ;;  %v19896_v8 = vld [vmem:[%s30201_s1 + $0x1040] ss:$52 sps:$4 sm:$0xff]   ;;  %v19899_v9 = vld [vmem:[%s30201_s1 + $0x8] ss:$52 sps:$4 sm:$0xff]  }
  0x46   :  { %4738 = vmatprep.mubr.bf16.mxu0 %v23158_v35 }
  0x47   :  { %4709 = vmatpush1.bf16.msra.mxu0 %v19811_v10  ;;  %v19907_v10 = vld [vmem:[%s30201_s1 + $0x624] ss:$52 sps:$4 sm:$0xff]  }
  0x48   :  { %4752 = vmatpush1.bf16.msra.mxu1 %v19814_v11  ;;  %4710 = vmatprep.subr.bf16.mxu0 %v19819_v12  ;;  %v19910_v11 = vld [vmem:[%s30201_s1 + $0x964] ss:$52 sps:$4 sm:$0xff]   ;;  %v23279_v12 = vld [vmem:[%s30202_s0 + $0x10] ss:$28 sps:$4 sm:$0xff]  }
  0x49   :  { %4753 = vmatprep.subr.bf16.mxu1 %v19822_v13  ;;  %v19905_v13 = vld [vmem:[%s30201_s1 + $0x620] ss:$52 sps:$4 sm:$0xff]  }
  0x4b   :  { %4711 = vmatpush1.bf16.msra.mxu0 %v19817_v15  ;;  %v19908_v15 = vld [vmem:[%s30201_s1 + $0x960] ss:$52 sps:$4 sm:$0xff]  }
  0x4c   :  { %4754 = vmatpush1.bf16.msra.mxu1 %v19820_v16  ;;  %4712 = vmatprep.subr.bf16.mxu0 %v19825_v17  ;;  %v19913_v16 = vld [vmem:[%s30201_s1 + $0x5bc] ss:$52 sps:$4 sm:$0xff]  }
  0x4d   :  { %4755 = vmatprep.subr.bf16.mxu1 %v19828_v18  ;;  %v19916_v17 = vld [vmem:[%s30201_s1 + $0x8fc] ss:$52 sps:$4 sm:$0xff]   ;;  %v19911_v18 = vld [vmem:[%s30201_s1 + $0x5b8] ss:$52 sps:$4 sm:$0xff]  }
  0x4f   :  { %4713 = vmatpush1.bf16.msra.mxu0 %v19823_v19  ;;  %v19914_v19 = vld [vmem:[%s30201_s1 + $0x8f8] ss:$52 sps:$4 sm:$0xff]  }
  0x50   :  { %4756 = vmatpush1.bf16.msra.mxu1 %v19826_v20  ;;  %4714 = vmatprep.subr.bf16.mxu0 %v19831_v21  ;;  %v19919_v20 = vld [vmem:[%s30201_s1 + $0x554] ss:$52 sps:$4 sm:$0xff]  }
  0x51   :  { %4757 = vmatprep.subr.bf16.mxu1 %v19834_v22  ;;  %v19922_v21 = vld [vmem:[%s30201_s1 + $0x894] ss:$52 sps:$4 sm:$0xff]   ;;  %v19917_v22 = vld [vmem:[%s30201_s1 + $0x550] ss:$52 sps:$4 sm:$0xff]  }
  0x53   :  { %4715 = vmatpush1.bf16.msra.mxu0 %v19829_v23  ;;  %v19920_v23 = vld [vmem:[%s30201_s1 + $0x890] ss:$52 sps:$4 sm:$0xff]  }
  0x54   :  { %4758 = vmatpush1.bf16.msra.mxu1 %v19832_v24  ;;  %4716 = vmatprep.subr.bf16.mxu0 %v19837_v25  ;;  %v19925_v24 = vld [vmem:[%s30201_s1 + $0x4ec] ss:$52 sps:$4 sm:$0xff]   ;;  %v19923_v25 = vld [vmem:[%s30201_s1 + $0x4e8] ss:$52 sps:$4 sm:$0xff]  }
  0x55   :  { %4759 = vmatprep.subr.bf16.mxu1 %v19840_v26  ;;  %v19926_v26 = vld [vmem:[%s30201_s1 + $0x828] ss:$52 sps:$4 sm:$0xff]  }
  0x57   :  { %4717 = vmatpush1.bf16.msra.mxu0 %v19835_v27  ;;  %v19931_v27 = vld [vmem:[%s30201_s1 + $0x484] ss:$52 sps:$4 sm:$0xff]  }
  0x58   :  { %4760 = vmatpush1.bf16.msra.mxu1 %v19838_v28  ;;  %4718 = vmatprep.subr.bf16.mxu0 %v19843_v29  ;;  %v19934_v28 = vld [vmem:[%s30201_s1 + $0x7c4] ss:$52 sps:$4 sm:$0xff]   ;;  %v19929_v29 = vld [vmem:[%s30201_s1 + $0x480] ss:$52 sps:$4 sm:$0xff]  }
  0x59   :  { %4761 = vmatprep.subr.bf16.mxu1 %v19846_v30  ;;  %v19932_v30 = vld [vmem:[%s30201_s1 + $0x7c0] ss:$52 sps:$4 sm:$0xff]  }
  0x5b   :  { %4719 = vmatpush1.bf16.msra.mxu0 %v19841_v31  ;;  %v19937_v31 = vld [vmem:[%s30201_s1 + $0x41c] ss:$52 sps:$4 sm:$0xff]  }
  0x5c   :  { %4762 = vmatpush1.bf16.msra.mxu1 %v19844_v32  ;;  %4720 = vmatprep.subr.bf16.mxu0 %v19849_v33  ;;  %v19940_v32 = vld [vmem:[%s30201_s1 + $0x75c] ss:$52 sps:$4 sm:$0xff]   ;;  %v19935_v33 = vld [vmem:[%s30201_s1 + $0x418] ss:$52 sps:$4 sm:$0xff]  }
  0x5d   :  { %4763 = vmatprep.subr.bf16.mxu1 %v19852_v34  ;;  %v19938_v34 = vld [vmem:[%s30201_s1 + $0x758] ss:$52 sps:$4 sm:$0xff]  }
  0x5f   :  { %4721 = vmatpush1.bf16.msra.mxu0 %v19847_v36  ;;  %v19943_v36 = vld [vmem:[%s30201_s1 + $0x3b4] ss:$52 sps:$4 sm:$0xff]  }
  0x60   :  { %4764 = vmatpush1.bf16.msra.mxu1 %v19850_v37  ;;  %4722 = vmatprep.subr.bf16.mxu0 %v19855_v38  ;;  %v19946_v37 = vld [vmem:[%s30201_s1 + $0x6f4] ss:$52 sps:$4 sm:$0xff]   ;;  %v19941_v38 = vld [vmem:[%s30201_s1 + $0x3b0] ss:$52 sps:$4 sm:$0xff]  }
  0x61   :  { %4792 = vmatprep.subr.bf16.mxu1 %v19858_v39  ;;  %v19944_v39 = vld [vmem:[%s30201_s1 + $0x6f0] ss:$52 sps:$4 sm:$0xff]  }
  0x63   :  { %4782 = vmatmul.mubr.bf16.vlgmr.msra.gmra.mxu1 %v23179_v41  ;;  %4723 = vmatpush2.bf16.msra.mxu0 %v19853_v40  ;;  %v19949_v40 = vld [vmem:[%s30201_s1 + $0x34c] ss:$52 sps:$4 sm:$0xff]  }
  0x64   :  { %4793 = vmatpush1.bf16.msra.mxu1 %v19856_v42  ;;  %4724 = vmatprep.subr.bf16.mxu0 %v19862_v43  ;;  %v19952_v42 = vld [vmem:[%s30201_s1 + $0x68c] ss:$52 sps:$4 sm:$0xff]   ;;  %v19947_v43 = vld [vmem:[%s30201_s1 + $0x348] ss:$52 sps:$4 sm:$0xff]  }
  0x65   :  { %4794 = vmatprep.subr.bf16.mxu1 %v19865_v44  ;;  %4824 = vmatprep.mubr.bf16.mxu1 %v22998_v49  ;;  %v19877_v49 = vld [vmem:[%s30201_s1 + $0x1ac] ss:$52 sps:$4 sm:$0xff]   ;;  %v19950_v44 = vld [vmem:[%s30201_s1 + $0x688] ss:$52 sps:$4 sm:$0xff]  }
  0x67   :  { %4725 = vmatpush2.bf16.msra.mxu0 %v19860_v45  ;;  %v19955_v45 = vld [vmem:[%s30201_s1 + $0xca4] ss:$52 sps:$4 sm:$0xff]  }
  0x68   :  { %4795 = vmatpush1.bf16.msra.mxu1 %v19863_v46  ;;  %4726 = vmatprep.subr.bf16.mxu0 %v19868_v47  ;;  %v19958_v46 = vld [vmem:[%s30201_s1 + $0xfe4] ss:$52 sps:$4 sm:$0xff]   ;;  %v19953_v47 = vld [vmem:[%s30201_s1 + $0xca0] ss:$52 sps:$4 sm:$0xff]  }
  0x69   :  { %4796 = vmatprep.subr.bf16.mxu1 %v19871_v48  ;;  %v19956_v48 = vld [vmem:[%s30201_s1 + $0xfe0] ss:$52 sps:$4 sm:$0xff]  }
  0x6b   :  { %4727 = vmatpush2.bf16.msra.mxu0 %v19866_v51  ;;  %v19961_v51 = vld [vmem:[%s30201_s1 + $0xc3c] ss:$52 sps:$4 sm:$0xff]  }
  0x6c   :  { %4797 = vmatpush1.bf16.msra.mxu1 %v19869_v52  ;;  %4728 = vmatprep.subr.bf16.mxu0 %v19874_v53  ;;  %v19964_v52 = vld [vmem:[%s30201_s1 + $0xf7c] ss:$52 sps:$4 sm:$0xff]   ;;  %v19959_v53 = vld [vmem:[%s30201_s1 + $0xc38] ss:$52 sps:$4 sm:$0xff]  }
  0x6d   :  { %4798 = vmatprep.subr.bf16.mxu1 %v19877_v49  ;;  %v19962_v49 = vld [vmem:[%s30201_s1 + $0xf78] ss:$52 sps:$4 sm:$0xff]  }
  0x6f   :  { %4729 = vmatpush2.bf16.msra.mxu0 %v19872_v54  ;;  %v19967_v54 = vld [vmem:[%s30201_s1 + $0xbd4] ss:$52 sps:$4 sm:$0xff]  }
  0x70   :  { %4799 = vmatpush1.bf16.msra.mxu1 %v19875_v55  ;;  %4730 = vmatprep.subr.bf16.mxu0 %v19880_v56  ;;  %v19965_v55 = vld [vmem:[%s30201_s1 + $0xbd0] ss:$52 sps:$4 sm:$0xff]  }
  0x71   :  { %4800 = vmatprep.subr.bf16.mxu1 %v19883_v57  ;;  %v19968_v56 = vld [vmem:[%s30201_s1 + $0xf10] ss:$52 sps:$4 sm:$0xff]   ;;  %v19973_v57 = vld [vmem:[%s30201_s1 + $0xb6c] ss:$52 sps:$4 sm:$0xff]  }
  0x73   :  { %4731 = vmatpush2.bf16.msra.mxu0 %v19878_v58  ;;  %v19971_v58 = vld [vmem:[%s30201_s1 + $0xb68] ss:$52 sps:$4 sm:$0xff]  }
  0x74   :  { %4801 = vmatpush1.bf16.msra.mxu1 %v19881_v59  ;;  %4732 = vmatprep.subr.bf16.mxu0 %v19886_v60  ;;  %v19974_v59 = vld [vmem:[%s30201_s1 + $0xea8] ss:$52 sps:$4 sm:$0xff]   ;;  %v19979_v60 = vld [vmem:[%s30201_s1 + $0xb04] ss:$52 sps:$4 sm:$0xff]  }
  0x75   :  { %4802 = vmatprep.subr.bf16.mxu1 %v19889_v61  ;;  %v19982_v61 = vld [vmem:[%s30201_s1 + $0xe44] ss:$52 sps:$4 sm:$0xff]  }
  0x77   :  { %4733 = vmatpush2.bf16.msra.mxu0 %v19884_v62  ;;  %v19977_v62 = vld [vmem:[%s30201_s1 + $0xb00] ss:$52 sps:$4 sm:$0xff]  }
  0x78   :  { %4803 = vmatpush1.bf16.msra.mxu1 %v19887_v63  ;;  %4734 = vmatprep.subr.bf16.mxu0 %v19892_v0  ;;  %v19980_v63 = vld [vmem:[%s30201_s1 + $0xe40] ss:$52 sps:$4 sm:$0xff]   ;;  %v19985_v0 = vld [vmem:[%s30201_s1 + $0xa9c] ss:$52 sps:$4 sm:$0xff]  }
  0x79   :  { %4804 = vmatprep.subr.bf16.mxu1 %v19895_v1  ;;  %v19988_v1 = vld [vmem:[%s30201_s1 + $0xddc] ss:$52 sps:$4 sm:$0xff]  }
  0x7b   :  { %4735 = vmatpush2.bf16.msra.mxu0 %v19890_v2  ;;  %v19983_v2 = vld [vmem:[%s30201_s1 + $0xa98] ss:$52 sps:$4 sm:$0xff]  }
  0x7c   :  { %4805 = vmatpush1.bf16.msra.mxu1 %v19893_v3  ;;  %4736 = vmatprep.subr.bf16.mxu0 %v19898_v5  ;;  %v19986_v3 = vld [vmem:[%s30201_s1 + $0xdd8] ss:$52 sps:$4 sm:$0xff]   ;;  %v19991_v5 = vld [vmem:[%s30201_s1 + $0xa34] ss:$52 sps:$4 sm:$0xff]  }
  0x7d   :  { %4806 = vmatprep.subr.bf16.mxu1 %v19901_v6  ;;  %v19994_v6 = vld [vmem:[%s30201_s1 + $0xd74] ss:$52 sps:$4 sm:$0xff]  }
  0x7f   :  { %4737 = vmatpush2.bf16.msra.mxu0 %v19896_v8  ;;  %v19989_v8 = vld [vmem:[%s30201_s1 + $0xa30] ss:$52 sps:$4 sm:$0xff]  }
  0x80   :  { %4807 = vmatpush1.bf16.msra.mxu1 %v19899_v9  ;;  %4835 = vmatprep.subr.bf16.mxu0 %v19910_v11  ;;  %v19992_v9 = vld [vmem:[%s30201_s1 + $0xd70] ss:$52 sps:$4 sm:$0xff]   ;;  %v20000_v11 = vld [vmem:[%s30201_s1 + $0xd0c] ss:$52 sps:$4 sm:$0xff]  }
  0x81   :  { %4808 = vmatprep.subr.bf16.mxu1 %v19907_v10  ;;  %v19997_v10 = vld [vmem:[%s30201_s1 + $0x9cc] ss:$52 sps:$4 sm:$0xff]  }
  0x82   :  { %4739 = vmatmul.mubr.bf16.vlgmr.msra.gmra.mxu0 %v23279_v12 }
  0x83   :  { %4836 = vmatpush1.bf16.msra.mxu0 %v19908_v15  ;;  %4867 = vmatprep.mubr.bf16.mxu0 %v23003_v50  ;;  %v19928_v50 = vld [vmem:[%s30201_s1 + $0x82c] ss:$52 sps:$4 sm:$0xff]   ;;  %v19998_v15 = vld [vmem:[%s30201_s1 + $0xd08] ss:$52 sps:$4 sm:$0xff]  }
  0x84   :  { %4809 = vmatpush2.bf16.msra.mxu1 %v19905_v13  ;;  %4837 = vmatprep.subr.bf16.mxu0 %v19916_v17  ;;  %v19995_v13 = vld [vmem:[%s30201_s1 + $0x9c8] ss:$52 sps:$4 sm:$0xff]   ;;  %v20006_v17 = vld [vmem:[%s30201_s1 + $0x1664] ss:$52 sps:$4 sm:$0xff]  }
  0x85   :  { %4810 = vmatprep.subr.bf16.mxu1 %v19913_v16  ;;  %v20003_v16 = vld [vmem:[%s30201_s1 + $0x1324] ss:$52 sps:$4 sm:$0xff]  }
  0x87   :  { %4838 = vmatpush1.bf16.msra.mxu0 %v19914_v19  ;;  %v20004_v19 = vld [vmem:[%s30201_s1 + $0x1660] ss:$52 sps:$4 sm:$0xff]  }
  0x88   :  { %4811 = vmatpush2.bf16.msra.mxu1 %v19911_v18  ;;  %4839 = vmatprep.subr.bf16.mxu0 %v19922_v21  ;;  %v20001_v18 = vld [vmem:[%s30201_s1 + $0x1320] ss:$52 sps:$4 sm:$0xff]   ;;  %v20012_v21 = vld [vmem:[%s30201_s1 + $0x15fc] ss:$52 sps:$4 sm:$0xff]  }
  0x89   :  { %4812 = vmatprep.subr.bf16.mxu1 %v19919_v20  ;;  %v20009_v20 = vld [vmem:[%s30201_s1 + $0x12bc] ss:$52 sps:$4 sm:$0xff]  }
  0x8b   :  { %4840 = vmatpush1.bf16.msra.mxu0 %v19920_v23  ;;  %v20010_v23 = vld [vmem:[%s30201_s1 + $0x15f8] ss:$52 sps:$4 sm:$0xff]  }
  0x8c   :  { %4813 = vmatpush2.bf16.msra.mxu1 %v19917_v22  ;;  %4841 = vmatprep.subr.bf16.mxu0 %v19928_v50  ;;  %v20007_v22 = vld [vmem:[%s30201_s1 + $0x12b8] ss:$52 sps:$4 sm:$0xff]   ;;  %v20013_v50 = vld [vmem:[%s30201_s1 + $0x1250] ss:$52 sps:$4 sm:$0xff]  }
  0x8d   :  { %4814 = vmatprep.subr.bf16.mxu1 %v19925_v24  ;;  %v20015_v24 = vld [vmem:[%s30201_s1 + $0x1254] ss:$52 sps:$4 sm:$0xff]  }
  0x8f   :  { %4842 = vmatpush1.bf16.msra.mxu0 %v19926_v26  ;;  %v20021_v26 = vld [vmem:[%s30201_s1 + $0x11ec] ss:$52 sps:$4 sm:$0xff]  }
  0x90   :  { %4815 = vmatpush2.bf16.msra.mxu1 %v19923_v25  ;;  %4843 = vmatprep.subr.bf16.mxu0 %v19934_v28  ;;  %v20016_v25 = vld [vmem:[%s30201_s1 + $0x1590] ss:$52 sps:$4 sm:$0xff]   ;;  %v20019_v28 = vld [vmem:[%s30201_s1 + $0x11e8] ss:$52 sps:$4 sm:$0xff]  }
  0x91   :  { %4816 = vmatprep.subr.bf16.mxu1 %v19931_v27  ;;  %v20024_v27 = vld [vmem:[%s30201_s1 + $0x152c] ss:$52 sps:$4 sm:$0xff]  }
  0x93   :  { %4844 = vmatpush1.bf16.msra.mxu0 %v19932_v30  ;;  %v20027_v30 = vld [vmem:[%s30201_s1 + $0x1184] ss:$52 sps:$4 sm:$0xff]  }
  0x94   :  { %4817 = vmatpush2.bf16.msra.mxu1 %v19929_v29  ;;  %4845 = vmatprep.subr.bf16.mxu0 %v19940_v32  ;;  %v20022_v29 = vld [vmem:[%s30201_s1 + $0x1528] ss:$52 sps:$4 sm:$0xff]   ;;  %v20025_v32 = vld [vmem:[%s30201_s1 + $0x1180] ss:$52 sps:$4 sm:$0xff]  }
  0x95   :  { %4818 = vmatprep.subr.bf16.mxu1 %v19937_v31  ;;  %v20030_v31 = vld [vmem:[%s30201_s1 + $0x14c4] ss:$52 sps:$4 sm:$0xff]  }
  0x97   :  { %4846 = vmatpush1.bf16.msra.mxu0 %v19938_v34  ;;  %v20033_v34 = vld [vmem:[%s30201_s1 + $0x111c] ss:$52 sps:$4 sm:$0xff]  }
  0x98   :  { %4819 = vmatpush2.bf16.msra.mxu1 %v19935_v33  ;;  %4847 = vmatprep.subr.bf16.mxu0 %v19946_v37  ;;  %v20028_v33 = vld [vmem:[%s30201_s1 + $0x14c0] ss:$52 sps:$4 sm:$0xff]   ;;  %v20031_v37 = vld [vmem:[%s30201_s1 + $0x1118] ss:$52 sps:$4 sm:$0xff]  }
  0x99   :  { %4820 = vmatprep.subr.bf16.mxu1 %v19943_v36  ;;  %v20036_v36 = vld [vmem:[%s30201_s1 + $0x145c] ss:$52 sps:$4 sm:$0xff]  }
  0x9b   :  { %4848 = vmatpush1.bf16.msra.mxu0 %v19944_v39  ;;  %v20039_v39 = vld [vmem:[%s30201_s1 + $0x10b4] ss:$52 sps:$4 sm:$0xff]  }
  0x9c   :  { %4821 = vmatpush2.bf16.msra.mxu1 %v19941_v38  ;;  %4849 = vmatprep.subr.bf16.mxu0 %v19952_v42  ;;  %v20034_v38 = vld [vmem:[%s30201_s1 + $0x1458] ss:$52 sps:$4 sm:$0xff]   ;;  %v20037_v42 = vld [vmem:[%s30201_s1 + $0x10b0] ss:$52 sps:$4 sm:$0xff]  }
  0x9d   :  { %4822 = vmatprep.subr.bf16.mxu1 %v19949_v40  ;;  %v20042_v40 = vld [vmem:[%s30201_s1 + $0x13f4] ss:$52 sps:$4 sm:$0xff]  }
  0x9f   :  { %4850 = vmatpush1.bf16.msra.mxu0 %v19950_v44  ;;  %v20045_v44 = vld [vmem:[%s30201_s1 + $0x104c] ss:$52 sps:$4 sm:$0xff]  }
  0xa0   :  { %4823 = vmatpush2.bf16.msra.mxu1 %v19947_v43  ;;  %4851 = vmatprep.subr.bf16.mxu0 %v19955_v45  ;;  %v20040_v43 = vld [vmem:[%s30201_s1 + $0x13f0] ss:$52 sps:$4 sm:$0xff]   ;;  %v20048_v45 = vld [vmem:[%s30201_s1 + $0x138c] ss:$52 sps:$4 sm:$0xff]  }
  0xa1   :  { %4878 = vmatprep.subr.bf16.mxu1 %v19958_v46  ;;  %v20043_v46 = vld [vmem:[%s30201_s1 + $0x1048] ss:$52 sps:$4 sm:$0xff]  }
  0xa3   :  { %4825 = vmatmul.mubr.bf16.vlgmr.msra.gmra.mxu1 %v23061_v4  ;;  %4852 = vmatpush2.bf16.msra.mxu0 %v19953_v47  ;;  %v19970_v4 = vld [vmem:[%s30201_s1 + $0xf14] ss:$52 sps:$4 sm:$0xff]  }
  0xa4   :  { %4879 = vmatpush1.bf16.msra.mxu1 %v19956_v48  ;;  %4853 = vmatprep.subr.bf16.mxu0 %v19961_v51  ;;  %v20046_v47 = vld [vmem:[%s30201_s1 + $0x1388] ss:$52 sps:$4 sm:$0xff]   ;;  %v20051_v48 = vld [vmem:[%s30201_s1 + $0x2ec] ss:$52 sps:$4 sm:$0xff]  }
  0xa5   :  { %4880 = vmatprep.subr.bf16.mxu1 %v19964_v52  ;;  %4910 = vmatprep.mubr.bf16.mxu1 %v23158_v35  ;;  %v19976_v35 = vld [vmem:[%s30201_s1 + $0xeac] ss:$52 sps:$4 sm:$0xff]   ;;  %v20049_v52 = vld [vmem:[%s30201_s1 + $0x2e8] ss:$52 sps:$4 sm:$0xff]  }
  0xa6   :  { %v20054_v51 = vld [vmem:[%s30201_s1 + $0x96c] ss:$52 sps:$4 sm:$0xff]  }
  0xa7   :  { %4854 = vmatpush2.bf16.msra.mxu0 %v19959_v53  ;;  %v20052_v53 = vld [vmem:[%s30201_s1 + $0x968] ss:$52 sps:$4 sm:$0xff]  }
  0xa8   :  { %4881 = vmatpush1.bf16.msra.mxu1 %v19962_v49  ;;  %4855 = vmatprep.subr.bf16.mxu0 %v19967_v54  ;;  %v20057_v49 = vld [vmem:[%s30201_s1 + $0x284] ss:$52 sps:$4 sm:$0xff]  }
  0xa9   :  { %4882 = vmatprep.subr.bf16.mxu1 %v19970_v4  ;;  %v20060_v54 = vld [vmem:[%s30201_s1 + $0x904] ss:$52 sps:$4 sm:$0xff]   ;;  %v20055_v4 = vld [vmem:[%s30201_s1 + $0x280] ss:$52 sps:$4 sm:$0xff]  }
  0xab   :  { %4856 = vmatpush2.bf16.msra.mxu0 %v19965_v55  ;;  %v20058_v55 = vld [vmem:[%s30201_s1 + $0x900] ss:$52 sps:$4 sm:$0xff]  }
  0xac   :  { %4883 = vmatpush1.bf16.msra.mxu1 %v19968_v56  ;;  %4857 = vmatprep.subr.bf16.mxu0 %v19973_v57  ;;  %v20063_v56 = vld [vmem:[%s30201_s1 + $0x21c] ss:$52 sps:$4 sm:$0xff]   ;;  %v22778_v57 = vld [vmem:[%s30202_s0 + $0xc] ss:$28 sps:$4 sm:$0xff]  }
  0xad   :  { %4884 = vmatprep.subr.bf16.mxu1 %v19976_v35  ;;  %v20061_v35 = vld [vmem:[%s30201_s1 + $0x218] ss:$52 sps:$4 sm:$0xff]  }
  0xaf   :  { %4858 = vmatpush2.bf16.msra.mxu0 %v19971_v58  ;;  %v20064_v58 = vld [vmem:[%s30201_s1 + $0x898] ss:$52 sps:$4 sm:$0xff]  }
  0xb0   :  { %4885 = vmatpush1.bf16.msra.mxu1 %v19974_v59  ;;  %4859 = vmatprep.subr.bf16.mxu0 %v19979_v60  ;;  %v20069_v59 = vld [vmem:[%s30201_s1 + $0x1b4] ss:$52 sps:$4 sm:$0xff]  }
  0xb1   :  { %4886 = vmatprep.subr.bf16.mxu1 %v19982_v61  ;;  %v20072_v60 = vld [vmem:[%s30201_s1 + $0x834] ss:$52 sps:$4 sm:$0xff]   ;;  %v20067_v61 = vld [vmem:[%s30201_s1 + $0x1b0] ss:$52 sps:$4 sm:$0xff]  }
  0xb3   :  { %4860 = vmatpush2.bf16.msra.mxu0 %v19977_v62  ;;  %v20070_v62 = vld [vmem:[%s30201_s1 + $0x830] ss:$52 sps:$4 sm:$0xff]  }
  0xb4   :  { %4887 = vmatpush1.bf16.msra.mxu1 %v19980_v63  ;;  %4861 = vmatprep.subr.bf16.mxu0 %v19985_v0  ;;  %v20075_v63 = vld [vmem:[%s30201_s1 + $0x14c] ss:$52 sps:$4 sm:$0xff]  }
  0xb5   :  { %4888 = vmatprep.subr.bf16.mxu1 %v19988_v1  ;;  %v20078_v0 = vld [vmem:[%s30201_s1 + $0x7cc] ss:$52 sps:$4 sm:$0xff]   ;;  %v20073_v1 = vld [vmem:[%s30201_s1 + $0x148] ss:$52 sps:$4 sm:$0xff]  }
  0xb7   :  { %4862 = vmatpush2.bf16.msra.mxu0 %v19983_v2  ;;  %v20076_v2 = vld [vmem:[%s30201_s1 + $0x7c8] ss:$52 sps:$4 sm:$0xff]  }
  0xb8   :  { %4889 = vmatpush1.bf16.msra.mxu1 %v19986_v3  ;;  %4863 = vmatprep.subr.bf16.mxu0 %v19991_v5  ;;  %v20081_v3 = vld [vmem:[%s30201_s1 + $0xe4] ss:$52 sps:$4 sm:$0xff]  }
  0xb9   :  { %4890 = vmatprep.subr.bf16.mxu1 %v19994_v6  ;;  %v20084_v5 = vld [vmem:[%s30201_s1 + $0x764] ss:$52 sps:$4 sm:$0xff]   ;;  %v20079_v6 = vld [vmem:[%s30201_s1 + $0xe0] ss:$52 sps:$4 sm:$0xff]  }
  0xbb   :  { %4864 = vmatpush2.bf16.msra.mxu0 %v19989_v8  ;;  %v20082_v8 = vld [vmem:[%s30201_s1 + $0x760] ss:$52 sps:$4 sm:$0xff]  }
  0xbc   :  { %4891 = vmatpush1.bf16.msra.mxu1 %v19992_v9  ;;  %4865 = vmatprep.subr.bf16.mxu0 %v19997_v10  ;;  %v20087_v9 = vld [vmem:[%s30201_s1 + $0x7c] ss:$52 sps:$4 sm:$0xff]   ;;  %v823_v10 = vlaneseq }
  0xbd   :  { %4892 = vmatprep.subr.bf16.mxu1 %v20000_v11  ;;  %v20090_v11 = vld [vmem:[%s30201_s1 + $0x6fc] ss:$52 sps:$4 sm:$0xff]  }
  0xbf   :  { %4866 = vmatpush2.bf16.msra.mxu0 %v19995_v13  ;;  %v20085_v13 = vld [vmem:[%s30201_s1 + $0x78] ss:$52 sps:$4 sm:$0xff]  }
  0xc0   :  { %4893 = vmatpush1.bf16.msra.mxu1 %v19998_v15  ;;  %4921 = vmatprep.subr.bf16.mxu0 %v20006_v17  ;;  %v20088_v15 = vld [vmem:[%s30201_s1 + $0x6f8] ss:$52 sps:$4 sm:$0xff]   ;;  %v23667_v17 = vshrl.u32 %v823_v10, 7  ;;  %v23816_v10 = vld [vmem:[%s30202_s0] ss:$28 sps:$4 sm:$0xff]  }
  0xc1   :  { %4894 = vmatprep.subr.bf16.mxu1 %v20003_v16  ;;  %v20093_v16 = vld [vmem:[%s30201_s1 + $0x14] ss:$52 sps:$4 sm:$0xff]  }
  0xc2   :  { %4868 = vmatmul.mubr.bf16.vlgmr.msra.gmra.mxu0 %v23072_v7  ;;  %v20018_v7 = vld [vmem:[%s30201_s1 + $0x1594] ss:$52 sps:$4 sm:$0xff]  }
  0xc3   :  { %4922 = vmatpush1.bf16.msra.mxu0 %v20004_v19  ;;  %4953 = vmatprep.mubr.bf16.mxu0 %v30214_v14  ;;  %v20091_v19 = vld [vmem:[%s30201_s1 + $0x10] ss:$52 sps:$4 sm:$0xff]  }
  0xc4   :  { %4895 = vmatpush2.bf16.msra.mxu1 %v20001_v18  ;;  %4923 = vmatprep.subr.bf16.mxu0 %v20012_v21  ;;  %v20096_v18 = vld [vmem:[%s30201_s1 + $0x694] ss:$52 sps:$4 sm:$0xff]   ;;  %v819_v21 = vld [vmem:[%s30203_s2] sm:$0xff] }
  0xc5   :  { %4896 = vmatprep.subr.bf16.mxu1 %v20009_v20  ;;  %v20094_v20 = vld [vmem:[%s30201_s1 + $0x690] ss:$52 sps:$4 sm:$0xff]  }
  0xc7   :  { %4924 = vmatpush1.bf16.msra.mxu0 %v20010_v23  ;;  %v20099_v23 = vld [vmem:[%s30201_s1 + $0x62c] ss:$52 sps:$4 sm:$0xff]  }
  0xc8   :  { %4897 = vmatpush2.bf16.msra.mxu1 %v20007_v22  ;;  %4925 = vmatprep.subr.bf16.mxu0 %v20018_v7  ;;  %v23682_v22 = vsub.s32 0, %v23667_v17  ;;  %v20097_v7 = vld [vmem:[%s30201_s1 + $0x628] ss:$52 sps:$4 sm:$0xff]  }
  0xc9   :  { %4898 = vmatprep.subr.bf16.mxu1 %v20015_v24  ;;  %v20102_v24 = vld [vmem:[%s30201_s1 + $0xcac] ss:$52 sps:$4 sm:$0xff]  }
  0xca   :  { %30219 = vst [vmem:[#allocation2_spill] sm:$0xff] %v23682_v22 }
  0xcb   :  { %4926 = vmatpush1.bf16.msra.mxu0 %v20016_v25  ;;  %v826_v25 = vrot.slane %v819_v21, %v23682_v22  ;;  %v20168_v21 = vld [vmem:[%s30201_s1 + $0x1534] ss:$52 sps:$4 sm:$0xff]  }
  0xcc   :  { %4899 = vmatpush2.bf16.msra.mxu1 %v20013_v50  ;;  %4927 = vmatprep.subr.bf16.mxu0 %v20024_v27  ;;  %v20100_v50 = vld [vmem:[%s30201_s1 + $0xca8] ss:$52 sps:$4 sm:$0xff]   ;;  %v20108_v27 = vld [vmem:[%s30201_s1 + $0xc44] ss:$52 sps:$4 sm:$0xff]  }
  0xcd   :  { %4900 = vmatprep.subr.bf16.mxu1 %v20021_v26  ;;  %v20105_v26 = vld [vmem:[%s30201_s1 + $0x5c4] ss:$52 sps:$4 sm:$0xff]  }
  0xcf   :  { %4928 = vmatpush1.bf16.msra.mxu0 %v20022_v29 }
  0xd0   :  { %4901 = vmatpush2.bf16.msra.mxu1 %v20019_v28  ;;  %4929 = vmatprep.subr.bf16.mxu0 %v20030_v31  ;;  %v20106_v31 = vld [vmem:[%s30201_s1 + $0xc40] ss:$52 sps:$4 sm:$0xff]  }
  0xd1   :  { %4902 = vmatprep.subr.bf16.mxu1 %v20027_v30  ;;  %v20103_v30 = vld [vmem:[%s30201_s1 + $0x5c0] ss:$52 sps:$4 sm:$0xff]  }
  0xd3   :  { %4930 = vmatpush1.bf16.msra.mxu0 %v20028_v33  ;;  %v20111_v33 = vld [vmem:[%s30201_s1 + $0x55c] ss:$52 sps:$4 sm:$0xff]  }
  0xd4   :  { %4903 = vmatpush2.bf16.msra.mxu1 %v20025_v32  ;;  %4931 = vmatprep.subr.bf16.mxu0 %v20036_v36 }
  0xd5   :  { %4904 = vmatprep.subr.bf16.mxu1 %v20033_v34 }
  0xd7   :  { %4932 = vmatpush1.bf16.msra.mxu0 %v20034_v38 }
  0xd8   :  { %4905 = vmatpush2.bf16.msra.mxu1 %v20031_v37  ;;  %4933 = vmatprep.subr.bf16.mxu0 %v20042_v40  ;;  %v20114_v37 = vld [vmem:[%s30201_s1 + $0xbdc] ss:$52 sps:$4 sm:$0xff]  }
  0xd9   :  { %4906 = vmatprep.subr.bf16.mxu1 %v20039_v39 }
  0xdb   :  { %4934 = vmatpush1.bf16.msra.mxu0 %v20040_v43  ;;  %v20112_v43 = vld [vmem:[%s30201_s1 + $0xbd8] ss:$52 sps:$4 sm:$0xff]  }
  0xdc   :  { %4907 = vmatpush2.bf16.msra.mxu1 %v20037_v42  ;;  %4935 = vmatprep.subr.bf16.mxu0 %v20048_v45  ;;  %v20109_v42 = vld [vmem:[%s30201_s1 + $0x558] ss:$52 sps:$4 sm:$0xff]   ;;  %v20117_v45 = vld [vmem:[%s30201_s1 + $0x4f4] ss:$52 sps:$4 sm:$0xff]  }
  0xdd   :  { %4908 = vmatprep.subr.bf16.mxu1 %v20045_v44 }
  0xdf   :  { %4936 = vmatpush1.bf16.msra.mxu0 %v20046_v47 }
  0xe0   :  { %4909 = vmatpush2.bf16.msra.mxu1 %v20043_v46  ;;  %4964 = vmatprep.subr.bf16.mxu0 %v20051_v48  ;;  %v20120_v46 = vld [vmem:[%s30201_s1 + $0xb74] ss:$52 sps:$4 sm:$0xff]   ;;  %v20115_v48 = vld [vmem:[%s30201_s1 + $0x4f0] ss:$52 sps:$4 sm:$0xff]  }
  0xe1   :  { %5007 = vmatprep.subr.bf16.mxu1 %v20054_v51  ;;  %v20118_v51 = vld [vmem:[%s30201_s1 + $0xb70] ss:$52 sps:$4 sm:$0xff]  }
  0xe2   :  { %4954 = vmatmul.mubr.bf16.vlgmr.msra.gmra.mxu0 %v23179_v41  ;;  %v20066_v41 = vld [vmem:[%s30201_s1 + $0x89c] ss:$52 sps:$4 sm:$0xff]  }
  0xe3   :  { %4911 = vmatmul.mubr.bf16.vlgmr.msra.gmra.mxu1 %v23279_v12  ;;  %4965 = vmatpush1.bf16.msra.mxu0 %v20049_v52  ;;  %v23604_v12 = vld [vmem:[%s30202_s0 + $0x4] ss:$28 sps:$4 sm:$0xff]  }
  0xe4   :  { %5008 = vmatpush1.bf16.msra.mxu1 %v20052_v53  ;;  %4966 = vmatprep.subr.bf16.mxu0 %v20057_v49  ;;  %v20123_v52 = vld [vmem:[%s30201_s1 + $0x48c] ss:$52 sps:$4 sm:$0xff]   ;;  %v20121_v49 = vld [vmem:[%s30201_s1 + $0x488] ss:$52 sps:$4 sm:$0xff]  }
  0xe5   :  { %5009 = vmatprep.subr.bf16.mxu1 %v20060_v54  ;;  %4996 = vmatprep.mubr.bf16.mxu0 %v23604_v12  ;;  %v20126_v53 = vld [vmem:[%s30201_s1 + $0xb0c] ss:$52 sps:$4 sm:$0xff]   ;;  %v20124_v54 = vld [vmem:[%s30201_s1 + $0xb08] ss:$52 sps:$4 sm:$0xff]  }
  0xe6   :  { %5039 = vmatprep.mubr.bf16.mxu1 %v22778_v57  ;;  %v20135_v57 = vld [vmem:[%s30201_s1 + $0x3bc] ss:$52 sps:$4 sm:$0xff]  }
  0xe7   :  { %4967 = vmatpush1.bf16.msra.mxu0 %v20055_v4  ;;  %v20129_v4 = vld [vmem:[%s30201_s1 + $0x424] ss:$52 sps:$4 sm:$0xff]  }
  0xe8   :  { %5010 = vmatpush1.bf16.msra.mxu1 %v20058_v55  ;;  %4968 = vmatprep.subr.bf16.mxu0 %v20063_v56  ;;  %v20132_v55 = vld [vmem:[%s30201_s1 + $0xaa4] ss:$52 sps:$4 sm:$0xff]   ;;  %v20127_v56 = vld [vmem:[%s30201_s1 + $0x420] ss:$52 sps:$4 sm:$0xff]  }
  0xe9   :  { %5011 = vmatprep.subr.bf16.mxu1 %v20066_v41  ;;  %v20130_v41 = vld [vmem:[%s30201_s1 + $0xaa0] ss:$52 sps:$4 sm:$0xff]  }
  0xeb   :  { %4969 = vmatpush1.bf16.msra.mxu0 %v20061_v35  ;;  %v20138_v35 = vld [vmem:[%s30201_s1 + $0xa3c] ss:$52 sps:$4 sm:$0xff]  }
  0xec   :  { %5012 = vmatpush1.bf16.msra.mxu1 %v20064_v58  ;;  %4970 = vmatprep.subr.bf16.mxu0 %v20069_v59  ;;  %v20133_v58 = vld [vmem:[%s30201_s1 + $0x3b8] ss:$52 sps:$4 sm:$0xff]  }
  0xed   :  { %5013 = vmatprep.subr.bf16.mxu1 %v20072_v60  ;;  %v20136_v59 = vld [vmem:[%s30201_s1 + $0xa38] ss:$52 sps:$4 sm:$0xff]   ;;  %v20141_v60 = vld [vmem:[%s30201_s1 + $0x354] ss:$52 sps:$4 sm:$0xff]  }
  0xef   :  { %4971 = vmatpush1.bf16.msra.mxu0 %v20067_v61  ;;  %v20144_v61 = vld [vmem:[%s30201_s1 + $0x9d4] ss:$52 sps:$4 sm:$0xff]  }
  0xf0   :  { %5014 = vmatpush1.bf16.msra.mxu1 %v20070_v62  ;;  %4972 = vmatprep.subr.bf16.mxu0 %v20075_v63  ;;  %v20139_v62 = vld [vmem:[%s30201_s1 + $0x350] ss:$52 sps:$4 sm:$0xff]  }
  0xf1   :  { %5015 = vmatprep.subr.bf16.mxu1 %v20078_v0  ;;  %v20142_v63 = vld [vmem:[%s30201_s1 + $0x9d0] ss:$52 sps:$4 sm:$0xff]   ;;  %v20147_v0 = vld [vmem:[%s30201_s1 + $0xfec] ss:$52 sps:$4 sm:$0xff]  }
  0xf3   :  { %4973 = vmatpush1.bf16.msra.mxu0 %v20073_v1  ;;  %v20150_v1 = vld [vmem:[%s30201_s1 + $0x166c] ss:$52 sps:$4 sm:$0xff]  }
  0xf4   :  { %5016 = vmatpush1.bf16.msra.mxu1 %v20076_v2  ;;  %4974 = vmatprep.subr.bf16.mxu0 %v20081_v3  ;;  %v20145_v2 = vld [vmem:[%s30201_s1 + $0xfe8] ss:$52 sps:$4 sm:$0xff]  }
  0xf5   :  { %5017 = vmatprep.subr.bf16.mxu1 %v20084_v5  ;;  %v20148_v3 = vld [vmem:[%s30201_s1 + $0x1668] ss:$52 sps:$4 sm:$0xff]   ;;  %v20153_v5 = vld [vmem:[%s30201_s1 + $0xf84] ss:$52 sps:$4 sm:$0xff]  }
  0xf7   :  { %4975 = vmatpush1.bf16.msra.mxu0 %v20079_v6  ;;  %v20156_v6 = vld [vmem:[%s30201_s1 + $0x1604] ss:$52 sps:$4 sm:$0xff]  }
  0xf8   :  { %5018 = vmatpush1.bf16.msra.mxu1 %v20082_v8  ;;  %4976 = vmatprep.subr.bf16.mxu0 %v20087_v9  ;;  %v20151_v8 = vld [vmem:[%s30201_s1 + $0xf80] ss:$52 sps:$4 sm:$0xff]  }
  0xf9   :  { %5019 = vmatprep.subr.bf16.mxu1 %v20090_v11  ;;  %v20154_v9 = vld [vmem:[%s30201_s1 + $0x1600] ss:$52 sps:$4 sm:$0xff]   ;;  %v22780_v11 = vld [vmem:[%s30202_s0 + $0x8] ss:$28 sps:$4 sm:$0xff]  }
  0xfb   :  { %4977 = vmatpush1.bf16.msra.mxu0 %v20085_v13  ;;  %v20159_v13 = vld [vmem:[%s30201_s1 + $0xf1c] ss:$52 sps:$4 sm:$0xff]  }
  0xfc   :  { %5020 = vmatpush1.bf16.msra.mxu1 %v20088_v15  ;;  %4978 = vmatprep.subr.bf16.mxu0 %v20093_v16  ;;  %v20162_v15 = vld [vmem:[%s30201_s1 + $0x159c] ss:$52 sps:$4 sm:$0xff]   ;;  %v20157_v16 = vld [vmem:[%s30201_s1 + $0xf18] ss:$52 sps:$4 sm:$0xff]  }
  0xfd   :  { %5021 = vmatprep.subr.bf16.mxu1 %v20096_v18  ;;  %v20160_v18 = vld [vmem:[%s30201_s1 + $0x1598] ss:$52 sps:$4 sm:$0xff]  }
  0xff   :  { %4979 = vmatpush1.bf16.msra.mxu0 %v20091_v19  ;;  %v23838_v19 = vld [vmem:[%s30202_s0 + $0x14] ss:$28 sps:$4 sm:$0xff]  }
 0x100   :  { %5022 = vmatpush1.bf16.msra.mxu1 %v20094_v20  ;;  %4980 = vmatprep.subr.bf16.mxu0 %v20099_v23  ;;  %v20165_v20 = vld [vmem:[%s30201_s1 + $0xeb4] ss:$52 sps:$4 sm:$0xff]   ;;  %v20163_v23 = vld [vmem:[%s30201_s1 + $0xeb0] ss:$52 sps:$4 sm:$0xff]  }
 0x101   :  { %5023 = vmatprep.subr.bf16.mxu1 %v20102_v24  ;;  %v20166_v24 = vld [vmem:[%s30201_s1 + $0x1530] ss:$52 sps:$4 sm:$0xff]  }
 0x102   :  { %v4654_v28 = vpop.f32.mrf.mxu0 }
 0x103   :  { %v4697_v29 = vpop.f32.mrf.mxu1  ;;  %v4655_v32 = vadd.f32 %v4654_v28, %v826_v25  ;;  %4981 = vmatpush2.bf16.msra.mxu0 %v20097_v7  ;;  %v20171_v7 = vld [vmem:[%s30201_s1 + $0xe4c] ss:$52 sps:$4 sm:$0xff]   ;;  %v20180_v28 = vld [vmem:[%s30201_s1 + $0x1464] ss:$52 sps:$4 sm:$0xff]  }
 0x104   :  { %5024 = vmatpush2.bf16.msra.mxu1 %v20100_v50  ;;  %v23712_v34 = vpop.f32.mrf.mxu0  ;;  %4982 = vmatprep.subr.bf16.mxu0 %v20105_v26  ;;  %v20174_v50 = vld [vmem:[%s30201_s1 + $0x14cc] ss:$52 sps:$4 sm:$0xff]   ;;  %v20172_v26 = vld [vmem:[%s30201_s1 + $0x14c8] ss:$52 sps:$4 sm:$0xff]  }
 0x105   :  { %v23714_v36 = vpop.f32.mrf.mxu1  ;;  %5025 = vmatprep.subr.bf16.mxu1 %v20108_v27  ;;  %v23719_v38 = vadd.f32 %v4697_v29, %v4655_v32  ;;  %v20177_v27 = vld [vmem:[%s30201_s1 + $0xde4] ss:$52 sps:$4 sm:$0xff]   ;;  %v20175_v29 = vld [vmem:[%s30201_s1 + $0xde0] ss:$52 sps:$4 sm:$0xff]   ;;  %v20186_v32 = vld [vmem:[%s30201_s1 + $0x13fc] ss:$52 sps:$4 sm:$0xff]  }
 0x106   :  { %v4658_v39 = vpop.f32.mrf.mxu0 }
 0x107   :  { %v4701_v40 = vpop.f32.mrf.mxu1  ;;  %v4659_v44 = vadd.f32 %v4658_v39, %v826_v25  ;;  %4983 = vmatpush2.bf16.msra.mxu0 %v20103_v30  ;;  %v20169_v25 = vld [vmem:[%s30201_s1 + $0xe48] ss:$52 sps:$4 sm:$0xff]   ;;  %v20178_v30 = vld [vmem:[%s30201_s1 + $0x1460] ss:$52 sps:$4 sm:$0xff]  }
 0x108   :  { %5026 = vmatpush2.bf16.msra.mxu1 %v20106_v31  ;;  %4984 = vmatprep.subr.bf16.mxu0 %v20111_v33  ;;  %v20183_v31 = vld [vmem:[%s30201_s1 + $0xd7c] ss:$52 sps:$4 sm:$0xff]   ;;  %v20181_v33 = vld [vmem:[%s30201_s1 + $0xd78] ss:$52 sps:$4 sm:$0xff]   ;;  %v20189_v39 = vld [vmem:[%s30201_s1 + $0xd14] ss:$52 sps:$4 sm:$0xff]  }
 0x109   :  { %5027 = vmatprep.subr.bf16.mxu1 %v20114_v37  ;;  %v23733_v47 = vadd.f32 %v4701_v40, %v4659_v44  ;;  %v20184_v37 = vld [vmem:[%s30201_s1 + $0x13f8] ss:$52 sps:$4 sm:$0xff]   ;;  %v20192_v40 = vld [vmem:[%s30201_s1 + $0x1394] ss:$52 sps:$4 sm:$0xff]  }
 0x10a   :  { %v20195_v44 = vld [vmem:[%s30201_s1 + $0x132c] ss:$52 sps:$4 sm:$0xff]  }
 0x10b   :  { %4985 = vmatpush2.bf16.msra.mxu0 %v20109_v42  ;;  %v20187_v42 = vld [vmem:[%s30201_s1 + $0xd10] ss:$52 sps:$4 sm:$0xff]  }
 0x10c   :  { %5028 = vmatpush2.bf16.msra.mxu1 %v20112_v43  ;;  %4986 = vmatprep.subr.bf16.mxu0 %v20117_v45  ;;  %v20190_v43 = vld [vmem:[%s30201_s1 + $0x1390] ss:$52 sps:$4 sm:$0xff]   ;;  %v20198_v45 = vld [vmem:[%s30201_s1 + $0x2f4] ss:$52 sps:$4 sm:$0xff]  }
 0x10d   :  { %5029 = vmatprep.subr.bf16.mxu1 %v20120_v46  ;;  %v20193_v46 = vld [vmem:[%s30201_s1 + $0x1328] ss:$52 sps:$4 sm:$0xff]  }
 0x10f   :  { %4987 = vmatpush2.bf16.msra.mxu0 %v20115_v48  ;;  %v20196_v48 = vld [vmem:[%s30201_s1 + $0x2f0] ss:$52 sps:$4 sm:$0xff]  }
 0x110   :  { %5030 = vmatpush2.bf16.msra.mxu1 %v20118_v51  ;;  %4988 = vmatprep.subr.bf16.mxu0 %v20123_v52  ;;  %v23913_v51 = vpop.f32.mrf.mxu1  ;;  %v23915_v52 = vpop.f32.mrf.mxu0 }
 0x111   :  { %5031 = vmatprep.subr.bf16.mxu1 %v20126_v53 }
 0x113   :  { %4989 = vmatpush2.bf16.msra.mxu0 %v20121_v49  ;;  %v20201_v49 = vld [vmem:[%s30201_s1 + $0x12c4] ss:$52 sps:$4 sm:$0xff]  }
 0x114   :  { %5032 = vmatpush2.bf16.msra.mxu1 %v20124_v54  ;;  %4990 = vmatprep.subr.bf16.mxu0 %v20129_v4  ;;  %v20204_v54 = vld [vmem:[%s30201_s1 + $0x28c] ss:$52 sps:$4 sm:$0xff]  }
 0x115   :  { %5033 = vmatprep.subr.bf16.mxu1 %v20132_v55  ;;  %v22782_v55 = vld [vmem:[%s30202_s0 + $0x18] ss:$28 sps:$4 sm:$0xff]  }
 0x117   :  { %4991 = vmatpush2.bf16.msra.mxu0 %v20127_v56 }
 0x118   :  { %5034 = vmatpush2.bf16.msra.mxu1 %v20130_v41  ;;  %4992 = vmatprep.subr.bf16.mxu0 %v20135_v57  ;;  %v20199_v41 = vld [vmem:[%s30201_s1 + $0x12c0] ss:$52 sps:$4 sm:$0xff]   ;;  %v20202_v57 = vld [vmem:[%s30201_s1 + $0x288] ss:$52 sps:$4 sm:$0xff]  }
 0x119   :  { %5035 = vmatprep.subr.bf16.mxu1 %v20138_v35 }
 0x11b   :  { %4993 = vmatpush2.bf16.msra.mxu0 %v20133_v58 }
 0x11c   :  { %5036 = vmatpush2.bf16.msra.mxu1 %v20136_v59  ;;  %4994 = vmatprep.subr.bf16.mxu0 %v20141_v60  ;;  %v20210_v59 = vld [vmem:[%s30201_s1 + $0x224] ss:$52 sps:$4 sm:$0xff]  }
 0x11d   :  { %5037 = vmatprep.subr.bf16.mxu1 %v20144_v61 }
 0x11f   :  { %4995 = vmatpush2.bf16.msra.mxu0 %v20139_v62 }
 0x120   :  { %5038 = vmatpush2.bf16.msra.mxu1 %v20142_v63  ;;  %5050 = vmatprep.subr.bf16.mxu0 %v20147_v0  ;;  %v20205_v63 = vld [vmem:[%s30201_s1 + $0x1258] ss:$52 sps:$4 sm:$0xff]   ;;  %v20208_v0 = vld [vmem:[%s30201_s1 + $0x220] ss:$52 sps:$4 sm:$0xff]  }
 0x121   :  { %5093 = vmatprep.subr.bf16.mxu1 %v20150_v1 }
 0x122   :  { %4997 = vmatmul.mubr.bf16.vlgmr.msra.gmra.mxu0 %v23816_v10 }
 0x123   :  { %5040 = vmatmul.mubr.bf16.vlgmr.msra.gmra.mxu1 %v22780_v11  ;;  %5051 = vmatpush1.bf16.msra.mxu0 %v20145_v2  ;;  %v4783_v53 = vpop.f32.mrf.mxu1  ;;  %v20222_v11 = vld [vmem:[%s30201_s1 + $0x154] ss:$52 sps:$4 sm:$0xff]  }
 0x124   :  { %5094 = vmatpush1.bf16.msra.mxu1 %v20148_v3  ;;  %5052 = vmatprep.subr.bf16.mxu0 %v20153_v5  ;;  %v20211_v3 = vld [vmem:[%s30201_s1 + $0x11f0] ss:$52 sps:$4 sm:$0xff]  }
 0x125   :  { %5095 = vmatprep.subr.bf16.mxu1 %v20156_v6  ;;  %5125 = vmatprep.mubr.bf16.mxu1 %v30214_v14  ;;  %v23933_v35 = vpop.f32.mrf.mxu1 }
 0x126   :  { %5082 = vmatprep.mubr.bf16.mxu0 %v23838_v19 }
 0x127   :  { %5053 = vmatpush1.bf16.msra.mxu0 %v20151_v8  ;;  %v4787_v1 = vpop.f32.mrf.mxu1  ;;  %v20214_v8 = vld [vmem:[%s30201_s1 + $0x1b8] ss:$52 sps:$4 sm:$0xff]  }
 0x128   :  { %5096 = vmatpush1.bf16.msra.mxu1 %v20154_v9  ;;  %5054 = vmatprep.subr.bf16.mxu0 %v20159_v13  ;;  %v20219_v9 = vld [vmem:[%s30201_s1 + $0x118c] ss:$52 sps:$4 sm:$0xff]  }
 0x129   :  { %5097 = vmatprep.subr.bf16.mxu1 %v20162_v15  ;;  %v20217_v15 = vld [vmem:[%s30201_s1 + $0x1188] ss:$52 sps:$4 sm:$0xff]  }
 0x12b   :  { %5055 = vmatpush1.bf16.msra.mxu0 %v20157_v16  ;;  %v20220_v16 = vld [vmem:[%s30201_s1 + $0x150] ss:$52 sps:$4 sm:$0xff]  }
 0x12c   :  { %5098 = vmatpush1.bf16.msra.mxu1 %v20160_v18  ;;  %5056 = vmatprep.subr.bf16.mxu0 %v20165_v20  ;;  %v20225_v18 = vld [vmem:[%s30201_s1 + $0x1124] ss:$52 sps:$4 sm:$0xff]   ;;  %v20228_v20 = vld [vmem:[%s30201_s1 + $0xec] ss:$52 sps:$4 sm:$0xff]  }
 0x12d   :  { %5099 = vmatprep.subr.bf16.mxu1 %v20168_v21  ;;  %v20223_v21 = vld [vmem:[%s30201_s1 + $0x1120] ss:$52 sps:$4 sm:$0xff]  }
 0x12f   :  { %5057 = vmatpush1.bf16.msra.mxu0 %v20163_v23  ;;  %v20226_v23 = vld [vmem:[%s30201_s1 + $0xe8] ss:$52 sps:$4 sm:$0xff]  }
 0x130   :  { %5100 = vmatpush1.bf16.msra.mxu1 %v20166_v24  ;;  %5058 = vmatprep.subr.bf16.mxu0 %v20171_v7  ;;  %v20231_v24 = vld [vmem:[%s30201_s1 + $0x10bc] ss:$52 sps:$4 sm:$0xff]   ;;  %v20234_v7 = vld [vmem:[%s30201_s1 + $0x84] ss:$52 sps:$4 sm:$0xff]  }
 0x131   :  { %5101 = vmatprep.subr.bf16.mxu1 %v20174_v50  ;;  %v20229_v50 = vld [vmem:[%s30201_s1 + $0x10b8] ss:$52 sps:$4 sm:$0xff]  }
 0x133   :  { %5059 = vmatpush1.bf16.msra.mxu0 %v20169_v25  ;;  %v20232_v25 = vld [vmem:[%s30201_s1 + $0x80] ss:$52 sps:$4 sm:$0xff]  }
 0x134   :  { %5102 = vmatpush1.bf16.msra.mxu1 %v20172_v26  ;;  %5060 = vmatprep.subr.bf16.mxu0 %v20177_v27  ;;  %v20237_v26 = vld [vmem:[%s30201_s1 + $0x1054] ss:$52 sps:$4 sm:$0xff]   ;;  %v20240_v27 = vld [vmem:[%s30201_s1 + $0x1c] ss:$52 sps:$4 sm:$0xff]  }
 0x135   :  { %5103 = vmatprep.subr.bf16.mxu1 %v20180_v28  ;;  %v20235_v28 = vld [vmem:[%s30201_s1 + $0x1050] ss:$52 sps:$4 sm:$0xff]  }
 0x137   :  { %5061 = vmatpush1.bf16.msra.mxu0 %v20175_v29  ;;  %v20238_v29 = vld [vmem:[%s30201_s1 + $0x18] ss:$52 sps:$4 sm:$0xff]  }
 0x138   :  { %5104 = vmatpush1.bf16.msra.mxu1 %v20178_v30  ;;  %5062 = vmatprep.subr.bf16.mxu0 %v20183_v31  ;;  %v20243_v30 = vld [vmem:[%s30201_s1 + $0x634] ss:$52 sps:$4 sm:$0xff]  }
 0x139   :  { %5105 = vmatprep.subr.bf16.mxu1 %v20186_v32  ;;  %v20246_v31 = vld [vmem:[%s30201_s1 + $0x974] ss:$52 sps:$4 sm:$0xff]   ;;  %v20241_v32 = vld [vmem:[%s30201_s1 + $0x630] ss:$52 sps:$4 sm:$0xff]  }
 0x13b   :  { %5063 = vmatpush1.bf16.msra.mxu0 %v20181_v33  ;;  %v20244_v33 = vld [vmem:[%s30201_s1 + $0x970] ss:$52 sps:$4 sm:$0xff]  }
 0x13c   :  { %5106 = vmatpush1.bf16.msra.mxu1 %v20184_v37  ;;  %5064 = vmatprep.subr.bf16.mxu0 %v20189_v39  ;;  %v20249_v37 = vld [vmem:[%s30201_s1 + $0x5cc] ss:$52 sps:$4 sm:$0xff]  }
 0x13d   :  { %5107 = vmatprep.subr.bf16.mxu1 %v20192_v40  ;;  %v20252_v39 = vld [vmem:[%s30201_s1 + $0x90c] ss:$52 sps:$4 sm:$0xff]   ;;  %v20247_v40 = vld [vmem:[%s30201_s1 + $0x5c8] ss:$52 sps:$4 sm:$0xff]  }
 0x13f   :  { %5065 = vmatpush1.bf16.msra.mxu0 %v20187_v42  ;;  %v20250_v42 = vld [vmem:[%s30201_s1 + $0x908] ss:$52 sps:$4 sm:$0xff]  }
 0x140   :  { %5108 = vmatpush1.bf16.msra.mxu1 %v20190_v43  ;;  %5066 = vmatprep.subr.bf16.mxu0 %v20195_v44  ;;  %v24040_v43 = vld [vmem:[%s30202_s0 + $0x10] ss:$28 sps:$4 sm:$0xff]   ;;  %v20255_v44 = vld [vmem:[%s30201_s1 + $0x564] ss:$52 sps:$4 sm:$0xff]  }
 0x141   :  { %5136 = vmatprep.subr.bf16.mxu1 %v20198_v45  ;;  %v20258_v45 = vld [vmem:[%s30201_s1 + $0x8a4] ss:$52 sps:$4 sm:$0xff]  }
 0x142   :  { %v4740_v4 = vpop.f32.mrf.mxu0 }
 0x143   :  { %5126 = vmatmul.mubr.bf16.vlgmr.msra.gmra.mxu1 %v22782_v55  ;;  %v4741_v56 = vadd.f32 %v4740_v4, %v23719_v38  ;;  %5067 = vmatpush2.bf16.msra.mxu0 %v20193_v46  ;;  %v20207_v38 = vld [vmem:[%s30201_s1 + $0x125c] ss:$52 sps:$4 sm:$0xff]   ;;  %v20253_v46 = vld [vmem:[%s30201_s1 + $0x560] ss:$52 sps:$4 sm:$0xff]   ;;  %v20259_v4 = vld [vmem:[%s30201_s1 + $0x4f8] ss:$52 sps:$4 sm:$0xff]  }
 0x144   :  { %5137 = vmatpush1.bf16.msra.mxu1 %v20196_v48  ;;  %v23935_v58 = vpop.f32.mrf.mxu0  ;;  %5068 = vmatprep.subr.bf16.mxu0 %v20201_v49  ;;  %v20256_v48 = vld [vmem:[%s30201_s1 + $0x8a0] ss:$52 sps:$4 sm:$0xff]   ;;  %v20261_v49 = vld [vmem:[%s30201_s1 + $0x4fc] ss:$52 sps:$4 sm:$0xff]   ;;  %v20262_v55 = vld [vmem:[%s30201_s1 + $0x838] ss:$52 sps:$4 sm:$0xff]  }
 0x145   :  { %5138 = vmatprep.subr.bf16.mxu1 %v20204_v54  ;;  %v4784_v60 = vadd.f32 %v4783_v53, %v4741_v56  ;;  %5168 = vmatprep.mubr.bf16.mxu1 %v23604_v12  ;;  %v20213_v12 = vld [vmem:[%s30201_s1 + $0x11f4] ss:$52 sps:$4 sm:$0xff]   ;;  %v20264_v54 = vld [vmem:[%s30201_s1 + $0x83c] ss:$52 sps:$4 sm:$0xff]  }
 0x146   :  { %v4744_v61 = vpop.f32.mrf.mxu0  ;;  %v24058_v53 = vld [vmem:[%s30202_s0 + $0xc] ss:$28 sps:$4 sm:$0xff]  }
 0x147   :  { %v4745_v62 = vadd.f32 %v4744_v61, %v23733_v47  ;;  %5069 = vmatpush2.bf16.msra.mxu0 %v20199_v41  ;;  %v20216_v47 = vld [vmem:[%s30201_s1 + $0x1bc] ss:$52 sps:$4 sm:$0xff]   ;;  %v5816_v5 = vmax.f32 %v4784_v60, 0.0  ;;  %v20267_v56 = vld [vmem:[%s30201_s1 + $0x494] ss:$52 sps:$4 sm:$0xff]  }
 0x148   :  { %5139 = vmatpush1.bf16.msra.mxu1 %v20202_v57  ;;  %5070 = vmatprep.subr.bf16.mxu0 %v20207_v38  ;;  %v20270_v41 = vld [vmem:[%s30201_s1 + $0x7d4] ss:$52 sps:$4 sm:$0xff]   ;;  %v20265_v57 = vld [vmem:[%s30201_s1 + $0x490] ss:$52 sps:$4 sm:$0xff]   ;;  %v20276_v60 = vld [vmem:[%s30201_s1 + $0x76c] ss:$52 sps:$4 sm:$0xff]  }
 0x149   :  { %5140 = vmatprep.subr.bf16.mxu1 %v20210_v59  ;;  %v4788_v2 = vadd.f32 %v4787_v1, %v4745_v62  ;;  %v20268_v38 = vld [vmem:[%s30201_s1 + $0x7d0] ss:$52 sps:$4 sm:$0xff]   ;;  %v20273_v59 = vld [vmem:[%s30201_s1 + $0x42c] ss:$52 sps:$4 sm:$0xff]   ;;  %v20271_v61 = vld [vmem:[%s30201_s1 + $0x428] ss:$52 sps:$4 sm:$0xff]  }
 0x14a   :  { %v20274_v62 = vld [vmem:[%s30201_s1 + $0x768] ss:$52 sps:$4 sm:$0xff]   ;;  %v20277_v1 = vld [vmem:[%s30201_s1 + $0x3c0] ss:$52 sps:$4 sm:$0xff]  }
 0x14b   :  { %v5829_v6 = vmax.f32 %v4788_v2, 0.0  ;;  %5071 = vmatpush2.bf16.msra.mxu0 %v20205_v63  ;;  %v20279_v63 = vld [vmem:[%s30201_s1 + $0x3c4] ss:$52 sps:$4 sm:$0xff]   ;;  %v20288_v2 = vld [vmem:[%s30201_s1 + $0x69c] ss:$52 sps:$4 sm:$0xff]  }
 0x14c   :  { %5141 = vmatpush1.bf16.msra.mxu1 %v20208_v0  ;;  %5072 = vmatprep.subr.bf16.mxu0 %v20213_v12  ;;  %v20282_v0 = vld [vmem:[%s30201_s1 + $0x704] ss:$52 sps:$4 sm:$0xff]   ;;  %v20280_v12 = vld [vmem:[%s30201_s1 + $0x700] ss:$52 sps:$4 sm:$0xff]  }
 0x14d   :  { %5142 = vmatprep.subr.bf16.mxu1 %v20216_v47  ;;  %v23969_v13 = vpack.c.bf16 %v5829_v6, %v5816_v5  ;;  %v20285_v47 = vld [vmem:[%s30201_s1 + $0x35c] ss:$52 sps:$4 sm:$0xff]   ;;  %v24118_v5 = vpop.f32.mrf.mxu1  ;;  %v20283_v6 = vld [vmem:[%s30201_s1 + $0x358] ss:$52 sps:$4 sm:$0xff]  }
 0x14f   :  { %5073 = vmatpush2.bf16.msra.mxu0 %v20211_v3  ;;  %v24116_v3 = vsub.s32 2, %v23667_v17 }
 0x150   :  { %5143 = vmatpush1.bf16.msra.mxu1 %v20214_v8  ;;  %5074 = vmatprep.subr.bf16.mxu0 %v20219_v9  ;;  %v20286_v8 = vld [vmem:[%s30201_s1 + $0x698] ss:$52 sps:$4 sm:$0xff]  }
 0x151   :  { %5144 = vmatprep.subr.bf16.mxu1 %v20222_v11  ;;  %30220 = vst [vmem:[#allocation3_spill] sm:$0xff] %v24116_v3  ;;  %v20291_v11 = vld [vmem:[%s30201_s1 + $0xcb4] ss:$52 sps:$4 sm:$0xff]  }
 0x153   :  { %5075 = vmatpush2.bf16.msra.mxu0 %v20217_v15  ;;  %v20294_v15 = vld [vmem:[%s30201_s1 + $0xff4] ss:$52 sps:$4 sm:$0xff]  }
 0x154   :  { %5145 = vmatpush1.bf16.msra.mxu1 %v20220_v16  ;;  %5076 = vmatprep.subr.bf16.mxu0 %v20225_v18  ;;  %v24135_v16 = vld [vmem:[%s30203_s2] sm:$0xff] }
 0x155   :  { %5146 = vmatprep.subr.bf16.mxu1 %v20228_v20  ;;  %v834_v18 = vrot.slane %v24135_v16, %v24116_v3  ;;  %v20289_v20 = vld [vmem:[%s30201_s1 + $0xcb0] ss:$52 sps:$4 sm:$0xff]  }
 0x157   :  { %5077 = vmatpush2.bf16.msra.mxu0 %v20223_v21  ;;  %v20292_v21 = vld [vmem:[%s30201_s1 + $0xff0] ss:$52 sps:$4 sm:$0xff]  }
 0x158   :  { %5147 = vmatpush1.bf16.msra.mxu1 %v20226_v23  ;;  %5078 = vmatprep.subr.bf16.mxu0 %v20231_v24  ;;  %v24145_v23 = vpop.f32.mrf.mxu0 }
 0x159   :  { %5148 = vmatprep.subr.bf16.mxu1 %v20234_v7  ;;  %v20297_v7 = vld [vmem:[%s30201_s1 + $0xc4c] ss:$52 sps:$4 sm:$0xff]  }
 0x15b   :  { %5079 = vmatpush2.bf16.msra.mxu0 %v20229_v50  ;;  %v20300_v50 = vld [vmem:[%s30201_s1 + $0xf8c] ss:$52 sps:$4 sm:$0xff]  }
 0x15c   :  { %5149 = vmatpush1.bf16.msra.mxu1 %v20232_v25  ;;  %5080 = vmatprep.subr.bf16.mxu0 %v20237_v26  ;;  %v20295_v26 = vld [vmem:[%s30201_s1 + $0xc48] ss:$52 sps:$4 sm:$0xff]  }
 0x15d   :  { %5150 = vmatprep.subr.bf16.mxu1 %v20240_v27  ;;  %v20298_v27 = vld [vmem:[%s30201_s1 + $0xf88] ss:$52 sps:$4 sm:$0xff]  }
 0x15f   :  { %5081 = vmatpush2.bf16.msra.mxu0 %v20235_v28 }
 0x160   :  { %5151 = vmatpush1.bf16.msra.mxu1 %v20238_v29  ;;  %5179 = vmatprep.subr.bf16.mxu0 %v20246_v31 }
 0x161   :  { %5152 = vmatprep.subr.bf16.mxu1 %v20243_v30 }
 0x162   :  { %5083 = vmatmul.mubr.bf16.vlgmr.msra.gmra.mxu0 %v24040_v43 }
 0x163   :  { %5180 = vmatpush1.bf16.msra.mxu0 %v20244_v33  ;;  %5211 = vmatprep.mubr.bf16.mxu0 %v24058_v53  ;;  %v4826_v9 = vpop.f32.mrf.mxu1  ;;  %v20306_v33 = vld [vmem:[%s30201_s1 + $0xf24] ss:$52 sps:$4 sm:$0xff]  }
 0x164   :  { %5153 = vmatpush2.bf16.msra.mxu1 %v20241_v32  ;;  %5181 = vmatprep.subr.bf16.mxu0 %v20252_v39  ;;  %v4827_v25 = vadd.f32 %v4826_v9, %v834_v18  ;;  %v20303_v32 = vld [vmem:[%s30201_s1 + $0xbe4] ss:$52 sps:$4 sm:$0xff]   ;;  %v20304_v39 = vld [vmem:[%s30201_s1 + $0xf20] ss:$52 sps:$4 sm:$0xff]  }
 0x165   :  { %5154 = vmatprep.subr.bf16.mxu1 %v20249_v37  ;;  %v24147_v24 = vpop.f32.mrf.mxu1 }
 0x167   :  { %5182 = vmatpush1.bf16.msra.mxu0 %v20250_v42  ;;  %v4830_v30 = vpop.f32.mrf.mxu1 }
 0x168   :  { %5155 = vmatpush2.bf16.msra.mxu1 %v20247_v40  ;;  %5183 = vmatprep.subr.bf16.mxu0 %v20258_v45  ;;  %v4831_v37 = vadd.f32 %v4830_v30, %v834_v18  ;;  %v20312_v45 = vld [vmem:[%s30201_s1 + $0xebc] ss:$52 sps:$4 sm:$0xff]   ;;  %v20354_v30 = vld [vmem:[%s30201_s1 + $0x15a4] ss:$52 sps:$4 sm:$0xff]  }
 0x169   :  { %5156 = vmatprep.subr.bf16.mxu1 %v20255_v44  ;;  %v20309_v44 = vld [vmem:[%s30201_s1 + $0xb7c] ss:$52 sps:$4 sm:$0xff]  }
 0x16a   :  { %v20343_v18 = vld [vmem:[%s30201_s1 + $0x12c8] ss:$52 sps:$4 sm:$0xff]  }
 0x16b   :  { %5184 = vmatpush1.bf16.msra.mxu0 %v20256_v48  ;;  %v20315_v48 = vld [vmem:[%s30201_s1 + $0xb14] ss:$52 sps:$4 sm:$0xff]  }
 0x16c   :  { %5157 = vmatpush2.bf16.msra.mxu1 %v20253_v46  ;;  %5185 = vmatprep.subr.bf16.mxu0 %v20264_v54  ;;  %v20310_v46 = vld [vmem:[%s30201_s1 + $0xeb8] ss:$52 sps:$4 sm:$0xff]   ;;  %v20313_v54 = vld [vmem:[%s30201_s1 + $0xb10] ss:$52 sps:$4 sm:$0xff]  }
 0x16d   :  { %5158 = vmatprep.subr.bf16.mxu1 %v20261_v49  ;;  %v20318_v49 = vld [vmem:[%s30201_s1 + $0xe54] ss:$52 sps:$4 sm:$0xff]  }
 0x16f   :  { %5186 = vmatpush1.bf16.msra.mxu0 %v20262_v55  ;;  %v20321_v55 = vld [vmem:[%s30201_s1 + $0xaac] ss:$52 sps:$4 sm:$0xff]  }
 0x170   :  { %5159 = vmatpush2.bf16.msra.mxu1 %v20259_v4  ;;  %5187 = vmatprep.subr.bf16.mxu0 %v20270_v41  ;;  %v20316_v4 = vld [vmem:[%s30201_s1 + $0xe50] ss:$52 sps:$4 sm:$0xff]   ;;  %v20319_v41 = vld [vmem:[%s30201_s1 + $0xaa8] ss:$52 sps:$4 sm:$0xff]  }
 0x171   :  { %5160 = vmatprep.subr.bf16.mxu1 %v20267_v56  ;;  %v20324_v56 = vld [vmem:[%s30201_s1 + $0xdec] ss:$52 sps:$4 sm:$0xff]  }
 0x173   :  { %5188 = vmatpush1.bf16.msra.mxu0 %v20268_v38  ;;  %v20327_v38 = vld [vmem:[%s30201_s1 + $0xa44] ss:$52 sps:$4 sm:$0xff]  }
 0x174   :  { %5161 = vmatpush2.bf16.msra.mxu1 %v20265_v57  ;;  %5189 = vmatprep.subr.bf16.mxu0 %v20276_v60  ;;  %v20322_v57 = vld [vmem:[%s30201_s1 + $0xde8] ss:$52 sps:$4 sm:$0xff]   ;;  %v20325_v60 = vld [vmem:[%s30201_s1 + $0xa40] ss:$52 sps:$4 sm:$0xff]  }
 0x175   :  { %5162 = vmatprep.subr.bf16.mxu1 %v20273_v59  ;;  %v20330_v59 = vld [vmem:[%s30201_s1 + $0xd84] ss:$52 sps:$4 sm:$0xff]  }
 0x177   :  { %5190 = vmatpush1.bf16.msra.mxu0 %v20274_v62  ;;  %v20333_v62 = vld [vmem:[%s30201_s1 + $0x9dc] ss:$52 sps:$4 sm:$0xff]  }
 0x178   :  { %5163 = vmatpush2.bf16.msra.mxu1 %v20271_v61  ;;  %5191 = vmatprep.subr.bf16.mxu0 %v20282_v0  ;;  %v20328_v61 = vld [vmem:[%s30201_s1 + $0xd80] ss:$52 sps:$4 sm:$0xff]   ;;  %v20331_v0 = vld [vmem:[%s30201_s1 + $0x9d8] ss:$52 sps:$4 sm:$0xff]  }
 0x179   :  { %5164 = vmatprep.subr.bf16.mxu1 %v20279_v63  ;;  %v20336_v63 = vld [vmem:[%s30201_s1 + $0xd1c] ss:$52 sps:$4 sm:$0xff]  }
 0x17b   :  { %5192 = vmatpush1.bf16.msra.mxu0 %v20280_v12  ;;  %v20339_v12 = vld [vmem:[%s30201_s1 + $0x1334] ss:$52 sps:$4 sm:$0xff]  }
 0x17c   :  { %5165 = vmatpush2.bf16.msra.mxu1 %v20277_v1  ;;  %5193 = vmatprep.subr.bf16.mxu0 %v20288_v2  ;;  %v20334_v1 = vld [vmem:[%s30201_s1 + $0xd18] ss:$52 sps:$4 sm:$0xff]   ;;  %v20337_v2 = vld [vmem:[%s30201_s1 + $0x1330] ss:$52 sps:$4 sm:$0xff]  }
 0x17d   :  { %5166 = vmatprep.subr.bf16.mxu1 %v20285_v47  ;;  %v20342_v47 = vld [vmem:[%s30201_s1 + $0x1674] ss:$52 sps:$4 sm:$0xff]  }
 0x17f   :  { %5194 = vmatpush1.bf16.msra.mxu0 %v20286_v8  ;;  %v24253_v8 = vpop.f32.mrf.mxu1 }
 0x180   :  { %5167 = vmatpush2.bf16.msra.mxu1 %v20283_v6  ;;  %5195 = vmatprep.subr.bf16.mxu0 %v20291_v11  ;;  %v20340_v6 = vld [vmem:[%s30201_s1 + $0x1670] ss:$52 sps:$4 sm:$0xff]   ;;  %v20345_v11 = vld [vmem:[%s30201_s1 + $0x12cc] ss:$52 sps:$4 sm:$0xff]  }
 0x181   :  { %5222 = vmatprep.subr.bf16.mxu1 %v20294_v15  ;;  %v20348_v15 = vld [vmem:[%s30201_s1 + $0x160c] ss:$52 sps:$4 sm:$0xff]  }
 0x182   :  { %v4869_v28 = vpop.f32.mrf.mxu0 }
 0x183   :  { %5169 = vmatmul.mubr.bf16.vlgmr.msra.gmra.mxu1 %v23816_v10  ;;  %v24162_v29 = vadd.f32 %v4869_v28, %v4827_v25  ;;  %5196 = vmatpush2.bf16.msra.mxu0 %v20289_v20  ;;  %v20301_v10 = vld [vmem:[%s30201_s1 + $0xbe0] ss:$52 sps:$4 sm:$0xff]   ;;  %v20346_v20 = vld [vmem:[%s30201_s1 + $0x1608] ss:$52 sps:$4 sm:$0xff]   ;;  %v20351_v28 = vld [vmem:[%s30201_s1 + $0x1264] ss:$52 sps:$4 sm:$0xff]  }
 0x184   :  { %5223 = vmatpush1.bf16.msra.mxu1 %v20292_v21  ;;  %v24164_v31 = vpop.f32.mrf.mxu0  ;;  %5197 = vmatprep.subr.bf16.mxu0 %v20297_v7 }
 0x185   :  { %5224 = vmatprep.subr.bf16.mxu1 %v20300_v50  ;;  %5254 = vmatprep.mubr.bf16.mxu1 %v23838_v19  ;;  %v20307_v19 = vld [vmem:[%s30201_s1 + $0xb78] ss:$52 sps:$4 sm:$0xff]   ;;  %v24272_v50 = vld [vmem:[%s30202_s0 + $0x8] ss:$28 sps:$4 sm:$0xff]  }
 0x186   :  { %v4873_v40 = vpop.f32.mrf.mxu0 }
 0x187   :  { %v24179_v42 = vadd.f32 %v4873_v40, %v4831_v37  ;;  %5198 = vmatpush2.bf16.msra.mxu0 %v20295_v26  ;;  %v20357_v40 = vld [vmem:[%s30201_s1 + $0x11fc] ss:$52 sps:$4 sm:$0xff]  }
 0x188   :  { %5225 = vmatpush1.bf16.msra.mxu1 %v20298_v27  ;;  %5199 = vmatprep.subr.bf16.mxu0 %v20303_v32  ;;  %v24255_v9 = vpop.f32.mrf.mxu0 }
 0x189   :  { %5226 = vmatprep.subr.bf16.mxu1 %v20306_v33 }
 0x18b   :  { %5200 = vmatpush2.bf16.msra.mxu0 %v20301_v10  ;;  %v20352_v10 = vld [vmem:[%s30201_s1 + $0x15a0] ss:$52 sps:$4 sm:$0xff]  }
 0x18c   :  { %5227 = vmatpush1.bf16.msra.mxu1 %v20304_v39  ;;  %5201 = vmatprep.subr.bf16.mxu0 %v20309_v44  ;;  %v20360_v44 = vld [vmem:[%s30201_s1 + $0x153c] ss:$52 sps:$4 sm:$0xff]  }
 0x18d   :  { %5228 = vmatprep.subr.bf16.mxu1 %v20312_v45 }
 0x18f   :  { %5202 = vmatpush2.bf16.msra.mxu0 %v20307_v19  ;;  %v20358_v19 = vld [vmem:[%s30201_s1 + $0x1538] ss:$52 sps:$4 sm:$0xff]  }
 0x190   :  { %5229 = vmatpush1.bf16.msra.mxu1 %v20310_v46  ;;  %5203 = vmatprep.subr.bf16.mxu0 %v20315_v48 }
 0x191   :  { %5230 = vmatprep.subr.bf16.mxu1 %v20318_v49  ;;  %v20363_v49 = vld [vmem:[%s30201_s1 + $0x1194] ss:$52 sps:$4 sm:$0xff]  }
 0x193   :  { %5204 = vmatpush2.bf16.msra.mxu0 %v20313_v54  ;;  %v20366_v54 = vld [vmem:[%s30201_s1 + $0x14d4] ss:$52 sps:$4 sm:$0xff]  }
 0x194   :  { %5231 = vmatpush1.bf16.msra.mxu1 %v20316_v4  ;;  %5205 = vmatprep.subr.bf16.mxu0 %v20321_v55  ;;  %v20361_v55 = vld [vmem:[%s30201_s1 + $0x1190] ss:$52 sps:$4 sm:$0xff]  }
 0x195   :  { %5232 = vmatprep.subr.bf16.mxu1 %v20324_v56  ;;  %v20364_v56 = vld [vmem:[%s30201_s1 + $0x14d0] ss:$52 sps:$4 sm:$0xff]  }
 0x197   :  { %5206 = vmatpush2.bf16.msra.mxu0 %v20319_v41  ;;  %v20369_v41 = vld [vmem:[%s30201_s1 + $0x112c] ss:$52 sps:$4 sm:$0xff]  }
 0x198   :  { %5233 = vmatpush1.bf16.msra.mxu1 %v20322_v57  ;;  %5207 = vmatprep.subr.bf16.mxu0 %v20327_v38  ;;  %v20372_v57 = vld [vmem:[%s30201_s1 + $0x146c] ss:$52 sps:$4 sm:$0xff]   ;;  %v20367_v38 = vld [vmem:[%s30201_s1 + $0x1128] ss:$52 sps:$4 sm:$0xff]  }
 0x199   :  { %5234 = vmatprep.subr.bf16.mxu1 %v20330_v59  ;;  %v20370_v59 = vld [vmem:[%s30201_s1 + $0x1468] ss:$52 sps:$4 sm:$0xff]  }
 0x19b   :  { %5208 = vmatpush2.bf16.msra.mxu0 %v20325_v60  ;;  %v20375_v60 = vld [vmem:[%s30201_s1 + $0x10c4] ss:$52 sps:$4 sm:$0xff]  }
 0x19c   :  { %5235 = vmatpush1.bf16.msra.mxu1 %v20328_v61  ;;  %5209 = vmatprep.subr.bf16.mxu0 %v20333_v62  ;;  %v20378_v61 = vld [vmem:[%s30201_s1 + $0x1404] ss:$52 sps:$4 sm:$0xff]   ;;  %v20373_v62 = vld [vmem:[%s30201_s1 + $0x10c0] ss:$52 sps:$4 sm:$0xff]  }
 0x19d   :  { %5236 = vmatprep.subr.bf16.mxu1 %v20336_v63  ;;  %v20376_v63 = vld [vmem:[%s30201_s1 + $0x1400] ss:$52 sps:$4 sm:$0xff]  }
 0x19f   :  { %5210 = vmatpush2.bf16.msra.mxu0 %v20331_v0  ;;  %v20381_v0 = vld [vmem:[%s30201_s1 + $0x105c] ss:$52 sps:$4 sm:$0xff]  }
 0x1a0   :  { %5237 = vmatpush1.bf16.msra.mxu1 %v20334_v1  ;;  %5265 = vmatprep.subr.bf16.mxu0 %v20342_v47  ;;  %v20384_v1 = vld [vmem:[%s30201_s1 + $0x139c] ss:$52 sps:$4 sm:$0xff]   ;;  %v20382_v47 = vld [vmem:[%s30201_s1 + $0x1398] ss:$52 sps:$4 sm:$0xff]  }
 0x1a1   :  { %5238 = vmatprep.subr.bf16.mxu1 %v20339_v12  ;;  %v20379_v12 = vld [vmem:[%s30201_s1 + $0x1058] ss:$52 sps:$4 sm:$0xff]  }
 0x1a2   :  { %v4955_v7 = vpop.f32.mrf.mxu0  ;;  %5212 = vmatmul.mubr.bf16.vlgmr.msra.gmra.mxu0 %v24272_v50 }
 0x1a3   :  { %v4912_v21 = vpop.f32.mrf.mxu1  ;;  %5266 = vmatpush1.bf16.msra.mxu0 %v20340_v6  ;;  %5297 = vmatprep.mubr.bf16.mxu0 %v30214_v14  ;;  %v20390_v6 = vld [vmem:[%s30201_s1 + $0x97c] ss:$52 sps:$4 sm:$0xff]  }
 0x1a4   :  { %v4913_v25 = vadd.f32 %v4912_v21, %v24162_v29  ;;  %5239 = vmatpush2.bf16.msra.mxu1 %v20337_v2  ;;  %v24278_v27 = vpop.f32.mrf.mxu0  ;;  %5267 = vmatprep.subr.bf16.mxu0 %v20348_v15  ;;  %v20349_v29 = vld [vmem:[%s30201_s1 + $0x1260] ss:$52 sps:$4 sm:$0xff]   ;;  %v20387_v2 = vld [vmem:[%s30201_s1 + $0x2fc] ss:$52 sps:$4 sm:$0xff]   ;;  %v20388_v15 = vld [vmem:[%s30201_s1 + $0x978] ss:$52 sps:$4 sm:$0xff]  }
 0x1a5   :  { %v24276_v26 = vpop.f32.mrf.mxu1  ;;  %5240 = vmatprep.subr.bf16.mxu1 %v20345_v11  ;;  %v20385_v11 = vld [vmem:[%s30201_s1 + $0x2f8] ss:$52 sps:$4 sm:$0xff]  }
 0x1a6   :  { %v4956_v32 = vadd.f32 %v4955_v7, %v4913_v25  ;;  %v4959_v39 = vpop.f32.mrf.mxu0  ;;  %v24378_v21 = vld [vmem:[%s30202_s0 + $0x18] ss:$28 sps:$4 sm:$0xff]   ;;  %v20391_v7 = vld [vmem:[%s30201_s1 + $0x290] ss:$52 sps:$4 sm:$0xff]  }
 0x1a7   :  { %v4916_v33 = vpop.f32.mrf.mxu1  ;;  %5268 = vmatpush1.bf16.msra.mxu0 %v20346_v20  ;;  %v20396_v20 = vld [vmem:[%s30201_s1 + $0x914] ss:$52 sps:$4 sm:$0xff]   ;;  %v20394_v25 = vld [vmem:[%s30201_s1 + $0x910] ss:$52 sps:$4 sm:$0xff]  }
 0x1a8   :  { %v4917_v37 = vadd.f32 %v4916_v33, %v24179_v42  ;;  %5241 = vmatpush2.bf16.msra.mxu1 %v20343_v18  ;;  %5269 = vmatprep.subr.bf16.mxu0 %v20354_v30  ;;  %v20355_v42 = vld [vmem:[%s30201_s1 + $0x11f8] ss:$52 sps:$4 sm:$0xff]   ;;  %v5818_v46 = vmax.f32 %v4956_v32, 0.0  ;;  %v20393_v18 = vld [vmem:[%s30201_s1 + $0x294] ss:$52 sps:$4 sm:$0xff]  }
 0x1a9   :  { %5242 = vmatprep.subr.bf16.mxu1 %v20351_v28  ;;  %v20402_v28 = vld [vmem:[%s30201_s1 + $0x8ac] ss:$52 sps:$4 sm:$0xff]   ;;  %v20397_v30 = vld [vmem:[%s30201_s1 + $0x228] ss:$52 sps:$4 sm:$0xff]   ;;  %v20405_v33 = vld [vmem:[%s30201_s1 + $0x1c4] ss:$52 sps:$4 sm:$0xff]  }
 0x1aa   :  { %v4960_v45 = vadd.f32 %v4959_v39, %v4917_v37  ;;  %v20400_v32 = vld [vmem:[%s30201_s1 + $0x8a8] ss:$52 sps:$4 sm:$0xff]   ;;  %v20408_v37 = vld [vmem:[%s30201_s1 + $0x844] ss:$52 sps:$4 sm:$0xff]  }
 0x1ab   :  { %5270 = vmatpush1.bf16.msra.mxu0 %v20352_v10  ;;  %v20403_v10 = vld [vmem:[%s30201_s1 + $0x1c0] ss:$52 sps:$4 sm:$0xff]   ;;  %v20411_v39 = vld [vmem:[%s30201_s1 + $0x15c] ss:$52 sps:$4 sm:$0xff]  }
 0x1ac   :  { %v5831_v48 = vmax.f32 %v4960_v45, 0.0  ;;  %5243 = vmatpush2.bf16.msra.mxu1 %v20349_v29  ;;  %5271 = vmatprep.subr.bf16.mxu0 %v20360_v44  ;;  %v24402_v29 = vld [vmem:[%s30202_s0 + $0x4] ss:$28 sps:$4 sm:$0xff]   ;;  %v20409_v44 = vld [vmem:[%s30201_s1 + $0x158] ss:$52 sps:$4 sm:$0xff]  }
 0x1ad   :  { %5244 = vmatprep.subr.bf16.mxu1 %v20357_v40  ;;  %v20414_v40 = vld [vmem:[%s30201_s1 + $0x7dc] ss:$52 sps:$4 sm:$0xff]   ;;  %v20412_v45 = vld [vmem:[%s30201_s1 + $0x7d8] ss:$52 sps:$4 sm:$0xff]  }
 0x1ae   :  { %v24312_v4 = vpack.c.bf16 %v5831_v48, %v5818_v46  ;;  %v20415_v46 = vld [vmem:[%s30201_s1 + $0xf0] ss:$52 sps:$4 sm:$0xff]  }
 0x1af   :  { %5272 = vmatpush1.bf16.msra.mxu0 %v20358_v19  ;;  %v20420_v19 = vld [vmem:[%s30201_s1 + $0x774] ss:$52 sps:$4 sm:$0xff]   ;;  %v20418_v48 = vld [vmem:[%s30201_s1 + $0x770] ss:$52 sps:$4 sm:$0xff]  }
 0x1b0   :  { %5245 = vmatpush2.bf16.msra.mxu1 %v20355_v42  ;;  %5273 = vmatprep.subr.bf16.mxu0 %v20366_v54  ;;  %v20417_v42 = vld [vmem:[%s30201_s1 + $0xf4] ss:$52 sps:$4 sm:$0xff]   ;;  %v20426_v54 = vld [vmem:[%s30201_s1 + $0x70c] ss:$52 sps:$4 sm:$0xff]  }
 0x1b1   :  { %5246 = vmatprep.subr.bf16.mxu1 %v20363_v49  ;;  %v20423_v49 = vld [vmem:[%s30201_s1 + $0x8c] ss:$52 sps:$4 sm:$0xff]  }
 0x1b3   :  { %5274 = vmatpush1.bf16.msra.mxu0 %v20364_v56  ;;  %v20424_v56 = vld [vmem:[%s30201_s1 + $0x708] ss:$52 sps:$4 sm:$0xff]  }
 0x1b4   :  { %5247 = vmatpush2.bf16.msra.mxu1 %v20361_v55  ;;  %5275 = vmatprep.subr.bf16.mxu0 %v20372_v57  ;;  %v20421_v55 = vld [vmem:[%s30201_s1 + $0x88] ss:$52 sps:$4 sm:$0xff]   ;;  %v20432_v57 = vld [vmem:[%s30201_s1 + $0x6a4] ss:$52 sps:$4 sm:$0xff]  }
 0x1b5   :  { %5248 = vmatprep.subr.bf16.mxu1 %v20369_v41  ;;  %v20429_v41 = vld [vmem:[%s30201_s1 + $0x24] ss:$52 sps:$4 sm:$0xff]  }
 0x1b7   :  { %5276 = vmatpush1.bf16.msra.mxu0 %v20370_v59  ;;  %v20430_v59 = vld [vmem:[%s30201_s1 + $0x6a0] ss:$52 sps:$4 sm:$0xff]  }
 0x1b8   :  { %5249 = vmatpush2.bf16.msra.mxu1 %v20367_v38  ;;  %5277 = vmatprep.subr.bf16.mxu0 %v20378_v61  ;;  %v20427_v38 = vld [vmem:[%s30201_s1 + $0x20] ss:$52 sps:$4 sm:$0xff]   ;;  %v20435_v61 = vld [vmem:[%s30201_s1 + $0x63c] ss:$52 sps:$4 sm:$0xff]  }
 0x1b9   :  { %5250 = vmatprep.subr.bf16.mxu1 %v20375_v60  ;;  %v24467_v60 = vsub.s32 4, %v23667_v17 }
 0x1bb   :  { %5278 = vmatpush1.bf16.msra.mxu0 %v20376_v63  ;;  %30221 = vst [vmem:[#allocation4_spill] sm:$0xff] %v24467_v60  ;;  %v842_v63 = vrot.slane %v24135_v16, %v24467_v60  ;;  %v20444_v16 = vld [vmem:[%s30201_s1 + $0xc54] ss:$52 sps:$4 sm:$0xff]  }
 0x1bc   :  { %5251 = vmatpush2.bf16.msra.mxu1 %v20373_v62  ;;  %5279 = vmatprep.subr.bf16.mxu0 %v20384_v1  ;;  %v20438_v62 = vld [vmem:[%s30201_s1 + $0xcbc] ss:$52 sps:$4 sm:$0xff]   ;;  %v20436_v1 = vld [vmem:[%s30201_s1 + $0xcb8] ss:$52 sps:$4 sm:$0xff]  }
 0x1bd   :  { %5252 = vmatprep.subr.bf16.mxu1 %v20381_v0  ;;  %v20433_v0 = vld [vmem:[%s30201_s1 + $0x638] ss:$52 sps:$4 sm:$0xff]  }
 0x1bf   :  { %5280 = vmatpush1.bf16.msra.mxu0 %v20382_v47  ;;  %v24485_v47 = vpop.f32.mrf.mxu0 }
 0x1c0   :  { %5253 = vmatpush2.bf16.msra.mxu1 %v20379_v12  ;;  %5308 = vmatprep.subr.bf16.mxu0 %v20387_v2  ;;  %v24483_v12 = vpop.f32.mrf.mxu1  ;;  %v20441_v2 = vld [vmem:[%s30201_s1 + $0x5d4] ss:$52 sps:$4 sm:$0xff]  }
 0x1c1   :  { %5351 = vmatprep.subr.bf16.mxu1 %v20390_v6 }
 0x1c2   :  { %5298 = vmatmul.mubr.bf16.vlgmr.msra.gmra.mxu0 %v24378_v21 }
 0x1c3   :  { %5255 = vmatmul.mubr.bf16.vlgmr.msra.gmra.mxu1 %v24040_v43  ;;  %5309 = vmatpush1.bf16.msra.mxu0 %v20385_v11  ;;  %v20399_v43 = vld [vmem:[%s30201_s1 + $0x22c] ss:$52 sps:$4 sm:$0xff]  }
 0x1c4   :  { %5352 = vmatpush1.bf16.msra.mxu1 %v20388_v15  ;;  %5310 = vmatprep.subr.bf16.mxu0 %v20393_v18  ;;  %v20439_v18 = vld [vmem:[%s30201_s1 + $0x5d0] ss:$52 sps:$4 sm:$0xff]  }
 0x1c5   :  { %5353 = vmatprep.subr.bf16.mxu1 %v20396_v20  ;;  %5340 = vmatprep.mubr.bf16.mxu0 %v24402_v29  ;;  %v20442_v20 = vld [vmem:[%s30201_s1 + $0xc50] ss:$52 sps:$4 sm:$0xff]  }
 0x1c6   :  { %5383 = vmatprep.mubr.bf16.mxu1 %v24058_v53  ;;  %v20406_v53 = vld [vmem:[%s30201_s1 + $0x840] ss:$52 sps:$4 sm:$0xff]  }
 0x1c7   :  { %5311 = vmatpush1.bf16.msra.mxu0 %v20391_v7 }
 0x1c8   :  { %5354 = vmatpush1.bf16.msra.mxu1 %v20394_v25  ;;  %5312 = vmatprep.subr.bf16.mxu0 %v20399_v43  ;;  %v20447_v43 = vld [vmem:[%s30201_s1 + $0x56c] ss:$52 sps:$4 sm:$0xff]  }
 0x1c9   :  { %5355 = vmatprep.subr.bf16.mxu1 %v20402_v28  ;;  %v20450_v28 = vld [vmem:[%s30201_s1 + $0xbec] ss:$52 sps:$4 sm:$0xff]  }
 0x1cb   :  { %5313 = vmatpush1.bf16.msra.mxu0 %v20397_v30 }
 0x1cc   :  { %5356 = vmatpush1.bf16.msra.mxu1 %v20400_v32  ;;  %5314 = vmatprep.subr.bf16.mxu0 %v20405_v33 }
 0x1cd   :  { %5357 = vmatprep.subr.bf16.mxu1 %v20408_v37 }
 0x1cf   :  { %5315 = vmatpush1.bf16.msra.mxu0 %v20403_v10  ;;  %v20445_v10 = vld [vmem:[%s30201_s1 + $0x568] ss:$52 sps:$4 sm:$0xff]  }
 0x1d0   :  { %5358 = vmatpush1.bf16.msra.mxu1 %v20406_v53  ;;  %5316 = vmatprep.subr.bf16.mxu0 %v20411_v39  ;;  %v20448_v53 = vld [vmem:[%s30201_s1 + $0xbe8] ss:$52 sps:$4 sm:$0xff]   ;;  %v20453_v39 = vld [vmem:[%s30201_s1 + $0x504] ss:$52 sps:$4 sm:$0xff]  }
 0x1d1   :  { %5359 = vmatprep.subr.bf16.mxu1 %v20414_v40  ;;  %v20456_v40 = vld [vmem:[%s30201_s1 + $0xb84] ss:$52 sps:$4 sm:$0xff]  }
 0x1d3   :  { %5317 = vmatpush1.bf16.msra.mxu0 %v20409_v44 }
 0x1d4   :  { %5360 = vmatpush1.bf16.msra.mxu1 %v20412_v45  ;;  %5318 = vmatprep.subr.bf16.mxu0 %v20417_v42  ;;  %v20451_v45 = vld [vmem:[%s30201_s1 + $0x500] ss:$52 sps:$4 sm:$0xff]  }
 0x1d5   :  { %5361 = vmatprep.subr.bf16.mxu1 %v20420_v19  ;;  %v20454_v42 = vld [vmem:[%s30201_s1 + $0xb80] ss:$52 sps:$4 sm:$0xff]   ;;  %v20459_v19 = vld [vmem:[%s30201_s1 + $0x49c] ss:$52 sps:$4 sm:$0xff]  }
 0x1d7   :  { %5319 = vmatpush1.bf16.msra.mxu0 %v20415_v46  ;;  %v20462_v46 = vld [vmem:[%s30201_s1 + $0xb1c] ss:$52 sps:$4 sm:$0xff]  }
 0x1d8   :  { %5362 = vmatpush1.bf16.msra.mxu1 %v20418_v48  ;;  %5320 = vmatprep.subr.bf16.mxu0 %v20423_v49  ;;  %v20457_v48 = vld [vmem:[%s30201_s1 + $0x498] ss:$52 sps:$4 sm:$0xff]  }
 0x1d9   :  { %5363 = vmatprep.subr.bf16.mxu1 %v20426_v54  ;;  %v20460_v49 = vld [vmem:[%s30201_s1 + $0xb18] ss:$52 sps:$4 sm:$0xff]   ;;  %v20465_v54 = vld [vmem:[%s30201_s1 + $0x434] ss:$52 sps:$4 sm:$0xff]  }
 0x1db   :  { %5321 = vmatpush1.bf16.msra.mxu0 %v20421_v55  ;;  %v20468_v55 = vld [vmem:[%s30201_s1 + $0xab4] ss:$52 sps:$4 sm:$0xff]  }
 0x1dc   :  { %5364 = vmatpush1.bf16.msra.mxu1 %v20424_v56  ;;  %5322 = vmatprep.subr.bf16.mxu0 %v20429_v41  ;;  %v20463_v56 = vld [vmem:[%s30201_s1 + $0x430] ss:$52 sps:$4 sm:$0xff]  }
 0x1dd   :  { %5365 = vmatprep.subr.bf16.mxu1 %v20432_v57  ;;  %v20466_v41 = vld [vmem:[%s30201_s1 + $0xab0] ss:$52 sps:$4 sm:$0xff]   ;;  %v20471_v57 = vld [vmem:[%s30201_s1 + $0x3cc] ss:$52 sps:$4 sm:$0xff]  }
 0x1df   :  { %5323 = vmatpush1.bf16.msra.mxu0 %v20427_v38  ;;  %v20474_v38 = vld [vmem:[%s30201_s1 + $0xa4c] ss:$52 sps:$4 sm:$0xff]  }
 0x1e0   :  { %5366 = vmatpush1.bf16.msra.mxu1 %v20430_v59  ;;  %5324 = vmatprep.subr.bf16.mxu0 %v20435_v61  ;;  %v20469_v59 = vld [vmem:[%s30201_s1 + $0x3c8] ss:$52 sps:$4 sm:$0xff]  }
 0x1e1   :  { %5367 = vmatprep.subr.bf16.mxu1 %v20438_v62  ;;  %v20472_v61 = vld [vmem:[%s30201_s1 + $0xa48] ss:$52 sps:$4 sm:$0xff]   ;;  %v20477_v62 = vld [vmem:[%s30201_s1 + $0x364] ss:$52 sps:$4 sm:$0xff]  }
 0x1e2   :  { %v4998_v6 = vpop.f32.mrf.mxu0 }
 0x1e3   :  { %v5041_v11 = vpop.f32.mrf.mxu1  ;;  %v4999_v15 = vadd.f32 %v4998_v6, %v842_v63  ;;  %5325 = vmatpush2.bf16.msra.mxu0 %v20433_v0  ;;  %v20475_v0 = vld [vmem:[%s30201_s1 + $0x360] ss:$52 sps:$4 sm:$0xff]   ;;  %v20481_v6 = vld [vmem:[%s30201_s1 + $0xff8] ss:$52 sps:$4 sm:$0xff]  }
 0x1e4   :  { %5368 = vmatpush2.bf16.msra.mxu1 %v20436_v1  ;;  %v24499_v7 = vpop.f32.mrf.mxu0  ;;  %5326 = vmatprep.subr.bf16.mxu0 %v20441_v2  ;;  %v20478_v1 = vld [vmem:[%s30201_s1 + $0x9e0] ss:$52 sps:$4 sm:$0xff]   ;;  %v20483_v2 = vld [vmem:[%s30201_s1 + $0xffc] ss:$52 sps:$4 sm:$0xff]  }
 0x1e5   :  { %v24501_v25 = vpop.f32.mrf.mxu1  ;;  %5369 = vmatprep.subr.bf16.mxu1 %v20444_v16  ;;  %v24509_v30 = vadd.f32 %v5041_v11, %v4999_v15  ;;  %v20486_v16 = vld [vmem:[%s30201_s1 + $0x167c] ss:$52 sps:$4 sm:$0xff]   ;;  %v20484_v11 = vld [vmem:[%s30201_s1 + $0x1678] ss:$52 sps:$4 sm:$0xff]   ;;  %v20489_v15 = vld [vmem:[%s30201_s1 + $0xf94] ss:$52 sps:$4 sm:$0xff]  }
 0x1e6   :  { %v5002_v32 = vpop.f32.mrf.mxu0 }
 0x1e7   :  { %v5045_v33 = vpop.f32.mrf.mxu1  ;;  %v5003_v37 = vadd.f32 %v5002_v32, %v842_v63  ;;  %5327 = vmatpush2.bf16.msra.mxu0 %v20439_v18  ;;  %v20480_v63 = vld [vmem:[%s30201_s1 + $0x9e4] ss:$52 sps:$4 sm:$0xff]   ;;  %v20492_v18 = vld [vmem:[%s30201_s1 + $0x1614] ss:$52 sps:$4 sm:$0xff]   ;;  %v20495_v32 = vld [vmem:[%s30201_s1 + $0xf2c] ss:$52 sps:$4 sm:$0xff]  }
 0x1e8   :  { %5370 = vmatpush2.bf16.msra.mxu1 %v20442_v20  ;;  %5328 = vmatprep.subr.bf16.mxu0 %v20447_v43  ;;  %v24600_v20 = vld [vmem:[%s30202_s0] ss:$28 sps:$4 sm:$0xff]   ;;  %v20487_v43 = vld [vmem:[%s30201_s1 + $0xf90] ss:$52 sps:$4 sm:$0xff]  }
 0x1e9   :  { %5371 = vmatprep.subr.bf16.mxu1 %v20450_v28  ;;  %v24523_v44 = vadd.f32 %v5045_v33, %v5003_v37  ;;  %v20490_v28 = vld [vmem:[%s30201_s1 + $0x1610] ss:$52 sps:$4 sm:$0xff]   ;;  %v20493_v37 = vld [vmem:[%s30201_s1 + $0xf28] ss:$52 sps:$4 sm:$0xff]  }
 0x1ea   :  { %v24620_v33 = vld [vmem:[%s30202_s0 + $0x14] ss:$28 sps:$4 sm:$0xff]  }
 0x1eb   :  { %5329 = vmatpush2.bf16.msra.mxu0 %v20445_v10  ;;  %v20496_v10 = vld [vmem:[%s30201_s1 + $0x15a8] ss:$52 sps:$4 sm:$0xff]  }
 0x1ec   :  { %5372 = vmatpush2.bf16.msra.mxu1 %v20448_v53  ;;  %5330 = vmatprep.subr.bf16.mxu0 %v20453_v39  ;;  %v20501_v53 = vld [vmem:[%s30201_s1 + $0xec4] ss:$52 sps:$4 sm:$0xff]  }
 0x1ed   :  { %5373 = vmatprep.subr.bf16.mxu1 %v20456_v40  ;;  %v20504_v39 = vld [vmem:[%s30201_s1 + $0x1544] ss:$52 sps:$4 sm:$0xff]   ;;  %v20499_v40 = vld [vmem:[%s30201_s1 + $0xec0] ss:$52 sps:$4 sm:$0xff]  }
 0x1ef   :  { %5331 = vmatpush2.bf16.msra.mxu0 %v20451_v45  ;;  %v20502_v45 = vld [vmem:[%s30201_s1 + $0x1540] ss:$52 sps:$4 sm:$0xff]  }
 0x1f0   :  { %5374 = vmatpush2.bf16.msra.mxu1 %v20454_v42  ;;  %5332 = vmatprep.subr.bf16.mxu0 %v20459_v19  ;;  %v20507_v42 = vld [vmem:[%s30201_s1 + $0xe5c] ss:$52 sps:$4 sm:$0xff]  }
 0x1f1   :  { %5375 = vmatprep.subr.bf16.mxu1 %v20462_v46  ;;  %v20510_v19 = vld [vmem:[%s30201_s1 + $0x14dc] ss:$52 sps:$4 sm:$0xff]   ;;  %v20505_v46 = vld [vmem:[%s30201_s1 + $0xe58] ss:$52 sps:$4 sm:$0xff]  }
 0x1f3   :  { %5333 = vmatpush2.bf16.msra.mxu0 %v20457_v48  ;;  %v20508_v48 = vld [vmem:[%s30201_s1 + $0x14d8] ss:$52 sps:$4 sm:$0xff]  }
 0x1f4   :  { %5376 = vmatpush2.bf16.msra.mxu1 %v20460_v49  ;;  %5334 = vmatprep.subr.bf16.mxu0 %v20465_v54  ;;  %v20513_v49 = vld [vmem:[%s30201_s1 + $0xdf4] ss:$52 sps:$4 sm:$0xff]  }
 0x1f5   :  { %5377 = vmatprep.subr.bf16.mxu1 %v20468_v55  ;;  %v20516_v54 = vld [vmem:[%s30201_s1 + $0x1474] ss:$52 sps:$4 sm:$0xff]   ;;  %v20511_v55 = vld [vmem:[%s30201_s1 + $0xdf0] ss:$52 sps:$4 sm:$0xff]  }
 0x1f7   :  { %5335 = vmatpush2.bf16.msra.mxu0 %v20463_v56  ;;  %v20514_v56 = vld [vmem:[%s30201_s1 + $0x1470] ss:$52 sps:$4 sm:$0xff]  }
 0x1f8   :  { %5378 = vmatpush2.bf16.msra.mxu1 %v20466_v41  ;;  %5336 = vmatprep.subr.bf16.mxu0 %v20471_v57  ;;  %v20519_v41 = vld [vmem:[%s30201_s1 + $0xd8c] ss:$52 sps:$4 sm:$0xff]  }
 0x1f9   :  { %5379 = vmatprep.subr.bf16.mxu1 %v20474_v38  ;;  %v20522_v57 = vld [vmem:[%s30201_s1 + $0x140c] ss:$52 sps:$4 sm:$0xff]   ;;  %v20517_v38 = vld [vmem:[%s30201_s1 + $0xd88] ss:$52 sps:$4 sm:$0xff]  }
 0x1fb   :  { %5337 = vmatpush2.bf16.msra.mxu0 %v20469_v59  ;;  %v20520_v59 = vld [vmem:[%s30201_s1 + $0x1408] ss:$52 sps:$4 sm:$0xff]  }
 0x1fc   :  { %5380 = vmatpush2.bf16.msra.mxu1 %v20472_v61  ;;  %5338 = vmatprep.subr.bf16.mxu0 %v20477_v62  ;;  %v20525_v61 = vld [vmem:[%s30201_s1 + $0xd24] ss:$52 sps:$4 sm:$0xff]  }
 0x1fd   :  { %5381 = vmatprep.subr.bf16.mxu1 %v20480_v63  ;;  %v20528_v62 = vld [vmem:[%s30201_s1 + $0x13a4] ss:$52 sps:$4 sm:$0xff]   ;;  %v20523_v63 = vld [vmem:[%s30201_s1 + $0xd20] ss:$52 sps:$4 sm:$0xff]  }
 0x1ff   :  { %5339 = vmatpush2.bf16.msra.mxu0 %v20475_v0  ;;  %v20526_v0 = vld [vmem:[%s30201_s1 + $0x13a0] ss:$52 sps:$4 sm:$0xff]  }
 0x200   :  { %5382 = vmatpush2.bf16.msra.mxu1 %v20478_v1  ;;  %5394 = vmatprep.subr.bf16.mxu0 %v20483_v2  ;;  %v20531_v1 = vld [vmem:[%s30201_s1 + $0x133c] ss:$52 sps:$4 sm:$0xff]   ;;  %v20534_v2 = vld [vmem:[%s30201_s1 + $0x304] ss:$52 sps:$4 sm:$0xff]  }
 0x201   :  { %5437 = vmatprep.subr.bf16.mxu1 %v20486_v16  ;;  %v24695_v16 = vpop.f32.mrf.mxu1 }
 0x202   :  { %5341 = vmatmul.mubr.bf16.vlgmr.msra.gmra.mxu0 %v24600_v20 }
 0x203   :  { %5384 = vmatmul.mubr.bf16.vlgmr.msra.gmra.mxu1 %v24272_v50  ;;  %5395 = vmatpush1.bf16.msra.mxu0 %v20481_v6  ;;  %v20498_v50 = vld [vmem:[%s30201_s1 + $0x15ac] ss:$52 sps:$4 sm:$0xff]  }
 0x204   :  { %5438 = vmatpush1.bf16.msra.mxu1 %v20484_v11  ;;  %5396 = vmatprep.subr.bf16.mxu0 %v20489_v15  ;;  %v20529_v6 = vld [vmem:[%s30201_s1 + $0x1338] ss:$52 sps:$4 sm:$0xff]   ;;  %v20532_v11 = vld [vmem:[%s30201_s1 + $0x300] ss:$52 sps:$4 sm:$0xff]   ;;  %v24703_v15 = vpop.f32.mrf.mxu0 }
 0x205   :  { %5439 = vmatprep.subr.bf16.mxu1 %v20492_v18  ;;  %5469 = vmatprep.mubr.bf16.mxu1 %v30214_v14  ;;  %v5127_v18 = vpop.f32.mrf.mxu1 }
 0x206   :  { %5426 = vmatprep.mubr.bf16.mxu0 %v24620_v33 }
 0x207   :  { %5397 = vmatpush1.bf16.msra.mxu0 %v20487_v43  ;;  %v20537_v43 = vld [vmem:[%s30201_s1 + $0x12d4] ss:$52 sps:$4 sm:$0xff]  }
 0x208   :  { %5440 = vmatpush1.bf16.msra.mxu1 %v20490_v28  ;;  %5398 = vmatprep.subr.bf16.mxu0 %v20495_v32  ;;  %v20540_v28 = vld [vmem:[%s30201_s1 + $0x29c] ss:$52 sps:$4 sm:$0xff]  }
 0x209   :  { %5441 = vmatprep.subr.bf16.mxu1 %v20498_v50 }
 0x20b   :  { %5399 = vmatpush1.bf16.msra.mxu0 %v20493_v37  ;;  %v20535_v37 = vld [vmem:[%s30201_s1 + $0x12d0] ss:$52 sps:$4 sm:$0xff]  }
 0x20c   :  { %5442 = vmatpush1.bf16.msra.mxu1 %v20496_v10  ;;  %5400 = vmatprep.subr.bf16.mxu0 %v20501_v53  ;;  %v20538_v10 = vld [vmem:[%s30201_s1 + $0x298] ss:$52 sps:$4 sm:$0xff]   ;;  %v24719_v53 = vpop.f32.mrf.mxu1 }
 0x20d   :  { %5443 = vmatprep.subr.bf16.mxu1 %v20504_v39 }
 0x20f   :  { %5401 = vmatpush1.bf16.msra.mxu0 %v20499_v40 }
 0x210   :  { %5444 = vmatpush1.bf16.msra.mxu1 %v20502_v45  ;;  %5402 = vmatprep.subr.bf16.mxu0 %v20507_v42 }
 0x211   :  { %5445 = vmatprep.subr.bf16.mxu1 %v20510_v19  ;;  %v20541_v19 = vld [vmem:[%s30201_s1 + $0x1268] ss:$52 sps:$4 sm:$0xff]  }
 0x213   :  { %5403 = vmatpush1.bf16.msra.mxu0 %v20505_v46  ;;  %v20544_v46 = vld [vmem:[%s30201_s1 + $0x230] ss:$52 sps:$4 sm:$0xff]  }
 0x214   :  { %5446 = vmatpush1.bf16.msra.mxu1 %v20508_v48  ;;  %5404 = vmatprep.subr.bf16.mxu0 %v20513_v49  ;;  %v5131_v48 = vpop.f32.mrf.mxu1 }
 0x215   :  { %5447 = vmatprep.subr.bf16.mxu1 %v20516_v54 }
 0x217   :  { %5405 = vmatpush1.bf16.msra.mxu0 %v20511_v55 }
 0x218   :  { %5448 = vmatpush1.bf16.msra.mxu1 %v20514_v56  ;;  %5406 = vmatprep.subr.bf16.mxu0 %v20519_v41  ;;  %v20547_v56 = vld [vmem:[%s30201_s1 + $0x1200] ss:$52 sps:$4 sm:$0xff]   ;;  %v20550_v41 = vld [vmem:[%s30201_s1 + $0x1c8] ss:$52 sps:$4 sm:$0xff]  }
 0x219   :  { %5449 = vmatprep.subr.bf16.mxu1 %v20522_v57  ;;  %v20555_v57 = vld [vmem:[%s30201_s1 + $0x119c] ss:$52 sps:$4 sm:$0xff]  }
 0x21b   :  { %5407 = vmatpush1.bf16.msra.mxu0 %v20517_v38  ;;  %v20558_v38 = vld [vmem:[%s30201_s1 + $0x164] ss:$52 sps:$4 sm:$0xff]  }
 0x21c   :  { %5450 = vmatpush1.bf16.msra.mxu1 %v20520_v59  ;;  %5408 = vmatprep.subr.bf16.mxu0 %v20525_v61  ;;  %v20553_v61 = vld [vmem:[%s30201_s1 + $0x1198] ss:$52 sps:$4 sm:$0xff]  }
 0x21d   :  { %5451 = vmatprep.subr.bf16.mxu1 %v20528_v62  ;;  %v20556_v62 = vld [vmem:[%s30201_s1 + $0x160] ss:$52 sps:$4 sm:$0xff]  }
 0x21f   :  { %5409 = vmatpush1.bf16.msra.mxu0 %v20523_v63  ;;  %v20561_v63 = vld [vmem:[%s30201_s1 + $0x1134] ss:$52 sps:$4 sm:$0xff]  }
 0x220   :  { %5452 = vmatpush1.bf16.msra.mxu1 %v20526_v0  ;;  %5410 = vmatprep.subr.bf16.mxu0 %v20531_v1  ;;  %v20564_v0 = vld [vmem:[%s30201_s1 + $0xfc] ss:$52 sps:$4 sm:$0xff]  }
 0x221   :  { %5480 = vmatprep.subr.bf16.mxu1 %v20534_v2  ;;  %v20559_v1 = vld [vmem:[%s30201_s1 + $0x1130] ss:$52 sps:$4 sm:$0xff]   ;;  %v20562_v2 = vld [vmem:[%s30201_s1 + $0xf8] ss:$52 sps:$4 sm:$0xff]  }
 0x222   :  { %v5084_v32 = vpop.f32.mrf.mxu0 }
 0x223   :  { %5470 = vmatmul.mubr.bf16.vlgmr.msra.gmra.mxu1 %v24378_v21  ;;  %v5085_v50 = vadd.f32 %v5084_v32, %v24509_v30  ;;  %5411 = vmatpush2.bf16.msra.mxu0 %v20529_v6  ;;  %v20543_v21 = vld [vmem:[%s30201_s1 + $0x126c] ss:$52 sps:$4 sm:$0xff]   ;;  %v20546_v30 = vld [vmem:[%s30201_s1 + $0x234] ss:$52 sps:$4 sm:$0xff]  }
 0x224   :  { %5481 = vmatpush1.bf16.msra.mxu1 %v20532_v11  ;;  %v24721_v39 = vpop.f32.mrf.mxu0  ;;  %5412 = vmatprep.subr.bf16.mxu0 %v20537_v43  ;;  %v20567_v6 = vld [vmem:[%s30201_s1 + $0x10cc] ss:$52 sps:$4 sm:$0xff]   ;;  %v20570_v11 = vld [vmem:[%s30201_s1 + $0x94] ss:$52 sps:$4 sm:$0xff]   ;;  %v20568_v43 = vld [vmem:[%s30201_s1 + $0x90] ss:$52 sps:$4 sm:$0xff]  }
 0x225   :  { %5482 = vmatprep.subr.bf16.mxu1 %v20540_v28  ;;  %v5128_v40 = vadd.f32 %v5127_v18, %v5085_v50  ;;  %5512 = vmatprep.mubr.bf16.mxu1 %v24402_v29  ;;  %v20549_v29 = vld [vmem:[%s30201_s1 + $0x1204] ss:$52 sps:$4 sm:$0xff]   ;;  %v20565_v18 = vld [vmem:[%s30201_s1 + $0x10c8] ss:$52 sps:$4 sm:$0xff]   ;;  %v20576_v32 = vld [vmem:[%s30201_s1 + $0x2c] ss:$52 sps:$4 sm:$0xff]  }
 0x226   :  { %v5088_v45 = vpop.f32.mrf.mxu0  ;;  %v20573_v28 = vld [vmem:[%s30201_s1 + $0x1064] ss:$52 sps:$4 sm:$0xff]   ;;  %v20571_v50 = vld [vmem:[%s30201_s1 + $0x1060] ss:$52 sps:$4 sm:$0xff]  }
 0x227   :  { %v5089_v42 = vadd.f32 %v5088_v45, %v24523_v44  ;;  %5413 = vmatpush2.bf16.msra.mxu0 %v20535_v37  ;;  %v20552_v44 = vld [vmem:[%s30201_s1 + $0x1cc] ss:$52 sps:$4 sm:$0xff]   ;;  %v5820_v54 = vmax.f32 %v5128_v40, 0.0  ;;  %v20574_v37 = vld [vmem:[%s30201_s1 + $0x28] ss:$52 sps:$4 sm:$0xff]  }
 0x228   :  { %5483 = vmatpush1.bf16.msra.mxu1 %v20538_v10  ;;  %5414 = vmatprep.subr.bf16.mxu0 %v20543_v21  ;;  %v20579_v10 = vld [vmem:[%s30201_s1 + $0x644] ss:$52 sps:$4 sm:$0xff]   ;;  %v20580_v40 = vld [vmem:[%s30201_s1 + $0x980] ss:$52 sps:$4 sm:$0xff]   ;;  %v20585_v45 = vld [vmem:[%s30201_s1 + $0x5dc] ss:$52 sps:$4 sm:$0xff]  }
 0x229   :  { %5484 = vmatprep.subr.bf16.mxu1 %v20546_v30  ;;  %v5132_v49 = vadd.f32 %v5131_v48, %v5089_v42  ;;  %v20582_v21 = vld [vmem:[%s30201_s1 + $0x984] ss:$52 sps:$4 sm:$0xff]   ;;  %v20577_v30 = vld [vmem:[%s30201_s1 + $0x640] ss:$52 sps:$4 sm:$0xff]   ;;  %v20588_v42 = vld [vmem:[%s30201_s1 + $0x91c] ss:$52 sps:$4 sm:$0xff]  }
 0x22a   :  { %v20586_v48 = vld [vmem:[%s30201_s1 + $0x918] ss:$52 sps:$4 sm:$0xff]  }
 0x22b   :  { %v5833_v55 = vmax.f32 %v5132_v49, 0.0  ;;  %5415 = vmatpush2.bf16.msra.mxu0 %v20541_v19  ;;  %v24820_v19 = vld [vmem:[%s30202_s0 + $0x10] ss:$28 sps:$4 sm:$0xff]  }
 0x22c   :  { %5485 = vmatpush1.bf16.msra.mxu1 %v20544_v46  ;;  %5416 = vmatprep.subr.bf16.mxu0 %v20549_v29  ;;  %v20583_v46 = vld [vmem:[%s30201_s1 + $0x5d8] ss:$52 sps:$4 sm:$0xff]   ;;  %v20591_v29 = vld [vmem:[%s30201_s1 + $0x574] ss:$52 sps:$4 sm:$0xff]  }
 0x22d   :  { %5486 = vmatprep.subr.bf16.mxu1 %v20552_v44  ;;  %v24755_v59 = vpack.c.bf16 %v5833_v55, %v5820_v54  ;;  %v20594_v44 = vld [vmem:[%s30201_s1 + $0x8b4] ss:$52 sps:$4 sm:$0xff]   ;;  %v20589_v54 = vld [vmem:[%s30201_s1 + $0x570] ss:$52 sps:$4 sm:$0xff]  }
 0x22e   :  { %v24838_v49 = vld [vmem:[%s30202_s0 + $0xc] ss:$28 sps:$4 sm:$0xff]   ;;  %v20592_v55 = vld [vmem:[%s30201_s1 + $0x8b0] ss:$52 sps:$4 sm:$0xff]  }
 0x22f   :  { %5417 = vmatpush2.bf16.msra.mxu0 %v20547_v56  ;;  %v20597_v56 = vld [vmem:[%s30201_s1 + $0x50c] ss:$52 sps:$4 sm:$0xff]  }
 0x230   :  { %5487 = vmatpush1.bf16.msra.mxu1 %v20550_v41  ;;  %5418 = vmatprep.subr.bf16.mxu0 %v20555_v57  ;;  %v20600_v41 = vld [vmem:[%s30201_s1 + $0x84c] ss:$52 sps:$4 sm:$0xff]   ;;  %v20595_v57 = vld [vmem:[%s30201_s1 + $0x508] ss:$52 sps:$4 sm:$0xff]  }
 0x231   :  { %5488 = vmatprep.subr.bf16.mxu1 %v20558_v38  ;;  %v20598_v38 = vld [vmem:[%s30201_s1 + $0x848] ss:$52 sps:$4 sm:$0xff]  }
 0x233   :  { %5419 = vmatpush2.bf16.msra.mxu0 %v20553_v61  ;;  %v20603_v61 = vld [vmem:[%s30201_s1 + $0x4a4] ss:$52 sps:$4 sm:$0xff]  }
 0x234   :  { %5489 = vmatpush1.bf16.msra.mxu1 %v20556_v62  ;;  %5420 = vmatprep.subr.bf16.mxu0 %v20561_v63  ;;  %v20606_v62 = vld [vmem:[%s30201_s1 + $0x7e4] ss:$52 sps:$4 sm:$0xff]   ;;  %v20601_v63 = vld [vmem:[%s30201_s1 + $0x4a0] ss:$52 sps:$4 sm:$0xff]  }
 0x235   :  { %5490 = vmatprep.subr.bf16.mxu1 %v20564_v0  ;;  %v20604_v0 = vld [vmem:[%s30201_s1 + $0x7e0] ss:$52 sps:$4 sm:$0xff]  }
 0x237   :  { %5421 = vmatpush2.bf16.msra.mxu0 %v20559_v1  ;;  %v20609_v1 = vld [vmem:[%s30201_s1 + $0x43c] ss:$52 sps:$4 sm:$0xff]  }
 0x238   :  { %5491 = vmatpush1.bf16.msra.mxu1 %v20562_v2  ;;  %5422 = vmatprep.subr.bf16.mxu0 %v20567_v6  ;;  %v20612_v2 = vld [vmem:[%s30201_s1 + $0x77c] ss:$52 sps:$4 sm:$0xff]   ;;  %v20607_v6 = vld [vmem:[%s30201_s1 + $0x438] ss:$52 sps:$4 sm:$0xff]  }
 0x239   :  { %5492 = vmatprep.subr.bf16.mxu1 %v20570_v11  ;;  %v20610_v11 = vld [vmem:[%s30201_s1 + $0x778] ss:$52 sps:$4 sm:$0xff]  }
 0x23b   :  { %5423 = vmatpush2.bf16.msra.mxu0 %v20565_v18  ;;  %v20615_v18 = vld [vmem:[%s30201_s1 + $0x3d4] ss:$52 sps:$4 sm:$0xff]  }
 0x23c   :  { %5493 = vmatpush1.bf16.msra.mxu1 %v20568_v43  ;;  %5424 = vmatprep.subr.bf16.mxu0 %v20573_v28  ;;  %v20618_v43 = vld [vmem:[%s30201_s1 + $0x714] ss:$52 sps:$4 sm:$0xff]   ;;  %v20613_v28 = vld [vmem:[%s30201_s1 + $0x3d0] ss:$52 sps:$4 sm:$0xff]  }
 0x23d   :  { %5494 = vmatprep.subr.bf16.mxu1 %v20576_v32  ;;  %v20616_v32 = vld [vmem:[%s30201_s1 + $0x710] ss:$52 sps:$4 sm:$0xff]  }
 0x23f   :  { %5425 = vmatpush2.bf16.msra.mxu0 %v20571_v50  ;;  %v20621_v50 = vld [vmem:[%s30201_s1 + $0x36c] ss:$52 sps:$4 sm:$0xff]  }
 0x240   :  { %5495 = vmatpush1.bf16.msra.mxu1 %v20574_v37  ;;  %5523 = vmatprep.subr.bf16.mxu0 %v20582_v21  ;;  %v20624_v37 = vld [vmem:[%s30201_s1 + $0x6ac] ss:$52 sps:$4 sm:$0xff]   ;;  %v24902_v21 = vpop.f32.mrf.mxu1 }
 0x241   :  { %5496 = vmatprep.subr.bf16.mxu1 %v20579_v10  ;;  %v30209_v10 = vsub.s32 6, %v23667_v17 }
 0x242   :  { %5427 = vmatmul.mubr.bf16.vlgmr.msra.gmra.mxu0 %v24820_v19 }
 0x243   :  { %5524 = vmatpush1.bf16.msra.mxu0 %v20580_v40  ;;  %5555 = vmatprep.mubr.bf16.mxu0 %v24838_v49  ;;  %v20622_v40 = vld [vmem:[%s30201_s1 + $0x6a8] ss:$52 sps:$4 sm:$0xff]  }
 0x244   :  { %5497 = vmatpush2.bf16.msra.mxu1 %v20577_v30  ;;  %5525 = vmatprep.subr.bf16.mxu0 %v20588_v42  ;;  %v20619_v30 = vld [vmem:[%s30201_s1 + $0x368] ss:$52 sps:$4 sm:$0xff]   ;;  %v20627_v42 = vld [vmem:[%s30201_s1 + $0xcc4] ss:$52 sps:$4 sm:$0xff]  }
 0x245   :  { %5498 = vmatprep.subr.bf16.mxu1 %v20585_v45  ;;  %v5170_v45 = vpop.f32.mrf.mxu1 }
 0x247   :  { %5526 = vmatpush1.bf16.msra.mxu0 %v20586_v48  ;;  %v24919_v48 = vld [vmem:[%s30203_s2] sm:$0xff] }
 0x248   :  { %5499 = vmatpush2.bf16.msra.mxu1 %v20583_v46  ;;  %5527 = vmatprep.subr.bf16.mxu0 %v20594_v44  ;;  %v20630_v46 = vld [vmem:[%s30201_s1 + $0x1004] ss:$52 sps:$4 sm:$0xff]   ;;  %v20625_v44 = vld [vmem:[%s30201_s1 + $0xcc0] ss:$52 sps:$4 sm:$0xff]  }
 0x249   :  { %5500 = vmatprep.subr.bf16.mxu1 %v20591_v29  ;;  %v850_v29 = vrot.slane %v24919_v48, %v30209_v10 }
 0x24b   :  { %5528 = vmatpush1.bf16.msra.mxu0 %v20592_v55  ;;  %v20633_v55 = vld [vmem:[%s30201_s1 + $0xc5c] ss:$52 sps:$4 sm:$0xff]  }
 0x24c   :  { %5501 = vmatpush2.bf16.msra.mxu1 %v20589_v54  ;;  %5529 = vmatprep.subr.bf16.mxu0 %v20600_v41  ;;  %v20628_v54 = vld [vmem:[%s30201_s1 + $0x1000] ss:$52 sps:$4 sm:$0xff]   ;;  %v24935_v41 = vpop.f32.mrf.mxu1 }
 0x24d   :  { %5502 = vmatprep.subr.bf16.mxu1 %v20597_v56  ;;  %v24933_v56 = vpop.f32.mrf.mxu0 }
 0x24f   :  { %5530 = vmatpush1.bf16.msra.mxu0 %v20598_v38  ;;  %v5171_v38 = vadd.f32 %v5170_v45, %v850_v29  ;;  %v20654_v45 = vld [vmem:[%s30201_s1 + $0xe64] ss:$52 sps:$4 sm:$0xff]  }
 0x250   :  { %5503 = vmatpush2.bf16.msra.mxu1 %v20595_v57  ;;  %5531 = vmatprep.subr.bf16.mxu0 %v20606_v62  ;;  %v20636_v57 = vld [vmem:[%s30201_s1 + $0xf9c] ss:$52 sps:$4 sm:$0xff]   ;;  %v20631_v62 = vld [vmem:[%s30201_s1 + $0xc58] ss:$52 sps:$4 sm:$0xff]  }
 0x251   :  { %5504 = vmatprep.subr.bf16.mxu1 %v20603_v61 }
 0x253   :  { %5532 = vmatpush1.bf16.msra.mxu0 %v20604_v0 }
 0x254   :  { %5505 = vmatpush2.bf16.msra.mxu1 %v20601_v63  ;;  %5533 = vmatprep.subr.bf16.mxu0 %v20612_v2  ;;  %v20634_v63 = vld [vmem:[%s30201_s1 + $0xf98] ss:$52 sps:$4 sm:$0xff]  }
 0x255   :  { %5506 = vmatprep.subr.bf16.mxu1 %v20609_v1  ;;  %v5174_v1 = vpop.f32.mrf.mxu1 }
 0x257   :  { %5534 = vmatpush1.bf16.msra.mxu0 %v20610_v11  ;;  %v5175_v11 = vadd.f32 %v5174_v1, %v850_v29  ;;  %v20657_v29 = vld [vmem:[%s30201_s1 + $0xabc] ss:$52 sps:$4 sm:$0xff]   ;;  %v20672_v1 = vld [vmem:[%s30201_s1 + $0xd2c] ss:$52 sps:$4 sm:$0xff]  }
 0x258   :  { %5507 = vmatpush2.bf16.msra.mxu1 %v20607_v6  ;;  %5535 = vmatprep.subr.bf16.mxu0 %v20618_v43  ;;  %v20642_v6 = vld [vmem:[%s30201_s1 + $0xf34] ss:$52 sps:$4 sm:$0xff]   ;;  %v20640_v43 = vld [vmem:[%s30201_s1 + $0xf30] ss:$52 sps:$4 sm:$0xff]  }
 0x259   :  { %5508 = vmatprep.subr.bf16.mxu1 %v20615_v18  ;;  %v20637_v18 = vld [vmem:[%s30201_s1 + $0xbf0] ss:$52 sps:$4 sm:$0xff]  }
 0x25b   :  { %5536 = vmatpush1.bf16.msra.mxu0 %v20616_v32 }
 0x25c   :  { %5509 = vmatpush2.bf16.msra.mxu1 %v20613_v28  ;;  %5537 = vmatprep.subr.bf16.mxu0 %v20624_v37  ;;  %v20648_v37 = vld [vmem:[%s30201_s1 + $0xecc] ss:$52 sps:$4 sm:$0xff]  }
 0x25d   :  { %5510 = vmatprep.subr.bf16.mxu1 %v20621_v50  ;;  %v20645_v50 = vld [vmem:[%s30201_s1 + $0xb8c] ss:$52 sps:$4 sm:$0xff]  }
 0x25f   :  { %5538 = vmatpush1.bf16.msra.mxu0 %v20622_v40  ;;  %v20651_v40 = vld [vmem:[%s30201_s1 + $0xb24] ss:$52 sps:$4 sm:$0xff]  }
 0x260   :  { %5511 = vmatpush2.bf16.msra.mxu1 %v20619_v30  ;;  %5539 = vmatprep.subr.bf16.mxu0 %v20627_v42  ;;  %v20643_v30 = vld [vmem:[%s30201_s1 + $0xb88] ss:$52 sps:$4 sm:$0xff]   ;;  %v20649_v42 = vld [vmem:[%s30201_s1 + $0xb20] ss:$52 sps:$4 sm:$0xff]  }
 0x261   :  { %5566 = vmatprep.subr.bf16.mxu1 %v20630_v46  ;;  %v20652_v46 = vld [vmem:[%s30201_s1 + $0xe60] ss:$52 sps:$4 sm:$0xff]  }
 0x262   :  { %v5213_v61 = vpop.f32.mrf.mxu0 }
 0x263   :  { %5513 = vmatmul.mubr.bf16.vlgmr.msra.gmra.mxu1 %v24600_v20  ;;  %v24947_v0 = vadd.f32 %v5213_v61, %v5171_v38  ;;  %5540 = vmatpush2.bf16.msra.mxu0 %v20625_v44  ;;  %v20639_v20 = vld [vmem:[%s30201_s1 + $0xbf4] ss:$52 sps:$4 sm:$0xff]   ;;  %v20660_v44 = vld [vmem:[%s30201_s1 + $0xdfc] ss:$52 sps:$4 sm:$0xff]  }
 0x264   :  { %5567 = vmatpush1.bf16.msra.mxu1 %v20628_v54  ;;  %v24949_v2 = vpop.f32.mrf.mxu0  ;;  %5541 = vmatprep.subr.bf16.mxu0 %v20633_v55  ;;  %v20655_v54 = vld [vmem:[%s30201_s1 + $0xab8] ss:$52 sps:$4 sm:$0xff]   ;;  %v20666_v38 = vld [vmem:[%s30201_s1 + $0xd94] ss:$52 sps:$4 sm:$0xff]   ;;  %v20661_v61 = vld [vmem:[%s30201_s1 + $0xa50] ss:$52 sps:$4 sm:$0xff]  }
 0x265   :  { %5568 = vmatprep.subr.bf16.mxu1 %v20636_v57  ;;  %5598 = vmatprep.mubr.bf16.mxu1 %v24620_v33  ;;  %v20646_v33 = vld [vmem:[%s30201_s1 + $0xec8] ss:$52 sps:$4 sm:$0xff]   ;;  %v20658_v55 = vld [vmem:[%s30201_s1 + $0xdf8] ss:$52 sps:$4 sm:$0xff]  }
 0x266   :  { %v5217_v28 = vpop.f32.mrf.mxu0  ;;  %v20663_v57 = vld [vmem:[%s30201_s1 + $0xa54] ss:$52 sps:$4 sm:$0xff]  }
 0x267   :  { %v24964_v32 = vadd.f32 %v5217_v28, %v5175_v11  ;;  %5542 = vmatpush2.bf16.msra.mxu0 %v20631_v62  ;;  %v20664_v62 = vld [vmem:[%s30201_s1 + $0xd90] ss:$52 sps:$4 sm:$0xff]   ;;  %v20676_v28 = vld [vmem:[%s30201_s1 + $0x1680] ss:$52 sps:$4 sm:$0xff]  }
 0x268   :  { %5569 = vmatpush1.bf16.msra.mxu1 %v20634_v63  ;;  %5543 = vmatprep.subr.bf16.mxu0 %v20639_v20  ;;  %v20669_v63 = vld [vmem:[%s30201_s1 + $0x9ec] ss:$52 sps:$4 sm:$0xff]   ;;  %v20667_v20 = vld [vmem:[%s30201_s1 + $0x9e8] ss:$52 sps:$4 sm:$0xff]   ;;  %v20675_v11 = vld [vmem:[%s30201_s1 + $0x1344] ss:$52 sps:$4 sm:$0xff]  }
 0x269   :  { %5570 = vmatprep.subr.bf16.mxu1 %v20642_v6  ;;  %v20670_v6 = vld [vmem:[%s30201_s1 + $0xd28] ss:$52 sps:$4 sm:$0xff]  }
 0x26b   :  { %5544 = vmatpush2.bf16.msra.mxu0 %v20637_v18  ;;  %v20678_v18 = vld [vmem:[%s30201_s1 + $0x1684] ss:$52 sps:$4 sm:$0xff]  }
 0x26c   :  { %5571 = vmatpush1.bf16.msra.mxu1 %v20640_v43  ;;  %5545 = vmatprep.subr.bf16.mxu0 %v20645_v50  ;;  %v20673_v43 = vld [vmem:[%s30201_s1 + $0x1340] ss:$52 sps:$4 sm:$0xff]   ;;  %v20681_v50 = vld [vmem:[%s30201_s1 + $0x12dc] ss:$52 sps:$4 sm:$0xff]  }
 0x26d   :  { %5572 = vmatprep.subr.bf16.mxu1 %v20648_v37  ;;  %v20684_v37 = vld [vmem:[%s30201_s1 + $0x161c] ss:$52 sps:$4 sm:$0xff]  }
 0x26f   :  { %5546 = vmatpush2.bf16.msra.mxu0 %v20643_v30  ;;  %v25044_v30 = vpop.f32.mrf.mxu1 }
 0x270   :  { %5573 = vmatpush1.bf16.msra.mxu1 %v20646_v33  ;;  %5547 = vmatprep.subr.bf16.mxu0 %v20651_v40  ;;  %v25046_v33 = vpop.f32.mrf.mxu0  ;;  %v20679_v40 = vld [vmem:[%s30201_s1 + $0x12d8] ss:$52 sps:$4 sm:$0xff]  }
 0x271   :  { %5574 = vmatprep.subr.bf16.mxu1 %v20654_v45  ;;  %v20682_v45 = vld [vmem:[%s30201_s1 + $0x1618] ss:$52 sps:$4 sm:$0xff]  }
 0x273   :  { %5548 = vmatpush2.bf16.msra.mxu0 %v20649_v42 }
 0x274   :  { %5575 = vmatpush1.bf16.msra.mxu1 %v20652_v46  ;;  %5549 = vmatprep.subr.bf16.mxu0 %v20657_v29  ;;  %v25057_v29 = vld [vmem:[%s30202_s0 + $0x8] ss:$28 sps:$4 sm:$0xff]  }
 0x275   :  { %5576 = vmatprep.subr.bf16.mxu1 %v20660_v44  ;;  %v20687_v44 = vld [vmem:[%s30201_s1 + $0x1274] ss:$52 sps:$4 sm:$0xff]  }
 0x277   :  { %5550 = vmatpush2.bf16.msra.mxu0 %v20655_v54  ;;  %v20690_v54 = vld [vmem:[%s30201_s1 + $0x15b4] ss:$52 sps:$4 sm:$0xff]  }
 0x278   :  { %5577 = vmatpush1.bf16.msra.mxu1 %v20658_v55  ;;  %5551 = vmatprep.subr.bf16.mxu0 %v20663_v57 }
 0x279   :  { %5578 = vmatprep.subr.bf16.mxu1 %v20666_v38 }
 0x27b   :  { %5552 = vmatpush2.bf16.msra.mxu0 %v20661_v61 }
 0x27c   :  { %5579 = vmatpush1.bf16.msra.mxu1 %v20664_v62  ;;  %5553 = vmatprep.subr.bf16.mxu0 %v20669_v63  ;;  %v20685_v62 = vld [vmem:[%s30201_s1 + $0x1270] ss:$52 sps:$4 sm:$0xff]  }
 0x27d   :  { %5580 = vmatprep.subr.bf16.mxu1 %v20672_v1  ;;  %v20688_v63 = vld [vmem:[%s30201_s1 + $0x15b0] ss:$52 sps:$4 sm:$0xff]   ;;  %v20693_v1 = vld [vmem:[%s30201_s1 + $0x120c] ss:$52 sps:$4 sm:$0xff]  }
 0x27f   :  { %5554 = vmatpush2.bf16.msra.mxu0 %v20667_v20  ;;  %v20696_v20 = vld [vmem:[%s30201_s1 + $0x154c] ss:$52 sps:$4 sm:$0xff]  }
 0x280   :  { %5581 = vmatpush1.bf16.msra.mxu1 %v20670_v6  ;;  %5609 = vmatprep.subr.bf16.mxu0 %v20678_v18 }
 0x281   :  { %5582 = vmatprep.subr.bf16.mxu1 %v20675_v11 }
 0x282   :  { %v5299_v46 = vpop.f32.mrf.mxu0  ;;  %5556 = vmatmul.mubr.bf16.vlgmr.msra.gmra.mxu0 %v25057_v29 }
 0x283   :  { %v5256_v42 = vpop.f32.mrf.mxu1  ;;  %5610 = vmatpush1.bf16.msra.mxu0 %v20676_v28  ;;  %5641 = vmatprep.mubr.bf16.mxu0 %v30214_v14  ;;  %v20694_v28 = vld [vmem:[%s30201_s1 + $0x1548] ss:$52 sps:$4 sm:$0xff]  }
 0x284   :  { %v5257_v55 = vadd.f32 %v5256_v42, %v24947_v0  ;;  %5583 = vmatpush2.bf16.msra.mxu1 %v20673_v43  ;;  %v25069_v38 = vpop.f32.mrf.mxu0  ;;  %5611 = vmatprep.subr.bf16.mxu0 %v20684_v37  ;;  %v20691_v43 = vld [vmem:[%s30201_s1 + $0x1208] ss:$52 sps:$4 sm:$0xff]   ;;  %v20697_v42 = vld [vmem:[%s30201_s1 + $0x11a0] ss:$52 sps:$4 sm:$0xff]  }
 0x285   :  { %v25067_v57 = vpop.f32.mrf.mxu1  ;;  %5584 = vmatprep.subr.bf16.mxu1 %v20681_v50  ;;  %v20699_v50 = vld [vmem:[%s30201_s1 + $0x11a4] ss:$52 sps:$4 sm:$0xff]  }
 0x286   :  { %v5300_v61 = vadd.f32 %v5299_v46, %v5257_v55  ;;  %v5303_v11 = vpop.f32.mrf.mxu0  ;;  %v20700_v46 = vld [vmem:[%s30201_s1 + $0x14e0] ss:$52 sps:$4 sm:$0xff]   ;;  %v20703_v55 = vld [vmem:[%s30201_s1 + $0x1138] ss:$52 sps:$4 sm:$0xff]  }
 0x287   :  { %v5260_v0 = vpop.f32.mrf.mxu1  ;;  %5612 = vmatpush1.bf16.msra.mxu0 %v20682_v45 }
 0x288   :  { %v5261_v6 = vadd.f32 %v5260_v0, %v24964_v32  ;;  %5585 = vmatpush2.bf16.msra.mxu1 %v20679_v40  ;;  %5613 = vmatprep.subr.bf16.mxu0 %v20690_v54  ;;  %v20702_v32 = vld [vmem:[%s30201_s1 + $0x14e4] ss:$52 sps:$4 sm:$0xff]   ;;  %v5822_v37 = vmax.f32 %v5300_v61, 0.0  ;;  %v20708_v54 = vld [vmem:[%s30201_s1 + $0x147c] ss:$52 sps:$4 sm:$0xff]  }
 0x289   :  { %5586 = vmatprep.subr.bf16.mxu1 %v20687_v44  ;;  %v20705_v44 = vld [vmem:[%s30201_s1 + $0x113c] ss:$52 sps:$4 sm:$0xff]   ;;  %v20706_v61 = vld [vmem:[%s30201_s1 + $0x1478] ss:$52 sps:$4 sm:$0xff]  }
 0x28a   :  { %v5304_v18 = vadd.f32 %v5303_v11, %v5261_v6  ;;  %v20709_v0 = vld [vmem:[%s30201_s1 + $0x10d0] ss:$52 sps:$4 sm:$0xff]   ;;  %v20720_v6 = vld [vmem:[%s30201_s1 + $0x13ac] ss:$52 sps:$4 sm:$0xff]   ;;  %v20715_v11 = vld [vmem:[%s30201_s1 + $0x1068] ss:$52 sps:$4 sm:$0xff]  }
 0x28b   :  { %5614 = vmatpush1.bf16.msra.mxu0 %v20688_v63  ;;  %v20714_v63 = vld [vmem:[%s30201_s1 + $0x1414] ss:$52 sps:$4 sm:$0xff]  }
 0x28c   :  { %v5835_v40 = vmax.f32 %v5304_v18, 0.0  ;;  %5587 = vmatpush2.bf16.msra.mxu1 %v20685_v62  ;;  %5615 = vmatprep.subr.bf16.mxu0 %v20696_v20  ;;  %v20711_v62 = vld [vmem:[%s30201_s1 + $0x10d4] ss:$52 sps:$4 sm:$0xff]   ;;  %v20717_v20 = vld [vmem:[%s30201_s1 + $0x106c] ss:$52 sps:$4 sm:$0xff]  }
 0x28d   :  { %5588 = vmatprep.subr.bf16.mxu1 %v20693_v1  ;;  %v20712_v1 = vld [vmem:[%s30201_s1 + $0x1410] ss:$52 sps:$4 sm:$0xff]   ;;  %v20718_v18 = vld [vmem:[%s30201_s1 + $0x13a8] ss:$52 sps:$4 sm:$0xff]  }
 0x28e   :  { %v25097_v45 = vpack.c.bf16 %v5835_v40, %v5822_v37  ;;  %v20725_v37 = vld [vmem:[%s30201_s1 + $0x5e0] ss:$52 sps:$4 sm:$0xff]  }
 0x28f   :  { %5616 = vmatpush1.bf16.msra.mxu0 %v20694_v28  ;;  %v20722_v28 = vld [vmem:[%s30201_s1 + $0xcc8] ss:$52 sps:$4 sm:$0xff]   ;;  %v20726_v40 = vld [vmem:[%s30201_s1 + $0xc60] ss:$52 sps:$4 sm:$0xff]  }
 0x290   :  { %5589 = vmatpush2.bf16.msra.mxu1 %v20691_v43  ;;  %5617 = vmatprep.subr.bf16.mxu0 %v20702_v32  ;;  %v20721_v43 = vld [vmem:[%s30201_s1 + $0x648] ss:$52 sps:$4 sm:$0xff]  }
 0x291   :  { %5590 = vmatprep.subr.bf16.mxu1 %v20699_v50  ;;  %v20723_v50 = vld [vmem:[%s30201_s1 + $0x308] ss:$52 sps:$4 sm:$0xff]  }
 0x292   :  { %v20724_v32 = vld [vmem:[%s30201_s1 + $0x988] ss:$52 sps:$4 sm:$0xff]  }
 0x293   :  { %5618 = vmatpush1.bf16.msra.mxu0 %v20700_v46  ;;  %v20728_v46 = vld [vmem:[%s30201_s1 + $0x920] ss:$52 sps:$4 sm:$0xff]  }
 0x294   :  { %5591 = vmatpush2.bf16.msra.mxu1 %v20697_v42  ;;  %5619 = vmatprep.subr.bf16.mxu0 %v20708_v54  ;;  %v20727_v42 = vld [vmem:[%s30201_s1 + $0x2a0] ss:$52 sps:$4 sm:$0xff]   ;;  %v20729_v54 = vld [vmem:[%s30201_s1 + $0x578] ss:$52 sps:$4 sm:$0xff]  }
 0x295   :  { %5592 = vmatprep.subr.bf16.mxu1 %v20705_v44  ;;  %v25169_v44 = vld [vmem:[%s30202_s0 + $0x18] ss:$28 sps:$4 sm:$0xff]  }
 0x297   :  { %5620 = vmatpush1.bf16.msra.mxu0 %v20706_v61  ;;  %v20732_v61 = vld [vmem:[%s30201_s1 + $0x8b8] ss:$52 sps:$4 sm:$0xff]  }
 0x298   :  { %5593 = vmatpush2.bf16.msra.mxu1 %v20703_v55  ;;  %5621 = vmatprep.subr.bf16.mxu0 %v20714_v63  ;;  %v20730_v55 = vld [vmem:[%s30201_s1 + $0xbf8] ss:$52 sps:$4 sm:$0xff]   ;;  %v20733_v63 = vld [vmem:[%s30201_s1 + $0x510] ss:$52 sps:$4 sm:$0xff]  }
 0x299   :  { %5594 = vmatprep.subr.bf16.mxu1 %v20711_v62  ;;  %v22796_v62 = vld [vmem:[%s30202_s0 + $0x4] ss:$28 sps:$4 sm:$0xff]  }
 0x29b   :  { %5622 = vmatpush1.bf16.msra.mxu0 %v20712_v1  ;;  %v20735_v1 = vld [vmem:[%s30201_s1 + $0x1d0] ss:$52 sps:$4 sm:$0xff]  }
 0x29c   :  { %5595 = vmatpush2.bf16.msra.mxu1 %v20709_v0  ;;  %5623 = vmatprep.subr.bf16.mxu0 %v20720_v6  ;;  %v20734_v0 = vld [vmem:[%s30201_s1 + $0xb90] ss:$52 sps:$4 sm:$0xff]   ;;  %v20738_v6 = vld [vmem:[%s30201_s1 + $0xb28] ss:$52 sps:$4 sm:$0xff]  }
 0x29d   :  { %5596 = vmatprep.subr.bf16.mxu1 %v20717_v20  ;;  %v20737_v20 = vld [vmem:[%s30201_s1 + $0x4a8] ss:$52 sps:$4 sm:$0xff]  }
 0x29f   :  { %5624 = vmatpush1.bf16.msra.mxu0 %v20718_v18  ;;  %v20740_v18 = vld [vmem:[%s30201_s1 + $0x7e8] ss:$52 sps:$4 sm:$0xff]  }
 0x2a0   :  { %5597 = vmatpush2.bf16.msra.mxu1 %v20715_v11  ;;  %19307 = vmatprep.subr.bf16.mxu0 %v20721_v43  ;;  %v20739_v11 = vld [vmem:[%s30201_s1 + $0x168] ss:$52 sps:$4 sm:$0xff]   ;;  %v20741_v43 = vld [vmem:[%s30201_s1 + $0x440] ss:$52 sps:$4 sm:$0xff]  }
 0x2a1   :  { %19329 = vmatprep.subr.bf16.mxu1 %v20722_v28  ;;  %v20742_v28 = vld [vmem:[%s30201_s1 + $0xac0] ss:$52 sps:$4 sm:$0xff]  }
 0x2a2   :  { %5642 = vmatmul.mubr.bf16.vlgmr.msra.gmra.mxu0 %v25169_v44 }
 0x2a3   :  { %5599 = vmatmul.mubr.bf16.vlgmr.msra.gmra.mxu1 %v24820_v19  ;;  %19308 = vmatpush3.bf16.msra.mxu0 %v20723_v50  ;;  %v20731_v19 = vld [vmem:[%s30201_s1 + $0x238] ss:$52 sps:$4 sm:$0xff]   ;;  %v20743_v50 = vld [vmem:[%s30201_s1 + $0x100] ss:$52 sps:$4 sm:$0xff]  }
 0x2a4   :  { %19330 = vmatpush3.bf16.msra.mxu1 %v20724_v32  ;;  %19309 = vmatprep.subr.bf16.mxu0 %v20725_v37  ;;  %v20744_v32 = vld [vmem:[%s30201_s1 + $0x780] ss:$52 sps:$4 sm:$0xff]   ;;  %v20745_v37 = vld [vmem:[%s30201_s1 + $0x3d8] ss:$52 sps:$4 sm:$0xff]  }
 0x2a5   :  { %19331 = vmatprep.subr.bf16.mxu1 %v20726_v40  ;;  %5684 = vmatprep.mubr.bf16.mxu0 %v22796_v62  ;;  %v20746_v40 = vld [vmem:[%s30201_s1 + $0xa58] ss:$52 sps:$4 sm:$0xff]  }
 0x2a6   :  { %5725 = vmatprep.mubr.bf16.mxu1 %v24838_v49  ;;  %v20736_v49 = vld [vmem:[%s30201_s1 + $0x850] ss:$52 sps:$4 sm:$0xff]   ;;  %v820_v62 = vld [vmem:[%s30203_s2 + $0x8] sm:$0x1f] }
 0x2a7   :  { %19310 = vmatpush3.bf16.msra.mxu0 %v20727_v42  ;;  %v20747_v42 = vld [vmem:[%s30201_s1 + $0x98] ss:$52 sps:$4 sm:$0xff]  }
 0x2a8   :  { %19332 = vmatpush3.bf16.msra.mxu1 %v20728_v46  ;;  %19311 = vmatprep.subr.bf16.mxu0 %v20729_v54  ;;  %v20748_v46 = vld [vmem:[%s30201_s1 + $0x718] ss:$52 sps:$4 sm:$0xff]   ;;  %v20749_v54 = vld [vmem:[%s30201_s1 + $0x370] ss:$52 sps:$4 sm:$0xff]  }
 0x2a9   :  { %19333 = vmatprep.subr.bf16.mxu1 %v20730_v55  ;;  %v20750_v55 = vld [vmem:[%s30201_s1 + $0x9f0] ss:$52 sps:$4 sm:$0xff]  }
 0x2ab   :  { %19312 = vmatpush3.bf16.msra.mxu0 %v20731_v19  ;;  %v20751_v19 = vld [vmem:[%s30201_s1 + $0x30] ss:$52 sps:$4 sm:$0xff]  }
 0x2ac   :  { %19334 = vmatpush3.bf16.msra.mxu1 %v20732_v61  ;;  %19313 = vmatprep.subr.bf16.mxu0 %v20733_v63  ;;  %v20752_v61 = vld [vmem:[%s30201_s1 + $0x6b0] ss:$52 sps:$4 sm:$0xff]   ;;  %v20753_v63 = vld [vmem:[%s30201_s1 + $0x1348] ss:$52 sps:$4 sm:$0xff]  }
 0x2ad   :  { %19335 = vmatprep.subr.bf16.mxu1 %v20734_v0  ;;  %v20754_v0 = vld [vmem:[%s30201_s1 + $0x1008] ss:$52 sps:$4 sm:$0xff]  }
 0x2af   :  { %19314 = vmatpush3.bf16.msra.mxu0 %v20735_v1  ;;  %v20755_v1 = vld [vmem:[%s30201_s1 + $0x1688] ss:$52 sps:$4 sm:$0xff]  }
 0x2b0   :  { %19336 = vmatpush3.bf16.msra.mxu1 %v20736_v49  ;;  %19315 = vmatprep.subr.bf16.mxu0 %v20737_v20  ;;  %v20756_v49 = vld [vmem:[%s30201_s1 + $0x12e0] ss:$52 sps:$4 sm:$0xff]   ;;  %v858_v20 = vrot.slane %v820_v62, %v23682_v22  ;;  %v20760_v62 = vld [vmem:[%s30201_s1 + $0xf38] ss:$52 sps:$4 sm:$0xff]  }
 0x2b1   :  { %19337 = vmatprep.subr.bf16.mxu1 %v20738_v6  ;;  %v25264_v6 = vpop.f32.mrf.mxu1 }
 0x2b3   :  { %19316 = vmatpush3.bf16.msra.mxu0 %v20739_v11  ;;  %v25266_v11 = vpop.f32.mrf.mxu0 }
 0x2b4   :  { %19338 = vmatpush3.bf16.msra.mxu1 %v20740_v18  ;;  %19317 = vmatprep.subr.bf16.mxu0 %v20741_v43  ;;  %v30212_v18 = vmov 0.0  }
 0x2b5   :  { %19339 = vmatprep.subr.bf16.mxu1 %v20742_v28  ;;  %v22797_v28 = vld [vmem:[%s30202_s0] ss:$28 sps:$4 sm:$0xff]  }
 0x2b7   :  { %19318 = vmatpush3.bf16.msra.mxu0 %v20743_v50 }
 0x2b8   :  { %19340 = vmatpush3.bf16.msra.mxu1 %v20744_v32  ;;  %19319 = vmatprep.subr.bf16.mxu0 %v20745_v37  ;;  %v20757_v32 = vld [vmem:[%s30201_s1 + $0xfa0] ss:$52 sps:$4 sm:$0xff]  }
 0x2b9   :  { %19341 = vmatprep.subr.bf16.mxu1 %v20746_v40  ;;  %v20758_v40 = vld [vmem:[%s30201_s1 + $0x1620] ss:$52 sps:$4 sm:$0xff]  }
 0x2bb   :  { %19320 = vmatpush3.bf16.msra.mxu0 %v20747_v42  ;;  %v20759_v42 = vld [vmem:[%s30201_s1 + $0x1278] ss:$52 sps:$4 sm:$0xff]  }
 0x2bc   :  { %19342 = vmatpush3.bf16.msra.mxu1 %v20748_v46  ;;  %19321 = vmatprep.subr.bf16.mxu0 %v20749_v54 }
 0x2bd   :  { %19343 = vmatprep.subr.bf16.mxu1 %v20750_v55  ;;  %v22798_v55 = vld [vmem:[%s30202_s0 + $0x14] ss:$28 sps:$4 sm:$0xff]  }
 0x2bf   :  { %19322 = vmatpush3.bf16.msra.mxu0 %v20751_v19 }
 0x2c0   :  { %19344 = vmatpush3.bf16.msra.mxu1 %v20752_v61  ;;  %19351 = vmatprep.subr.bf16.mxu0 %v20753_v63 }
 0x2c1   :  { %19656 = vmatprep.subr.bf16.mxu1 %v30212_v18 }
 0x2c2   :  { %v5342_v43 = vpop.f32.mrf.mxu0  ;;  %5685 = vmatmul.mubr.bf16.vlgmr.msra.gmra.mxu0 %v22797_v28  ;;  %v25313_v28 = vsub.s32 3, %v23667_v17 }
 0x2c3   :  { %v5385_v50 = vpop.f32.mrf.mxu1  ;;  %5726 = vmatmul.mubr.bf16.vlgmr.msra.gmra.mxu1 %v25057_v29  ;;  %v5343_v37 = vadd.f32 %v5342_v43, %v858_v20  ;;  %19352 = vmatpush3.bf16.msra.mxu0 %v20754_v0  ;;  %v20761_v0 = vld [vmem:[%s30201_s1 + $0x15b8] ss:$52 sps:$4 sm:$0xff]  }
 0x2c4   :  { %19657 = vmatpush3.bf16.msra.mxu1 %v20755_v1  ;;  %v25282_v46 = vpop.f32.mrf.mxu0  ;;  %19353 = vmatprep.subr.bf16.mxu0 %v20756_v49  ;;  %v20762_v1 = vld [vmem:[%s30201_s1 + $0x1210] ss:$52 sps:$4 sm:$0xff]   ;;  %v25305_v49 = vsub.s32 1, %v23667_v17 }
 0x2c5   :  { %v25284_v54 = vpop.f32.mrf.mxu1  ;;  %19658 = vmatprep.subr.bf16.mxu1 %v30212_v18  ;;  %v25287_v29 = vadd.f32 %v5385_v50, %v5343_v37  ;;  %5766 = vmatprep.mubr.bf16.mxu0 %v22798_v55  ;;  %v20764_v50 = vld [vmem:[%s30201_s1 + $0x1550] ss:$52 sps:$4 sm:$0xff]   ;;  %v838_v55 = vrot.slane %v24919_v48, %v25313_v28 }
 0x2c6   :  { %19672 = vmatprep.mubr.msk.bf16.mxu1 %vm22807_vm0, %v30212_v18  ;;  %v5346_v19 = vpop.f32.mrf.mxu0  ;;  %v830_v37 = vrot.slane %v24919_v48, %v25305_v49  ;;  %v20770_v48 = vld [vmem:[%s30201_s1 + $0x1480] ss:$52 sps:$4 sm:$0xff]  }
 0x2c7   :  { %v5389_v61 = vpop.f32.mrf.mxu1  ;;  %v5347_v63 = vadd.f32 %v5346_v19, %v858_v20  ;;  %19354 = vmatpush3.bf16.msra.mxu0 %v20757_v32  ;;  %v20763_v20 = vld [vmem:[%s30201_s1 + $0xed0] ss:$52 sps:$4 sm:$0xff]   ;;  %v20765_v32 = vld [vmem:[%s30201_s1 + $0x11a8] ss:$52 sps:$4 sm:$0xff]  }
 0x2c8   :  { %19659 = vmatpush3.bf16.msra.mxu1 %v20758_v40  ;;  %19355 = vmatprep.subr.bf16.mxu0 %v20759_v42  ;;  %v20766_v40 = vld [vmem:[%s30201_s1 + $0xe68] ss:$52 sps:$4 sm:$0xff]   ;;  %v4661_v19 = vadd.f32 %v23915_v52, %v830_v37  ;;  %v4833_v52 = vadd.f32 %v24253_v8, %v838_v55 }
 0x2c9   :  { %19660 = vmatprep.subr.bf16.mxu1 %v30212_v18  ;;  %v25307_v43 = vadd.f32 %v5389_v61, %v5347_v63  ;;  %v20767_v42 = vld [vmem:[%s30201_s1 + $0x14e8] ss:$52 sps:$4 sm:$0xff]   ;;  %v20768_v61 = vld [vmem:[%s30201_s1 + $0x1140] ss:$52 sps:$4 sm:$0xff]  }
 0x2ca   :  { %v20769_v63 = vld [vmem:[%s30201_s1 + $0xe00] ss:$52 sps:$4 sm:$0xff]  }
 0x2cb   :  { %19356 = vmatpush3.bf16.msra.mxu0 %v20760_v62  ;;  %v4657_v62 = vadd.f32 %v23712_v34, %v830_v37  ;;  %v20771_v34 = vld [vmem:[%s30201_s1 + $0x10d8] ss:$52 sps:$4 sm:$0xff]  }
 0x2cc   :  { %19661 = vmatpush3.bf16.msra.mxu1 %v20761_v0  ;;  %19357 = vmatprep.subr.bf16.mxu0 %v20762_v1  ;;  %v4704_v0 = vadd.f32 %v23913_v51, %v4661_v19  ;;  %v4829_v1 = vadd.f32 %v24147_v24, %v838_v55  ;;  %v20772_v51 = vld [vmem:[%s30201_s1 + $0xd98] ss:$52 sps:$4 sm:$0xff]   ;;  %v20782_v55 = vld [vmem:[%s30204_s3 + $0x95c] ss:$52 sps:$4 sm:$0xff]  }
 0x2cd   :  { %19662 = vmatprep.subr.bf16.mxu1 %v30212_v18  ;;  %v20773_v24 = vld [vmem:[%s30201_s1 + $0x1418] ss:$52 sps:$4 sm:$0xff]  }
 0x2ce   :  { %v4872_v8 = vadd.f32 %v24164_v31, %v4829_v1  ;;  %v20775_v31 = vld [vmem:[%s30201_s1 + $0xd30] ss:$52 sps:$4 sm:$0xff]  }
 0x2cf   :  { %19358 = vmatpush3.bf16.msra.mxu0 %v20763_v20  ;;  %v4876_v20 = vadd.f32 %v24255_v9, %v4833_v52  ;;  %v22799_v1 = vld [vmem:[%s30202_s0 + $0x10] ss:$28 sps:$4 sm:$0xff]  }
 0x2d0   :  { %19663 = vmatpush3.bf16.msra.mxu1 %v20764_v50  ;;  %19359 = vmatprep.subr.bf16.mxu0 %v20765_v32  ;;  %v4700_v50 = vadd.f32 %v23714_v36, %v4657_v62  ;;  %v4747_v32 = vadd.f32 %v24145_v23, %v4704_v0  ;;  %v4915_v36 = vadd.f32 %v24276_v26, %v4872_v8  ;;  %v20774_v23 = vld [vmem:[%s30201_s1 + $0x1070] ss:$52 sps:$4 sm:$0xff]   ;;  %v20785_v62 = vld [vmem:[%s30204_s3 + $0x274] ss:$52 sps:$4 sm:$0xff]  }
 0x2d1   :  { %19664 = vmatprep.subr.bf16.mxu1 %v30212_v18  ;;  %v4919_v9 = vadd.f32 %v24483_v12, %v4876_v20  ;;  %v20783_v20 = vld [vmem:[%s30204_s3 + $0x270] ss:$52 sps:$4 sm:$0xff]  }
 0x2d2   :  { %v4743_v37 = vadd.f32 %v23935_v58, %v4700_v50  ;;  %v20776_v58 = vld [vmem:[%s30201_s1 + $0x13b0] ss:$52 sps:$4 sm:$0xff]   ;;  %v20791_v50 = vld [vmem:[%s30204_s3 + $0x20c] ss:$52 sps:$4 sm:$0xff]  }
 0x2d3   :  { %19360 = vmatpush3.bf16.msra.mxu0 %v20766_v40  ;;  %v4790_v40 = vadd.f32 %v24118_v5, %v4747_v32  ;;  %v4962_v12 = vadd.f32 %v24485_v47, %v4919_v9  ;;  %v20779_v5 = vld [vmem:[%s30204_s3 + $0x2dc] ss:$52 sps:$4 sm:$0xff]   ;;  %v20794_v32 = vld [vmem:[%s30204_s3 + $0x88c] ss:$52 sps:$4 sm:$0xff]   ;;  %v20800_v8 = vld [vmem:[%s30204_s3 + $0x824] ss:$52 sps:$4 sm:$0xff]  }
 0x2d4   :  { %19665 = vmatpush3.bf16.msra.mxu1 %v20767_v42  ;;  %19361 = vmatprep.subr.bf16.mxu0 %v20768_v61  ;;  %v4786_v26 = vadd.f32 %v23933_v35, %v4743_v37  ;;  %v4958_v42 = vadd.f32 %v24278_v27, %v4915_v36  ;;  %v20777_v35 = vld [vmem:[%s30204_s3 + $0x2d8] ss:$52 sps:$4 sm:$0xff]   ;;  %v20795_v9 = vld [vmem:[%s30204_s3 + $0x1a0] ss:$52 sps:$4 sm:$0xff]   ;;  %v20803_v36 = vld [vmem:[%s30204_s3 + $0x13c] ss:$52 sps:$4 sm:$0xff]  }
 0x2d5   :  { %19666 = vmatprep.subr.bf16.mxu1 %v30212_v18  ;;  %v5830_v19 = vmax.f32 %v4790_v40, 0.0  ;;  %v5832_v47 = vmax.f32 %v4962_v12, 0.0  ;;  %v20780_v27 = vld [vmem:[%s30204_s3 + $0x958] ss:$52 sps:$4 sm:$0xff]   ;;  %v20798_v37 = vld [vmem:[%s30204_s3 + $0x820] ss:$52 sps:$4 sm:$0xff]  }
 0x2d6   :  { %v5817_v61 = vmax.f32 %v4786_v26, 0.0  ;;  %v20801_v40 = vld [vmem:[%s30204_s3 + $0x138] ss:$52 sps:$4 sm:$0xff]   ;;  %v20812_v12 = vld [vmem:[%s30204_s3 + $0x754] ss:$52 sps:$4 sm:$0xff]  }
 0x2d7   :  { %19362 = vmatpush3.bf16.msra.mxu0 %v20769_v63  ;;  %v20788_v63 = vld [vmem:[%s30204_s3 + $0x8f4] ss:$52 sps:$4 sm:$0xff]   ;;  %v20807_v26 = vld [vmem:[%s30204_s3 + $0xd0] ss:$52 sps:$4 sm:$0xff]  }
 0x2d8   :  { %19667 = vmatpush3.bf16.msra.mxu1 %v20770_v48  ;;  %19363 = vmatprep.subr.bf16.mxu0 %v20771_v34  ;;  %v5819_v48 = vmax.f32 %v4958_v42, 0.0  ;;  %v25397_v52 = vpack.c.bf16 %v5830_v19, %v5817_v61  ;;  %v20786_v34 = vld [vmem:[%s30204_s3 + $0x8f0] ss:$52 sps:$4 sm:$0xff]   ;;  %v20818_v19 = vld [vmem:[%s30204_s3 + $0x6ec] ss:$52 sps:$4 sm:$0xff]  }
 0x2d9   :  { %19668 = vmatprep.subr.bf16.mxu1 %v30212_v18  ;;  %v20810_v42 = vld [vmem:[%s30204_s3 + $0x750] ss:$52 sps:$4 sm:$0xff]  }
 0x2da   :  { %v25399_v0 = vpack.c.bf16 %v5832_v47, %v5819_v48  ;;  %v20821_v47 = vld [vmem:[%s30204_s3 + $0x4] ss:$52 sps:$4 sm:$0xff]   ;;  %v20830_v48 = vld [vmem:[%s30204_s3 + $0xc9c] ss:$52 sps:$4 sm:$0xff]  }
 0x2db   :  { %19364 = vmatpush3.bf16.msra.mxu0 %v20772_v51  ;;  %v20792_v51 = vld [vmem:[%s30204_s3 + $0x888] ss:$52 sps:$4 sm:$0xff]   ;;  %v20824_v61 = vld [vmem:[%s30204_s3 + $0x684] ss:$52 sps:$4 sm:$0xff]  }
 0x2dc   :  { %19669 = vmatpush3.bf16.msra.mxu1 %v20773_v24  ;;  %19365 = vmatprep.subr.bf16.mxu0 %v20774_v23  ;;  %v20797_v24 = vld [vmem:[%s30204_s3 + $0x1a4] ss:$52 sps:$4 sm:$0xff]   ;;  %v20806_v23 = vld [vmem:[%s30204_s3 + $0x7bc] ss:$52 sps:$4 sm:$0xff]  }
 0x2dd   :  { %19670 = vmatprep.subr.bf16.mxu1 %v30212_v18 }
 0x2df   :  { %19366 = vmatpush3.bf16.msra.mxu0 %v20775_v31  ;;  %v20804_v31 = vld [vmem:[%s30204_s3 + $0x7b8] ss:$52 sps:$4 sm:$0xff]  }
 0x2e0   :  { %19671 = vmatpush3.bf16.msra.mxu1 %v20776_v58  ;;  %13928 = vmatprep.subr.bf16.mxu0 %v20779_v5  ;;  %v20809_v58 = vld [vmem:[%s30204_s3 + $0xd4] ss:$52 sps:$4 sm:$0xff]   ;;  %v20815_v5 = vld [vmem:[%s30204_s3 + $0x6c] ss:$52 sps:$4 sm:$0xff]  }
 0x2e1   :  { %13971 = vmatprep.subr.bf16.mxu1 %v20782_v55  ;;  %v20813_v55 = vld [vmem:[%s30204_s3 + $0x68] ss:$52 sps:$4 sm:$0xff]  }
 0x2e2   :  { %5767 = vmatmul.mubr.bf16.vlgmr.msra.gmra.mxu0 %v22799_v1  ;;  %v20825_v1 = vld [vmem:[%s30204_s3 + $0x618] ss:$52 sps:$4 sm:$0xff]  }
 0x2e3   :  { %19673 = vmatmul.mubr.bf16.vlgmr.msra.gmra.mxu1 %v25169_v44  ;;  %13929 = vmatpush1.bf16.msra.mxu0 %v20777_v35  ;;  %v20789_v44 = vld [vmem:[%s30204_s3 + $0x208] ss:$52 sps:$4 sm:$0xff]  }
 0x2e4   :  { %13960 = vmatprep.mubr.bf16.mxu0 %v25397_v52  ;;  %13972 = vmatpush1.bf16.msra.mxu1 %v20780_v27  ;;  %v20816_v35 = vld [vmem:[%s30204_s3 + $0x6e8] ss:$52 sps:$4 sm:$0xff]   ;;  %v20819_v27 = vld [vmem:[%s30204_s3] ss:$52 sps:$4 sm:$0xff]  }
 0x2e5   :  { %14003 = vmatprep.mubr.bf16.mxu1 %v25399_v0  ;;  %13930 = vmatprep.subr.bf16.mxu0 %v20785_v62  ;;  %v20822_v62 = vld [vmem:[%s30204_s3 + $0x680] ss:$52 sps:$4 sm:$0xff]  }
 0x2e6   :  { %13973 = vmatprep.subr.bf16.mxu1 %v20788_v63  ;;  %v20827_v63 = vld [vmem:[%s30204_s3 + $0x61c] ss:$52 sps:$4 sm:$0xff]  }
 0x2e7   :  { %13931 = vmatpush1.bf16.msra.mxu0 %v20783_v20  ;;  %v25494_v20 = vpop.f32.mrf.mxu1 }
 0x2e8   :  { %13974 = vmatpush1.bf16.msra.mxu1 %v20786_v34  ;;  %13932 = vmatprep.subr.bf16.mxu0 %v20791_v50  ;;  %v20828_v34 = vld [vmem:[%s30204_s3 + $0xc98] ss:$52 sps:$4 sm:$0xff]   ;;  %v20833_v50 = vld [vmem:[%s30204_s3 + $0x5b4] ss:$52 sps:$4 sm:$0xff]  }
 0x2e9   :  { %13975 = vmatprep.subr.bf16.mxu1 %v20794_v32  ;;  %v20836_v32 = vld [vmem:[%s30204_s3 + $0xc34] ss:$52 sps:$4 sm:$0xff]  }
 0x2eb   :  { %13933 = vmatpush1.bf16.msra.mxu0 %v20789_v44  ;;  %v25505_v44 = vpop.f32.mrf.mxu0 }
 0x2ec   :  { %13976 = vmatpush1.bf16.msra.mxu1 %v20792_v51  ;;  %13934 = vmatprep.subr.bf16.mxu0 %v20797_v24  ;;  %v5471_v51 = vpop.f32.mrf.mxu1 }
 0x2ed   :  { %13977 = vmatprep.subr.bf16.mxu1 %v20800_v8  ;;  %v20831_v8 = vld [vmem:[%s30204_s3 + $0x5b0] ss:$52 sps:$4 sm:$0xff]  }
 0x2ef   :  { %13935 = vmatpush1.bf16.msra.mxu0 %v20795_v9  ;;  %v20834_v9 = vld [vmem:[%s30204_s3 + $0xc30] ss:$52 sps:$4 sm:$0xff]  }
 0x2f0   :  { %13978 = vmatpush1.bf16.msra.mxu1 %v20798_v37  ;;  %13936 = vmatprep.subr.bf16.mxu0 %v20803_v36  ;;  %v20839_v37 = vld [vmem:[%s30204_s3 + $0x54c] ss:$52 sps:$4 sm:$0xff]  }
 0x2f1   :  { %13979 = vmatprep.subr.bf16.mxu1 %v20806_v23  ;;  %v20842_v23 = vld [vmem:[%s30204_s3 + $0xbcc] ss:$52 sps:$4 sm:$0xff]  }
 0x2f3   :  { %13937 = vmatpush1.bf16.msra.mxu0 %v20801_v40  ;;  %v25520_v40 = vpop.f32.mrf.mxu1 }
 0x2f4   :  { %13980 = vmatpush1.bf16.msra.mxu1 %v20804_v31  ;;  %13938 = vmatprep.subr.bf16.mxu0 %v20809_v58 }
 0x2f5   :  { %13981 = vmatprep.subr.bf16.mxu1 %v20812_v12 }
 0x2f7   :  { %13939 = vmatpush1.bf16.msra.mxu0 %v20807_v26  ;;  %v20837_v26 = vld [vmem:[%s30204_s3 + $0x548] ss:$52 sps:$4 sm:$0xff]  }
 0x2f8   :  { %13982 = vmatpush1.bf16.msra.mxu1 %v20810_v42  ;;  %13940 = vmatprep.subr.bf16.mxu0 %v20815_v5  ;;  %v20845_v5 = vld [vmem:[%s30204_s3 + $0x4e4] ss:$52 sps:$4 sm:$0xff]  }
 0x2f9   :  { %13983 = vmatprep.subr.bf16.mxu1 %v20818_v19  ;;  %v5475_v19 = vpop.f32.mrf.mxu1 }
 0x2fb   :  { %13941 = vmatpush1.bf16.msra.mxu0 %v20813_v55  ;;  %v20848_v55 = vld [vmem:[%s30204_s3 + $0xb64] ss:$52 sps:$4 sm:$0xff]  }
 0x2fc   :  { %13984 = vmatpush1.bf16.msra.mxu1 %v20816_v35  ;;  %13942 = vmatprep.subr.bf16.mxu0 %v20821_v47  ;;  %v30211_v47 = vsub.s32 5, %v23667_v17 }
 0x2fd   :  { %13985 = vmatprep.subr.bf16.mxu1 %v20824_v61  ;;  %v30210_v61 = vsub.s32 7, %v23667_v17 }
 0x2ff   :  { %13943 = vmatpush1.bf16.msra.mxu0 %v20819_v27  ;;  %v20846_v27 = vld [vmem:[%s30204_s3 + $0xb60] ss:$52 sps:$4 sm:$0xff]  }
 0x300   :  { %13986 = vmatpush1.bf16.msra.mxu1 %v20822_v62  ;;  %13944 = vmatprep.subr.bf16.mxu0 %v20827_v63 }
 0x301   :  { %13987 = vmatprep.subr.bf16.mxu1 %v20830_v48  ;;  %v20851_v48 = vld [vmem:[%s30204_s3 + $0x47c] ss:$52 sps:$4 sm:$0xff]  }
 0x302   :  { %v5428_v24 = vpop.f32.mrf.mxu0 }
 0x303   :  { %v5429_v36 = vadd.f32 %v5428_v24, %v25287_v29  ;;  %13945 = vmatpush2.bf16.msra.mxu0 %v20825_v1  ;;  %v20840_v29 = vld [vmem:[%s30204_s3 + $0xbc8] ss:$52 sps:$4 sm:$0xff]  }
 0x304   :  { %13988 = vmatpush2.bf16.msra.mxu1 %v20828_v34  ;;  %v25522_v31 = vpop.f32.mrf.mxu0  ;;  %13946 = vmatprep.subr.bf16.mxu0 %v20833_v50  ;;  %v20854_v34 = vld [vmem:[%s30204_s3 + $0xafc] ss:$52 sps:$4 sm:$0xff]   ;;  %v22800_v50 = vld [vmem:[%s30203_s2] sm:$0xff] }
 0x305   :  { %v5472_v58 = vadd.f32 %v5471_v51, %v5429_v36  ;;  %13989 = vmatprep.subr.bf16.mxu1 %v20836_v32  ;;  %v846_v32 = vrot.slane %v22800_v50, %v30211_v47  ;;  %v20849_v51 = vld [vmem:[%s30204_s3 + $0x478] ss:$52 sps:$4 sm:$0xff]   ;;  %v854_v24 = vrot.slane %v22800_v50, %v30210_v61  ;;  %v20855_v36 = vld [vmem:[%s30204_s3 + $0x410] ss:$52 sps:$4 sm:$0xff]   ;;  %v20881_v50 = vld [vmem:[%s30204_s3 + $0xf74] ss:$52 sps:$4 sm:$0xff]  }
 0x306   :  { %v5432_v12 = vpop.f32.mrf.mxu0 }
 0x307   :  { %v5433_v42 = vadd.f32 %v5432_v12, %v25307_v43  ;;  %13947 = vmatpush2.bf16.msra.mxu0 %v20831_v8  ;;  %v20843_v43 = vld [vmem:[%s30204_s3 + $0x4e0] ss:$52 sps:$4 sm:$0xff]   ;;  %v5824_v62 = vmax.f32 %v5472_v58, 0.0  ;;  %v5005_v8 = vadd.f32 %v24703_v15, %v846_v32  ;;  %v5001_v15 = vadd.f32 %v24499_v7, %v846_v32  ;;  %v20861_v7 = vld [vmem:[%s30204_s3 + $0x3a8] ss:$52 sps:$4 sm:$0xff]  }
 0x308   :  { %13990 = vmatpush2.bf16.msra.mxu1 %v20834_v9  ;;  %13948 = vmatprep.subr.bf16.mxu0 %v20839_v37  ;;  %v20852_v9 = vld [vmem:[%s30204_s3 + $0xaf8] ss:$52 sps:$4 sm:$0xff]   ;;  %v20857_v37 = vld [vmem:[%s30204_s3 + $0x414] ss:$52 sps:$4 sm:$0xff]   ;;  %v5177_v58 = vadd.f32 %v25044_v30, %v854_v24 }
 0x309   :  { %v5476_v35 = vadd.f32 %v5475_v19, %v5433_v42  ;;  %13991 = vmatprep.subr.bf16.mxu1 %v20842_v23  ;;  %v20860_v23 = vld [vmem:[%s30204_s3 + $0xa94] ss:$52 sps:$4 sm:$0xff]   ;;  %v5048_v12 = vadd.f32 %v24695_v16, %v5005_v8  ;;  %v5173_v42 = vadd.f32 %v24935_v41, %v854_v24  ;;  %v20866_v16 = vld [vmem:[%s30204_s3 + $0xa2c] ss:$52 sps:$4 sm:$0xff]   ;;  %v5044_v30 = vadd.f32 %v24501_v25, %v5001_v15  ;;  %v20882_v8 = vld [vmem:[%s30204_s3 + $0x15f0] ss:$52 sps:$4 sm:$0xff]  }
 0x30a   :  { %v20885_v15 = vld [vmem:[%s30204_s3 + $0xf08] ss:$52 sps:$4 sm:$0xff]  }
 0x30b   :  { %v5837_v63 = vmax.f32 %v5476_v35, 0.0  ;;  %13949 = vmatpush2.bf16.msra.mxu0 %v20837_v26  ;;  %v20858_v26 = vld [vmem:[%s30204_s3 + $0xa90] ss:$52 sps:$4 sm:$0xff]   ;;  %v5216_v19 = vadd.f32 %v24949_v2, %v5173_v42  ;;  %v5087_v41 = vadd.f32 %v24721_v39, %v5044_v30  ;;  %v20894_v42 = vld [vmem:[%s30204_s3 + $0x1520] ss:$52 sps:$4 sm:$0xff]  }
 0x30c   :  { %13992 = vmatpush2.bf16.msra.mxu1 %v20840_v29  ;;  %13950 = vmatprep.subr.bf16.mxu0 %v20845_v5  ;;  %v20863_v29 = vld [vmem:[%s30204_s3 + $0x3ac] ss:$52 sps:$4 sm:$0xff]   ;;  %v5220_v5 = vadd.f32 %v25046_v33, %v5177_v58  ;;  %v20864_v33 = vld [vmem:[%s30204_s3 + $0xa28] ss:$52 sps:$4 sm:$0xff]   ;;  %v20872_v39 = vld [vmem:[%s30204_s3 + $0x9c4] ss:$52 sps:$4 sm:$0xff]  }
 0x30d   :  { %v25548_v1 = vpack.c.bf16 %v5837_v63, %v5824_v62  ;;  %13993 = vmatprep.subr.bf16.mxu1 %v20848_v55  ;;  %v5091_v55 = vadd.f32 %v24933_v56, %v5048_v12  ;;  %v5259_v25 = vadd.f32 %v25067_v57, %v5216_v19  ;;  %v20867_v56 = vld [vmem:[%s30204_s3 + $0x340] ss:$52 sps:$4 sm:$0xff]   ;;  %v20875_v62 = vld [vmem:[%s30204_s3 + $0xfdc] ss:$52 sps:$4 sm:$0xff]   ;;  %v20893_v12 = vld [vmem:[%s30204_s3 + $0xea4] ss:$52 sps:$4 sm:$0xff]  }
 0x30e   :  { %v5263_v35 = vadd.f32 %v25264_v6, %v5220_v5  ;;  %v20870_v57 = vld [vmem:[%s30204_s3 + $0x9c0] ss:$52 sps:$4 sm:$0xff]   ;;  %v20878_v63 = vld [vmem:[%s30204_s3 + $0x165c] ss:$52 sps:$4 sm:$0xff]   ;;  %v20900_v30 = vld [vmem:[%s30204_s3 + $0x14b8] ss:$52 sps:$4 sm:$0xff]  }
 0x30f   :  { %13951 = vmatpush2.bf16.msra.mxu0 %v20843_v43  ;;  %v20869_v43 = vld [vmem:[%s30204_s3 + $0x344] ss:$52 sps:$4 sm:$0xff]   ;;  %v5134_v2 = vadd.f32 %v24902_v21, %v5091_v55  ;;  %v5302_v21 = vadd.f32 %v25069_v38, %v5259_v25  ;;  %v20888_v58 = vld [vmem:[%s30204_s3 + $0x1588] ss:$52 sps:$4 sm:$0xff]  }
 0x310   :  { %13994 = vmatpush2.bf16.msra.mxu1 %v20846_v27  ;;  %13952 = vmatprep.subr.bf16.mxu0 %v20851_v48  ;;  %v5306_v6 = vadd.f32 %v25266_v11, %v5263_v35  ;;  %v5130_v27 = vadd.f32 %v24719_v53, %v5087_v41  ;;  %v20873_v53 = vld [vmem:[%s30204_s3 + $0xfd8] ss:$52 sps:$4 sm:$0xff]   ;;  %v20899_v5 = vld [vmem:[%s30204_s3 + $0xe3c] ss:$52 sps:$4 sm:$0xff]   ;;  %v20905_v55 = vld [vmem:[%s30204_s3 + $0xdd4] ss:$52 sps:$4 sm:$0xff]  }
 0x311   :  { %13995 = vmatprep.subr.bf16.mxu1 %v20854_v34  ;;  %v5834_v11 = vmax.f32 %v5134_v2, 0.0  ;;  %v20876_v48 = vld [vmem:[%s30204_s3 + $0x1658] ss:$52 sps:$4 sm:$0xff]   ;;  %v5823_v38 = vmax.f32 %v5302_v21, 0.0  ;;  %v20903_v19 = vld [vmem:[%s30204_s3 + $0xdd0] ss:$52 sps:$4 sm:$0xff]  }
 0x312   :  { %v5836_v34 = vmax.f32 %v5306_v6, 0.0  ;;  %v5821_v32 = vmax.f32 %v5130_v27, 0.0  ;;  %v20908_v35 = vld [vmem:[%s30204_s3 + $0x1454] ss:$52 sps:$4 sm:$0xff]   ;;  %v20906_v41 = vld [vmem:[%s30204_s3 + $0x1450] ss:$52 sps:$4 sm:$0xff]  }
 0x313   :  { %13953 = vmatpush2.bf16.msra.mxu0 %v20849_v51  ;;  %v20879_v51 = vld [vmem:[%s30204_s3 + $0xf70] ss:$52 sps:$4 sm:$0xff]   ;;  %v20909_v25 = vld [vmem:[%s30204_s3 + $0xd68] ss:$52 sps:$4 sm:$0xff]   ;;  %v20915_v2 = vld [vmem:[%s30204_s3 + $0xd00] ss:$52 sps:$4 sm:$0xff]  }
 0x314   :  { %13996 = vmatpush2.bf16.msra.mxu1 %v20852_v9  ;;  %13954 = vmatprep.subr.bf16.mxu0 %v20857_v37  ;;  %v25636_v24 = vpack.c.bf16 %v5834_v11, %v5821_v32  ;;  %v20884_v9 = vld [vmem:[%s30204_s3 + $0x15f4] ss:$52 sps:$4 sm:$0xff]   ;;  %v25645_v37 = vpack.c.bf16 %v5836_v34, %v5823_v38  ;;  %v20920_v6 = vld [vmem:[%s30204_s3 + $0x1384] ss:$52 sps:$4 sm:$0xff]   ;;  %v20938_v38 = vld [vmem:[%s30204_s3 + $0x18cc] ss:$52 sps:$4 sm:$0xff]  }
 0x315   :  { %13997 = vmatprep.subr.bf16.mxu1 %v20860_v23  ;;  %v20890_v23 = vld [vmem:[%s30204_s3 + $0x158c] ss:$52 sps:$4 sm:$0xff]   ;;  %v20927_v11 = vld [vmem:[%s30204_s3 + $0x12b0] ss:$52 sps:$4 sm:$0xff]   ;;  %v20933_v32 = vld [vmem:[%s30204_s3 + $0x1248] ss:$52 sps:$4 sm:$0xff]  }
 0x316   :  { %v20918_v27 = vld [vmem:[%s30204_s3 + $0x1380] ss:$52 sps:$4 sm:$0xff]   ;;  %v20924_v21 = vld [vmem:[%s30204_s3 + $0x1998] ss:$52 sps:$4 sm:$0xff]   ;;  %v20930_v34 = vld [vmem:[%s30204_s3 + $0x1930] ss:$52 sps:$4 sm:$0xff]  }
 0x317   :  { %13955 = vmatpush2.bf16.msra.mxu0 %v20855_v36  ;;  %v20887_v36 = vld [vmem:[%s30204_s3 + $0xf0c] ss:$52 sps:$4 sm:$0xff]  }
 0x318   :  { %13998 = vmatpush2.bf16.msra.mxu1 %v20858_v26  ;;  %13956 = vmatprep.subr.bf16.mxu0 %v20863_v29  ;;  %v20896_v26 = vld [vmem:[%s30204_s3 + $0x1524] ss:$52 sps:$4 sm:$0xff]   ;;  %v20891_v29 = vld [vmem:[%s30204_s3 + $0xea0] ss:$52 sps:$4 sm:$0xff]  }
 0x319   :  { %13999 = vmatprep.subr.bf16.mxu1 %v20866_v16  ;;  %v20897_v16 = vld [vmem:[%s30204_s3 + $0xe38] ss:$52 sps:$4 sm:$0xff]  }
 0x31b   :  { %13957 = vmatpush2.bf16.msra.mxu0 %v20861_v7  ;;  %v20902_v7 = vld [vmem:[%s30204_s3 + $0x14bc] ss:$52 sps:$4 sm:$0xff]  }
 0x31c   :  { %14000 = vmatpush2.bf16.msra.mxu1 %v20864_v33  ;;  %13958 = vmatprep.subr.bf16.mxu0 %v20869_v43  ;;  %v20911_v33 = vld [vmem:[%s30204_s3 + $0xd6c] ss:$52 sps:$4 sm:$0xff]  }
 0x31d   :  { %14001 = vmatprep.subr.bf16.mxu1 %v20872_v39  ;;  %v20914_v43 = vld [vmem:[%s30204_s3 + $0x13ec] ss:$52 sps:$4 sm:$0xff]   ;;  %v20917_v39 = vld [vmem:[%s30204_s3 + $0xd04] ss:$52 sps:$4 sm:$0xff]  }
 0x31f   :  { %13959 = vmatpush2.bf16.msra.mxu0 %v20867_v56  ;;  %v20912_v56 = vld [vmem:[%s30204_s3 + $0x13e8] ss:$52 sps:$4 sm:$0xff]  }
 0x320   :  { %14002 = vmatpush2.bf16.msra.mxu1 %v20870_v57  ;;  %14014 = vmatprep.subr.bf16.mxu0 %v20875_v62  ;;  %v20923_v57 = vld [vmem:[%s30204_s3 + $0x131c] ss:$52 sps:$4 sm:$0xff]   ;;  %v20921_v62 = vld [vmem:[%s30204_s3 + $0x1318] ss:$52 sps:$4 sm:$0xff]  }
 0x321   :  { %14057 = vmatprep.subr.bf16.mxu1 %v20878_v63  ;;  %v20926_v63 = vld [vmem:[%s30204_s3 + $0x199c] ss:$52 sps:$4 sm:$0xff]  }
 0x322   :  { %13961 = vmatmul.mubr.bf16.vlgmr.msra.gmra.mxu0 %v23969_v13 }
 0x323   :  { %14004 = vmatmul.mubr.bf16.vlgmr.msra.gmra.mxu1 %v24312_v4  ;;  %14015 = vmatpush1.bf16.msra.mxu0 %v20873_v53  ;;  %v20929_v53 = vld [vmem:[%s30204_s3 + $0x12b4] ss:$52 sps:$4 sm:$0xff]  }
 0x324   :  { %14046 = vmatprep.mubr.bf16.mxu0 %v25636_v24  ;;  %14058 = vmatpush1.bf16.msra.mxu1 %v20876_v48  ;;  %v20932_v48 = vld [vmem:[%s30204_s3 + $0x1934] ss:$52 sps:$4 sm:$0xff]  }
 0x325   :  { %14089 = vmatprep.mubr.bf16.mxu1 %v25645_v37  ;;  %14016 = vmatprep.subr.bf16.mxu0 %v20881_v50  ;;  %v20935_v50 = vld [vmem:[%s30204_s3 + $0x124c] ss:$52 sps:$4 sm:$0xff]  }
 0x326   :  { %14059 = vmatprep.subr.bf16.mxu1 %v20884_v9  ;;  %v20939_v9 = vld [vmem:[%s30204_s3 + $0x11e0] ss:$52 sps:$4 sm:$0xff]  }
 0x327   :  { %14017 = vmatpush1.bf16.msra.mxu0 %v20879_v51  ;;  %v20936_v51 = vld [vmem:[%s30204_s3 + $0x18c8] ss:$52 sps:$4 sm:$0xff]  }
 0x328   :  { %14060 = vmatpush1.bf16.msra.mxu1 %v20882_v8  ;;  %14018 = vmatprep.subr.bf16.mxu0 %v20887_v36  ;;  %v20941_v8 = vld [vmem:[%s30204_s3 + $0x11e4] ss:$52 sps:$4 sm:$0xff]  }
 0x329   :  { %14061 = vmatprep.subr.bf16.mxu1 %v20890_v23  ;;  %v20944_v36 = vld [vmem:[%s30204_s3 + $0x1864] ss:$52 sps:$4 sm:$0xff]   ;;  %v20942_v23 = vld [vmem:[%s30204_s3 + $0x1860] ss:$52 sps:$4 sm:$0xff]  }
 0x32b   :  { %14019 = vmatpush1.bf16.msra.mxu0 %v20885_v15  ;;  %v20947_v15 = vld [vmem:[%s30204_s3 + $0x117c] ss:$52 sps:$4 sm:$0xff]  }
 0x32c   :  { %14062 = vmatpush1.bf16.msra.mxu1 %v20888_v58  ;;  %14020 = vmatprep.subr.bf16.mxu0 %v20893_v12  ;;  %v20945_v58 = vld [vmem:[%s30204_s3 + $0x1178] ss:$52 sps:$4 sm:$0xff]   ;;  %v20950_v12 = vld [vmem:[%s30204_s3 + $0x17fc] ss:$52 sps:$4 sm:$0xff]  }
 0x32d   :  { %14063 = vmatprep.subr.bf16.mxu1 %v20896_v26  ;;  %v25782_v26 = vld [vmem:[%s30203_s2 + $0x8] sm:$0x1f] }
 0x32f   :  { %14021 = vmatpush1.bf16.msra.mxu0 %v20891_v29  ;;  %v862_v29 = vrot.slane %v25782_v26, %v25305_v49 }
 0x330   :  { %14064 = vmatpush1.bf16.msra.mxu1 %v20894_v42  ;;  %14022 = vmatprep.subr.bf16.mxu0 %v20899_v5  ;;  %v20948_v5 = vld [vmem:[%s30204_s3 + $0x17f8] ss:$52 sps:$4 sm:$0xff]  }
 0x331   :  { %14065 = vmatprep.subr.bf16.mxu1 %v20902_v7  ;;  %v5349_v42 = vadd.f32 %v25505_v44, %v862_v29  ;;  %v20953_v7 = vld [vmem:[%s30204_s3 + $0x1114] ss:$52 sps:$4 sm:$0xff]   ;;  %v5345_v44 = vadd.f32 %v25282_v46, %v862_v29 }
 0x332   :  { %v20957_v46 = vld [vmem:[%s30204_s3 + $0x10a8] ss:$52 sps:$4 sm:$0xff]  }
 0x333   :  { %14023 = vmatpush1.bf16.msra.mxu0 %v20897_v16  ;;  %v20951_v16 = vld [vmem:[%s30204_s3 + $0x1110] ss:$52 sps:$4 sm:$0xff]  }
 0x334   :  { %14066 = vmatpush1.bf16.msra.mxu1 %v20900_v30  ;;  %14024 = vmatprep.subr.bf16.mxu0 %v20905_v55  ;;  %v20956_v30 = vld [vmem:[%s30204_s3 + $0x1794] ss:$52 sps:$4 sm:$0xff]   ;;  %v5477_v55 = vpop.f32.mrf.mxu1 }
 0x335   :  { %14067 = vmatprep.subr.bf16.mxu1 %v20908_v35  ;;  %v5392_v35 = vadd.f32 %v25494_v20, %v5349_v42  ;;  %v20962_v20 = vld [vmem:[%s30204_s3 + $0x172c] ss:$52 sps:$4 sm:$0xff]  }
 0x337   :  { %14025 = vmatpush1.bf16.msra.mxu0 %v20903_v19  ;;  %v5434_v19 = vpop.f32.mrf.mxu0 }
 0x338   :  { %14068 = vmatpush1.bf16.msra.mxu1 %v20906_v41  ;;  %14026 = vmatprep.subr.bf16.mxu0 %v20911_v33  ;;  %v25801_v41 = vpop.f32.mrf.mxu1 }
 0x339   :  { %14069 = vmatprep.subr.bf16.mxu1 %v20914_v43  ;;  %v20954_v43 = vld [vmem:[%s30204_s3 + $0x1790] ss:$52 sps:$4 sm:$0xff]  }
 0x33b   :  { %14027 = vmatpush1.bf16.msra.mxu0 %v20909_v25  ;;  %v20959_v25 = vld [vmem:[%s30204_s3 + $0x10ac] ss:$52 sps:$4 sm:$0xff]  }
 0x33c   :  { %14070 = vmatpush1.bf16.msra.mxu1 %v20912_v56  ;;  %14028 = vmatprep.subr.bf16.mxu0 %v20917_v39  ;;  %v5388_v56 = vadd.f32 %v25284_v54, %v5345_v44  ;;  %v5435_v39 = vadd.f32 %v5434_v19, %v5392_v35  ;;  %v20963_v54 = vld [vmem:[%s30204_s3 + $0x1040] ss:$52 sps:$4 sm:$0xff]  }
 0x33d   :  { %14071 = vmatprep.subr.bf16.mxu1 %v20920_v6  ;;  %v5516_v6 = vpop.f32.mrf.mxu1  ;;  %v20986_v44 = vld [vmem:[%s30204_s3 + $0x228c] ss:$52 sps:$4 sm:$0xff]  }
 0x33f   :  { %14029 = vmatpush1.bf16.msra.mxu0 %v20915_v2  ;;  %v5431_v2 = vadd.f32 %v25522_v31, %v5388_v56  ;;  %v20968_v31 = vld [vmem:[%s30204_s3 + $0x16c4] ss:$52 sps:$4 sm:$0xff]   ;;  %v20984_v56 = vld [vmem:[%s30204_s3 + $0x2288] ss:$52 sps:$4 sm:$0xff]  }
 0x340   :  { %14072 = vmatpush1.bf16.msra.mxu1 %v20918_v27  ;;  %14030 = vmatprep.subr.bf16.mxu0 %v20923_v57  ;;  %v20960_v57 = vld [vmem:[%s30204_s3 + $0x1728] ss:$52 sps:$4 sm:$0xff]  }
 0x341   :  { %14073 = vmatprep.subr.bf16.mxu1 %v20926_v63  ;;  %v5478_v63 = vadd.f32 %v5477_v55, %v5435_v39 }
 0x342   :  { %v25803_v33 = vpop.f32.mrf.mxu0 }
 0x343   :  { %14031 = vmatpush2.bf16.msra.mxu0 %v20921_v62  ;;  %v20965_v62 = vld [vmem:[%s30204_s3 + $0x1044] ss:$52 sps:$4 sm:$0xff]  }
 0x344   :  { %14074 = vmatpush2.bf16.msra.mxu1 %v20924_v21  ;;  %14032 = vmatprep.subr.bf16.mxu0 %v20929_v53  ;;  %v5559_v27 = vpop.f32.mrf.mxu0  ;;  %v5474_v21 = vadd.f32 %v25520_v40, %v5431_v2  ;;  %v25832_v53 = vpop.f32.mrf.mxu1  ;;  %v20969_v40 = vld [vmem:[%s30204_s3 + $0x1cd8] ss:$52 sps:$4 sm:$0xff]  }
 0x345   :  { %14075 = vmatprep.subr.bf16.mxu1 %v20932_v48  ;;  %v20966_v48 = vld [vmem:[%s30204_s3 + $0x16c0] ss:$52 sps:$4 sm:$0xff]   ;;  %v20989_v2 = vld [vmem:[%s30204_s3 + $0x1ba4] ss:$52 sps:$4 sm:$0xff]  }
 0x347   :  { %14033 = vmatpush2.bf16.msra.mxu0 %v20927_v11  ;;  %v25834_v11 = vpop.f32.mrf.mxu0 }
 0x348   :  { %14076 = vmatpush2.bf16.msra.mxu1 %v20930_v34  ;;  %14034 = vmatprep.subr.bf16.mxu0 %v20935_v50  ;;  %v20971_v34 = vld [vmem:[%s30204_s3 + $0x1cdc] ss:$52 sps:$4 sm:$0xff]   ;;  %v870_v50 = vrot.slane %v25782_v26, %v25313_v28 }
 0x349   :  { %14077 = vmatprep.subr.bf16.mxu1 %v20938_v38  ;;  %v5838_v38 = vmax.f32 %v5478_v63, 0.0  ;;  %v20987_v63 = vld [vmem:[%s30204_s3 + $0x1ba0] ss:$52 sps:$4 sm:$0xff]  }
 0x34b   :  { %14035 = vmatpush2.bf16.msra.mxu0 %v20933_v32  ;;  %v20974_v32 = vld [vmem:[%s30204_s3 + $0x235c] ss:$52 sps:$4 sm:$0xff]  }
 0x34c   :  { %14078 = vmatpush2.bf16.msra.mxu1 %v20936_v51  ;;  %14036 = vmatprep.subr.bf16.mxu0 %v20941_v8  ;;  %v20972_v51 = vld [vmem:[%s30204_s3 + $0x2358] ss:$52 sps:$4 sm:$0xff]   ;;  %v20977_v8 = vld [vmem:[%s30204_s3 + $0x1c74] ss:$52 sps:$4 sm:$0xff]  }
 0x34d   :  { %14079 = vmatprep.subr.bf16.mxu1 %v20944_v36  ;;  %v5520_v36 = vpop.f32.mrf.mxu1 }
 0x34e   :  { %v5521_v35 = vadd.f32 %v5520_v36, %v870_v50  ;;  %v20999_v36 = vld [vmem:[%s30204_s3 + $0x1ad0] ss:$52 sps:$4 sm:$0xff]  }
 0x34f   :  { %14037 = vmatpush2.bf16.msra.mxu0 %v20939_v9  ;;  %v5825_v9 = vmax.f32 %v5474_v21, 0.0  ;;  %v20990_v21 = vld [vmem:[%s30204_s3 + $0x2220] ss:$52 sps:$4 sm:$0xff]  }
 0x350   :  { %14080 = vmatpush2.bf16.msra.mxu1 %v20942_v23  ;;  %14038 = vmatprep.subr.bf16.mxu0 %v20947_v15  ;;  %v5563_v23 = vpop.f32.mrf.mxu0  ;;  %v5517_v15 = vadd.f32 %v5516_v6, %v870_v50  ;;  %v20992_v6 = vld [vmem:[%s30204_s3 + $0x2224] ss:$52 sps:$4 sm:$0xff]  }
 0x351   :  { %14081 = vmatprep.subr.bf16.mxu1 %v20950_v12  ;;  %v25859_v12 = vpack.c.bf16 %v5838_v38, %v5825_v9  ;;  %v5564_v39 = vadd.f32 %v5563_v23, %v5521_v35  ;;  %v20996_v38 = vld [vmem:[%s30204_s3 + $0x21b8] ss:$52 sps:$4 sm:$0xff]   ;;  %v21004_v9 = vld [vmem:[%s30204_s3 + $0x2154] ss:$52 sps:$4 sm:$0xff]   ;;  %v21002_v23 = vld [vmem:[%s30204_s3 + $0x2150] ss:$52 sps:$4 sm:$0xff]  }
 0x352   :  { %v21017_v35 = vld [vmem:[%s30204_s3 + $0x2018] ss:$52 sps:$4 sm:$0xff]  }
 0x353   :  { %14039 = vmatpush2.bf16.msra.mxu0 %v20945_v58  ;;  %v20980_v58 = vld [vmem:[%s30204_s3 + $0x22f4] ss:$52 sps:$4 sm:$0xff]  }
 0x354   :  { %14082 = vmatpush2.bf16.msra.mxu1 %v20948_v5  ;;  %14040 = vmatprep.subr.bf16.mxu0 %v20953_v7  ;;  %v20975_v5 = vld [vmem:[%s30204_s3 + $0x1c70] ss:$52 sps:$4 sm:$0xff]  }
 0x355   :  { %14083 = vmatprep.subr.bf16.mxu1 %v20956_v30  ;;  %v20978_v7 = vld [vmem:[%s30204_s3 + $0x22f0] ss:$52 sps:$4 sm:$0xff]   ;;  %v20983_v30 = vld [vmem:[%s30204_s3 + $0x1c0c] ss:$52 sps:$4 sm:$0xff]  }
 0x357   :  { %14041 = vmatpush2.bf16.msra.mxu0 %v20951_v16  ;;  %v5560_v16 = vadd.f32 %v5559_v27, %v5517_v15  ;;  %v21007_v15 = vld [vmem:[%s30204_s3 + $0x1a6c] ss:$52 sps:$4 sm:$0xff]  }
 0x358   :  { %14084 = vmatpush2.bf16.msra.mxu1 %v20954_v43  ;;  %14042 = vmatprep.subr.bf16.mxu0 %v20959_v25 }
 0x359   :  { %14085 = vmatprep.subr.bf16.mxu1 %v20962_v20  ;;  %v20981_v20 = vld [vmem:[%s30204_s3 + $0x1c08] ss:$52 sps:$4 sm:$0xff]  }
 0x35b   :  { %14043 = vmatpush2.bf16.msra.mxu0 %v20957_v46 }
 0x35c   :  { %14086 = vmatpush2.bf16.msra.mxu1 %v20960_v57  ;;  %14044 = vmatprep.subr.bf16.mxu0 %v20965_v62 }
 0x35d   :  { %14087 = vmatprep.subr.bf16.mxu1 %v20968_v31 }
 0x35f   :  { %14045 = vmatpush2.bf16.msra.mxu0 %v20963_v54 }
 0x360   :  { %14088 = vmatpush2.bf16.msra.mxu1 %v20966_v48  ;;  %14100 = vmatprep.subr.bf16.mxu0 %v20971_v34  ;;  %v20995_v48 = vld [vmem:[%s30204_s3 + $0x1b3c] ss:$52 sps:$4 sm:$0xff]  }
 0x361   :  { %14143 = vmatprep.subr.bf16.mxu1 %v20974_v32  ;;  %v20998_v32 = vld [vmem:[%s30204_s3 + $0x21bc] ss:$52 sps:$4 sm:$0xff]  }
 0x362   :  { %v25863_v42 = vpop.f32.mrf.mxu0  ;;  %14047 = vmatmul.mubr.bf16.vlgmr.msra.gmra.mxu0 %v24755_v59 }
 0x363   :  { %v25861_v29 = vpop.f32.mrf.mxu1  ;;  %14090 = vmatmul.mubr.bf16.vlgmr.msra.gmra.mxu1 %v25097_v45  ;;  %14101 = vmatpush1.bf16.msra.mxu0 %v20969_v40  ;;  %v20993_v40 = vld [vmem:[%s30204_s3 + $0x1b38] ss:$52 sps:$4 sm:$0xff]  }
 0x364   :  { %14132 = vmatprep.mubr.bf16.mxu0 %v25859_v12  ;;  %14144 = vmatpush1.bf16.msra.mxu1 %v20972_v51  ;;  %v5645_v19 = vpop.f32.mrf.mxu0  ;;  %v21001_v51 = vld [vmem:[%s30204_s3 + $0x1ad4] ss:$52 sps:$4 sm:$0xff]  }
 0x365   :  { %v5602_v55 = vpop.f32.mrf.mxu1  ;;  %14102 = vmatprep.subr.bf16.mxu0 %v20977_v8  ;;  %14145 = vmatprep.subr.bf16.mxu1 %v20980_v58  ;;  %v21010_v58 = vld [vmem:[%s30204_s3 + $0x20ec] ss:$52 sps:$4 sm:$0xff]  }
 0x366   :  { %v5603_v43 = vadd.f32 %v5602_v55, %v5560_v16  ;;  %v25882_v46 = vpop.f32.mrf.mxu0  ;;  %v21013_v16 = vld [vmem:[%s30204_s3 + $0x1a04] ss:$52 sps:$4 sm:$0xff]   ;;  %v21014_v55 = vld [vmem:[%s30204_s3 + $0x2080] ss:$52 sps:$4 sm:$0xff]  }
 0x367   :  { %v25880_v25 = vpop.f32.mrf.mxu1  ;;  %14103 = vmatpush1.bf16.msra.mxu0 %v20975_v5  ;;  %v21005_v5 = vld [vmem:[%s30204_s3 + $0x1a68] ss:$52 sps:$4 sm:$0xff]  }
 0x368   :  { %14146 = vmatpush1.bf16.msra.mxu1 %v20978_v7  ;;  %14104 = vmatprep.subr.bf16.mxu0 %v20983_v30  ;;  %v5646_v57 = vadd.f32 %v5645_v19, %v5603_v43  ;;  %v5649_v54 = vpop.f32.mrf.mxu0  ;;  %v21008_v7 = vld [vmem:[%s30204_s3 + $0x20e8] ss:$52 sps:$4 sm:$0xff]   ;;  %v21011_v30 = vld [vmem:[%s30204_s3 + $0x1a00] ss:$52 sps:$4 sm:$0xff]  }
 0x369   :  { %v5606_v27 = vpop.f32.mrf.mxu1  ;;  %14147 = vmatprep.subr.bf16.mxu1 %v20986_v44  ;;  %v21016_v44 = vld [vmem:[%s30204_s3 + $0x2084] ss:$52 sps:$4 sm:$0xff]   ;;  %v21019_v19 = vld [vmem:[%s30204_s3 + $0x201c] ss:$52 sps:$4 sm:$0xff]  }
 0x36a   :  { %v5607_v62 = vadd.f32 %v5606_v27, %v5564_v39  ;;  %v5827_v34 = vmax.f32 %v5646_v57, 0.0  ;;  %v21022_v43 = vld [vmem:[%s30204_s3 + $0x269c] ss:$52 sps:$4 sm:$0xff]   ;;  %v21031_v27 = vld [vmem:[%s30204_s3 + $0x1f4c] ss:$52 sps:$4 sm:$0xff]  }
 0x36b   :  { %14105 = vmatpush1.bf16.msra.mxu0 %v20981_v20  ;;  %v21020_v20 = vld [vmem:[%s30204_s3 + $0x2698] ss:$52 sps:$4 sm:$0xff]   ;;  %v21023_v39 = vld [vmem:[%s30204_s3 + $0x1fb0] ss:$52 sps:$4 sm:$0xff]   ;;  %v21029_v57 = vld [vmem:[%s30204_s3 + $0x1f48] ss:$52 sps:$4 sm:$0xff]  }
 0x36c   :  { %v5650_v31 = vadd.f32 %v5649_v54, %v5607_v62  ;;  %14148 = vmatpush1.bf16.msra.mxu1 %v20984_v56  ;;  %14106 = vmatprep.subr.bf16.mxu0 %v20989_v2  ;;  %v21025_v56 = vld [vmem:[%s30204_s3 + $0x1fb4] ss:$52 sps:$4 sm:$0xff]   ;;  %v21034_v62 = vld [vmem:[%s30204_s3 + $0x25cc] ss:$52 sps:$4 sm:$0xff]  }
 0x36d   :  { %14149 = vmatprep.subr.bf16.mxu1 %v20992_v6  ;;  %v21028_v2 = vld [vmem:[%s30204_s3 + $0x2634] ss:$52 sps:$4 sm:$0xff]   ;;  %v21026_v6 = vld [vmem:[%s30204_s3 + $0x2630] ss:$52 sps:$4 sm:$0xff]  }
 0x36e   :  { %v5840_v50 = vmax.f32 %v5650_v31, 0.0  ;;  %v21032_v54 = vld [vmem:[%s30204_s3 + $0x25c8] ss:$52 sps:$4 sm:$0xff]   ;;  %v21037_v31 = vld [vmem:[%s30204_s3 + $0x1ee4] ss:$52 sps:$4 sm:$0xff]  }
 0x36f   :  { %14107 = vmatpush1.bf16.msra.mxu0 %v20987_v63  ;;  %v21035_v63 = vld [vmem:[%s30204_s3 + $0x1ee0] ss:$52 sps:$4 sm:$0xff]  }
 0x370   :  { %v25917_v8 = vpack.c.bf16 %v5840_v50, %v5827_v34  ;;  %14150 = vmatpush1.bf16.msra.mxu1 %v20990_v21  ;;  %14108 = vmatprep.subr.bf16.mxu0 %v20995_v48  ;;  %v21040_v21 = vld [vmem:[%s30204_s3 + $0x2564] ss:$52 sps:$4 sm:$0xff]   ;;  %v21038_v48 = vld [vmem:[%s30204_s3 + $0x2560] ss:$52 sps:$4 sm:$0xff]   ;;  %v21043_v34 = vld [vmem:[%s30204_s3 + $0x1e7c] ss:$52 sps:$4 sm:$0xff]   ;;  %v866_v50 = vrot.slane %v25782_v26, %v24116_v3 }
 0x371   :  { %14151 = vmatprep.subr.bf16.mxu1 %v20998_v32  ;;  %v21046_v32 = vld [vmem:[%s30204_s3 + $0x24fc] ss:$52 sps:$4 sm:$0xff]  }
 0x372   :  { %14175 = vmatprep.mubr.bf16.mxu1 %v25917_v8 }
 0x373   :  { %14109 = vmatpush1.bf16.msra.mxu0 %v20993_v40  ;;  %v21041_v40 = vld [vmem:[%s30204_s3 + $0x1e78] ss:$52 sps:$4 sm:$0xff]  }
 0x374   :  { %14152 = vmatpush1.bf16.msra.mxu1 %v20996_v38  ;;  %14110 = vmatprep.subr.bf16.mxu0 %v21001_v51  ;;  %v21044_v38 = vld [vmem:[%s30204_s3 + $0x24f8] ss:$52 sps:$4 sm:$0xff]   ;;  %v21049_v51 = vld [vmem:[%s30204_s3 + $0x1e14] ss:$52 sps:$4 sm:$0xff]  }
 0x375   :  { %14153 = vmatprep.subr.bf16.mxu1 %v21004_v9  ;;  %v5519_v9 = vadd.f32 %v25832_v53, %v866_v50  ;;  %v21050_v53 = vld [vmem:[%s30204_s3 + $0x2490] ss:$52 sps:$4 sm:$0xff]  }
 0x377   :  { %14111 = vmatpush1.bf16.msra.mxu0 %v20999_v36  ;;  %v21047_v36 = vld [vmem:[%s30204_s3 + $0x1e10] ss:$52 sps:$4 sm:$0xff]  }
 0x378   :  { %14154 = vmatpush1.bf16.msra.mxu1 %v21002_v23  ;;  %14112 = vmatprep.subr.bf16.mxu0 %v21007_v15  ;;  %v21052_v23 = vld [vmem:[%s30204_s3 + $0x2494] ss:$52 sps:$4 sm:$0xff]  }
 0x379   :  { %14155 = vmatprep.subr.bf16.mxu1 %v21010_v58  ;;  %v5515_v58 = vadd.f32 %v25801_v41, %v866_v50  ;;  %v21053_v41 = vld [vmem:[%s30204_s3 + $0x1da8] ss:$52 sps:$4 sm:$0xff]  }
 0x37b   :  { %14113 = vmatpush1.bf16.msra.mxu0 %v21005_v5  ;;  %v5562_v5 = vadd.f32 %v25834_v11, %v5519_v9  ;;  %v21058_v11 = vld [vmem:[%s30204_s3 + $0x242c] ss:$52 sps:$4 sm:$0xff]  }
 0x37c   :  { %14156 = vmatpush1.bf16.msra.mxu1 %v21008_v7  ;;  %14114 = vmatprep.subr.bf16.mxu0 %v21013_v16  ;;  %v21055_v16 = vld [vmem:[%s30204_s3 + $0x1dac] ss:$52 sps:$4 sm:$0xff]  }
 0x37d   :  { %14157 = vmatprep.subr.bf16.mxu1 %v21016_v44  ;;  %v5605_v44 = vadd.f32 %v25880_v25, %v5562_v5  ;;  %v21061_v25 = vld [vmem:[%s30204_s3 + $0x1d44] ss:$52 sps:$4 sm:$0xff]  }
 0x37f   :  { %14115 = vmatpush1.bf16.msra.mxu0 %v21011_v30  ;;  %v5558_v30 = vadd.f32 %v25803_v33, %v5515_v58  ;;  %v21056_v33 = vld [vmem:[%s30204_s3 + $0x2428] ss:$52 sps:$4 sm:$0xff]  }
 0x380   :  { %14158 = vmatpush1.bf16.msra.mxu1 %v21014_v55  ;;  %14116 = vmatprep.subr.bf16.mxu0 %v21019_v19  ;;  %v21082_v58 = vld [vmem:[%s30204_s3 + $0x214] ss:$52 sps:$4 sm:$0xff]  }
 0x381   :  { %14159 = vmatprep.subr.bf16.mxu1 %v21022_v43  ;;  %v5601_v19 = vadd.f32 %v25861_v29, %v5558_v30  ;;  %v5648_v43 = vadd.f32 %v25882_v46, %v5605_v44  ;;  %v21064_v29 = vld [vmem:[%s30204_s3 + $0x23c4] ss:$52 sps:$4 sm:$0xff]   ;;  %v21062_v46 = vld [vmem:[%s30204_s3 + $0x23c0] ss:$52 sps:$4 sm:$0xff]  }
 0x382   :  { %v19323_v15 = vpop.f32.mrf.mxu0 }
 0x383   :  { %14117 = vmatpush2.bf16.msra.mxu0 %v21017_v35  ;;  %v19345_v7 = vpop.f32.mrf.mxu1 }
 0x384   :  { %14160 = vmatpush2.bf16.msra.mxu1 %v21020_v20  ;;  %14118 = vmatprep.subr.bf16.mxu0 %v21025_v56  ;;  %v19324_v55 = vpop.f32.mrf.mxu0  ;;  %v21059_v20 = vld [vmem:[%s30204_s3 + $0x1d40] ss:$52 sps:$4 sm:$0xff]  }
 0x385   :  { %14161 = vmatprep.subr.bf16.mxu1 %v21028_v2  ;;  %v19346_v35 = vpop.f32.mrf.mxu1  ;;  %v874_v2 = vrot.slane %v25782_v26, %v24467_v60  ;;  %v21070_v26 = vld [vmem:[%s30204_s3 + $0x2e4] ss:$52 sps:$4 sm:$0xff]  }
 0x386   :  { %v19326_v56 = vpop.f32.mrf.mxu0  ;;  %v19347_v50 = vadd.f32 %v19346_v35, %v19345_v7 }
 0x387   :  { %14119 = vmatpush2.bf16.msra.mxu0 %v21023_v39  ;;  %v5644_v39 = vadd.f32 %v25863_v42, %v5601_v19  ;;  %v21065_v42 = vld [vmem:[%s30204_s3 + $0x2838] ss:$52 sps:$4 sm:$0xff]   ;;  %v21080_v19 = vld [vmem:[%s30204_s3 + $0x210] ss:$52 sps:$4 sm:$0xff]  }
 0x388   :  { %14162 = vmatpush2.bf16.msra.mxu1 %v21026_v6  ;;  %14120 = vmatprep.subr.bf16.mxu0 %v21031_v27  ;;  %v19325_v6 = vadd.f32 %v19324_v55, %v19323_v15  ;;  %v19348_v27 = vpop.f32.mrf.mxu1  ;;  %v21079_v15 = vld [vmem:[%s30204_s3 + $0x276c] ss:$52 sps:$4 sm:$0xff]   ;;  %v21077_v55 = vld [vmem:[%s30204_s3 + $0x2768] ss:$52 sps:$4 sm:$0xff]  }
 0x389   :  { %14163 = vmatprep.subr.bf16.mxu1 %v21034_v62  ;;  %v5839_v62 = vmax.f32 %v5648_v43, 0.0 }
 0x38b   :  { %14121 = vmatpush2.bf16.msra.mxu0 %v21029_v57  ;;  %v21067_v57 = vld [vmem:[%s30204_s3 + $0x283c] ss:$52 sps:$4 sm:$0xff]  }
 0x38c   :  { %14164 = vmatpush2.bf16.msra.mxu1 %v21032_v54  ;;  %14122 = vmatprep.subr.bf16.mxu0 %v21037_v31  ;;  %v19327_v54 = vpop.f32.mrf.mxu0  ;;  %v21068_v31 = vld [vmem:[%s30204_s3 + $0x2e0] ss:$52 sps:$4 sm:$0xff]  }
 0x38d   :  { %14165 = vmatprep.subr.bf16.mxu1 %v21040_v21  ;;  %v21073_v21 = vld [vmem:[%s30204_s3 + $0x27d4] ss:$52 sps:$4 sm:$0xff]  }
 0x38f   :  { %14123 = vmatpush2.bf16.msra.mxu0 %v21035_v63  ;;  %v5826_v63 = vmax.f32 %v5644_v39, 0.0 }
 0x390   :  { %14166 = vmatpush2.bf16.msra.mxu1 %v21038_v48  ;;  %14124 = vmatprep.subr.bf16.mxu0 %v21043_v34  ;;  %v21076_v48 = vld [vmem:[%s30204_s3 + $0x27c] ss:$52 sps:$4 sm:$0xff]   ;;  %v5687_v34 = vadd.f32 %v19325_v6, %v874_v2  ;;  %v21083_v6 = vld [vmem:[%s30204_s3 + $0x2700] ss:$52 sps:$4 sm:$0xff]  }
 0x391   :  { %14167 = vmatprep.subr.bf16.mxu1 %v21046_v32  ;;  %v26079_v32 = vpack.c.bf16 %v5839_v62, %v5826_v63  ;;  %v21091_v62 = vld [vmem:[%s30204_s3 + $0x144] ss:$52 sps:$4 sm:$0xff]   ;;  %v21097_v63 = vld [vmem:[%s30204_s3 + $0xdc] ss:$52 sps:$4 sm:$0xff]  }
 0x392   :  { %v5728_v5 = vadd.f32 %v19347_v50, %v5687_v34  ;;  %v21095_v34 = vld [vmem:[%s30204_s3 + $0xd8] ss:$52 sps:$4 sm:$0xff]  }
 0x393   :  { %14125 = vmatpush2.bf16.msra.mxu0 %v21041_v40  ;;  %v19349_v40 = vpop.f32.mrf.mxu1  ;;  %v21098_v50 = vld [vmem:[%s30204_s3 + $0x8f8] ss:$52 sps:$4 sm:$0xff]  }
 0x394   :  { %14168 = vmatpush2.bf16.msra.mxu1 %v21044_v38  ;;  %14126 = vmatprep.subr.bf16.mxu0 %v21049_v51  ;;  %v19328_v38 = vadd.f32 %v19327_v54, %v19326_v56  ;;  %v19350_v30 = vadd.f32 %v19349_v40, %v19348_v27  ;;  %v21086_v27 = vld [vmem:[%s30204_s3 + $0x1a8] ss:$52 sps:$4 sm:$0xff]  }
 0x395   :  { %14169 = vmatprep.subr.bf16.mxu1 %v21052_v23  ;;  %v21074_v23 = vld [vmem:[%s30204_s3 + $0x278] ss:$52 sps:$4 sm:$0xff]   ;;  %v21103_v40 = vld [vmem:[%s30204_s3 + $0x74] ss:$52 sps:$4 sm:$0xff]  }
 0x397   :  { %14127 = vmatpush2.bf16.msra.mxu0 %v21047_v36  ;;  %v21071_v36 = vld [vmem:[%s30204_s3 + $0x27d0] ss:$52 sps:$4 sm:$0xff]  }
 0x398   :  { %14170 = vmatpush2.bf16.msra.mxu1 %v21050_v53  ;;  %14128 = vmatprep.subr.bf16.mxu0 %v21055_v16  ;;  %v5690_v16 = vadd.f32 %v19328_v38, %v874_v2  ;;  %v21106_v38 = vld [vmem:[%s30204_s3 + $0x894] ss:$52 sps:$4 sm:$0xff]  }
 0x399   :  { %14171 = vmatprep.subr.bf16.mxu1 %v21058_v11 }
 0x39b   :  { %14129 = vmatpush2.bf16.msra.mxu0 %v21053_v41 }
 0x39c   :  { %14172 = vmatpush2.bf16.msra.mxu1 %v21056_v33  ;;  %14130 = vmatprep.subr.bf16.mxu0 %v21061_v25  ;;  %v21085_v33 = vld [vmem:[%s30204_s3 + $0x2704] ss:$52 sps:$4 sm:$0xff]   ;;  %v21088_v25 = vld [vmem:[%s30204_s3 + $0x1ac] ss:$52 sps:$4 sm:$0xff]  }
 0x39d   :  { %14173 = vmatprep.subr.bf16.mxu1 %v21064_v29  ;;  %v5731_v29 = vadd.f32 %v19350_v30, %v5690_v16  ;;  %v21116_v16 = vld [vmem:[%s30204_s3 + $0x7c0] ss:$52 sps:$4 sm:$0xff]   ;;  %v21121_v30 = vld [vmem:[%s30204_s3 + $0x5bc] ss:$52 sps:$4 sm:$0xff]  }
 0x39f   :  { %14131 = vmatpush2.bf16.msra.mxu0 %v21059_v20 }
 0x3a0   :  { %14174 = vmatpush2.bf16.msra.mxu1 %v21062_v46  ;;  %14194 = vmatprep.subr.bf16.mxu0 %v21067_v57  ;;  %v21094_v46 = vld [vmem:[%s30204_s3 + $0x964] ss:$52 sps:$4 sm:$0xff]  }
 0x3a1   :  { %14229 = vmatprep.subr.bf16.mxu1 %v21070_v26  ;;  %v21092_v26 = vld [vmem:[%s30204_s3 + $0x960] ss:$52 sps:$4 sm:$0xff]  }
 0x3a2   :  { %v19367_v51 = vpop.f32.mrf.mxu0  ;;  %14133 = vmatmul.mubr.bf16.vlgmr.msra.gmra.mxu0 %v25548_v1 }
 0x3a3   :  { %v5809_v9 = vpop.f32.mrf.mxu1  ;;  %14176 = vmatmul.mubr.bf16.vlgmr.msra.gmra.mxu1 %v26079_v32  ;;  %14195 = vmatpush1.bf16.msra.mxu0 %v21065_v42  ;;  %v21089_v42 = vld [vmem:[%s30204_s3 + $0x140] ss:$52 sps:$4 sm:$0xff]  }
 0x3a4   :  { %14230 = vmatpush1.bf16.msra.mxu1 %v21068_v31  ;;  %14261 = vmatprep.mubr.bf16.mxu1 %v25397_v52  ;;  %v19368_v7 = vpop.f32.mrf.mxu0 }
 0x3a5   :  { %v19674_v53 = vpop.f32.mrf.mxu1  ;;  %v19369_v44 = vadd.f32 %v19368_v7, %v19367_v51  ;;  %14196 = vmatprep.subr.bf16.mxu0 %v21073_v21  ;;  %14231 = vmatprep.subr.bf16.mxu1 %v21076_v48  ;;  %v21100_v48 = vld [vmem:[%s30204_s3 + $0x8fc] ss:$52 sps:$4 sm:$0xff]   ;;  %v21118_v7 = vld [vmem:[%s30204_s3 + $0x7c4] ss:$52 sps:$4 sm:$0xff]  }
 0x3a6   :  { %v19370_v41 = vpop.f32.mrf.mxu0  ;;  %14218 = vmatprep.mubr.bf16.mxu0 %v30214_v14  ;;  %v21101_v51 = vld [vmem:[%s30204_s3 + $0x70] ss:$52 sps:$4 sm:$0xff]   ;;  %v21113_v53 = vld [vmem:[%s30204_s3 + $0x620] ss:$52 sps:$4 sm:$0xff]  }
 0x3a7   :  { %v5812_v11 = vpop.f32.mrf.mxu1  ;;  %v5769_v35 = vadd.f32 %v19369_v44, %v5728_v5  ;;  %14197 = vmatpush1.bf16.msra.mxu0 %v21071_v36  ;;  %v21109_v36 = vld [vmem:[%s30204_s3 + $0xc] ss:$52 sps:$4 sm:$0xff]   ;;  %v21115_v5 = vld [vmem:[%s30204_s3 + $0x624] ss:$52 sps:$4 sm:$0xff]   ;;  %v21124_v44 = vld [vmem:[%s30204_s3 + $0x75c] ss:$52 sps:$4 sm:$0xff]  }
 0x3a8   :  { %14232 = vmatpush1.bf16.msra.mxu1 %v21074_v23  ;;  %v19371_v43 = vpop.f32.mrf.mxu0  ;;  %14198 = vmatprep.subr.bf16.mxu0 %v21079_v15  ;;  %v21112_v23 = vld [vmem:[%s30204_s3 + $0x82c] ss:$52 sps:$4 sm:$0xff]   ;;  %v21107_v15 = vld [vmem:[%s30204_s3 + $0x8] ss:$52 sps:$4 sm:$0xff]  }
 0x3a9   :  { %v19675_v20 = vpop.f32.mrf.mxu1  ;;  %v19372_v56 = vadd.f32 %v19371_v43, %v19370_v41  ;;  %14233 = vmatprep.subr.bf16.mxu1 %v21082_v58  ;;  %v5810_v39 = vadd.f32 %v5809_v9, %v5769_v35  ;;  %v21104_v9 = vld [vmem:[%s30204_s3 + $0x890] ss:$52 sps:$4 sm:$0xff]   ;;  %v21110_v58 = vld [vmem:[%s30204_s3 + $0x828] ss:$52 sps:$4 sm:$0xff]   ;;  %v21119_v41 = vld [vmem:[%s30204_s3 + $0x5b8] ss:$52 sps:$4 sm:$0xff]  }
 0x3aa   :  { %v21125_v35 = vld [vmem:[%s30204_s3 + $0x550] ss:$52 sps:$4 sm:$0xff]   ;;  %v21136_v43 = vld [vmem:[%s30204_s3 + $0x68c] ss:$52 sps:$4 sm:$0xff]   ;;  %v21131_v20 = vld [vmem:[%s30204_s3 + $0x4e8] ss:$52 sps:$4 sm:$0xff]  }
 0x3ab   :  { %v5772_v2 = vadd.f32 %v19372_v56, %v5731_v29  ;;  %14199 = vmatpush1.bf16.msra.mxu0 %v21077_v55  ;;  %v5828_v54 = vmax.f32 %v5810_v39, 0.0  ;;  %v21127_v55 = vld [vmem:[%s30204_s3 + $0x554] ss:$52 sps:$4 sm:$0xff]   ;;  %v21139_v56 = vld [vmem:[%s30204_s3 + $0x484] ss:$52 sps:$4 sm:$0xff]  }
 0x3ac   :  { %14234 = vmatpush1.bf16.msra.mxu1 %v21080_v19  ;;  %14200 = vmatprep.subr.bf16.mxu0 %v21085_v33  ;;  %v21130_v19 = vld [vmem:[%s30204_s3 + $0x6f4] ss:$52 sps:$4 sm:$0xff]   ;;  %v21128_v33 = vld [vmem:[%s30204_s3 + $0x6f0] ss:$52 sps:$4 sm:$0xff]  }
 0x3ad   :  { %v5813_v57 = vadd.f32 %v5812_v11, %v5772_v2  ;;  %14235 = vmatprep.subr.bf16.mxu1 %v21088_v25  ;;  %v21122_v11 = vld [vmem:[%s30204_s3 + $0x758] ss:$52 sps:$4 sm:$0xff]   ;;  %v21134_v29 = vld [vmem:[%s30204_s3 + $0x688] ss:$52 sps:$4 sm:$0xff]   ;;  %v21137_v2 = vld [vmem:[%s30204_s3 + $0x480] ss:$52 sps:$4 sm:$0xff]  }
 0x3ae   :  { %v21133_v25 = vld [vmem:[%s30204_s3 + $0x4ec] ss:$52 sps:$4 sm:$0xff]   ;;  %v21142_v39 = vld [vmem:[%s30204_s3 + $0xca4] ss:$52 sps:$4 sm:$0xff]  }
 0x3af   :  { %v5841_v31 = vmax.f32 %v5813_v57, 0.0  ;;  %14201 = vmatpush1.bf16.msra.mxu0 %v21083_v6  ;;  %v21140_v6 = vld [vmem:[%s30204_s3 + $0xca0] ss:$52 sps:$4 sm:$0xff]   ;;  %v21143_v57 = vld [vmem:[%s30204_s3 + $0x418] ss:$52 sps:$4 sm:$0xff]  }
 0x3b0   :  { %14236 = vmatpush1.bf16.msra.mxu1 %v21086_v27  ;;  %14272 = vmatprep.subr.bf16.mxu0 %v21094_v46  ;;  %v21145_v27 = vld [vmem:[%s30204_s3 + $0x41c] ss:$52 sps:$4 sm:$0xff]  }
 0x3b1   :  { %v26130_v21 = vpack.c.bf16 %v5841_v31, %v5828_v54  ;;  %14237 = vmatprep.subr.bf16.mxu1 %v21091_v62  ;;  %v21148_v46 = vld [vmem:[%s30204_s3 + $0xc3c] ss:$52 sps:$4 sm:$0xff]   ;;  %v21146_v62 = vld [vmem:[%s30204_s3 + $0xc38] ss:$52 sps:$4 sm:$0xff]  }
 0x3b2   :  { %v21149_v54 = vld [vmem:[%s30204_s3 + $0x3b0] ss:$52 sps:$4 sm:$0xff]  }
 0x3b3   :  { %19198 = vmatmul.mubr.msk.bf16.vlgmr.msra.gmra.mxu0 %vm13924_vm1, %v26130_v21  ;;  %v21152_v31 = vld [vmem:[%s30204_s3 + $0xbd0] ss:$52 sps:$4 sm:$0xff]  }
 0x3b4   :  { %14238 = vmatpush1.bf16.msra.mxu1 %v21089_v42  ;;  %14273 = vmatpush1.bf16.msra.mxu0 %v21092_v26  ;;  %v21151_v42 = vld [vmem:[%s30204_s3 + $0x3b4] ss:$52 sps:$4 sm:$0xff]  }
 0x3b5   :  { %14304 = vmatprep.mubr.bf16.mxu0 %v25399_v0  ;;  %14239 = vmatprep.subr.bf16.mxu1 %v21097_v63  ;;  %v21154_v26 = vld [vmem:[%s30204_s3 + $0xbd4] ss:$52 sps:$4 sm:$0xff]   ;;  %v21157_v63 = vld [vmem:[%s30204_s3 + $0x34c] ss:$52 sps:$4 sm:$0xff]  }
 0x3b6   :  { %14274 = vmatprep.subr.bf16.mxu0 %v21100_v48  ;;  %v21160_v48 = vld [vmem:[%s30204_s3 + $0xb6c] ss:$52 sps:$4 sm:$0xff]  }
 0x3b8   :  { %14240 = vmatpush1.bf16.msra.mxu1 %v21095_v34  ;;  %14275 = vmatpush1.bf16.msra.mxu0 %v21098_v50  ;;  %v21155_v34 = vld [vmem:[%s30204_s3 + $0x348] ss:$52 sps:$4 sm:$0xff]  }
 0x3b9   :  { %14241 = vmatprep.subr.bf16.mxu1 %v21103_v40  ;;  %14276 = vmatprep.subr.bf16.mxu0 %v21106_v38  ;;  %v21158_v50 = vld [vmem:[%s30204_s3 + $0xb68] ss:$52 sps:$4 sm:$0xff]   ;;  %v7255_v40 = vld [vmem:[%s30205_s4] sm:$0xff] }
 0x3ba   :  { %v21163_v38 = vld [vmem:[%s30204_s3 + $0xb04] ss:$52 sps:$4 sm:$0xff]  }
 0x3bc   :  { %14242 = vmatpush1.bf16.msra.mxu1 %v21101_v51  ;;  %14277 = vmatpush1.bf16.msra.mxu0 %v21104_v9  ;;  %v21166_v51 = vld [vmem:[%s30204_s3 + $0xfe4] ss:$52 sps:$4 sm:$0xff]   ;;  %v21161_v9 = vld [vmem:[%s30204_s3 + $0xb00] ss:$52 sps:$4 sm:$0xff]  }
 0x3bd   :  { %14243 = vmatprep.subr.bf16.mxu1 %v21109_v36  ;;  %14278 = vmatprep.subr.bf16.mxu0 %v21112_v23  ;;  %v21164_v36 = vld [vmem:[%s30204_s3 + $0xfe0] ss:$52 sps:$4 sm:$0xff]   ;;  %v7262_v23 = vrot.slane %v7255_v40, %v23682_v22 }
 0x3be   :  { %v21205_v40 = vld [vmem:[%s30204_s3 + $0xd0c] ss:$52 sps:$4 sm:$0xff]  }
 0x3bf   :  { %v21869_v22 = vld [vmem:[%s30204_s3 + $0x1740] ss:$52 sps:$4 sm:$0xff]  }
 0x3c0   :  { %14244 = vmatpush1.bf16.msra.mxu1 %v21107_v15  ;;  %14279 = vmatpush1.bf16.msra.mxu0 %v21110_v58  ;;  %v21169_v15 = vld [vmem:[%s30204_s3 + $0xa9c] ss:$52 sps:$4 sm:$0xff]  }
 0x3c1   :  { %14245 = vmatprep.subr.bf16.mxu1 %v21115_v5  ;;  %14280 = vmatprep.subr.bf16.mxu0 %v21118_v7  ;;  %v21172_v58 = vld [vmem:[%s30204_s3 + $0xf7c] ss:$52 sps:$4 sm:$0xff]   ;;  %v21167_v7 = vld [vmem:[%s30204_s3 + $0xa98] ss:$52 sps:$4 sm:$0xff]  }
 0x3c4   :  { %14246 = vmatpush2.bf16.msra.mxu1 %v21113_v53  ;;  %14281 = vmatpush1.bf16.msra.mxu0 %v21116_v16  ;;  %v21170_v53 = vld [vmem:[%s30204_s3 + $0xf78] ss:$52 sps:$4 sm:$0xff]  }
 0x3c5   :  { %14247 = vmatprep.subr.bf16.mxu1 %v21121_v30  ;;  %14282 = vmatprep.subr.bf16.mxu0 %v21124_v44  ;;  %v21175_v44 = vld [vmem:[%s30204_s3 + $0xa34] ss:$52 sps:$4 sm:$0xff]  }
 0x3c8   :  { %14248 = vmatpush2.bf16.msra.mxu1 %v21119_v41  ;;  %14283 = vmatpush1.bf16.msra.mxu0 %v21122_v11  ;;  %v21178_v41 = vld [vmem:[%s30204_s3 + $0xf14] ss:$52 sps:$4 sm:$0xff]  }
 0x3c9   :  { %14249 = vmatprep.subr.bf16.mxu1 %v21127_v55  ;;  %14284 = vmatprep.subr.bf16.mxu0 %v21130_v19 }
 0x3cc   :  { %14250 = vmatpush2.bf16.msra.mxu1 %v21125_v35  ;;  %14285 = vmatpush1.bf16.msra.mxu0 %v21128_v33  ;;  %v21173_v33 = vld [vmem:[%s30204_s3 + $0xa30] ss:$52 sps:$4 sm:$0xff]  }
 0x3cd   :  { %14251 = vmatprep.subr.bf16.mxu1 %v21133_v25  ;;  %14286 = vmatprep.subr.bf16.mxu0 %v21136_v43  ;;  %v21176_v25 = vld [vmem:[%s30204_s3 + $0xf10] ss:$52 sps:$4 sm:$0xff]  }
 0x3d0   :  { %14252 = vmatpush2.bf16.msra.mxu1 %v21131_v20  ;;  %14287 = vmatpush1.bf16.msra.mxu0 %v21134_v29  ;;  %v21181_v20 = vld [vmem:[%s30204_s3 + $0x9cc] ss:$52 sps:$4 sm:$0xff]  }
 0x3d1   :  { %14253 = vmatprep.subr.bf16.mxu1 %v21139_v56  ;;  %14288 = vmatprep.subr.bf16.mxu0 %v21142_v39  ;;  %v21184_v29 = vld [vmem:[%s30204_s3 + $0xeac] ss:$52 sps:$4 sm:$0xff]  }
 0x3d4   :  { %14254 = vmatpush2.bf16.msra.mxu1 %v21137_v2  ;;  %14289 = vmatpush2.bf16.msra.mxu0 %v21140_v6  ;;  %v21179_v2 = vld [vmem:[%s30204_s3 + $0x9c8] ss:$52 sps:$4 sm:$0xff]  }
 0x3d5   :  { %14255 = vmatprep.subr.bf16.mxu1 %v21145_v27  ;;  %14290 = vmatprep.subr.bf16.mxu0 %v21148_v46  ;;  %v21182_v6 = vld [vmem:[%s30204_s3 + $0xea8] ss:$52 sps:$4 sm:$0xff]   ;;  %v21187_v27 = vld [vmem:[%s30204_s3 + $0xe44] ss:$52 sps:$4 sm:$0xff]  }
 0x3d6   :  { %v21190_v46 = vld [vmem:[%s30204_s3 + $0x1664] ss:$52 sps:$4 sm:$0xff]  }
 0x3d8   :  { %14256 = vmatpush2.bf16.msra.mxu1 %v21143_v57  ;;  %14291 = vmatpush2.bf16.msra.mxu0 %v21146_v62  ;;  %v21185_v57 = vld [vmem:[%s30204_s3 + $0xe40] ss:$52 sps:$4 sm:$0xff]  }
 0x3d9   :  { %14257 = vmatprep.subr.bf16.mxu1 %v21151_v42  ;;  %14292 = vmatprep.subr.bf16.mxu0 %v21154_v26  ;;  %v21188_v62 = vld [vmem:[%s30204_s3 + $0x1660] ss:$52 sps:$4 sm:$0xff]   ;;  %v21193_v42 = vld [vmem:[%s30204_s3 + $0xddc] ss:$52 sps:$4 sm:$0xff]   ;;  %v21191_v26 = vld [vmem:[%s30204_s3 + $0xdd8] ss:$52 sps:$4 sm:$0xff]  }
 0x3dc   :  { %14258 = vmatpush2.bf16.msra.mxu1 %v21149_v54  ;;  %14293 = vmatpush2.bf16.msra.mxu0 %v21152_v31  ;;  %v21194_v54 = vld [vmem:[%s30204_s3 + $0x15f8] ss:$52 sps:$4 sm:$0xff]   ;;  %v21196_v31 = vld [vmem:[%s30204_s3 + $0x15fc] ss:$52 sps:$4 sm:$0xff]  }
 0x3dd   :  { %14259 = vmatprep.subr.bf16.mxu1 %v21157_v63  ;;  %14294 = vmatprep.subr.bf16.mxu0 %v21160_v48  ;;  %v21199_v63 = vld [vmem:[%s30204_s3 + $0xd74] ss:$52 sps:$4 sm:$0xff]  }
 0x3de   :  { %v21202_v48 = vld [vmem:[%s30204_s3 + $0x1594] ss:$52 sps:$4 sm:$0xff]  }
 0x3e0   :  { %14260 = vmatpush2.bf16.msra.mxu1 %v21155_v34  ;;  %14295 = vmatpush2.bf16.msra.mxu0 %v21158_v50  ;;  %v21197_v34 = vld [vmem:[%s30204_s3 + $0xd70] ss:$52 sps:$4 sm:$0xff]  }
 0x3e1   :  { %14296 = vmatprep.subr.bf16.mxu0 %v21163_v38  ;;  %14315 = vmatprep.subr.bf16.mxu1 %v21166_v51  ;;  %v21200_v50 = vld [vmem:[%s30204_s3 + $0x1590] ss:$52 sps:$4 sm:$0xff]   ;;  %v21208_v38 = vld [vmem:[%s30204_s3 + $0x152c] ss:$52 sps:$4 sm:$0xff]   ;;  %v21203_v51 = vld [vmem:[%s30204_s3 + $0xd08] ss:$52 sps:$4 sm:$0xff]  }
 0x3e2   :  { %v13962_v5 = vpop.f32.mrf.mxu0 }
 0x3e3   :  { %v13963_v16 = vadd.f32 %v13962_v5, %v7262_v23  ;;  %v14005_v30 = vpop.f32.mrf.mxu1  ;;  %14262 = vmatmul.mubr.bf16.vlgmr.msra.gmra.mxu1 %v23969_v13  ;;  %v21217_v5 = vld [vmem:[%s30204_s3 + $0x12bc] ss:$52 sps:$4 sm:$0xff]  }
 0x3e4   :  { %14297 = vmatpush2.bf16.msra.mxu0 %v21161_v9  ;;  %14316 = vmatpush1.bf16.msra.mxu1 %v21164_v36  ;;  %v26299_v11 = vpop.f32.mrf.mxu0  ;;  %v21206_v9 = vld [vmem:[%s30204_s3 + $0x1528] ss:$52 sps:$4 sm:$0xff]   ;;  %v21211_v36 = vld [vmem:[%s30204_s3 + $0x1324] ss:$52 sps:$4 sm:$0xff]  }
 0x3e5   :  { %v26301_v55 = vadd.f32 %v14005_v30, %v13963_v16  ;;  %14347 = vmatprep.mubr.bf16.mxu1 %v25636_v24  ;;  %v26304_v19 = vpop.f32.mrf.mxu1  ;;  %14298 = vmatprep.subr.bf16.mxu0 %v21169_v15  ;;  %v21209_v15 = vld [vmem:[%s30204_s3 + $0x1320] ss:$52 sps:$4 sm:$0xff]   ;;  %v21218_v16 = vld [vmem:[%s30204_s3 + $0x1458] ss:$52 sps:$4 sm:$0xff]  }
 0x3e6   :  { %v13966_v35 = vpop.f32.mrf.mxu0  ;;  %14317 = vmatprep.subr.bf16.mxu1 %v21172_v58  ;;  %v21212_v58 = vld [vmem:[%s30204_s3 + $0x14c0] ss:$52 sps:$4 sm:$0xff]  }
 0x3e7   :  { %v13967_v43 = vadd.f32 %v13966_v35, %v7262_v23  ;;  %v14009_v56 = vpop.f32.mrf.mxu1  ;;  %v21214_v23 = vld [vmem:[%s30204_s3 + $0x14c4] ss:$52 sps:$4 sm:$0xff]   ;;  %v21223_v30 = vld [vmem:[%s30204_s3 + $0x1254] ss:$52 sps:$4 sm:$0xff]  }
 0x3e8   :  { %14299 = vmatpush2.bf16.msra.mxu0 %v21167_v7  ;;  %14318 = vmatpush1.bf16.msra.mxu1 %v21170_v53  ;;  %v21220_v7 = vld [vmem:[%s30204_s3 + $0x145c] ss:$52 sps:$4 sm:$0xff]   ;;  %v21215_v53 = vld [vmem:[%s30204_s3 + $0x12b8] ss:$52 sps:$4 sm:$0xff]  }
 0x3e9   :  { %v26318_v39 = vadd.f32 %v14009_v56, %v13967_v43  ;;  %14300 = vmatprep.subr.bf16.mxu0 %v21175_v44  ;;  %14319 = vmatprep.subr.bf16.mxu1 %v21178_v41  ;;  %v21226_v44 = vld [vmem:[%s30204_s3 + $0x13f4] ss:$52 sps:$4 sm:$0xff]   ;;  %v21221_v41 = vld [vmem:[%s30204_s3 + $0x1250] ss:$52 sps:$4 sm:$0xff]  }
 0x3ea   :  { %v21224_v35 = vld [vmem:[%s30204_s3 + $0x13f0] ss:$52 sps:$4 sm:$0xff]   ;;  %v21227_v43 = vld [vmem:[%s30204_s3 + $0x11e8] ss:$52 sps:$4 sm:$0xff]  }
 0x3eb   :  { %v21238_v56 = vld [vmem:[%s30204_s3 + $0x19a4] ss:$52 sps:$4 sm:$0xff]  }
 0x3ec   :  { %14301 = vmatpush2.bf16.msra.mxu0 %v21173_v33  ;;  %14320 = vmatpush1.bf16.msra.mxu1 %v21176_v25  ;;  %v21229_v33 = vld [vmem:[%s30204_s3 + $0x11ec] ss:$52 sps:$4 sm:$0xff]  }
 0x3ed   :  { %14302 = vmatprep.subr.bf16.mxu0 %v21181_v20  ;;  %14321 = vmatprep.subr.bf16.mxu1 %v21184_v29  ;;  %v21232_v25 = vld [vmem:[%s30204_s3 + $0x138c] ss:$52 sps:$4 sm:$0xff]   ;;  %v21230_v20 = vld [vmem:[%s30204_s3 + $0x1388] ss:$52 sps:$4 sm:$0xff]   ;;  %v21235_v29 = vld [vmem:[%s30204_s3 + $0x1184] ss:$52 sps:$4 sm:$0xff]  }
 0x3f0   :  { %14303 = vmatpush2.bf16.msra.mxu0 %v21179_v2  ;;  %14322 = vmatpush1.bf16.msra.mxu1 %v21182_v6  ;;  %v21233_v2 = vld [vmem:[%s30204_s3 + $0x1180] ss:$52 sps:$4 sm:$0xff]  }
 0x3f1   :  { %14323 = vmatprep.subr.bf16.mxu1 %v21187_v27  ;;  %14358 = vmatprep.subr.bf16.mxu0 %v21190_v46  ;;  %v21236_v6 = vld [vmem:[%s30204_s3 + $0x19a0] ss:$52 sps:$4 sm:$0xff]   ;;  %v21241_v27 = vld [vmem:[%s30204_s3 + $0x111c] ss:$52 sps:$4 sm:$0xff]  }
 0x3f2   :  { %v21244_v46 = vld [vmem:[%s30204_s3 + $0x193c] ss:$52 sps:$4 sm:$0xff]  }
 0x3f3   :  { %14305 = vmatmul.mubr.bf16.vlgmr.msra.gmra.mxu0 %v24312_v4 }
 0x3f4   :  { %14324 = vmatpush1.bf16.msra.mxu1 %v21185_v57  ;;  %14359 = vmatpush1.bf16.msra.mxu0 %v21188_v62  ;;  %v21239_v57 = vld [vmem:[%s30204_s3 + $0x1118] ss:$52 sps:$4 sm:$0xff]  }
 0x3f5   :  { %14390 = vmatprep.mubr.bf16.mxu0 %v25645_v37  ;;  %14325 = vmatprep.subr.bf16.mxu1 %v21193_v42  ;;  %v21242_v62 = vld [vmem:[%s30204_s3 + $0x1938] ss:$52 sps:$4 sm:$0xff]   ;;  %v21247_v42 = vld [vmem:[%s30204_s3 + $0x10b4] ss:$52 sps:$4 sm:$0xff]  }
 0x3f6   :  { %14360 = vmatprep.subr.bf16.mxu0 %v21196_v31  ;;  %v21248_v31 = vld [vmem:[%s30204_s3 + $0x18d0] ss:$52 sps:$4 sm:$0xff]  }
 0x3f8   :  { %14326 = vmatpush1.bf16.msra.mxu1 %v21191_v26  ;;  %14361 = vmatpush1.bf16.msra.mxu0 %v21194_v54  ;;  %v21250_v26 = vld [vmem:[%s30204_s3 + $0x18d4] ss:$52 sps:$4 sm:$0xff]   ;;  %v21245_v54 = vld [vmem:[%s30204_s3 + $0x10b0] ss:$52 sps:$4 sm:$0xff]  }
 0x3f9   :  { %14327 = vmatprep.subr.bf16.mxu1 %v21199_v63  ;;  %14362 = vmatprep.subr.bf16.mxu0 %v21202_v48  ;;  %v21253_v63 = vld [vmem:[%s30204_s3 + $0x104c] ss:$52 sps:$4 sm:$0xff]  }
 0x3fa   :  { %v21256_v48 = vld [vmem:[%s30204_s3 + $0x186c] ss:$52 sps:$4 sm:$0xff]  }
 0x3fc   :  { %14328 = vmatpush1.bf16.msra.mxu1 %v21197_v34  ;;  %14363 = vmatpush1.bf16.msra.mxu0 %v21200_v50  ;;  %v21251_v34 = vld [vmem:[%s30204_s3 + $0x1048] ss:$52 sps:$4 sm:$0xff]  }
 0x3fd   :  { %14329 = vmatprep.subr.bf16.mxu1 %v21205_v40  ;;  %14364 = vmatprep.subr.bf16.mxu0 %v21208_v38  ;;  %v21254_v50 = vld [vmem:[%s30204_s3 + $0x1868] ss:$52 sps:$4 sm:$0xff]   ;;  %v21259_v40 = vld [vmem:[%s30204_s3 + $0x1804] ss:$52 sps:$4 sm:$0xff]  }
 0x3fe   :  { %v21262_v38 = vld [vmem:[%s30204_s3 + $0x1ce4] ss:$52 sps:$4 sm:$0xff]  }
 0x400   :  { %14330 = vmatpush1.bf16.msra.mxu1 %v21203_v51  ;;  %14365 = vmatpush1.bf16.msra.mxu0 %v21206_v9  ;;  %v21257_v51 = vld [vmem:[%s30204_s3 + $0x1800] ss:$52 sps:$4 sm:$0xff]  }
 0x401   :  { %14331 = vmatprep.subr.bf16.mxu1 %v21211_v36  ;;  %14366 = vmatprep.subr.bf16.mxu0 %v21214_v23  ;;  %v21260_v9 = vld [vmem:[%s30204_s3 + $0x1ce0] ss:$52 sps:$4 sm:$0xff]   ;;  %v21265_v36 = vld [vmem:[%s30204_s3 + $0x179c] ss:$52 sps:$4 sm:$0xff]   ;;  %v26487_v23 = vpop.f32.mrf.mxu0 }
 0x404   :  { %14332 = vmatpush2.bf16.msra.mxu1 %v21209_v15  ;;  %14367 = vmatpush1.bf16.msra.mxu0 %v21212_v58  ;;  %v21268_v15 = vld [vmem:[%s30204_s3 + $0x1c7c] ss:$52 sps:$4 sm:$0xff]   ;;  %v26492_v58 = vpop.f32.mrf.mxu1 }
 0x405   :  { %14333 = vmatprep.subr.bf16.mxu1 %v21217_v5  ;;  %14368 = vmatprep.subr.bf16.mxu0 %v21220_v7  ;;  %v21263_v7 = vld [vmem:[%s30204_s3 + $0x1798] ss:$52 sps:$4 sm:$0xff]  }
 0x408   :  { %14334 = vmatpush2.bf16.msra.mxu1 %v21215_v53  ;;  %14369 = vmatpush1.bf16.msra.mxu0 %v21218_v16  ;;  %v21266_v53 = vld [vmem:[%s30204_s3 + $0x1c78] ss:$52 sps:$4 sm:$0xff]  }
 0x409   :  { %14335 = vmatprep.subr.bf16.mxu1 %v21223_v30  ;;  %14370 = vmatprep.subr.bf16.mxu0 %v21226_v44  ;;  %v21271_v44 = vld [vmem:[%s30204_s3 + $0x1734] ss:$52 sps:$4 sm:$0xff]  }
 0x40c   :  { %14336 = vmatpush2.bf16.msra.mxu1 %v21221_v41  ;;  %14371 = vmatpush1.bf16.msra.mxu0 %v21224_v35  ;;  %v21274_v41 = vld [vmem:[%s30204_s3 + $0x1c14] ss:$52 sps:$4 sm:$0xff]  }
 0x40d   :  { %14337 = vmatprep.subr.bf16.mxu1 %v21229_v33  ;;  %14372 = vmatprep.subr.bf16.mxu0 %v21232_v25 }
 0x410   :  { %14338 = vmatpush2.bf16.msra.mxu1 %v21227_v43  ;;  %14373 = vmatpush1.bf16.msra.mxu0 %v21230_v20  ;;  %v21269_v43 = vld [vmem:[%s30204_s3 + $0x1730] ss:$52 sps:$4 sm:$0xff]  }
 0x411   :  { %14339 = vmatprep.subr.bf16.mxu1 %v21235_v29  ;;  %14374 = vmatprep.subr.bf16.mxu0 %v21238_v56  ;;  %v21272_v20 = vld [vmem:[%s30204_s3 + $0x1c10] ss:$52 sps:$4 sm:$0xff]   ;;  %v21277_v56 = vld [vmem:[%s30204_s3 + $0x16cc] ss:$52 sps:$4 sm:$0xff]  }
 0x414   :  { %14340 = vmatpush2.bf16.msra.mxu1 %v21233_v2  ;;  %14375 = vmatpush2.bf16.msra.mxu0 %v21236_v6  ;;  %v21280_v2 = vld [vmem:[%s30204_s3 + $0x1bac] ss:$52 sps:$4 sm:$0xff]  }
 0x415   :  { %14341 = vmatprep.subr.bf16.mxu1 %v21241_v27  ;;  %14376 = vmatprep.subr.bf16.mxu0 %v21244_v46  ;;  %v21275_v46 = vld [vmem:[%s30204_s3 + $0x16c8] ss:$52 sps:$4 sm:$0xff]  }
 0x418   :  { %14342 = vmatpush2.bf16.msra.mxu1 %v21239_v57  ;;  %14377 = vmatpush2.bf16.msra.mxu0 %v21242_v62  ;;  %v21283_v57 = vld [vmem:[%s30204_s3 + $0x1b44] ss:$52 sps:$4 sm:$0xff]  }
 0x419   :  { %14343 = vmatprep.subr.bf16.mxu1 %v21247_v42  ;;  %14378 = vmatprep.subr.bf16.mxu0 %v21250_v26  ;;  %v21286_v62 = vld [vmem:[%s30204_s3 + $0x2364] ss:$52 sps:$4 sm:$0xff]   ;;  %v21281_v42 = vld [vmem:[%s30204_s3 + $0x1b40] ss:$52 sps:$4 sm:$0xff]  }
 0x41a   :  { %v21284_v26 = vld [vmem:[%s30204_s3 + $0x2360] ss:$52 sps:$4 sm:$0xff]  }
 0x41c   :  { %14344 = vmatpush2.bf16.msra.mxu1 %v21245_v54  ;;  %14379 = vmatpush2.bf16.msra.mxu0 %v21248_v31  ;;  %v21289_v54 = vld [vmem:[%s30204_s3 + $0x1adc] ss:$52 sps:$4 sm:$0xff]   ;;  %v21287_v31 = vld [vmem:[%s30204_s3 + $0x1ad8] ss:$52 sps:$4 sm:$0xff]  }
 0x41d   :  { %14345 = vmatprep.subr.bf16.mxu1 %v21253_v63  ;;  %14380 = vmatprep.subr.bf16.mxu0 %v21256_v48  ;;  %v21290_v63 = vld [vmem:[%s30204_s3 + $0x22f8] ss:$52 sps:$4 sm:$0xff]   ;;  %v21292_v48 = vld [vmem:[%s30204_s3 + $0x22fc] ss:$52 sps:$4 sm:$0xff]  }
 0x420   :  { %14346 = vmatpush2.bf16.msra.mxu1 %v21251_v34  ;;  %14381 = vmatpush2.bf16.msra.mxu0 %v21254_v50  ;;  %v21295_v34 = vld [vmem:[%s30204_s3 + $0x1a74] ss:$52 sps:$4 sm:$0xff]  }
 0x421   :  { %14382 = vmatprep.subr.bf16.mxu0 %v21259_v40  ;;  %14401 = vmatprep.subr.bf16.mxu1 %v21262_v38  ;;  %v21298_v50 = vld [vmem:[%s30204_s3 + $0x2294] ss:$52 sps:$4 sm:$0xff]   ;;  %v21293_v40 = vld [vmem:[%s30204_s3 + $0x1a70] ss:$52 sps:$4 sm:$0xff]  }
 0x422   :  { %v14048_v5 = vpop.f32.mrf.mxu0  ;;  %v21296_v38 = vld [vmem:[%s30204_s3 + $0x2290] ss:$52 sps:$4 sm:$0xff]  }
 0x423   :  { %v14049_v16 = vadd.f32 %v14048_v5, %v26301_v55  ;;  %v14091_v30 = vpop.f32.mrf.mxu1  ;;  %14348 = vmatmul.mubr.bf16.vlgmr.msra.gmra.mxu1 %v24755_v59  ;;  %v21307_v5 = vld [vmem:[%s30204_s3 + $0x2024] ss:$52 sps:$4 sm:$0xff]  }
 0x424   :  { %14383 = vmatpush2.bf16.msra.mxu0 %v21257_v51  ;;  %14402 = vmatpush1.bf16.msra.mxu1 %v21260_v9  ;;  %v26508_v35 = vpop.f32.mrf.mxu0  ;;  %v21301_v51 = vld [vmem:[%s30204_s3 + $0x1a0c] ss:$52 sps:$4 sm:$0xff]  }
 0x425   :  { %v26510_v33 = vadd.f32 %v14091_v30, %v14049_v16  ;;  %14433 = vmatprep.mubr.bf16.mxu1 %v25859_v12  ;;  %v26513_v55 = vpop.f32.mrf.mxu1  ;;  %14384 = vmatprep.subr.bf16.mxu0 %v21265_v36  ;;  %v21304_v9 = vld [vmem:[%s30204_s3 + $0x222c] ss:$52 sps:$4 sm:$0xff]   ;;  %v21299_v36 = vld [vmem:[%s30204_s3 + $0x1a08] ss:$52 sps:$4 sm:$0xff]  }
 0x426   :  { %v14052_v25 = vpop.f32.mrf.mxu0  ;;  %14403 = vmatprep.subr.bf16.mxu1 %v21268_v15  ;;  %v21302_v15 = vld [vmem:[%s30204_s3 + $0x2228] ss:$52 sps:$4 sm:$0xff]   ;;  %v21308_v16 = vld [vmem:[%s30204_s3 + $0x21c0] ss:$52 sps:$4 sm:$0xff]  }
 0x427   :  { %v14053_v29 = vadd.f32 %v14052_v25, %v26318_v39  ;;  %v14095_v6 = vpop.f32.mrf.mxu1  ;;  %v21278_v39 = vld [vmem:[%s30204_s3 + $0x1ba8] ss:$52 sps:$4 sm:$0xff]   ;;  %v21314_v25 = vld [vmem:[%s30204_s3 + $0x2158] ss:$52 sps:$4 sm:$0xff]  }
 0x428   :  { %14385 = vmatpush2.bf16.msra.mxu0 %v21263_v7  ;;  %14404 = vmatpush1.bf16.msra.mxu1 %v21266_v53  ;;  %v21310_v7 = vld [vmem:[%s30204_s3 + $0x21c4] ss:$52 sps:$4 sm:$0xff]   ;;  %v21305_v53 = vld [vmem:[%s30204_s3 + $0x2020] ss:$52 sps:$4 sm:$0xff]   ;;  %v21313_v30 = vld [vmem:[%s30204_s3 + $0x1fbc] ss:$52 sps:$4 sm:$0xff]  }
 0x429   :  { %v26528_v27 = vadd.f32 %v14095_v6, %v14053_v29  ;;  %14386 = vmatprep.subr.bf16.mxu0 %v21271_v44  ;;  %14405 = vmatprep.subr.bf16.mxu1 %v21274_v41  ;;  %v21316_v44 = vld [vmem:[%s30204_s3 + $0x215c] ss:$52 sps:$4 sm:$0xff]   ;;  %v21311_v41 = vld [vmem:[%s30204_s3 + $0x1fb8] ss:$52 sps:$4 sm:$0xff]  }
 0x42a   :  { %v21317_v29 = vld [vmem:[%s30204_s3 + $0x1f50] ss:$52 sps:$4 sm:$0xff]   ;;  %v21328_v6 = vld [vmem:[%s30204_s3 + $0x208c] ss:$52 sps:$4 sm:$0xff]  }
 0x42c   :  { %14387 = vmatpush2.bf16.msra.mxu0 %v21269_v43  ;;  %14406 = vmatpush1.bf16.msra.mxu1 %v21272_v20  ;;  %v21319_v43 = vld [vmem:[%s30204_s3 + $0x1f54] ss:$52 sps:$4 sm:$0xff]  }
 0x42d   :  { %14388 = vmatprep.subr.bf16.mxu0 %v21277_v56  ;;  %14407 = vmatprep.subr.bf16.mxu1 %v21280_v2  ;;  %v21322_v20 = vld [vmem:[%s30204_s3 + $0x20f4] ss:$52 sps:$4 sm:$0xff]   ;;  %v21320_v56 = vld [vmem:[%s30204_s3 + $0x20f0] ss:$52 sps:$4 sm:$0xff]   ;;  %v21325_v2 = vld [vmem:[%s30204_s3 + $0x1eec] ss:$52 sps:$4 sm:$0xff]  }
 0x430   :  { %14389 = vmatpush2.bf16.msra.mxu0 %v21275_v46  ;;  %14408 = vmatpush1.bf16.msra.mxu1 %v21278_v39  ;;  %v21323_v46 = vld [vmem:[%s30204_s3 + $0x1ee8] ss:$52 sps:$4 sm:$0xff]  }
 0x431   :  { %14409 = vmatprep.subr.bf16.mxu1 %v21283_v57  ;;  %14444 = vmatprep.subr.bf16.mxu0 %v21286_v62  ;;  %v21326_v39 = vld [vmem:[%s30204_s3 + $0x2088] ss:$52 sps:$4 sm:$0xff]   ;;  %v21331_v57 = vld [vmem:[%s30204_s3 + $0x1e84] ss:$52 sps:$4 sm:$0xff]  }
 0x432   :  { %v21334_v62 = vld [vmem:[%s30204_s3 + $0x26a4] ss:$52 sps:$4 sm:$0xff]  }
 0x433   :  { %14391 = vmatmul.mubr.bf16.vlgmr.msra.gmra.mxu0 %v25097_v45 }
 0x434   :  { %14410 = vmatpush1.bf16.msra.mxu1 %v21281_v42  ;;  %14445 = vmatpush1.bf16.msra.mxu0 %v21284_v26  ;;  %v21329_v42 = vld [vmem:[%s30204_s3 + $0x1e80] ss:$52 sps:$4 sm:$0xff]  }
 0x435   :  { %14476 = vmatprep.mubr.bf16.mxu0 %v25917_v8  ;;  %14411 = vmatprep.subr.bf16.mxu1 %v21289_v54  ;;  %v21332_v26 = vld [vmem:[%s30204_s3 + $0x26a0] ss:$52 sps:$4 sm:$0xff]   ;;  %v21337_v54 = vld [vmem:[%s30204_s3 + $0x1e1c] ss:$52 sps:$4 sm:$0xff]  }
 0x436   :  { %14446 = vmatprep.subr.bf16.mxu0 %v21292_v48  ;;  %v21338_v48 = vld [vmem:[%s30204_s3 + $0x2638] ss:$52 sps:$4 sm:$0xff]  }
 0x438   :  { %14412 = vmatpush1.bf16.msra.mxu1 %v21287_v31  ;;  %14447 = vmatpush1.bf16.msra.mxu0 %v21290_v63  ;;  %v21340_v31 = vld [vmem:[%s30204_s3 + $0x263c] ss:$52 sps:$4 sm:$0xff]   ;;  %v21335_v63 = vld [vmem:[%s30204_s3 + $0x1e18] ss:$52 sps:$4 sm:$0xff]  }
 0x439   :  { %14413 = vmatprep.subr.bf16.mxu1 %v21295_v34  ;;  %14448 = vmatprep.subr.bf16.mxu0 %v21298_v50  ;;  %v21343_v34 = vld [vmem:[%s30204_s3 + $0x1db4] ss:$52 sps:$4 sm:$0xff]  }
 0x43a   :  { %v21346_v50 = vld [vmem:[%s30204_s3 + $0x25d4] ss:$52 sps:$4 sm:$0xff]  }
 0x43c   :  { %14414 = vmatpush1.bf16.msra.mxu1 %v21293_v40  ;;  %14449 = vmatpush1.bf16.msra.mxu0 %v21296_v38  ;;  %v21341_v40 = vld [vmem:[%s30204_s3 + $0x1db0] ss:$52 sps:$4 sm:$0xff]  }
 0x43d   :  { %14415 = vmatprep.subr.bf16.mxu1 %v21301_v51  ;;  %14450 = vmatprep.subr.bf16.mxu0 %v21304_v9  ;;  %v21344_v38 = vld [vmem:[%s30204_s3 + $0x25d0] ss:$52 sps:$4 sm:$0xff]   ;;  %v21349_v51 = vld [vmem:[%s30204_s3 + $0x1d4c] ss:$52 sps:$4 sm:$0xff]  }
 0x43e   :  { %v21352_v9 = vld [vmem:[%s30204_s3 + $0x256c] ss:$52 sps:$4 sm:$0xff]  }
 0x440   :  { %14416 = vmatpush1.bf16.msra.mxu1 %v21299_v36  ;;  %14451 = vmatpush1.bf16.msra.mxu0 %v21302_v15  ;;  %v21347_v36 = vld [vmem:[%s30204_s3 + $0x1d48] ss:$52 sps:$4 sm:$0xff]  }
 0x441   :  { %14417 = vmatprep.subr.bf16.mxu1 %v21307_v5  ;;  %14452 = vmatprep.subr.bf16.mxu0 %v21310_v7  ;;  %v21350_v15 = vld [vmem:[%s30204_s3 + $0x2568] ss:$52 sps:$4 sm:$0xff]   ;;  %v21355_v5 = vld [vmem:[%s30204_s3 + $0x2504] ss:$52 sps:$4 sm:$0xff]  }
 0x442   :  { %v21358_v7 = vld [vmem:[%s30204_s3 + $0x2844] ss:$52 sps:$4 sm:$0xff]  }
 0x444   :  { %14418 = vmatpush2.bf16.msra.mxu1 %v21305_v53  ;;  %14453 = vmatpush1.bf16.msra.mxu0 %v21308_v16  ;;  %v21353_v53 = vld [vmem:[%s30204_s3 + $0x2500] ss:$52 sps:$4 sm:$0xff]  }
 0x445   :  { %14419 = vmatprep.subr.bf16.mxu1 %v21313_v30  ;;  %14454 = vmatprep.subr.bf16.mxu0 %v21316_v44  ;;  %v21356_v16 = vld [vmem:[%s30204_s3 + $0x2840] ss:$52 sps:$4 sm:$0xff]   ;;  %v21361_v30 = vld [vmem:[%s30204_s3 + $0x249c] ss:$52 sps:$4 sm:$0xff]  }
 0x446   :  { %v21364_v44 = vld [vmem:[%s30204_s3 + $0x27dc] ss:$52 sps:$4 sm:$0xff]  }
 0x448   :  { %14420 = vmatpush2.bf16.msra.mxu1 %v21311_v41  ;;  %14455 = vmatpush1.bf16.msra.mxu0 %v21314_v25  ;;  %v26700_v41 = vpop.f32.mrf.mxu0  ;;  %v26702_v25 = vpop.f32.mrf.mxu1 }
 0x449   :  { %14421 = vmatprep.subr.bf16.mxu1 %v21319_v43  ;;  %14456 = vmatprep.subr.bf16.mxu0 %v21322_v20 }
 0x44c   :  { %14422 = vmatpush2.bf16.msra.mxu1 %v21317_v29  ;;  %14457 = vmatpush1.bf16.msra.mxu0 %v21320_v56  ;;  %v21359_v56 = vld [vmem:[%s30204_s3 + $0x2498] ss:$52 sps:$4 sm:$0xff]  }
 0x44d   :  { %14423 = vmatprep.subr.bf16.mxu1 %v21325_v2  ;;  %14458 = vmatprep.subr.bf16.mxu0 %v21328_v6  ;;  %v21362_v2 = vld [vmem:[%s30204_s3 + $0x27d8] ss:$52 sps:$4 sm:$0xff]  }
 0x450   :  { %14424 = vmatpush2.bf16.msra.mxu1 %v21323_v46  ;;  %14459 = vmatpush1.bf16.msra.mxu0 %v21326_v39  ;;  %v21367_v46 = vld [vmem:[%s30204_s3 + $0x2434] ss:$52 sps:$4 sm:$0xff]  }
 0x451   :  { %14425 = vmatprep.subr.bf16.mxu1 %v21331_v57  ;;  %14460 = vmatprep.subr.bf16.mxu0 %v21334_v62 }
 0x454   :  { %14426 = vmatpush2.bf16.msra.mxu1 %v21329_v42  ;;  %14461 = vmatpush2.bf16.msra.mxu0 %v21332_v26  ;;  %v21365_v26 = vld [vmem:[%s30204_s3 + $0x2430] ss:$52 sps:$4 sm:$0xff]  }
 0x455   :  { %14427 = vmatprep.subr.bf16.mxu1 %v21337_v54  ;;  %14462 = vmatprep.subr.bf16.mxu0 %v21340_v31  ;;  %v21368_v54 = vld [vmem:[%s30204_s3 + $0x2770] ss:$52 sps:$4 sm:$0xff]  }
 0x458   :  { %14428 = vmatpush2.bf16.msra.mxu1 %v21335_v63  ;;  %14463 = vmatpush2.bf16.msra.mxu0 %v21338_v48  ;;  %v21373_v63 = vld [vmem:[%s30204_s3 + $0x23cc] ss:$52 sps:$4 sm:$0xff]  }
 0x459   :  { %14429 = vmatprep.subr.bf16.mxu1 %v21343_v34  ;;  %14464 = vmatprep.subr.bf16.mxu0 %v21346_v50  ;;  %v21376_v48 = vld [vmem:[%s30204_s3 + $0x270c] ss:$52 sps:$4 sm:$0xff]   ;;  %v21371_v34 = vld [vmem:[%s30204_s3 + $0x23c8] ss:$52 sps:$4 sm:$0xff]  }
 0x45a   :  { %v21374_v50 = vld [vmem:[%s30204_s3 + $0x2708] ss:$52 sps:$4 sm:$0xff]  }
 0x45c   :  { %14430 = vmatpush2.bf16.msra.mxu1 %v21341_v40  ;;  %14465 = vmatpush2.bf16.msra.mxu0 %v21344_v38  ;;  %v21379_v40 = vld [vmem:[%s30204_s3 + $0x2ec] ss:$52 sps:$4 sm:$0xff]  }
 0x45d   :  { %14431 = vmatprep.subr.bf16.mxu1 %v21349_v51  ;;  %14466 = vmatprep.subr.bf16.mxu0 %v21352_v9  ;;  %v21382_v38 = vld [vmem:[%s30204_s3 + $0x96c] ss:$52 sps:$4 sm:$0xff]   ;;  %v21377_v51 = vld [vmem:[%s30204_s3 + $0x2e8] ss:$52 sps:$4 sm:$0xff]  }
 0x45e   :  { %v21380_v9 = vld [vmem:[%s30204_s3 + $0x968] ss:$52 sps:$4 sm:$0xff]  }
 0x460   :  { %14432 = vmatpush2.bf16.msra.mxu1 %v21347_v36  ;;  %14467 = vmatpush2.bf16.msra.mxu0 %v21350_v15  ;;  %v21385_v36 = vld [vmem:[%s30204_s3 + $0x284] ss:$52 sps:$4 sm:$0xff]  }
 0x461   :  { %14468 = vmatprep.subr.bf16.mxu0 %v21355_v5  ;;  %14495 = vmatprep.subr.bf16.mxu1 %v21358_v7  ;;  %v21388_v15 = vld [vmem:[%s30204_s3 + $0x904] ss:$52 sps:$4 sm:$0xff]  }
 0x462   :  { %v14134_v43 = vpop.f32.mrf.mxu0 }
 0x463   :  { %v14135_v20 = vadd.f32 %v14134_v43, %v26510_v33  ;;  %v14177_v29 = vpop.f32.mrf.mxu1  ;;  %14434 = vmatmul.mubr.bf16.vlgmr.msra.gmra.mxu1 %v25548_v1  ;;  %v21370_v33 = vld [vmem:[%s30204_s3 + $0x2774] ss:$52 sps:$4 sm:$0xff]   ;;  %v21394_v43 = vld [vmem:[%s30204_s3 + $0x89c] ss:$52 sps:$4 sm:$0xff]  }
 0x464   :  { %14469 = vmatpush2.bf16.msra.mxu0 %v21353_v53  ;;  %14496 = vmatpush1.bf16.msra.mxu1 %v21356_v16  ;;  %v26712_v6 = vpop.f32.mrf.mxu0  ;;  %v21383_v53 = vld [vmem:[%s30204_s3 + $0x280] ss:$52 sps:$4 sm:$0xff]  }
 0x465   :  { %v14178_v39 = vadd.f32 %v14177_v29, %v14135_v20  ;;  %v26720_v57 = vpop.f32.mrf.mxu1  ;;  %14470 = vmatprep.subr.bf16.mxu0 %v21361_v30  ;;  %14497 = vmatprep.subr.bf16.mxu1 %v21364_v44  ;;  %v21386_v16 = vld [vmem:[%s30204_s3 + $0x900] ss:$52 sps:$4 sm:$0xff]   ;;  %v21391_v44 = vld [vmem:[%s30204_s3 + $0x21c] ss:$52 sps:$4 sm:$0xff]  }
 0x466   :  { %v14138_v62 = vpop.f32.mrf.mxu0  ;;  %14519 = vmatprep.mubr.bf16.mxu1 %v30214_v14 }
 0x467   :  { %v14139_v42 = vadd.f32 %v14138_v62, %v26528_v27  ;;  %v14181_v31 = vpop.f32.mrf.mxu1 }
 0x468   :  { %14471 = vmatpush2.bf16.msra.mxu0 %v21359_v56  ;;  %14498 = vmatpush1.bf16.msra.mxu1 %v21362_v2  ;;  %v26760_v5 = vpop.f32.mrf.mxu0  ;;  %v21389_v56 = vld [vmem:[%s30204_s3 + $0x218] ss:$52 sps:$4 sm:$0xff]  }
 0x469   :  { %v14182_v27 = vadd.f32 %v14181_v31, %v14139_v42  ;;  %14472 = vmatprep.subr.bf16.mxu0 %v21367_v46  ;;  %14499 = vmatprep.subr.bf16.mxu1 %v21370_v33  ;;  %v21392_v46 = vld [vmem:[%s30204_s3 + $0x898] ss:$52 sps:$4 sm:$0xff]   ;;  %v21397_v33 = vld [vmem:[%s30204_s3 + $0x1b4] ss:$52 sps:$4 sm:$0xff]   ;;  %v21398_v31 = vld [vmem:[%s30204_s3 + $0x830] ss:$52 sps:$4 sm:$0xff]  }
 0x46a   :  { %v21400_v42 = vld [vmem:[%s30204_s3 + $0x834] ss:$52 sps:$4 sm:$0xff]  }
 0x46c   :  { %14473 = vmatpush2.bf16.msra.mxu0 %v21365_v26  ;;  %14500 = vmatpush1.bf16.msra.mxu1 %v21368_v54  ;;  %v21395_v26 = vld [vmem:[%s30204_s3 + $0x1b0] ss:$52 sps:$4 sm:$0xff]  }
 0x46d   :  { %14474 = vmatprep.subr.bf16.mxu0 %v21373_v63  ;;  %14501 = vmatprep.subr.bf16.mxu1 %v21376_v48  ;;  %v21403_v63 = vld [vmem:[%s30204_s3 + $0x14c] ss:$52 sps:$4 sm:$0xff]   ;;  %v21401_v48 = vld [vmem:[%s30204_s3 + $0x148] ss:$52 sps:$4 sm:$0xff]  }
 0x470   :  { %14475 = vmatpush2.bf16.msra.mxu0 %v21371_v34  ;;  %14502 = vmatpush1.bf16.msra.mxu1 %v21374_v50  ;;  %v21404_v34 = vld [vmem:[%s30204_s3 + $0x7c8] ss:$52 sps:$4 sm:$0xff]   ;;  %v21409_v50 = vld [vmem:[%s30204_s3 + $0xe4] ss:$52 sps:$4 sm:$0xff]  }
 0x471   :  { %14530 = vmatprep.subr.bf16.mxu0 %v21379_v40  ;;  %14573 = vmatprep.subr.bf16.mxu1 %v21382_v38  ;;  %v21407_v40 = vld [vmem:[%s30204_s3 + $0xe0] ss:$52 sps:$4 sm:$0xff]   ;;  %v21412_v38 = vld [vmem:[%s30204_s3 + $0x764] ss:$52 sps:$4 sm:$0xff]  }
 0x473   :  { %14477 = vmatmul.mubr.bf16.vlgmr.msra.gmra.mxu0 %v26079_v32  ;;  %19199 = vmatmul.mubr.msk.bf16.vlgmr.msra.gmra.mxu1 %vm13924_vm1, %v26130_v21  ;;  %v14220_v7 = vpop.f32.mrf.mxu0 }
 0x474   :  { %v14221_v30 = vadd.f32 %v14220_v7, %v14178_v39  ;;  %14531 = vmatpush1.bf16.msra.mxu0 %v21377_v51  ;;  %14562 = vmatprep.mubr.bf16.mxu0 %v25397_v52  ;;  %v21410_v51 = vld [vmem:[%s30204_s3 + $0x760] ss:$52 sps:$4 sm:$0xff]   ;;  %v21416_v7 = vld [vmem:[%s30204_s3 + $0x6f8] ss:$52 sps:$4 sm:$0xff]  }
 0x475   :  { %14574 = vmatpush1.bf16.msra.mxu1 %v21380_v9  ;;  %14605 = vmatprep.mubr.bf16.mxu1 %v25399_v0  ;;  %v26779_v20 = vpop.f32.mrf.mxu0  ;;  %v21415_v9 = vld [vmem:[%s30204_s3 + $0x7c] ss:$52 sps:$4 sm:$0xff]  }
 0x476   :  { %14532 = vmatprep.subr.bf16.mxu0 %v21385_v36  ;;  %14575 = vmatprep.subr.bf16.mxu1 %v21388_v15  ;;  %v16021_v39 = vmax.f32 %v14221_v30, 0.0  ;;  %v21413_v36 = vld [vmem:[%s30204_s3 + $0x78] ss:$52 sps:$4 sm:$0xff]   ;;  %v21418_v15 = vld [vmem:[%s30204_s3 + $0x6fc] ss:$52 sps:$4 sm:$0xff]  }
 0x477   :  { %v14224_v29 = vpop.f32.mrf.mxu0  ;;  %v21424_v30 = vld [vmem:[%s30204_s3 + $0x694] ss:$52 sps:$4 sm:$0xff]  }
 0x478   :  { %v14225_v2 = vadd.f32 %v14224_v29, %v14182_v27  ;;  %14533 = vmatpush1.bf16.msra.mxu0 %v21383_v53  ;;  %v21406_v27 = vld [vmem:[%s30204_s3 + $0x7cc] ss:$52 sps:$4 sm:$0xff]   ;;  %v21421_v53 = vld [vmem:[%s30204_s3 + $0x14] ss:$52 sps:$4 sm:$0xff]  }
 0x479   :  { %14576 = vmatpush1.bf16.msra.mxu1 %v21386_v16  ;;  %14534 = vmatprep.subr.bf16.mxu0 %v21391_v44  ;;  %v21419_v16 = vld [vmem:[%s30204_s3 + $0x10] ss:$52 sps:$4 sm:$0xff]   ;;  %v21425_v29 = vld [vmem:[%s30204_s3 + $0x628] ss:$52 sps:$4 sm:$0xff]  }
 0x47a   :  { %v16034_v62 = vmax.f32 %v14225_v2, 0.0  ;;  %14577 = vmatprep.subr.bf16.mxu1 %v21394_v43  ;;  %v21422_v44 = vld [vmem:[%s30204_s3 + $0x690] ss:$52 sps:$4 sm:$0xff]   ;;  %v21427_v43 = vld [vmem:[%s30204_s3 + $0x62c] ss:$52 sps:$4 sm:$0xff]  }
 0x47b   :  { %v21428_v2 = vld [vmem:[%s30204_s3 + $0xca8] ss:$52 sps:$4 sm:$0xff]  }
 0x47c   :  { %v26796_v54 = vpack.c.bf16 %v16034_v62, %v16021_v39  ;;  %14535 = vmatpush1.bf16.msra.mxu0 %v21389_v56  ;;  %v21430_v56 = vld [vmem:[%s30204_s3 + $0xcac] ss:$52 sps:$4 sm:$0xff]   ;;  %v21436_v39 = vld [vmem:[%s30204_s3 + $0xc44] ss:$52 sps:$4 sm:$0xff]  }
 0x47d   :  { %14578 = vmatpush1.bf16.msra.mxu1 %v21392_v46  ;;  %14536 = vmatprep.subr.bf16.mxu0 %v21397_v33  ;;  %v21433_v46 = vld [vmem:[%s30204_s3 + $0x5c4] ss:$52 sps:$4 sm:$0xff]   ;;  %v21431_v33 = vld [vmem:[%s30204_s3 + $0x5c0] ss:$52 sps:$4 sm:$0xff]  }
 0x47e   :  { %30222 = vst [vmem:[#allocation5_spill] sm:$0xff] %v26796_v54  ;;  %14579 = vmatprep.subr.bf16.mxu1 %v21400_v42  ;;  %v21434_v62 = vld [vmem:[%s30204_s3 + $0xc40] ss:$52 sps:$4 sm:$0xff]   ;;  %v21439_v42 = vld [vmem:[%s30204_s3 + $0x55c] ss:$52 sps:$4 sm:$0xff]  }
 0x480   :  { %14537 = vmatpush1.bf16.msra.mxu0 %v21395_v26  ;;  %v21437_v26 = vld [vmem:[%s30204_s3 + $0x558] ss:$52 sps:$4 sm:$0xff]  }
 0x481   :  { %14580 = vmatpush1.bf16.msra.mxu1 %v21398_v31  ;;  %14538 = vmatprep.subr.bf16.mxu0 %v21403_v63  ;;  %v21442_v31 = vld [vmem:[%s30204_s3 + $0xbdc] ss:$52 sps:$4 sm:$0xff]   ;;  %v21440_v63 = vld [vmem:[%s30204_s3 + $0xbd8] ss:$52 sps:$4 sm:$0xff]  }
 0x482   :  { %14581 = vmatprep.subr.bf16.mxu1 %v21406_v27  ;;  %v21443_v27 = vld [vmem:[%s30204_s3 + $0x4f0] ss:$52 sps:$4 sm:$0xff]  }
 0x484   :  { %14539 = vmatpush1.bf16.msra.mxu0 %v21401_v48  ;;  %v21445_v48 = vld [vmem:[%s30204_s3 + $0x4f4] ss:$52 sps:$4 sm:$0xff]  }
 0x485   :  { %14582 = vmatpush1.bf16.msra.mxu1 %v21404_v34  ;;  %14540 = vmatprep.subr.bf16.mxu0 %v21409_v50  ;;  %v21448_v34 = vld [vmem:[%s30204_s3 + $0xb74] ss:$52 sps:$4 sm:$0xff]   ;;  %v21446_v50 = vld [vmem:[%s30204_s3 + $0xb70] ss:$52 sps:$4 sm:$0xff]  }
 0x486   :  { %14583 = vmatprep.subr.bf16.mxu1 %v21412_v38  ;;  %v21454_v38 = vld [vmem:[%s30204_s3 + $0xb0c] ss:$52 sps:$4 sm:$0xff]  }
 0x488   :  { %14541 = vmatpush1.bf16.msra.mxu0 %v21407_v40  ;;  %v21451_v40 = vld [vmem:[%s30204_s3 + $0x48c] ss:$52 sps:$4 sm:$0xff]  }
 0x489   :  { %14584 = vmatpush1.bf16.msra.mxu1 %v21410_v51  ;;  %14542 = vmatprep.subr.bf16.mxu0 %v21415_v9  ;;  %v21449_v51 = vld [vmem:[%s30204_s3 + $0x488] ss:$52 sps:$4 sm:$0xff]  }
 0x48a   :  { %14585 = vmatprep.subr.bf16.mxu1 %v21418_v15  ;;  %v21452_v9 = vld [vmem:[%s30204_s3 + $0xb08] ss:$52 sps:$4 sm:$0xff]   ;;  %v21460_v15 = vld [vmem:[%s30204_s3 + $0xaa4] ss:$52 sps:$4 sm:$0xff]  }
 0x48c   :  { %14543 = vmatpush1.bf16.msra.mxu0 %v21413_v36  ;;  %v21457_v36 = vld [vmem:[%s30204_s3 + $0x424] ss:$52 sps:$4 sm:$0xff]  }
 0x48d   :  { %14586 = vmatpush1.bf16.msra.mxu1 %v21416_v7  ;;  %14544 = vmatprep.subr.bf16.mxu0 %v21421_v53  ;;  %v21455_v7 = vld [vmem:[%s30204_s3 + $0x420] ss:$52 sps:$4 sm:$0xff]  }
 0x48e   :  { %14587 = vmatprep.subr.bf16.mxu1 %v21424_v30  ;;  %v21458_v53 = vld [vmem:[%s30204_s3 + $0xaa0] ss:$52 sps:$4 sm:$0xff]   ;;  %v21466_v30 = vld [vmem:[%s30204_s3 + $0xa3c] ss:$52 sps:$4 sm:$0xff]  }
 0x490   :  { %14545 = vmatpush1.bf16.msra.mxu0 %v21419_v16  ;;  %v21463_v16 = vld [vmem:[%s30204_s3 + $0x3bc] ss:$52 sps:$4 sm:$0xff]  }
 0x491   :  { %14588 = vmatpush1.bf16.msra.mxu1 %v21422_v44  ;;  %14546 = vmatprep.subr.bf16.mxu0 %v21427_v43  ;;  %v21461_v44 = vld [vmem:[%s30204_s3 + $0x3b8] ss:$52 sps:$4 sm:$0xff]  }
 0x492   :  { %14589 = vmatprep.subr.bf16.mxu1 %v21430_v56  ;;  %v21464_v43 = vld [vmem:[%s30204_s3 + $0xa38] ss:$52 sps:$4 sm:$0xff]   ;;  %v26936_v56 = vpop.f32.mrf.mxu1 }
 0x494   :  { %14547 = vmatpush2.bf16.msra.mxu0 %v21425_v29  ;;  %v21469_v29 = vld [vmem:[%s30204_s3 + $0x354] ss:$52 sps:$4 sm:$0xff]  }
 0x495   :  { %14590 = vmatpush2.bf16.msra.mxu1 %v21428_v2  ;;  %14548 = vmatprep.subr.bf16.mxu0 %v21433_v46  ;;  %v21472_v2 = vld [vmem:[%s30204_s3 + $0x9d4] ss:$52 sps:$4 sm:$0xff]  }
 0x496   :  { %14591 = vmatprep.subr.bf16.mxu1 %v21436_v39  ;;  %v21470_v39 = vld [vmem:[%s30204_s3 + $0x9d0] ss:$52 sps:$4 sm:$0xff]  }
 0x498   :  { %14549 = vmatpush2.bf16.msra.mxu0 %v21431_v33  ;;  %v21467_v33 = vld [vmem:[%s30204_s3 + $0x350] ss:$52 sps:$4 sm:$0xff]  }
 0x499   :  { %14592 = vmatpush2.bf16.msra.mxu1 %v21434_v62  ;;  %14550 = vmatprep.subr.bf16.mxu0 %v21439_v42  ;;  %v21475_v62 = vld [vmem:[%s30204_s3 + $0xfec] ss:$52 sps:$4 sm:$0xff]  }
 0x49a   :  { %14593 = vmatprep.subr.bf16.mxu1 %v21442_v31  ;;  %v21478_v42 = vld [vmem:[%s30204_s3 + $0x166c] ss:$52 sps:$4 sm:$0xff]  }
 0x49c   :  { %14551 = vmatpush2.bf16.msra.mxu0 %v21437_v26  ;;  %v22802_v26 = vld [vmem:[%s30205_s4] sm:$0xff] }
 0x49d   :  { %14594 = vmatpush2.bf16.msra.mxu1 %v21440_v63  ;;  %14552 = vmatprep.subr.bf16.mxu0 %v21445_v48  ;;  %v7270_v31 = vrot.slane %v22802_v26, %v24116_v3  ;;  %v21473_v63 = vld [vmem:[%s30204_s3 + $0xfe8] ss:$52 sps:$4 sm:$0xff]   ;;  %v21499_v26 = vld [vmem:[%s30204_s3 + $0xe4c] ss:$52 sps:$4 sm:$0xff]  }
 0x49e   :  { %14595 = vmatprep.subr.bf16.mxu1 %v21448_v34  ;;  %v21481_v34 = vld [vmem:[%s30204_s3 + $0xf84] ss:$52 sps:$4 sm:$0xff]  }
 0x4a0   :  { %14553 = vmatpush2.bf16.msra.mxu0 %v21443_v27  ;;  %v21476_v27 = vld [vmem:[%s30204_s3 + $0x1668] ss:$52 sps:$4 sm:$0xff]  }
 0x4a1   :  { %14596 = vmatpush2.bf16.msra.mxu1 %v21446_v50  ;;  %14554 = vmatprep.subr.bf16.mxu0 %v21451_v40  ;;  %v26968_v50 = vpop.f32.mrf.mxu0  ;;  %v21484_v40 = vld [vmem:[%s30204_s3 + $0x1604] ss:$52 sps:$4 sm:$0xff]  }
 0x4a2   :  { %14597 = vmatprep.subr.bf16.mxu1 %v21454_v38 }
 0x4a3   :  { %v14263_v46 = vpop.f32.mrf.mxu1 }
 0x4a4   :  { %14555 = vmatpush2.bf16.msra.mxu0 %v21449_v51  ;;  %v14264_v38 = vadd.f32 %v14263_v46, %v7270_v31 }
 0x4a5   :  { %14598 = vmatpush2.bf16.msra.mxu1 %v21452_v9  ;;  %14556 = vmatprep.subr.bf16.mxu0 %v21457_v36  ;;  %v26960_v48 = vpop.f32.mrf.mxu1  ;;  %v21479_v36 = vld [vmem:[%s30204_s3 + $0xf80] ss:$52 sps:$4 sm:$0xff]  }
 0x4a6   :  { %14599 = vmatprep.subr.bf16.mxu1 %v21460_v15  ;;  %v21482_v15 = vld [vmem:[%s30204_s3 + $0x1600] ss:$52 sps:$4 sm:$0xff]  }
 0x4a7   :  { %v14267_v51 = vpop.f32.mrf.mxu1 }
 0x4a8   :  { %14557 = vmatpush2.bf16.msra.mxu0 %v21455_v7 }
 0x4a9   :  { %14600 = vmatpush2.bf16.msra.mxu1 %v21458_v53  ;;  %14558 = vmatprep.subr.bf16.mxu0 %v21463_v16  ;;  %v21487_v53 = vld [vmem:[%s30204_s3 + $0xf1c] ss:$52 sps:$4 sm:$0xff]  }
 0x4aa   :  { %14601 = vmatprep.subr.bf16.mxu1 %v21466_v30  ;;  %v21490_v16 = vld [vmem:[%s30204_s3 + $0x159c] ss:$52 sps:$4 sm:$0xff]  }
 0x4ac   :  { %14559 = vmatpush2.bf16.msra.mxu0 %v21461_v44  ;;  %v14268_v44 = vadd.f32 %v14267_v51, %v7270_v31  ;;  %v21502_v31 = vld [vmem:[%s30204_s3 + $0x14cc] ss:$52 sps:$4 sm:$0xff]  }
 0x4ad   :  { %14602 = vmatpush2.bf16.msra.mxu1 %v21464_v43  ;;  %14560 = vmatprep.subr.bf16.mxu0 %v21469_v29  ;;  %v21485_v29 = vld [vmem:[%s30204_s3 + $0xf18] ss:$52 sps:$4 sm:$0xff]   ;;  %v21506_v51 = vld [vmem:[%s30204_s3 + $0x1460] ss:$52 sps:$4 sm:$0xff]  }
 0x4ae   :  { %14603 = vmatprep.subr.bf16.mxu1 %v21472_v2  ;;  %v21488_v2 = vld [vmem:[%s30204_s3 + $0x1598] ss:$52 sps:$4 sm:$0xff]  }
 0x4b0   :  { %14561 = vmatpush2.bf16.msra.mxu0 %v21467_v33  ;;  %v21493_v33 = vld [vmem:[%s30204_s3 + $0xeb4] ss:$52 sps:$4 sm:$0xff]  }
 0x4b1   :  { %14604 = vmatpush2.bf16.msra.mxu1 %v21470_v39  ;;  %14616 = vmatprep.subr.bf16.mxu0 %v21475_v62  ;;  %v21496_v39 = vld [vmem:[%s30204_s3 + $0x1534] ss:$52 sps:$4 sm:$0xff]   ;;  %v21491_v62 = vld [vmem:[%s30204_s3 + $0xeb0] ss:$52 sps:$4 sm:$0xff]  }
 0x4b2   :  { %14659 = vmatprep.subr.bf16.mxu1 %v21478_v42  ;;  %v21494_v42 = vld [vmem:[%s30204_s3 + $0x1530] ss:$52 sps:$4 sm:$0xff]  }
 0x4b3   :  { %v14306_v9 = vpop.f32.mrf.mxu0  ;;  %14563 = vmatmul.mubr.bf16.vlgmr.msra.gmra.mxu0 %v23969_v13 }
 0x4b4   :  { %v26980_v7 = vadd.f32 %v14306_v9, %v14264_v38  ;;  %14606 = vmatmul.mubr.bf16.vlgmr.msra.gmra.mxu1 %v24312_v4  ;;  %14617 = vmatpush1.bf16.msra.mxu0 %v21473_v63  ;;  %v21497_v63 = vld [vmem:[%s30204_s3 + $0xe48] ss:$52 sps:$4 sm:$0xff]   ;;  %v21503_v38 = vld [vmem:[%s30204_s3 + $0xde0] ss:$52 sps:$4 sm:$0xff]  }
 0x4b5   :  { %14648 = vmatprep.mubr.bf16.mxu0 %v25636_v24  ;;  %14660 = vmatpush1.bf16.msra.mxu1 %v21476_v27  ;;  %v26990_v30 = vpop.f32.mrf.mxu0  ;;  %v21500_v27 = vld [vmem:[%s30204_s3 + $0x14c8] ss:$52 sps:$4 sm:$0xff]  }
 0x4b6   :  { %14691 = vmatprep.mubr.bf16.mxu1 %v25645_v37  ;;  %14618 = vmatprep.subr.bf16.mxu0 %v21481_v34  ;;  %v21505_v34 = vld [vmem:[%s30204_s3 + $0xde4] ss:$52 sps:$4 sm:$0xff]   ;;  %v21511_v9 = vld [vmem:[%s30204_s3 + $0xd7c] ss:$52 sps:$4 sm:$0xff]  }
 0x4b7   :  { %v14310_v43 = vpop.f32.mrf.mxu0  ;;  %14661 = vmatprep.subr.bf16.mxu1 %v21484_v40  ;;  %v21508_v40 = vld [vmem:[%s30204_s3 + $0x1464] ss:$52 sps:$4 sm:$0xff]  }
 0x4b8   :  { %v26999_v46 = vadd.f32 %v14310_v43, %v14268_v44  ;;  %14619 = vmatpush1.bf16.msra.mxu0 %v21479_v36  ;;  %v21509_v36 = vld [vmem:[%s30204_s3 + $0xd78] ss:$52 sps:$4 sm:$0xff]   ;;  %v21515_v44 = vld [vmem:[%s30204_s3 + $0xd10] ss:$52 sps:$4 sm:$0xff]   ;;  %v21520_v43 = vld [vmem:[%s30204_s3 + $0x1394] ss:$52 sps:$4 sm:$0xff]  }
 0x4b9   :  { %14662 = vmatpush1.bf16.msra.mxu1 %v21482_v15  ;;  %14620 = vmatprep.subr.bf16.mxu0 %v21487_v53  ;;  %v21514_v15 = vld [vmem:[%s30204_s3 + $0x13fc] ss:$52 sps:$4 sm:$0xff]   ;;  %v21512_v53 = vld [vmem:[%s30204_s3 + $0x13f8] ss:$52 sps:$4 sm:$0xff]  }
 0x4ba   :  { %14663 = vmatprep.subr.bf16.mxu1 %v21490_v16  ;;  %v21517_v16 = vld [vmem:[%s30204_s3 + $0xd14] ss:$52 sps:$4 sm:$0xff]  }
 0x4bc   :  { %14621 = vmatpush1.bf16.msra.mxu0 %v21485_v29  ;;  %v21518_v29 = vld [vmem:[%s30204_s3 + $0x1390] ss:$52 sps:$4 sm:$0xff]  }
 0x4bd   :  { %14664 = vmatpush1.bf16.msra.mxu1 %v21488_v2  ;;  %14622 = vmatprep.subr.bf16.mxu0 %v21493_v33  ;;  %v21523_v2 = vld [vmem:[%s30204_s3 + $0x132c] ss:$52 sps:$4 sm:$0xff]   ;;  %v21521_v33 = vld [vmem:[%s30204_s3 + $0x1328] ss:$52 sps:$4 sm:$0xff]  }
 0x4be   :  { %14665 = vmatprep.subr.bf16.mxu1 %v21496_v39  ;;  %v21526_v39 = vld [vmem:[%s30204_s3 + $0x19ac] ss:$52 sps:$4 sm:$0xff]  }
 0x4c0   :  { %14623 = vmatpush1.bf16.msra.mxu0 %v21491_v62  ;;  %v21524_v62 = vld [vmem:[%s30204_s3 + $0x19a8] ss:$52 sps:$4 sm:$0xff]  }
 0x4c1   :  { %14666 = vmatpush1.bf16.msra.mxu1 %v21494_v42  ;;  %14624 = vmatprep.subr.bf16.mxu0 %v21499_v26  ;;  %v21529_v42 = vld [vmem:[%s30204_s3 + $0x12c4] ss:$52 sps:$4 sm:$0xff]   ;;  %v21527_v26 = vld [vmem:[%s30204_s3 + $0x12c0] ss:$52 sps:$4 sm:$0xff]  }
 0x4c2   :  { %14667 = vmatprep.subr.bf16.mxu1 %v21502_v31  ;;  %v21532_v31 = vld [vmem:[%s30204_s3 + $0x1944] ss:$52 sps:$4 sm:$0xff]  }
 0x4c4   :  { %14625 = vmatpush1.bf16.msra.mxu0 %v21497_v63  ;;  %v21530_v63 = vld [vmem:[%s30204_s3 + $0x1940] ss:$52 sps:$4 sm:$0xff]  }
 0x4c5   :  { %14668 = vmatpush1.bf16.msra.mxu1 %v21500_v27  ;;  %14626 = vmatprep.subr.bf16.mxu0 %v21505_v34  ;;  %v21535_v27 = vld [vmem:[%s30204_s3 + $0x125c] ss:$52 sps:$4 sm:$0xff]   ;;  %v21533_v34 = vld [vmem:[%s30204_s3 + $0x1258] ss:$52 sps:$4 sm:$0xff]  }
 0x4c6   :  { %14669 = vmatprep.subr.bf16.mxu1 %v21508_v40  ;;  %v21538_v40 = vld [vmem:[%s30204_s3 + $0x18dc] ss:$52 sps:$4 sm:$0xff]  }
 0x4c8   :  { %14627 = vmatpush1.bf16.msra.mxu0 %v21503_v38  ;;  %v21536_v38 = vld [vmem:[%s30204_s3 + $0x18d8] ss:$52 sps:$4 sm:$0xff]  }
 0x4c9   :  { %14670 = vmatpush1.bf16.msra.mxu1 %v21506_v51  ;;  %14628 = vmatprep.subr.bf16.mxu0 %v21511_v9  ;;  %v21541_v51 = vld [vmem:[%s30204_s3 + $0x11f4] ss:$52 sps:$4 sm:$0xff]   ;;  %v21539_v9 = vld [vmem:[%s30204_s3 + $0x11f0] ss:$52 sps:$4 sm:$0xff]  }
 0x4ca   :  { %14671 = vmatprep.subr.bf16.mxu1 %v21514_v15  ;;  %v21542_v15 = vld [vmem:[%s30204_s3 + $0x1870] ss:$52 sps:$4 sm:$0xff]  }
 0x4cc   :  { %14629 = vmatpush1.bf16.msra.mxu0 %v21509_v36  ;;  %v21544_v36 = vld [vmem:[%s30204_s3 + $0x1874] ss:$52 sps:$4 sm:$0xff]  }
 0x4cd   :  { %14672 = vmatpush1.bf16.msra.mxu1 %v21512_v53  ;;  %14630 = vmatprep.subr.bf16.mxu0 %v21517_v16  ;;  %v21547_v53 = vld [vmem:[%s30204_s3 + $0x118c] ss:$52 sps:$4 sm:$0xff]   ;;  %v21545_v16 = vld [vmem:[%s30204_s3 + $0x1188] ss:$52 sps:$4 sm:$0xff]  }
 0x4ce   :  { %14673 = vmatprep.subr.bf16.mxu1 %v21520_v43  ;;  %v27118_v43 = vpop.f32.mrf.mxu1 }
 0x4d0   :  { %14631 = vmatpush1.bf16.msra.mxu0 %v21515_v44  ;;  %v21550_v44 = vld [vmem:[%s30204_s3 + $0x180c] ss:$52 sps:$4 sm:$0xff]  }
 0x4d1   :  { %14674 = vmatpush1.bf16.msra.mxu1 %v21518_v29  ;;  %14632 = vmatprep.subr.bf16.mxu0 %v21523_v2  ;;  %v21548_v29 = vld [vmem:[%s30204_s3 + $0x1808] ss:$52 sps:$4 sm:$0xff]   ;;  %v21553_v2 = vld [vmem:[%s30204_s3 + $0x1124] ss:$52 sps:$4 sm:$0xff]  }
 0x4d2   :  { %14675 = vmatprep.subr.bf16.mxu1 %v21526_v39  ;;  %v21556_v39 = vld [vmem:[%s30204_s3 + $0x17a4] ss:$52 sps:$4 sm:$0xff]  }
 0x4d4   :  { %14633 = vmatpush2.bf16.msra.mxu0 %v21521_v33  ;;  %v21551_v33 = vld [vmem:[%s30204_s3 + $0x1120] ss:$52 sps:$4 sm:$0xff]  }
 0x4d5   :  { %14676 = vmatpush2.bf16.msra.mxu1 %v21524_v62  ;;  %14634 = vmatprep.subr.bf16.mxu0 %v21529_v42 }
 0x4d6   :  { %14677 = vmatprep.subr.bf16.mxu1 %v21532_v31  ;;  %v21554_v31 = vld [vmem:[%s30204_s3 + $0x17a0] ss:$52 sps:$4 sm:$0xff]  }
 0x4d8   :  { %14635 = vmatpush2.bf16.msra.mxu0 %v21527_v26 }
 0x4d9   :  { %14678 = vmatpush2.bf16.msra.mxu1 %v21530_v63  ;;  %14636 = vmatprep.subr.bf16.mxu0 %v21535_v27  ;;  %v21559_v63 = vld [vmem:[%s30204_s3 + $0x10bc] ss:$52 sps:$4 sm:$0xff]   ;;  %v21557_v27 = vld [vmem:[%s30204_s3 + $0x10b8] ss:$52 sps:$4 sm:$0xff]  }
 0x4da   :  { %14679 = vmatprep.subr.bf16.mxu1 %v21538_v40 }
 0x4dc   :  { %14637 = vmatpush2.bf16.msra.mxu0 %v21533_v34 }
 0x4dd   :  { %14680 = vmatpush2.bf16.msra.mxu1 %v21536_v38  ;;  %14638 = vmatprep.subr.bf16.mxu0 %v21541_v51  ;;  %v21560_v38 = vld [vmem:[%s30204_s3 + $0x1738] ss:$52 sps:$4 sm:$0xff]   ;;  %v21565_v51 = vld [vmem:[%s30204_s3 + $0x1054] ss:$52 sps:$4 sm:$0xff]  }
 0x4de   :  { %14681 = vmatprep.subr.bf16.mxu1 %v21544_v36  ;;  %v21566_v36 = vld [vmem:[%s30204_s3 + $0x16d0] ss:$52 sps:$4 sm:$0xff]  }
 0x4e0   :  { %14639 = vmatpush2.bf16.msra.mxu0 %v21539_v9  ;;  %v21563_v9 = vld [vmem:[%s30204_s3 + $0x1050] ss:$52 sps:$4 sm:$0xff]  }
 0x4e1   :  { %14682 = vmatpush2.bf16.msra.mxu1 %v21542_v15  ;;  %14640 = vmatprep.subr.bf16.mxu0 %v21547_v53  ;;  %v21571_v15 = vld [vmem:[%s30204_s3 + $0x1cec] ss:$52 sps:$4 sm:$0xff]   ;;  %v21569_v53 = vld [vmem:[%s30204_s3 + $0x1ce8] ss:$52 sps:$4 sm:$0xff]  }
 0x4e2   :  { %14683 = vmatprep.subr.bf16.mxu1 %v21550_v44  ;;  %v21572_v44 = vld [vmem:[%s30204_s3 + $0x2368] ss:$52 sps:$4 sm:$0xff]  }
 0x4e3   :  { %v14349_v62 = vpop.f32.mrf.mxu1 }
 0x4e4   :  { %v14350_v42 = vadd.f32 %v14349_v62, %v26980_v7  ;;  %14641 = vmatpush2.bf16.msra.mxu0 %v21545_v16  ;;  %v21562_v7 = vld [vmem:[%s30204_s3 + $0x173c] ss:$52 sps:$4 sm:$0xff]   ;;  %v21574_v16 = vld [vmem:[%s30204_s3 + $0x236c] ss:$52 sps:$4 sm:$0xff]  }
 0x4e5   :  { %14684 = vmatpush2.bf16.msra.mxu1 %v21548_v29  ;;  %v27133_v26 = vpop.f32.mrf.mxu1  ;;  %14642 = vmatprep.subr.bf16.mxu0 %v21553_v2  ;;  %v21577_v29 = vld [vmem:[%s30204_s3 + $0x1c84] ss:$52 sps:$4 sm:$0xff]   ;;  %v27178_v2 = vpop.f32.mrf.mxu0  ;;  %v21575_v62 = vld [vmem:[%s30204_s3 + $0x1c80] ss:$52 sps:$4 sm:$0xff]  }
 0x4e6   :  { %14685 = vmatprep.subr.bf16.mxu1 %v21556_v39 }
 0x4e7   :  { %v14353_v34 = vpop.f32.mrf.mxu1 }
 0x4e8   :  { %v14354_v40 = vadd.f32 %v14353_v34, %v26999_v46  ;;  %14643 = vmatpush2.bf16.msra.mxu0 %v21551_v33  ;;  %v21568_v46 = vld [vmem:[%s30204_s3 + $0x16d4] ss:$52 sps:$4 sm:$0xff]   ;;  %v21580_v33 = vld [vmem:[%s30204_s3 + $0x2304] ss:$52 sps:$4 sm:$0xff]  }
 0x4e9   :  { %14686 = vmatpush2.bf16.msra.mxu1 %v21554_v31  ;;  %14644 = vmatprep.subr.bf16.mxu0 %v21559_v63  ;;  %v21578_v31 = vld [vmem:[%s30204_s3 + $0x2300] ss:$52 sps:$4 sm:$0xff]  }
 0x4ea   :  { %14687 = vmatprep.subr.bf16.mxu1 %v21562_v7  ;;  %v21586_v7 = vld [vmem:[%s30204_s3 + $0x229c] ss:$52 sps:$4 sm:$0xff]  }
 0x4ec   :  { %14645 = vmatpush2.bf16.msra.mxu0 %v21557_v27  ;;  %v21583_v27 = vld [vmem:[%s30204_s3 + $0x1c1c] ss:$52 sps:$4 sm:$0xff]  }
 0x4ed   :  { %14688 = vmatpush2.bf16.msra.mxu1 %v21560_v38  ;;  %14646 = vmatprep.subr.bf16.mxu0 %v21565_v51  ;;  %v21581_v38 = vld [vmem:[%s30204_s3 + $0x1c18] ss:$52 sps:$4 sm:$0xff]  }
 0x4ee   :  { %14689 = vmatprep.subr.bf16.mxu1 %v21568_v46  ;;  %v21584_v51 = vld [vmem:[%s30204_s3 + $0x2298] ss:$52 sps:$4 sm:$0xff]   ;;  %v21589_v46 = vld [vmem:[%s30204_s3 + $0x1bb4] ss:$52 sps:$4 sm:$0xff]  }
 0x4f0   :  { %14647 = vmatpush2.bf16.msra.mxu0 %v21563_v9 }
 0x4f1   :  { %14690 = vmatpush2.bf16.msra.mxu1 %v21566_v36  ;;  %14702 = vmatprep.subr.bf16.mxu0 %v21571_v15  ;;  %v21592_v36 = vld [vmem:[%s30204_s3 + $0x2234] ss:$52 sps:$4 sm:$0xff]   ;;  %v21587_v15 = vld [vmem:[%s30204_s3 + $0x1bb0] ss:$52 sps:$4 sm:$0xff]  }
 0x4f2   :  { %14745 = vmatprep.subr.bf16.mxu1 %v21574_v16  ;;  %v21593_v16 = vld [vmem:[%s30204_s3 + $0x1b48] ss:$52 sps:$4 sm:$0xff]  }
 0x4f3   :  { %v14392_v39 = vpop.f32.mrf.mxu0  ;;  %14649 = vmatmul.mubr.bf16.vlgmr.msra.gmra.mxu0 %v24755_v59 }
 0x4f4   :  { %v27190_v63 = vadd.f32 %v14392_v39, %v14350_v42  ;;  %14692 = vmatmul.mubr.bf16.vlgmr.msra.gmra.mxu1 %v25097_v45  ;;  %14703 = vmatpush1.bf16.msra.mxu0 %v21569_v53  ;;  %v21595_v53 = vld [vmem:[%s30204_s3 + $0x1b4c] ss:$52 sps:$4 sm:$0xff]   ;;  %v21604_v39 = vld [vmem:[%s30204_s3 + $0x2164] ss:$52 sps:$4 sm:$0xff]  }
 0x4f5   :  { %14734 = vmatprep.mubr.bf16.mxu0 %v25859_v12  ;;  %14746 = vmatpush1.bf16.msra.mxu1 %v21572_v44  ;;  %v27200_v34 = vpop.f32.mrf.mxu0  ;;  %v21598_v44 = vld [vmem:[%s30204_s3 + $0x21cc] ss:$52 sps:$4 sm:$0xff]  }
 0x4f6   :  { %14777 = vmatprep.mubr.bf16.mxu1 %v25917_v8  ;;  %14704 = vmatprep.subr.bf16.mxu0 %v21577_v29  ;;  %v21596_v29 = vld [vmem:[%s30204_s3 + $0x21c8] ss:$52 sps:$4 sm:$0xff]  }
 0x4f7   :  { %v14396_v42 = vpop.f32.mrf.mxu0  ;;  %14747 = vmatprep.subr.bf16.mxu1 %v21580_v33  ;;  %v21601_v33 = vld [vmem:[%s30204_s3 + $0x1ae4] ss:$52 sps:$4 sm:$0xff]  }
 0x4f8   :  { %v27209_v9 = vadd.f32 %v14396_v42, %v14354_v40  ;;  %14705 = vmatpush1.bf16.msra.mxu0 %v21575_v62  ;;  %v21590_v40 = vld [vmem:[%s30204_s3 + $0x2230] ss:$52 sps:$4 sm:$0xff]   ;;  %v21599_v62 = vld [vmem:[%s30204_s3 + $0x1ae0] ss:$52 sps:$4 sm:$0xff]  }
 0x4f9   :  { %14748 = vmatpush1.bf16.msra.mxu1 %v21578_v31  ;;  %14706 = vmatprep.subr.bf16.mxu0 %v21583_v27  ;;  %v21602_v31 = vld [vmem:[%s30204_s3 + $0x2160] ss:$52 sps:$4 sm:$0xff]   ;;  %v21607_v27 = vld [vmem:[%s30204_s3 + $0x1a7c] ss:$52 sps:$4 sm:$0xff]  }
 0x4fa   :  { %14749 = vmatprep.subr.bf16.mxu1 %v21586_v7  ;;  %v21605_v7 = vld [vmem:[%s30204_s3 + $0x1a78] ss:$52 sps:$4 sm:$0xff]   ;;  %v21610_v42 = vld [vmem:[%s30204_s3 + $0x20fc] ss:$52 sps:$4 sm:$0xff]  }
 0x4fc   :  { %14707 = vmatpush1.bf16.msra.mxu0 %v21581_v38  ;;  %v21608_v38 = vld [vmem:[%s30204_s3 + $0x20f8] ss:$52 sps:$4 sm:$0xff]  }
 0x4fd   :  { %14750 = vmatpush1.bf16.msra.mxu1 %v21584_v51  ;;  %14708 = vmatprep.subr.bf16.mxu0 %v21589_v46  ;;  %v21613_v51 = vld [vmem:[%s30204_s3 + $0x1a14] ss:$52 sps:$4 sm:$0xff]   ;;  %v21611_v46 = vld [vmem:[%s30204_s3 + $0x1a10] ss:$52 sps:$4 sm:$0xff]  }
 0x4fe   :  { %14751 = vmatprep.subr.bf16.mxu1 %v21592_v36  ;;  %v21616_v36 = vld [vmem:[%s30204_s3 + $0x2094] ss:$52 sps:$4 sm:$0xff]  }
 0x500   :  { %14709 = vmatpush1.bf16.msra.mxu0 %v21587_v15  ;;  %v21614_v15 = vld [vmem:[%s30204_s3 + $0x2090] ss:$52 sps:$4 sm:$0xff]  }
 0x501   :  { %14752 = vmatpush1.bf16.msra.mxu1 %v21590_v40  ;;  %14710 = vmatprep.subr.bf16.mxu0 %v21595_v53  ;;  %v21619_v40 = vld [vmem:[%s30204_s3 + $0x202c] ss:$52 sps:$4 sm:$0xff]   ;;  %v21617_v53 = vld [vmem:[%s30204_s3 + $0x2028] ss:$52 sps:$4 sm:$0xff]  }
 0x502   :  { %14753 = vmatprep.subr.bf16.mxu1 %v21598_v44  ;;  %v21620_v44 = vld [vmem:[%s30204_s3 + $0x26a8] ss:$52 sps:$4 sm:$0xff]  }
 0x504   :  { %14711 = vmatpush1.bf16.msra.mxu0 %v21593_v16  ;;  %v21622_v16 = vld [vmem:[%s30204_s3 + $0x26ac] ss:$52 sps:$4 sm:$0xff]  }
 0x505   :  { %14754 = vmatpush1.bf16.msra.mxu1 %v21596_v29  ;;  %14712 = vmatprep.subr.bf16.mxu0 %v21601_v33  ;;  %v21625_v29 = vld [vmem:[%s30204_s3 + $0x1fc4] ss:$52 sps:$4 sm:$0xff]   ;;  %v21623_v33 = vld [vmem:[%s30204_s3 + $0x1fc0] ss:$52 sps:$4 sm:$0xff]  }
 0x506   :  { %14755 = vmatprep.subr.bf16.mxu1 %v21604_v39  ;;  %v21628_v39 = vld [vmem:[%s30204_s3 + $0x2644] ss:$52 sps:$4 sm:$0xff]  }
 0x508   :  { %14713 = vmatpush1.bf16.msra.mxu0 %v21599_v62  ;;  %v21626_v62 = vld [vmem:[%s30204_s3 + $0x2640] ss:$52 sps:$4 sm:$0xff]  }
 0x509   :  { %14756 = vmatpush1.bf16.msra.mxu1 %v21602_v31  ;;  %14714 = vmatprep.subr.bf16.mxu0 %v21607_v27  ;;  %v21631_v31 = vld [vmem:[%s30204_s3 + $0x1f5c] ss:$52 sps:$4 sm:$0xff]   ;;  %v21629_v27 = vld [vmem:[%s30204_s3 + $0x1f58] ss:$52 sps:$4 sm:$0xff]  }
 0x50a   :  { %14757 = vmatprep.subr.bf16.mxu1 %v21610_v42  ;;  %v21632_v42 = vld [vmem:[%s30204_s3 + $0x25d8] ss:$52 sps:$4 sm:$0xff]  }
 0x50c   :  { %14715 = vmatpush1.bf16.msra.mxu0 %v21605_v7  ;;  %v21634_v7 = vld [vmem:[%s30204_s3 + $0x25dc] ss:$52 sps:$4 sm:$0xff]  }
 0x50d   :  { %14758 = vmatpush1.bf16.msra.mxu1 %v21608_v38  ;;  %14716 = vmatprep.subr.bf16.mxu0 %v21613_v51  ;;  %v21637_v38 = vld [vmem:[%s30204_s3 + $0x1ef4] ss:$52 sps:$4 sm:$0xff]  }
 0x50e   :  { %14759 = vmatprep.subr.bf16.mxu1 %v21616_v36  ;;  %v21640_v51 = vld [vmem:[%s30204_s3 + $0x2574] ss:$52 sps:$4 sm:$0xff]   ;;  %v21638_v36 = vld [vmem:[%s30204_s3 + $0x2570] ss:$52 sps:$4 sm:$0xff]  }
 0x510   :  { %14717 = vmatpush1.bf16.msra.mxu0 %v21611_v46  ;;  %v21635_v46 = vld [vmem:[%s30204_s3 + $0x1ef0] ss:$52 sps:$4 sm:$0xff]  }
 0x511   :  { %14760 = vmatpush1.bf16.msra.mxu1 %v21614_v15  ;;  %14718 = vmatprep.subr.bf16.mxu0 %v21619_v40  ;;  %v21643_v15 = vld [vmem:[%s30204_s3 + $0x1e8c] ss:$52 sps:$4 sm:$0xff]  }
 0x512   :  { %14761 = vmatprep.subr.bf16.mxu1 %v21622_v16  ;;  %v21646_v40 = vld [vmem:[%s30204_s3 + $0x250c] ss:$52 sps:$4 sm:$0xff]   ;;  %v27328_v16 = vpop.f32.mrf.mxu1 }
 0x514   :  { %14719 = vmatpush2.bf16.msra.mxu0 %v21617_v53  ;;  %v21641_v53 = vld [vmem:[%s30204_s3 + $0x1e88] ss:$52 sps:$4 sm:$0xff]  }
 0x515   :  { %14762 = vmatpush2.bf16.msra.mxu1 %v21620_v44  ;;  %14720 = vmatprep.subr.bf16.mxu0 %v21625_v29  ;;  %v21644_v44 = vld [vmem:[%s30204_s3 + $0x2508] ss:$52 sps:$4 sm:$0xff]   ;;  %v21649_v29 = vld [vmem:[%s30204_s3 + $0x1e24] ss:$52 sps:$4 sm:$0xff]  }
 0x516   :  { %14763 = vmatprep.subr.bf16.mxu1 %v21628_v39 }
 0x518   :  { %14721 = vmatpush2.bf16.msra.mxu0 %v21623_v33  ;;  %v21652_v33 = vld [vmem:[%s30204_s3 + $0x24a4] ss:$52 sps:$4 sm:$0xff]  }
 0x519   :  { %14764 = vmatpush2.bf16.msra.mxu1 %v21626_v62  ;;  %14722 = vmatprep.subr.bf16.mxu0 %v21631_v31  ;;  %v21647_v31 = vld [vmem:[%s30204_s3 + $0x1e20] ss:$52 sps:$4 sm:$0xff]  }
 0x51a   :  { %14765 = vmatprep.subr.bf16.mxu1 %v21634_v7  ;;  %v21650_v7 = vld [vmem:[%s30204_s3 + $0x24a0] ss:$52 sps:$4 sm:$0xff]  }
 0x51c   :  { %14723 = vmatpush2.bf16.msra.mxu0 %v21629_v27 }
 0x51d   :  { %14766 = vmatpush2.bf16.msra.mxu1 %v21632_v42  ;;  %14724 = vmatprep.subr.bf16.mxu0 %v21637_v38  ;;  %v21655_v42 = vld [vmem:[%s30204_s3 + $0x1dbc] ss:$52 sps:$4 sm:$0xff]  }
 0x51e   :  { %14767 = vmatprep.subr.bf16.mxu1 %v21640_v51 }
 0x520   :  { %14725 = vmatpush2.bf16.msra.mxu0 %v21635_v46  ;;  %v21653_v46 = vld [vmem:[%s30204_s3 + $0x1db8] ss:$52 sps:$4 sm:$0xff]  }
 0x521   :  { %14768 = vmatpush2.bf16.msra.mxu1 %v21638_v36  ;;  %14726 = vmatprep.subr.bf16.mxu0 %v21643_v15  ;;  %v21656_v36 = vld [vmem:[%s30204_s3 + $0x2438] ss:$52 sps:$4 sm:$0xff]   ;;  %v21661_v15 = vld [vmem:[%s30204_s3 + $0x1d54] ss:$52 sps:$4 sm:$0xff]  }
 0x522   :  { %14769 = vmatprep.subr.bf16.mxu1 %v21646_v40  ;;  %v21659_v40 = vld [vmem:[%s30204_s3 + $0x1d50] ss:$52 sps:$4 sm:$0xff]  }
 0x523   :  { %v14435_v39 = vpop.f32.mrf.mxu1 }
 0x524   :  { %v14436_v62 = vadd.f32 %v14435_v39, %v27190_v63  ;;  %14727 = vmatpush2.bf16.msra.mxu0 %v21641_v53  ;;  %v21658_v63 = vld [vmem:[%s30204_s3 + $0x243c] ss:$52 sps:$4 sm:$0xff]   ;;  %v27382_v39 = vpop.f32.mrf.mxu0 }
 0x525   :  { %14770 = vmatpush2.bf16.msra.mxu1 %v21644_v44  ;;  %v27343_v27 = vpop.f32.mrf.mxu1  ;;  %14728 = vmatprep.subr.bf16.mxu0 %v21649_v29  ;;  %v21662_v53 = vld [vmem:[%s30204_s3 + $0x23d0] ss:$52 sps:$4 sm:$0xff]   ;;  %v21667_v44 = vld [vmem:[%s30204_s3 + $0x284c] ss:$52 sps:$4 sm:$0xff]   ;;  %v21670_v29 = vld [vmem:[%s30204_s3 + $0x2f4] ss:$52 sps:$4 sm:$0xff]  }
 0x526   :  { %14771 = vmatprep.subr.bf16.mxu1 %v21652_v33  ;;  %v21665_v33 = vld [vmem:[%s30204_s3 + $0x2848] ss:$52 sps:$4 sm:$0xff]  }
 0x527   :  { %v14439_v38 = vpop.f32.mrf.mxu1 }
 0x528   :  { %v14440_v51 = vadd.f32 %v14439_v38, %v27209_v9  ;;  %14729 = vmatpush2.bf16.msra.mxu0 %v21647_v31  ;;  %v21664_v9 = vld [vmem:[%s30204_s3 + $0x23d4] ss:$52 sps:$4 sm:$0xff]  }
 0x529   :  { %14772 = vmatpush2.bf16.msra.mxu1 %v21650_v7  ;;  %14730 = vmatprep.subr.bf16.mxu0 %v21655_v42  ;;  %v27384_v31 = vpop.f32.mrf.mxu1  ;;  %v21668_v7 = vld [vmem:[%s30204_s3 + $0x2f0] ss:$52 sps:$4 sm:$0xff]  }
 0x52a   :  { %14773 = vmatprep.subr.bf16.mxu1 %v21658_v63  ;;  %v21673_v42 = vld [vmem:[%s30204_s3 + $0x27e4] ss:$52 sps:$4 sm:$0xff]   ;;  %v21676_v63 = vld [vmem:[%s30204_s3 + $0x28c] ss:$52 sps:$4 sm:$0xff]  }
 0x52c   :  { %14731 = vmatpush2.bf16.msra.mxu0 %v21653_v46 }
 0x52d   :  { %14774 = vmatpush2.bf16.msra.mxu1 %v21656_v36  ;;  %14732 = vmatprep.subr.bf16.mxu0 %v21661_v15  ;;  %v21671_v15 = vld [vmem:[%s30204_s3 + $0x27e0] ss:$52 sps:$4 sm:$0xff]  }
 0x52e   :  { %14775 = vmatprep.subr.bf16.mxu1 %v21664_v9 }
 0x530   :  { %14733 = vmatpush2.bf16.msra.mxu0 %v21659_v40 }
 0x531   :  { %14776 = vmatpush2.bf16.msra.mxu1 %v21662_v53  ;;  %14796 = vmatprep.subr.bf16.mxu0 %v21667_v44  ;;  %v21674_v53 = vld [vmem:[%s30204_s3 + $0x288] ss:$52 sps:$4 sm:$0xff]  }
 0x532   :  { %14831 = vmatprep.subr.bf16.mxu1 %v21670_v29  ;;  %v21682_v29 = vld [vmem:[%s30204_s3 + $0x224] ss:$52 sps:$4 sm:$0xff]  }
 0x533   :  { %v14478_v38 = vpop.f32.mrf.mxu0  ;;  %v14521_v46 = vpop.f32.mrf.mxu1  ;;  %14735 = vmatmul.mubr.bf16.vlgmr.msra.gmra.mxu0 %v25548_v1 }
 0x534   :  { %v14479_v36 = vadd.f32 %v14478_v38, %v14436_v62  ;;  %14778 = vmatmul.mubr.bf16.vlgmr.msra.gmra.mxu1 %v26079_v32  ;;  %14797 = vmatpush1.bf16.msra.mxu0 %v21665_v33  ;;  %v21679_v62 = vld [vmem:[%s30204_s3 + $0x277c] ss:$52 sps:$4 sm:$0xff]   ;;  %v21677_v38 = vld [vmem:[%s30204_s3 + $0x2778] ss:$52 sps:$4 sm:$0xff]  }
 0x535   :  { %14832 = vmatpush1.bf16.msra.mxu1 %v21668_v7  ;;  %14863 = vmatprep.mubr.bf16.mxu1 %v25397_v52  ;;  %v27401_v9 = vpop.f32.mrf.mxu0  ;;  %v27403_v40 = vpop.f32.mrf.mxu1 }
 0x536   :  { %v14522_v44 = vadd.f32 %v14521_v46, %v14479_v36  ;;  %14798 = vmatprep.subr.bf16.mxu0 %v21673_v42  ;;  %14833 = vmatprep.subr.bf16.mxu1 %v21676_v63  ;;  %v21680_v42 = vld [vmem:[%s30204_s3 + $0x220] ss:$52 sps:$4 sm:$0xff]  }
 0x537   :  { %v14482_v33 = vpop.f32.mrf.mxu0  ;;  %14820 = vmatprep.mubr.bf16.mxu0 %v30214_v14  ;;  %v14525_v10 = vpop.f32.mrf.mxu1  ;;  %v21685_v63 = vld [vmem:[%s30204_s3 + $0x2714] ss:$52 sps:$4 sm:$0xff]  }
 0x538   :  { %v14483_v7 = vadd.f32 %v14482_v33, %v14440_v51  ;;  %14799 = vmatpush1.bf16.msra.mxu0 %v21671_v15  ;;  %v21688_v51 = vld [vmem:[%s30204_s3 + $0x1bc] ss:$52 sps:$4 sm:$0xff]   ;;  %v16023_v36 = vmax.f32 %v14522_v44, 0.0  ;;  %v21691_v44 = vld [vmem:[%s30204_s3 + $0x154] ss:$52 sps:$4 sm:$0xff]  }
 0x539   :  { %14834 = vmatpush1.bf16.msra.mxu1 %v21674_v53  ;;  %14800 = vmatprep.subr.bf16.mxu0 %v21679_v62  ;;  %v21683_v53 = vld [vmem:[%s30204_s3 + $0x2710] ss:$52 sps:$4 sm:$0xff]   ;;  %v21686_v62 = vld [vmem:[%s30204_s3 + $0x1b8] ss:$52 sps:$4 sm:$0xff]   ;;  %v21773_v14 = vld [vmem:[%s30204_s3 + $0xa40] ss:$52 sps:$4 sm:$0xff]  }
 0x53a   :  { %v14526_v46 = vadd.f32 %v14525_v10, %v14483_v7  ;;  %14835 = vmatprep.subr.bf16.mxu1 %v21682_v29  ;;  %v21694_v10 = vld [vmem:[%s30204_s3 + $0x974] ss:$52 sps:$4 sm:$0xff]   ;;  %v21692_v33 = vld [vmem:[%s30204_s3 + $0x970] ss:$52 sps:$4 sm:$0xff]  }
 0x53b   :  { %v21689_v7 = vld [vmem:[%s30204_s3 + $0x150] ss:$52 sps:$4 sm:$0xff]  }
 0x53c   :  { %v16036_v15 = vmax.f32 %v14526_v46, 0.0  ;;  %14801 = vmatpush1.bf16.msra.mxu0 %v21677_v38  ;;  %v21700_v38 = vld [vmem:[%s30204_s3 + $0x90c] ss:$52 sps:$4 sm:$0xff]   ;;  %v21695_v46 = vld [vmem:[%s30204_s3 + $0xe8] ss:$52 sps:$4 sm:$0xff]  }
 0x53d   :  { %14836 = vmatpush1.bf16.msra.mxu1 %v21680_v42  ;;  %14802 = vmatprep.subr.bf16.mxu0 %v21685_v63  ;;  %v21697_v42 = vld [vmem:[%s30204_s3 + $0xec] ss:$52 sps:$4 sm:$0xff]   ;;  %v21698_v63 = vld [vmem:[%s30204_s3 + $0x908] ss:$52 sps:$4 sm:$0xff]  }
 0x53e   :  { %v27436_v29 = vpack.c.bf16 %v16036_v15, %v16023_v36  ;;  %14837 = vmatprep.subr.bf16.mxu1 %v21688_v51  ;;  %v21706_v51 = vld [vmem:[%s30204_s3 + $0x8a4] ss:$52 sps:$4 sm:$0xff]   ;;  %v21704_v15 = vld [vmem:[%s30204_s3 + $0x8a0] ss:$52 sps:$4 sm:$0xff]  }
 0x53f   :  { %v21703_v36 = vld [vmem:[%s30204_s3 + $0x84] ss:$52 sps:$4 sm:$0xff]  }
 0x540   :  { %30223 = vst [vmem:[#allocation6_spill] sm:$0xff] %v27436_v29  ;;  %14803 = vmatpush1.bf16.msra.mxu0 %v21683_v53  ;;  %v21701_v53 = vld [vmem:[%s30204_s3 + $0x80] ss:$52 sps:$4 sm:$0xff]   ;;  %v21973_v29 = vld [vmem:[%s30204_s3 + $0x23dc] ss:$52 sps:$4 sm:$0xff]  }
 0x541   :  { %14838 = vmatpush1.bf16.msra.mxu1 %v21686_v62  ;;  %14874 = vmatprep.subr.bf16.mxu0 %v21694_v10  ;;  %v21712_v62 = vld [vmem:[%s30204_s3 + $0x83c] ss:$52 sps:$4 sm:$0xff]  }
 0x542   :  { %14839 = vmatprep.subr.bf16.mxu1 %v21691_v44  ;;  %v21709_v10 = vld [vmem:[%s30204_s3 + $0x1c] ss:$52 sps:$4 sm:$0xff]   ;;  %v21710_v44 = vld [vmem:[%s30204_s3 + $0x838] ss:$52 sps:$4 sm:$0xff]  }
 0x543   :  { %19200 = vmatmul.mubr.msk.bf16.vlgmr.msra.gmra.mxu0 %vm13924_vm1, %v26130_v21 }
 0x544   :  { %14875 = vmatpush1.bf16.msra.mxu0 %v21692_v33  ;;  %14906 = vmatprep.mubr.bf16.mxu0 %v25399_v0  ;;  %v21707_v33 = vld [vmem:[%s30204_s3 + $0x18] ss:$52 sps:$4 sm:$0xff]  }
 0x545   :  { %14840 = vmatpush1.bf16.msra.mxu1 %v21689_v7  ;;  %14876 = vmatprep.subr.bf16.mxu0 %v21700_v38  ;;  %v21718_v7 = vld [vmem:[%s30204_s3 + $0x7d4] ss:$52 sps:$4 sm:$0xff]  }
 0x546   :  { %14841 = vmatprep.subr.bf16.mxu1 %v21697_v42  ;;  %v21715_v38 = vld [vmem:[%s30204_s3 + $0x634] ss:$52 sps:$4 sm:$0xff]   ;;  %v21716_v42 = vld [vmem:[%s30204_s3 + $0x7d0] ss:$52 sps:$4 sm:$0xff]  }
 0x548   :  { %14877 = vmatpush1.bf16.msra.mxu0 %v21698_v63  ;;  %v21713_v63 = vld [vmem:[%s30204_s3 + $0x630] ss:$52 sps:$4 sm:$0xff]  }
 0x549   :  { %14842 = vmatpush1.bf16.msra.mxu1 %v21695_v46  ;;  %14878 = vmatprep.subr.bf16.mxu0 %v21706_v51  ;;  %v21724_v46 = vld [vmem:[%s30204_s3 + $0x76c] ss:$52 sps:$4 sm:$0xff]  }
 0x54a   :  { %14843 = vmatprep.subr.bf16.mxu1 %v21703_v36  ;;  %v21721_v51 = vld [vmem:[%s30204_s3 + $0x5cc] ss:$52 sps:$4 sm:$0xff]   ;;  %v21722_v36 = vld [vmem:[%s30204_s3 + $0x768] ss:$52 sps:$4 sm:$0xff]  }
 0x54c   :  { %14879 = vmatpush1.bf16.msra.mxu0 %v21704_v15  ;;  %v21719_v15 = vld [vmem:[%s30204_s3 + $0x5c8] ss:$52 sps:$4 sm:$0xff]  }
 0x54d   :  { %14844 = vmatpush1.bf16.msra.mxu1 %v21701_v53  ;;  %14880 = vmatprep.subr.bf16.mxu0 %v21712_v62  ;;  %v21730_v53 = vld [vmem:[%s30204_s3 + $0x704] ss:$52 sps:$4 sm:$0xff]  }
 0x54e   :  { %14845 = vmatprep.subr.bf16.mxu1 %v21709_v10  ;;  %v21727_v62 = vld [vmem:[%s30204_s3 + $0x564] ss:$52 sps:$4 sm:$0xff]   ;;  %v21728_v10 = vld [vmem:[%s30204_s3 + $0x700] ss:$52 sps:$4 sm:$0xff]  }
 0x550   :  { %14881 = vmatpush1.bf16.msra.mxu0 %v21710_v44  ;;  %v21725_v44 = vld [vmem:[%s30204_s3 + $0x560] ss:$52 sps:$4 sm:$0xff]  }
 0x551   :  { %14846 = vmatpush1.bf16.msra.mxu1 %v21707_v33  ;;  %14882 = vmatprep.subr.bf16.mxu0 %v21718_v7  ;;  %v21736_v33 = vld [vmem:[%s30204_s3 + $0x69c] ss:$52 sps:$4 sm:$0xff]  }
 0x552   :  { %14847 = vmatprep.subr.bf16.mxu1 %v21715_v38  ;;  %v21733_v7 = vld [vmem:[%s30204_s3 + $0x4fc] ss:$52 sps:$4 sm:$0xff]   ;;  %v21734_v38 = vld [vmem:[%s30204_s3 + $0x698] ss:$52 sps:$4 sm:$0xff]  }
 0x554   :  { %14883 = vmatpush1.bf16.msra.mxu0 %v21716_v42  ;;  %v21731_v42 = vld [vmem:[%s30204_s3 + $0x4f8] ss:$52 sps:$4 sm:$0xff]  }
 0x555   :  { %14848 = vmatpush2.bf16.msra.mxu1 %v21713_v63  ;;  %14884 = vmatprep.subr.bf16.mxu0 %v21724_v46  ;;  %v21742_v63 = vld [vmem:[%s30204_s3 + $0xcb4] ss:$52 sps:$4 sm:$0xff]  }
 0x556   :  { %14849 = vmatprep.subr.bf16.mxu1 %v21721_v51  ;;  %v21739_v46 = vld [vmem:[%s30204_s3 + $0x494] ss:$52 sps:$4 sm:$0xff]   ;;  %v21740_v51 = vld [vmem:[%s30204_s3 + $0xcb0] ss:$52 sps:$4 sm:$0xff]  }
 0x558   :  { %14885 = vmatpush1.bf16.msra.mxu0 %v21722_v36  ;;  %v21737_v36 = vld [vmem:[%s30204_s3 + $0x490] ss:$52 sps:$4 sm:$0xff]  }
 0x559   :  { %14850 = vmatpush2.bf16.msra.mxu1 %v21719_v15  ;;  %14886 = vmatprep.subr.bf16.mxu0 %v21730_v53  ;;  %v21748_v15 = vld [vmem:[%s30204_s3 + $0xc4c] ss:$52 sps:$4 sm:$0xff]  }
 0x55a   :  { %14851 = vmatprep.subr.bf16.mxu1 %v21727_v62  ;;  %v21745_v53 = vld [vmem:[%s30204_s3 + $0x42c] ss:$52 sps:$4 sm:$0xff]   ;;  %v21746_v62 = vld [vmem:[%s30204_s3 + $0xc48] ss:$52 sps:$4 sm:$0xff]  }
 0x55c   :  { %14887 = vmatpush1.bf16.msra.mxu0 %v21728_v10  ;;  %v21743_v10 = vld [vmem:[%s30204_s3 + $0x428] ss:$52 sps:$4 sm:$0xff]  }
 0x55d   :  { %14852 = vmatpush2.bf16.msra.mxu1 %v21725_v44  ;;  %14888 = vmatprep.subr.bf16.mxu0 %v21736_v33  ;;  %v21754_v44 = vld [vmem:[%s30204_s3 + $0xbe4] ss:$52 sps:$4 sm:$0xff]  }
 0x55e   :  { %14853 = vmatprep.subr.bf16.mxu1 %v21733_v7  ;;  %v21751_v33 = vld [vmem:[%s30204_s3 + $0x3c4] ss:$52 sps:$4 sm:$0xff]   ;;  %v21752_v7 = vld [vmem:[%s30204_s3 + $0xbe0] ss:$52 sps:$4 sm:$0xff]  }
 0x560   :  { %14889 = vmatpush1.bf16.msra.mxu0 %v21734_v38  ;;  %v21749_v38 = vld [vmem:[%s30204_s3 + $0x3c0] ss:$52 sps:$4 sm:$0xff]  }
 0x561   :  { %14854 = vmatpush2.bf16.msra.mxu1 %v21731_v42  ;;  %14890 = vmatprep.subr.bf16.mxu0 %v21742_v63  ;;  %v21760_v42 = vld [vmem:[%s30204_s3 + $0xb7c] ss:$52 sps:$4 sm:$0xff]  }
 0x562   :  { %14855 = vmatprep.subr.bf16.mxu1 %v21739_v46  ;;  %v21757_v63 = vld [vmem:[%s30204_s3 + $0x35c] ss:$52 sps:$4 sm:$0xff]   ;;  %v21758_v46 = vld [vmem:[%s30204_s3 + $0xb78] ss:$52 sps:$4 sm:$0xff]  }
 0x564   :  { %14891 = vmatpush2.bf16.msra.mxu0 %v21740_v51  ;;  %v21755_v51 = vld [vmem:[%s30204_s3 + $0x358] ss:$52 sps:$4 sm:$0xff]  }
 0x565   :  { %14856 = vmatpush2.bf16.msra.mxu1 %v21737_v36  ;;  %14892 = vmatprep.subr.bf16.mxu0 %v21748_v15  ;;  %v21763_v36 = vld [vmem:[%s30204_s3 + $0xb14] ss:$52 sps:$4 sm:$0xff]  }
 0x566   :  { %14857 = vmatprep.subr.bf16.mxu1 %v21745_v53  ;;  %v21766_v15 = vld [vmem:[%s30204_s3 + $0xff4] ss:$52 sps:$4 sm:$0xff]   ;;  %v22803_v53 = vld [vmem:[%s30205_s4] sm:$0xff] }
 0x568   :  { %14893 = vmatpush2.bf16.msra.mxu0 %v21746_v62  ;;  %v7278_v62 = vrot.slane %v22803_v53, %v24467_v60 }
 0x569   :  { %14858 = vmatpush2.bf16.msra.mxu1 %v21743_v10  ;;  %14894 = vmatprep.subr.bf16.mxu0 %v21754_v44  ;;  %v21761_v10 = vld [vmem:[%s30204_s3 + $0xb10] ss:$52 sps:$4 sm:$0xff]   ;;  %v27595_v44 = vpop.f32.mrf.mxu0 }
 0x56a   :  { %14859 = vmatprep.subr.bf16.mxu1 %v21751_v33  ;;  %v21764_v33 = vld [vmem:[%s30204_s3 + $0xff0] ss:$52 sps:$4 sm:$0xff]  }
 0x56c   :  { %14895 = vmatpush2.bf16.msra.mxu0 %v21752_v7  ;;  %v27600_v7 = vpop.f32.mrf.mxu1 }
 0x56d   :  { %14860 = vmatpush2.bf16.msra.mxu1 %v21749_v38  ;;  %14896 = vmatprep.subr.bf16.mxu0 %v21760_v42  ;;  %v21769_v38 = vld [vmem:[%s30204_s3 + $0xaac] ss:$52 sps:$4 sm:$0xff]  }
 0x56e   :  { %14861 = vmatprep.subr.bf16.mxu1 %v21757_v63  ;;  %v21772_v42 = vld [vmem:[%s30204_s3 + $0xf8c] ss:$52 sps:$4 sm:$0xff]  }
 0x570   :  { %14897 = vmatpush2.bf16.msra.mxu0 %v21758_v46 }
 0x571   :  { %14862 = vmatpush2.bf16.msra.mxu1 %v21755_v51  ;;  %14898 = vmatprep.subr.bf16.mxu0 %v21763_v36  ;;  %v21767_v51 = vld [vmem:[%s30204_s3 + $0xaa8] ss:$52 sps:$4 sm:$0xff]  }
 0x572   :  { %14917 = vmatprep.subr.bf16.mxu1 %v21766_v15  ;;  %v21770_v15 = vld [vmem:[%s30204_s3 + $0xf88] ss:$52 sps:$4 sm:$0xff]  }
 0x573   :  { %v14564_v63 = vpop.f32.mrf.mxu0 }
 0x574   :  { %v14565_v46 = vadd.f32 %v14564_v63, %v7278_v62  ;;  %v14607_v53 = vpop.f32.mrf.mxu1  ;;  %14864 = vmatmul.mubr.bf16.vlgmr.msra.gmra.mxu1 %v23969_v13  ;;  %14899 = vmatpush2.bf16.msra.mxu0 %v21761_v10  ;;  %v21775_v63 = vld [vmem:[%s30204_s3 + $0xa44] ss:$52 sps:$4 sm:$0xff]  }
 0x575   :  { %14918 = vmatpush1.bf16.msra.mxu1 %v21764_v33  ;;  %14949 = vmatprep.mubr.bf16.mxu1 %v25636_v24  ;;  %v27613_v36 = vpop.f32.mrf.mxu0  ;;  %v21778_v33 = vld [vmem:[%s30204_s3 + $0xf24] ss:$52 sps:$4 sm:$0xff]  }
 0x576   :  { %v27621_v61 = vadd.f32 %v14607_v53, %v14565_v46  ;;  %v27623_v10 = vpop.f32.mrf.mxu1  ;;  %14900 = vmatprep.subr.bf16.mxu0 %v21769_v38  ;;  %14919 = vmatprep.subr.bf16.mxu1 %v21772_v42  ;;  %v21776_v46 = vld [vmem:[%s30204_s3 + $0xf20] ss:$52 sps:$4 sm:$0xff]   ;;  %v21781_v38 = vld [vmem:[%s30204_s3 + $0x9dc] ss:$52 sps:$4 sm:$0xff]   ;;  %v21782_v53 = vld [vmem:[%s30204_s3 + $0xeb8] ss:$52 sps:$4 sm:$0xff]  }
 0x577   :  { %v14568_v47 = vpop.f32.mrf.mxu0 }
 0x578   :  { %v14569_v18 = vadd.f32 %v14568_v47, %v7278_v62  ;;  %14901 = vmatpush2.bf16.msra.mxu0 %v21767_v51  ;;  %v14611_v60 = vpop.f32.mrf.mxu1  ;;  %v21784_v47 = vld [vmem:[%s30204_s3 + $0xebc] ss:$52 sps:$4 sm:$0xff]   ;;  %v21779_v62 = vld [vmem:[%s30204_s3 + $0x9d8] ss:$52 sps:$4 sm:$0xff]  }
 0x579   :  { %14920 = vmatpush1.bf16.msra.mxu1 %v21770_v15  ;;  %14902 = vmatprep.subr.bf16.mxu0 %v21775_v63  ;;  %v21785_v51 = vld [vmem:[%s30204_s3 + $0xe50] ss:$52 sps:$4 sm:$0xff]   ;;  %v21796_v15 = vld [vmem:[%s30204_s3 + $0x160c] ss:$52 sps:$4 sm:$0xff]  }
 0x57a   :  { %v27637_v42 = vadd.f32 %v14611_v60, %v14569_v18  ;;  %14921 = vmatprep.subr.bf16.mxu1 %v21778_v33  ;;  %v21790_v60 = vld [vmem:[%s30204_s3 + $0x1674] ss:$52 sps:$4 sm:$0xff]   ;;  %v21793_v63 = vld [vmem:[%s30204_s3 + $0xdec] ss:$52 sps:$4 sm:$0xff]  }
 0x57b   :  { %v21787_v18 = vld [vmem:[%s30204_s3 + $0xe54] ss:$52 sps:$4 sm:$0xff]  }
 0x57c   :  { %14903 = vmatpush2.bf16.msra.mxu0 %v21773_v14  ;;  %v21788_v14 = vld [vmem:[%s30204_s3 + $0x1670] ss:$52 sps:$4 sm:$0xff]   ;;  %v21794_v33 = vld [vmem:[%s30204_s3 + $0x1608] ss:$52 sps:$4 sm:$0xff]  }
 0x57d   :  { %14922 = vmatpush1.bf16.msra.mxu1 %v21776_v46  ;;  %14904 = vmatprep.subr.bf16.mxu0 %v21781_v38  ;;  %v21791_v46 = vld [vmem:[%s30204_s3 + $0xde8] ss:$52 sps:$4 sm:$0xff]   ;;  %v21802_v38 = vld [vmem:[%s30204_s3 + $0x15a4] ss:$52 sps:$4 sm:$0xff]  }
 0x57e   :  { %14923 = vmatprep.subr.bf16.mxu1 %v21784_v47  ;;  %v21799_v47 = vld [vmem:[%s30204_s3 + $0xd84] ss:$52 sps:$4 sm:$0xff]  }
 0x580   :  { %14905 = vmatpush2.bf16.msra.mxu0 %v21779_v62  ;;  %v21800_v62 = vld [vmem:[%s30204_s3 + $0x15a0] ss:$52 sps:$4 sm:$0xff]  }
 0x581   :  { %14924 = vmatpush1.bf16.msra.mxu1 %v21782_v53  ;;  %14960 = vmatprep.subr.bf16.mxu0 %v21790_v60  ;;  %v21797_v53 = vld [vmem:[%s30204_s3 + $0xd80] ss:$52 sps:$4 sm:$0xff]   ;;  %v21808_v60 = vld [vmem:[%s30204_s3 + $0x153c] ss:$52 sps:$4 sm:$0xff]  }
 0x582   :  { %14925 = vmatprep.subr.bf16.mxu1 %v21787_v18  ;;  %v21805_v18 = vld [vmem:[%s30204_s3 + $0xd1c] ss:$52 sps:$4 sm:$0xff]  }
 0x583   :  { %14907 = vmatmul.mubr.bf16.vlgmr.msra.gmra.mxu0 %v24312_v4 }
 0x584   :  { %14961 = vmatpush1.bf16.msra.mxu0 %v21788_v14  ;;  %14992 = vmatprep.mubr.bf16.mxu0 %v25645_v37  ;;  %v21806_v14 = vld [vmem:[%s30204_s3 + $0x1538] ss:$52 sps:$4 sm:$0xff]  }
 0x585   :  { %14926 = vmatpush1.bf16.msra.mxu1 %v21785_v51  ;;  %14962 = vmatprep.subr.bf16.mxu0 %v21796_v15  ;;  %v21803_v51 = vld [vmem:[%s30204_s3 + $0xd18] ss:$52 sps:$4 sm:$0xff]   ;;  %v21814_v15 = vld [vmem:[%s30204_s3 + $0x14d4] ss:$52 sps:$4 sm:$0xff]  }
 0x586   :  { %14927 = vmatprep.subr.bf16.mxu1 %v21793_v63  ;;  %v21811_v63 = vld [vmem:[%s30204_s3 + $0x1334] ss:$52 sps:$4 sm:$0xff]  }
 0x588   :  { %14963 = vmatpush1.bf16.msra.mxu0 %v21794_v33  ;;  %v21812_v33 = vld [vmem:[%s30204_s3 + $0x14d0] ss:$52 sps:$4 sm:$0xff]  }
 0x589   :  { %14928 = vmatpush1.bf16.msra.mxu1 %v21791_v46  ;;  %14964 = vmatprep.subr.bf16.mxu0 %v21802_v38  ;;  %v21809_v46 = vld [vmem:[%s30204_s3 + $0x1330] ss:$52 sps:$4 sm:$0xff]   ;;  %v21820_v38 = vld [vmem:[%s30204_s3 + $0x146c] ss:$52 sps:$4 sm:$0xff]  }
 0x58a   :  { %14929 = vmatprep.subr.bf16.mxu1 %v21799_v47  ;;  %v21817_v47 = vld [vmem:[%s30204_s3 + $0x12cc] ss:$52 sps:$4 sm:$0xff]  }
 0x58c   :  { %14965 = vmatpush1.bf16.msra.mxu0 %v21800_v62  ;;  %v21818_v62 = vld [vmem:[%s30204_s3 + $0x1468] ss:$52 sps:$4 sm:$0xff]  }
 0x58d   :  { %14930 = vmatpush1.bf16.msra.mxu1 %v21797_v53  ;;  %14966 = vmatprep.subr.bf16.mxu0 %v21808_v60  ;;  %v21815_v53 = vld [vmem:[%s30204_s3 + $0x12c8] ss:$52 sps:$4 sm:$0xff]   ;;  %v21826_v60 = vld [vmem:[%s30204_s3 + $0x1404] ss:$52 sps:$4 sm:$0xff]  }
 0x58e   :  { %14931 = vmatprep.subr.bf16.mxu1 %v21805_v18  ;;  %v21823_v18 = vld [vmem:[%s30204_s3 + $0x1264] ss:$52 sps:$4 sm:$0xff]  }
 0x590   :  { %14967 = vmatpush1.bf16.msra.mxu0 %v21806_v14  ;;  %v21824_v14 = vld [vmem:[%s30204_s3 + $0x1400] ss:$52 sps:$4 sm:$0xff]  }
 0x591   :  { %14932 = vmatpush1.bf16.msra.mxu1 %v21803_v51  ;;  %14968 = vmatprep.subr.bf16.mxu0 %v21814_v15  ;;  %v21821_v51 = vld [vmem:[%s30204_s3 + $0x1260] ss:$52 sps:$4 sm:$0xff]   ;;  %v21832_v15 = vld [vmem:[%s30204_s3 + $0x139c] ss:$52 sps:$4 sm:$0xff]  }
 0x592   :  { %14933 = vmatprep.subr.bf16.mxu1 %v21811_v63  ;;  %v21829_v63 = vld [vmem:[%s30204_s3 + $0x11fc] ss:$52 sps:$4 sm:$0xff]  }
 0x594   :  { %14969 = vmatpush1.bf16.msra.mxu0 %v21812_v33  ;;  %v21830_v33 = vld [vmem:[%s30204_s3 + $0x1398] ss:$52 sps:$4 sm:$0xff]  }
 0x595   :  { %14934 = vmatpush2.bf16.msra.mxu1 %v21809_v46  ;;  %14970 = vmatprep.subr.bf16.mxu0 %v21820_v38  ;;  %v21827_v46 = vld [vmem:[%s30204_s3 + $0x11f8] ss:$52 sps:$4 sm:$0xff]   ;;  %v21838_v38 = vld [vmem:[%s30204_s3 + $0x19b4] ss:$52 sps:$4 sm:$0xff]  }
 0x596   :  { %14935 = vmatprep.subr.bf16.mxu1 %v21817_v47  ;;  %v21835_v47 = vld [vmem:[%s30204_s3 + $0x1194] ss:$52 sps:$4 sm:$0xff]  }
 0x598   :  { %14971 = vmatpush1.bf16.msra.mxu0 %v21818_v62  ;;  %v21836_v62 = vld [vmem:[%s30204_s3 + $0x19b0] ss:$52 sps:$4 sm:$0xff]  }
 0x599   :  { %14936 = vmatpush2.bf16.msra.mxu1 %v21815_v53  ;;  %14972 = vmatprep.subr.bf16.mxu0 %v21826_v60  ;;  %v21833_v53 = vld [vmem:[%s30204_s3 + $0x1190] ss:$52 sps:$4 sm:$0xff]   ;;  %v21844_v60 = vld [vmem:[%s30204_s3 + $0x194c] ss:$52 sps:$4 sm:$0xff]  }
 0x59a   :  { %14937 = vmatprep.subr.bf16.mxu1 %v21823_v18  ;;  %v21841_v18 = vld [vmem:[%s30204_s3 + $0x112c] ss:$52 sps:$4 sm:$0xff]  }
 0x59c   :  { %14973 = vmatpush1.bf16.msra.mxu0 %v21824_v14  ;;  %v21842_v14 = vld [vmem:[%s30204_s3 + $0x1948] ss:$52 sps:$4 sm:$0xff]  }
 0x59d   :  { %14938 = vmatpush2.bf16.msra.mxu1 %v21821_v51  ;;  %14974 = vmatprep.subr.bf16.mxu0 %v21832_v15  ;;  %v21839_v51 = vld [vmem:[%s30204_s3 + $0x1128] ss:$52 sps:$4 sm:$0xff]   ;;  %v21850_v15 = vld [vmem:[%s30204_s3 + $0x18e4] ss:$52 sps:$4 sm:$0xff]  }
 0x59e   :  { %14939 = vmatprep.subr.bf16.mxu1 %v21829_v63  ;;  %v21847_v63 = vld [vmem:[%s30204_s3 + $0x10c4] ss:$52 sps:$4 sm:$0xff]  }
 0x5a0   :  { %14975 = vmatpush1.bf16.msra.mxu0 %v21830_v33  ;;  %v21848_v33 = vld [vmem:[%s30204_s3 + $0x18e0] ss:$52 sps:$4 sm:$0xff]  }
 0x5a1   :  { %14940 = vmatpush2.bf16.msra.mxu1 %v21827_v46  ;;  %14976 = vmatprep.subr.bf16.mxu0 %v21838_v38  ;;  %v21845_v46 = vld [vmem:[%s30204_s3 + $0x10c0] ss:$52 sps:$4 sm:$0xff]   ;;  %v21856_v38 = vld [vmem:[%s30204_s3 + $0x187c] ss:$52 sps:$4 sm:$0xff]  }
 0x5a2   :  { %14941 = vmatprep.subr.bf16.mxu1 %v21835_v47  ;;  %v21853_v47 = vld [vmem:[%s30204_s3 + $0x105c] ss:$52 sps:$4 sm:$0xff]  }
 0x5a4   :  { %14977 = vmatpush2.bf16.msra.mxu0 %v21836_v62  ;;  %v21854_v62 = vld [vmem:[%s30204_s3 + $0x1878] ss:$52 sps:$4 sm:$0xff]  }
 0x5a5   :  { %14942 = vmatpush2.bf16.msra.mxu1 %v21833_v53  ;;  %14978 = vmatprep.subr.bf16.mxu0 %v21844_v60  ;;  %v21851_v53 = vld [vmem:[%s30204_s3 + $0x1058] ss:$52 sps:$4 sm:$0xff]   ;;  %v21859_v60 = vld [vmem:[%s30204_s3 + $0x1814] ss:$52 sps:$4 sm:$0xff]  }
 0x5a6   :  { %14943 = vmatprep.subr.bf16.mxu1 %v21841_v18  ;;  %v21862_v18 = vld [vmem:[%s30204_s3 + $0x1cf4] ss:$52 sps:$4 sm:$0xff]  }
 0x5a8   :  { %14979 = vmatpush2.bf16.msra.mxu0 %v21842_v14  ;;  %v21857_v14 = vld [vmem:[%s30204_s3 + $0x1810] ss:$52 sps:$4 sm:$0xff]  }
 0x5a9   :  { %14944 = vmatpush2.bf16.msra.mxu1 %v21839_v51  ;;  %14980 = vmatprep.subr.bf16.mxu0 %v21850_v15  ;;  %v27803_v51 = vpop.f32.mrf.mxu0  ;;  %v21860_v15 = vld [vmem:[%s30204_s3 + $0x1cf0] ss:$52 sps:$4 sm:$0xff]  }
 0x5aa   :  { %14945 = vmatprep.subr.bf16.mxu1 %v21847_v63  ;;  %v21865_v63 = vld [vmem:[%s30204_s3 + $0x17ac] ss:$52 sps:$4 sm:$0xff]  }
 0x5ac   :  { %14981 = vmatpush2.bf16.msra.mxu0 %v21848_v33  ;;  %v21868_v33 = vld [vmem:[%s30204_s3 + $0x1c8c] ss:$52 sps:$4 sm:$0xff]  }
 0x5ad   :  { %14946 = vmatpush2.bf16.msra.mxu1 %v21845_v46  ;;  %14982 = vmatprep.subr.bf16.mxu0 %v21856_v38  ;;  %v27814_v46 = vpop.f32.mrf.mxu1 }
 0x5ae   :  { %14947 = vmatprep.subr.bf16.mxu1 %v21853_v47 }
 0x5b0   :  { %14983 = vmatpush2.bf16.msra.mxu0 %v21854_v62  ;;  %v21863_v62 = vld [vmem:[%s30204_s3 + $0x17a8] ss:$52 sps:$4 sm:$0xff]  }
 0x5b1   :  { %14948 = vmatpush2.bf16.msra.mxu1 %v21851_v53  ;;  %14984 = vmatprep.subr.bf16.mxu0 %v21859_v60 }
 0x5b2   :  { %15003 = vmatprep.subr.bf16.mxu1 %v21862_v18  ;;  %v21866_v18 = vld [vmem:[%s30204_s3 + $0x1c88] ss:$52 sps:$4 sm:$0xff]  }
 0x5b3   :  { %v14650_v38 = vpop.f32.mrf.mxu0 }
 0x5b4   :  { %v14651_v47 = vadd.f32 %v14650_v38, %v27621_v61  ;;  %14950 = vmatmul.mubr.bf16.vlgmr.msra.gmra.mxu1 %v24755_v59  ;;  %14985 = vmatpush2.bf16.msra.mxu0 %v21857_v14  ;;  %v14693_v53 = vpop.f32.mrf.mxu1  ;;  %v21871_v61 = vld [vmem:[%s30204_s3 + $0x1744] ss:$52 sps:$4 sm:$0xff]  }
 0x5b5   :  { %15004 = vmatpush1.bf16.msra.mxu1 %v21860_v15  ;;  %15035 = vmatprep.mubr.bf16.mxu1 %v25859_v12  ;;  %v27822_v60 = vpop.f32.mrf.mxu0  ;;  %v21874_v14 = vld [vmem:[%s30204_s3 + $0x1c24] ss:$52 sps:$4 sm:$0xff]  }
 0x5b6   :  { %30224 = vst [vmem:[#allocation7_spill] sm:$0xff] %v27822_v60  ;;  %v27830_v38 = vadd.f32 %v14693_v53, %v14651_v47  ;;  %14986 = vmatprep.subr.bf16.mxu0 %v21865_v63  ;;  %15005 = vmatprep.subr.bf16.mxu1 %v21868_v33  ;;  %v21872_v63 = vld [vmem:[%s30204_s3 + $0x1c20] ss:$52 sps:$4 sm:$0xff]   ;;  %v21877_v33 = vld [vmem:[%s30204_s3 + $0x16dc] ss:$52 sps:$4 sm:$0xff]  }
 0x5b7   :  { %v14654_v15 = vpop.f32.mrf.mxu0  ;;  %v21875_v47 = vld [vmem:[%s30204_s3 + $0x16d8] ss:$52 sps:$4 sm:$0xff]   ;;  %v21886_v53 = vld [vmem:[%s30204_s3 + $0x2374] ss:$52 sps:$4 sm:$0xff]  }
 0x5b8   :  { %v27836_v3 = vadd.f32 %v14654_v15, %v27637_v42  ;;  %14987 = vmatpush2.bf16.msra.mxu0 %v21863_v62  ;;  %v21880_v42 = vld [vmem:[%s30204_s3 + $0x1bbc] ss:$52 sps:$4 sm:$0xff]   ;;  %v21878_v62 = vld [vmem:[%s30204_s3 + $0x1bb8] ss:$52 sps:$4 sm:$0xff]  }
 0x5b9   :  { %15006 = vmatpush1.bf16.msra.mxu1 %v21866_v18  ;;  %14988 = vmatprep.subr.bf16.mxu0 %v21871_v61  ;;  %v21883_v18 = vld [vmem:[%s30204_s3 + $0x1b54] ss:$52 sps:$4 sm:$0xff]   ;;  %v21881_v61 = vld [vmem:[%s30204_s3 + $0x1b50] ss:$52 sps:$4 sm:$0xff]   ;;  %v21889_v15 = vld [vmem:[%s30204_s3 + $0x1aec] ss:$52 sps:$4 sm:$0xff]  }
 0x5ba   :  { %15007 = vmatprep.subr.bf16.mxu1 %v21874_v14  ;;  %v21892_v14 = vld [vmem:[%s30204_s3 + $0x230c] ss:$52 sps:$4 sm:$0xff]  }
 0x5bc   :  { %14989 = vmatpush2.bf16.msra.mxu0 %v21869_v22  ;;  %v21884_v22 = vld [vmem:[%s30204_s3 + $0x2370] ss:$52 sps:$4 sm:$0xff]  }
 0x5bd   :  { %15008 = vmatpush1.bf16.msra.mxu1 %v21872_v63  ;;  %14990 = vmatprep.subr.bf16.mxu0 %v21877_v33  ;;  %v21890_v63 = vld [vmem:[%s30204_s3 + $0x2308] ss:$52 sps:$4 sm:$0xff]  }
 0x5be   :  { %15009 = vmatprep.subr.bf16.mxu1 %v21880_v42  ;;  %v21887_v33 = vld [vmem:[%s30204_s3 + $0x1ae8] ss:$52 sps:$4 sm:$0xff]   ;;  %v21898_v42 = vld [vmem:[%s30204_s3 + $0x22a4] ss:$52 sps:$4 sm:$0xff]  }
 0x5c0   :  { %14991 = vmatpush2.bf16.msra.mxu0 %v21875_v47  ;;  %v21895_v47 = vld [vmem:[%s30204_s3 + $0x1a84] ss:$52 sps:$4 sm:$0xff]  }
 0x5c1   :  { %15010 = vmatpush1.bf16.msra.mxu1 %v21878_v62  ;;  %15046 = vmatprep.subr.bf16.mxu0 %v21886_v53  ;;  %v21896_v62 = vld [vmem:[%s30204_s3 + $0x22a0] ss:$52 sps:$4 sm:$0xff]  }
 0x5c2   :  { %15011 = vmatprep.subr.bf16.mxu1 %v21883_v18  ;;  %v21893_v53 = vld [vmem:[%s30204_s3 + $0x1a80] ss:$52 sps:$4 sm:$0xff]   ;;  %v21904_v18 = vld [vmem:[%s30204_s3 + $0x223c] ss:$52 sps:$4 sm:$0xff]  }
 0x5c3   :  { %14993 = vmatmul.mubr.bf16.vlgmr.msra.gmra.mxu0 %v25097_v45 }
 0x5c4   :  { %15047 = vmatpush1.bf16.msra.mxu0 %v21884_v22  ;;  %15078 = vmatprep.mubr.bf16.mxu0 %v25917_v8  ;;  %v21901_v22 = vld [vmem:[%s30204_s3 + $0x1a1c] ss:$52 sps:$4 sm:$0xff]  }
 0x5c5   :  { %15012 = vmatpush1.bf16.msra.mxu1 %v21881_v61  ;;  %15048 = vmatprep.subr.bf16.mxu0 %v21892_v14  ;;  %v21902_v61 = vld [vmem:[%s30204_s3 + $0x2238] ss:$52 sps:$4 sm:$0xff]  }
 0x5c6   :  { %15013 = vmatprep.subr.bf16.mxu1 %v21889_v15  ;;  %v21899_v14 = vld [vmem:[%s30204_s3 + $0x1a18] ss:$52 sps:$4 sm:$0xff]   ;;  %v21910_v15 = vld [vmem:[%s30204_s3 + $0x21d4] ss:$52 sps:$4 sm:$0xff]  }
 0x5c8   :  { %15049 = vmatpush1.bf16.msra.mxu0 %v21890_v63  ;;  %v21907_v63 = vld [vmem:[%s30204_s3 + $0x2034] ss:$52 sps:$4 sm:$0xff]  }
 0x5c9   :  { %15014 = vmatpush1.bf16.msra.mxu1 %v21887_v33  ;;  %15050 = vmatprep.subr.bf16.mxu0 %v21898_v42  ;;  %v21908_v33 = vld [vmem:[%s30204_s3 + $0x21d0] ss:$52 sps:$4 sm:$0xff]  }
 0x5ca   :  { %15015 = vmatprep.subr.bf16.mxu1 %v21895_v47  ;;  %v21905_v42 = vld [vmem:[%s30204_s3 + $0x2030] ss:$52 sps:$4 sm:$0xff]   ;;  %v21916_v47 = vld [vmem:[%s30204_s3 + $0x216c] ss:$52 sps:$4 sm:$0xff]  }
 0x5cc   :  { %15051 = vmatpush1.bf16.msra.mxu0 %v21896_v62  ;;  %v21913_v62 = vld [vmem:[%s30204_s3 + $0x1fcc] ss:$52 sps:$4 sm:$0xff]  }
 0x5cd   :  { %15016 = vmatpush1.bf16.msra.mxu1 %v21893_v53  ;;  %15052 = vmatprep.subr.bf16.mxu0 %v21904_v18  ;;  %v21914_v53 = vld [vmem:[%s30204_s3 + $0x2168] ss:$52 sps:$4 sm:$0xff]  }
 0x5ce   :  { %15017 = vmatprep.subr.bf16.mxu1 %v21901_v22  ;;  %v21911_v18 = vld [vmem:[%s30204_s3 + $0x1fc8] ss:$52 sps:$4 sm:$0xff]   ;;  %v21922_v22 = vld [vmem:[%s30204_s3 + $0x2104] ss:$52 sps:$4 sm:$0xff]  }
 0x5d0   :  { %15053 = vmatpush1.bf16.msra.mxu0 %v21902_v61  ;;  %v21919_v61 = vld [vmem:[%s30204_s3 + $0x1f64] ss:$52 sps:$4 sm:$0xff]  }
 0x5d1   :  { %15018 = vmatpush1.bf16.msra.mxu1 %v21899_v14  ;;  %15054 = vmatprep.subr.bf16.mxu0 %v21910_v15  ;;  %v21920_v14 = vld [vmem:[%s30204_s3 + $0x2100] ss:$52 sps:$4 sm:$0xff]  }
 0x5d2   :  { %15019 = vmatprep.subr.bf16.mxu1 %v21907_v63  ;;  %v21917_v15 = vld [vmem:[%s30204_s3 + $0x1f60] ss:$52 sps:$4 sm:$0xff]   ;;  %v21928_v63 = vld [vmem:[%s30204_s3 + $0x209c] ss:$52 sps:$4 sm:$0xff]  }
 0x5d4   :  { %15055 = vmatpush1.bf16.msra.mxu0 %v21908_v33  ;;  %v21925_v33 = vld [vmem:[%s30204_s3 + $0x1efc] ss:$52 sps:$4 sm:$0xff]  }
 0x5d5   :  { %15020 = vmatpush2.bf16.msra.mxu1 %v21905_v42  ;;  %15056 = vmatprep.subr.bf16.mxu0 %v21916_v47  ;;  %v21926_v42 = vld [vmem:[%s30204_s3 + $0x2098] ss:$52 sps:$4 sm:$0xff]  }
 0x5d6   :  { %15021 = vmatprep.subr.bf16.mxu1 %v21913_v62  ;;  %v21923_v47 = vld [vmem:[%s30204_s3 + $0x1ef8] ss:$52 sps:$4 sm:$0xff]   ;;  %v21934_v62 = vld [vmem:[%s30204_s3 + $0x26b4] ss:$52 sps:$4 sm:$0xff]  }
 0x5d8   :  { %15057 = vmatpush1.bf16.msra.mxu0 %v21914_v53  ;;  %v21931_v53 = vld [vmem:[%s30204_s3 + $0x1e94] ss:$52 sps:$4 sm:$0xff]  }
 0x5d9   :  { %15022 = vmatpush2.bf16.msra.mxu1 %v21911_v18  ;;  %15058 = vmatprep.subr.bf16.mxu0 %v21922_v22  ;;  %v21932_v18 = vld [vmem:[%s30204_s3 + $0x26b0] ss:$52 sps:$4 sm:$0xff]  }
 0x5da   :  { %15023 = vmatprep.subr.bf16.mxu1 %v21919_v61  ;;  %v21929_v22 = vld [vmem:[%s30204_s3 + $0x1e90] ss:$52 sps:$4 sm:$0xff]   ;;  %v21940_v61 = vld [vmem:[%s30204_s3 + $0x264c] ss:$52 sps:$4 sm:$0xff]  }
 0x5dc   :  { %15059 = vmatpush1.bf16.msra.mxu0 %v21920_v14  ;;  %v21937_v14 = vld [vmem:[%s30204_s3 + $0x1e2c] ss:$52 sps:$4 sm:$0xff]  }
 0x5dd   :  { %15024 = vmatpush2.bf16.msra.mxu1 %v21917_v15  ;;  %15060 = vmatprep.subr.bf16.mxu0 %v21928_v63  ;;  %v21938_v15 = vld [vmem:[%s30204_s3 + $0x2648] ss:$52 sps:$4 sm:$0xff]  }
 0x5de   :  { %15025 = vmatprep.subr.bf16.mxu1 %v21925_v33  ;;  %v21935_v63 = vld [vmem:[%s30204_s3 + $0x1e28] ss:$52 sps:$4 sm:$0xff]   ;;  %v21946_v33 = vld [vmem:[%s30204_s3 + $0x25e4] ss:$52 sps:$4 sm:$0xff]  }
 0x5e0   :  { %15061 = vmatpush1.bf16.msra.mxu0 %v21926_v42  ;;  %v21943_v42 = vld [vmem:[%s30204_s3 + $0x1dc4] ss:$52 sps:$4 sm:$0xff]  }
 0x5e1   :  { %15026 = vmatpush2.bf16.msra.mxu1 %v21923_v47  ;;  %15062 = vmatprep.subr.bf16.mxu0 %v21934_v62  ;;  %v21944_v47 = vld [vmem:[%s30204_s3 + $0x25e0] ss:$52 sps:$4 sm:$0xff]  }
 0x5e2   :  { %15027 = vmatprep.subr.bf16.mxu1 %v21931_v53  ;;  %v21941_v62 = vld [vmem:[%s30204_s3 + $0x1dc0] ss:$52 sps:$4 sm:$0xff]   ;;  %v21952_v53 = vld [vmem:[%s30204_s3 + $0x257c] ss:$52 sps:$4 sm:$0xff]  }
 0x5e4   :  { %15063 = vmatpush2.bf16.msra.mxu0 %v21932_v18  ;;  %v21949_v18 = vld [vmem:[%s30204_s3 + $0x1d5c] ss:$52 sps:$4 sm:$0xff]  }
 0x5e5   :  { %15028 = vmatpush2.bf16.msra.mxu1 %v21929_v22  ;;  %15064 = vmatprep.subr.bf16.mxu0 %v21940_v61  ;;  %v21950_v22 = vld [vmem:[%s30204_s3 + $0x2578] ss:$52 sps:$4 sm:$0xff]  }
 0x5e6   :  { %15029 = vmatprep.subr.bf16.mxu1 %v21937_v14  ;;  %v21947_v61 = vld [vmem:[%s30204_s3 + $0x1d58] ss:$52 sps:$4 sm:$0xff]   ;;  %v21955_v14 = vld [vmem:[%s30204_s3 + $0x2514] ss:$52 sps:$4 sm:$0xff]  }
 0x5e8   :  { %15065 = vmatpush2.bf16.msra.mxu0 %v21938_v15  ;;  %v21958_v15 = vld [vmem:[%s30204_s3 + $0x2854] ss:$52 sps:$4 sm:$0xff]  }
 0x5e9   :  { %15030 = vmatpush2.bf16.msra.mxu1 %v21935_v63  ;;  %15066 = vmatprep.subr.bf16.mxu0 %v21946_v33  ;;  %v21953_v63 = vld [vmem:[%s30204_s3 + $0x2510] ss:$52 sps:$4 sm:$0xff]   ;;  %v28011_v33 = vpop.f32.mrf.mxu0 }
 0x5ea   :  { %15031 = vmatprep.subr.bf16.mxu1 %v21943_v42  ;;  %30225 = vst [vmem:[#allocation8_spill] sm:$0xff] %v28011_v33  ;;  %v21956_v42 = vld [vmem:[%s30204_s3 + $0x2850] ss:$52 sps:$4 sm:$0xff]  }
 0x5ec   :  { %15067 = vmatpush2.bf16.msra.mxu0 %v21944_v47  ;;  %v21961_v47 = vld [vmem:[%s30204_s3 + $0x24ac] ss:$52 sps:$4 sm:$0xff]  }
 0x5ed   :  { %15032 = vmatpush2.bf16.msra.mxu1 %v21941_v62  ;;  %15068 = vmatprep.subr.bf16.mxu0 %v21952_v53  ;;  %v21964_v62 = vld [vmem:[%s30204_s3 + $0x27ec] ss:$52 sps:$4 sm:$0xff]   ;;  %v28022_v53 = vpop.f32.mrf.mxu1 }
 0x5ee   :  { %15033 = vmatprep.subr.bf16.mxu1 %v21949_v18  ;;  %30226 = vst [vmem:[#allocation9_spill] sm:$0xff] %v28022_v53  ;;  %v21974_v53 = vld [vmem:[%s30204_s3 + $0x2718] ss:$52 sps:$4 sm:$0xff]  }
 0x5f0   :  { %15069 = vmatpush2.bf16.msra.mxu0 %v21950_v22 }
 0x5f1   :  { %15034 = vmatpush2.bf16.msra.mxu1 %v21947_v61  ;;  %15070 = vmatprep.subr.bf16.mxu0 %v21955_v14  ;;  %v21959_v61 = vld [vmem:[%s30204_s3 + $0x24a8] ss:$52 sps:$4 sm:$0xff]  }
 0x5f2   :  { %15097 = vmatprep.subr.bf16.mxu1 %v21958_v15  ;;  %v21962_v14 = vld [vmem:[%s30204_s3 + $0x27e8] ss:$52 sps:$4 sm:$0xff]   ;;  %v21967_v15 = vld [vmem:[%s30204_s3 + $0x2444] ss:$52 sps:$4 sm:$0xff]  }
 0x5f3   :  { %v14736_v18 = vpop.f32.mrf.mxu0 }
 0x5f4   :  { %v14737_v22 = vadd.f32 %v14736_v18, %v27830_v38  ;;  %15036 = vmatmul.mubr.bf16.vlgmr.msra.gmra.mxu1 %v25548_v1  ;;  %15071 = vmatpush2.bf16.msra.mxu0 %v21953_v63  ;;  %v21970_v38 = vld [vmem:[%s30204_s3 + $0x2784] ss:$52 sps:$4 sm:$0xff]   ;;  %v30227_v63 = vmov 0   ;;  %v14697_v18 = vpop.f32.mrf.mxu1 }
 0x5f5   :  { %15098 = vmatpush1.bf16.msra.mxu1 %v21956_v42  ;;  %15072 = vmatprep.subr.bf16.mxu0 %v21961_v47  ;;  %v21965_v42 = vld [vmem:[%s30204_s3 + $0x2440] ss:$52 sps:$4 sm:$0xff]   ;;  %v28042_v47 = vpop.f32.mrf.mxu0 }
 0x5f6   :  { %15099 = vmatprep.subr.bf16.mxu1 %v21964_v62  ;;  %15121 = vmatprep.mubr.bf16.mxu1 %v30227_v63  ;;  %30228 = vst [vmem:[#allocation10_spill] sm:$0xff] %v28042_v47  ;;  %v21968_v62 = vld [vmem:[%s30204_s3 + $0x2780] ss:$52 sps:$4 sm:$0xff]   ;;  %v28053_v54 = vpop.f32.mrf.mxu1 }
 0x5f7   :  { %30229 = vst [vmem:[#allocation11_spill] sm:$0xff] %v28053_v54  ;;  %v14740_v47 = vpop.f32.mrf.mxu0  ;;  %v14698_v54 = vadd.f32 %v14697_v18, %v27836_v3  ;;  %v21985_v3 = vld [vmem:[%s30204_s3 + $0x294] ss:$52 sps:$4 sm:$0xff]  }
 0x5f8   :  { %15073 = vmatpush2.bf16.msra.mxu0 %v21959_v61  ;;  %v21976_v61 = vld [vmem:[%s30204_s3 + $0x271c] ss:$52 sps:$4 sm:$0xff]  }
 0x5f9   :  { %15100 = vmatpush1.bf16.msra.mxu1 %v21962_v14  ;;  %15074 = vmatprep.subr.bf16.mxu0 %v21967_v15  ;;  %v21971_v14 = vld [vmem:[%s30204_s3 + $0x23d8] ss:$52 sps:$4 sm:$0xff]   ;;  %v14779_v15 = vpop.f32.mrf.mxu1  ;;  %v28073_v60 = vpop.f32.mrf.mxu0  ;;  %v14741_v33 = vadd.f32 %v14740_v47, %v14698_v54  ;;  %v21983_v54 = vld [vmem:[%s30204_s3 + $0x290] ss:$52 sps:$4 sm:$0xff]  }
 0x5fa   :  { %15101 = vmatprep.subr.bf16.mxu1 %v21970_v38  ;;  %v21979_v38 = vld [vmem:[%s30204_s3 + $0x2fc] ss:$52 sps:$4 sm:$0xff]   ;;  %30231 = vst [vmem:[#allocation13_spill] sm:$0xff] %v28073_v60 }
 0x5fb   :  { %v21989_v60 = vld [vmem:[%s30204_s3 + $0x228] ss:$52 sps:$4 sm:$0xff]  }
 0x5fc   :  { %15075 = vmatpush2.bf16.msra.mxu0 %v21965_v42  ;;  %v21982_v42 = vld [vmem:[%s30204_s3 + $0x97c] ss:$52 sps:$4 sm:$0xff]  }
 0x5fd   :  { %15102 = vmatpush1.bf16.msra.mxu1 %v21968_v62  ;;  %15076 = vmatprep.subr.bf16.mxu0 %v21973_v29  ;;  %v21977_v29 = vld [vmem:[%s30204_s3 + $0x2f8] ss:$52 sps:$4 sm:$0xff]   ;;  %v28071_v62 = vpop.f32.mrf.mxu1 }
 0x5fe   :  { %15103 = vmatprep.subr.bf16.mxu1 %v21976_v61  ;;  %30230 = vst [vmem:[#allocation12_spill] sm:$0xff] %v28071_v62  ;;  %v21980_v61 = vld [vmem:[%s30204_s3 + $0x978] ss:$52 sps:$4 sm:$0xff]   ;;  %v14780_v62 = vadd.f32 %v14779_v15, %v14737_v22 }
 0x5ff   :  { %v21991_v22 = vld [vmem:[%s30204_s3 + $0x22c] ss:$52 sps:$4 sm:$0xff]  }
 0x600   :  { %15077 = vmatpush2.bf16.msra.mxu0 %v21971_v14  ;;  %v21988_v14 = vld [vmem:[%s30204_s3 + $0x914] ss:$52 sps:$4 sm:$0xff]  }
 0x601   :  { %15104 = vmatpush1.bf16.msra.mxu1 %v21974_v53  ;;  %15132 = vmatprep.subr.bf16.mxu0 %v21979_v38  ;;  %v14783_v53 = vpop.f32.mrf.mxu1  ;;  %v21986_v38 = vld [vmem:[%s30204_s3 + $0x910] ss:$52 sps:$4 sm:$0xff]  }
 0x602   :  { %15175 = vmatprep.subr.bf16.mxu1 %v21982_v42  ;;  %v14784_v15 = vadd.f32 %v14783_v53, %v14741_v33  ;;  %v21992_v33 = vld [vmem:[%s30204_s3 + $0x8a8] ss:$52 sps:$4 sm:$0xff]   ;;  %v21995_v53 = vld [vmem:[%s30204_s3 + $0x1c0] ss:$52 sps:$4 sm:$0xff]  }
 0x603   :  { %v14822_v18 = vpop.f32.mrf.mxu0  ;;  %15079 = vmatmul.mubr.bf16.vlgmr.msra.gmra.mxu0 %v26079_v32 }
 0x604   :  { %19201 = vmatmul.mubr.msk.bf16.vlgmr.msra.gmra.mxu1 %vm13924_vm1, %v26130_v21  ;;  %15133 = vmatpush1.bf16.msra.mxu0 %v21977_v29  ;;  %v14823_v42 = vadd.f32 %v14822_v18, %v14780_v62  ;;  %v21994_v29 = vld [vmem:[%s30204_s3 + $0x8ac] ss:$52 sps:$4 sm:$0xff]   ;;  %v21997_v62 = vld [vmem:[%s30204_s3 + $0x1c4] ss:$52 sps:$4 sm:$0xff]  }
 0x605   :  { %15164 = vmatprep.mubr.bf16.mxu0 %v25397_v52  ;;  %15176 = vmatpush1.bf16.msra.mxu1 %v21980_v61  ;;  %v28091_v47 = vpop.f32.mrf.mxu0 }
 0x606   :  { %30232 = vst [vmem:[#allocation14_spill] sm:$0xff] %v28091_v47  ;;  %15207 = vmatprep.mubr.bf16.mxu1 %v25399_v0  ;;  %15134 = vmatprep.subr.bf16.mxu0 %v21985_v3  ;;  %v16025_v3 = vmax.f32 %v14823_v42, 0.0  ;;  %v22009_v42 = vld [vmem:[%s30204_s3 + $0xf4] ss:$52 sps:$4 sm:$0xff]  }
 0x607   :  { %v14826_v61 = vpop.f32.mrf.mxu0  ;;  %15177 = vmatprep.subr.bf16.mxu1 %v21988_v14  ;;  %v22000_v14 = vld [vmem:[%s30204_s3 + $0x844] ss:$52 sps:$4 sm:$0xff]  }
 0x608   :  { %v14827_v47 = vadd.f32 %v14826_v61, %v14784_v15  ;;  %15135 = vmatpush1.bf16.msra.mxu0 %v21983_v54  ;;  %v22004_v15 = vld [vmem:[%s30204_s3 + $0x7d8] ss:$52 sps:$4 sm:$0xff]   ;;  %v22007_v61 = vld [vmem:[%s30204_s3 + $0xf0] ss:$52 sps:$4 sm:$0xff]  }
 0x609   :  { %15178 = vmatpush1.bf16.msra.mxu1 %v21986_v38  ;;  %15136 = vmatprep.subr.bf16.mxu0 %v21991_v22  ;;  %v21998_v38 = vld [vmem:[%s30204_s3 + $0x840] ss:$52 sps:$4 sm:$0xff]   ;;  %v22006_v22 = vld [vmem:[%s30204_s3 + $0x7dc] ss:$52 sps:$4 sm:$0xff]  }
 0x60a   :  { %v16038_v18 = vmax.f32 %v14827_v47, 0.0  ;;  %15179 = vmatprep.subr.bf16.mxu1 %v21994_v29  ;;  %v22003_v47 = vld [vmem:[%s30204_s3 + $0x15c] ss:$52 sps:$4 sm:$0xff]   ;;  %v22012_v29 = vld [vmem:[%s30204_s3 + $0x774] ss:$52 sps:$4 sm:$0xff]  }
 0x60c   :  { %v28115_v54 = vpack.c.bf16 %v16038_v18, %v16025_v3  ;;  %15137 = vmatpush1.bf16.msra.mxu0 %v21989_v60  ;;  %v22001_v60 = vld [vmem:[%s30204_s3 + $0x158] ss:$52 sps:$4 sm:$0xff]   ;;  %v22013_v18 = vld [vmem:[%s30204_s3 + $0x88] ss:$52 sps:$4 sm:$0xff]  }
 0x60d   :  { %15180 = vmatpush1.bf16.msra.mxu1 %v21992_v33  ;;  %15138 = vmatprep.subr.bf16.mxu0 %v21997_v62  ;;  %v22010_v33 = vld [vmem:[%s30204_s3 + $0x770] ss:$52 sps:$4 sm:$0xff]   ;;  %v22015_v62 = vld [vmem:[%s30204_s3 + $0x8c] ss:$52 sps:$4 sm:$0xff]  }
 0x60e   :  { %30233 = vst [vmem:[#allocation15_spill] sm:$0xff] %v28115_v54  ;;  %15181 = vmatprep.subr.bf16.mxu1 %v22000_v14  ;;  %v22018_v3 = vld [vmem:[%s30204_s3 + $0x70c] ss:$52 sps:$4 sm:$0xff]   ;;  %v22016_v14 = vld [vmem:[%s30204_s3 + $0x708] ss:$52 sps:$4 sm:$0xff]  }
 0x610   :  { %15139 = vmatpush1.bf16.msra.mxu0 %v21995_v53  ;;  %v22021_v53 = vld [vmem:[%s30204_s3 + $0x24] ss:$52 sps:$4 sm:$0xff]  }
 0x611   :  { %15182 = vmatpush1.bf16.msra.mxu1 %v21998_v38  ;;  %15140 = vmatprep.subr.bf16.mxu0 %v22003_v47  ;;  %v22024_v38 = vld [vmem:[%s30204_s3 + $0x6a4] ss:$52 sps:$4 sm:$0xff]   ;;  %v22019_v47 = vld [vmem:[%s30204_s3 + $0x20] ss:$52 sps:$4 sm:$0xff]  }
 0x612   :  { %15183 = vmatprep.subr.bf16.mxu1 %v22006_v22  ;;  %v22022_v22 = vld [vmem:[%s30204_s3 + $0x6a0] ss:$52 sps:$4 sm:$0xff]  }
 0x614   :  { %15141 = vmatpush1.bf16.msra.mxu0 %v22001_v60  ;;  %v22027_v60 = vld [vmem:[%s30204_s3 + $0x63c] ss:$52 sps:$4 sm:$0xff]  }
 0x615   :  { %15184 = vmatpush1.bf16.msra.mxu1 %v22004_v15  ;;  %15142 = vmatprep.subr.bf16.mxu0 %v22009_v42  ;;  %v22030_v15 = vld [vmem:[%s30204_s3 + $0xcbc] ss:$52 sps:$4 sm:$0xff]   ;;  %v22025_v42 = vld [vmem:[%s30204_s3 + $0x638] ss:$52 sps:$4 sm:$0xff]  }
 0x616   :  { %15185 = vmatprep.subr.bf16.mxu1 %v22012_v29  ;;  %v22028_v29 = vld [vmem:[%s30204_s3 + $0xcb8] ss:$52 sps:$4 sm:$0xff]  }
 0x618   :  { %15143 = vmatpush1.bf16.msra.mxu0 %v22007_v61  ;;  %v22033_v61 = vld [vmem:[%s30204_s3 + $0x5d4] ss:$52 sps:$4 sm:$0xff]  }
 0x619   :  { %15186 = vmatpush1.bf16.msra.mxu1 %v22010_v33  ;;  %15144 = vmatprep.subr.bf16.mxu0 %v22015_v62  ;;  %v22036_v33 = vld [vmem:[%s30204_s3 + $0xc54] ss:$52 sps:$4 sm:$0xff]   ;;  %v22031_v62 = vld [vmem:[%s30204_s3 + $0x5d0] ss:$52 sps:$4 sm:$0xff]  }
 0x61a   :  { %15187 = vmatprep.subr.bf16.mxu1 %v22018_v3  ;;  %v22034_v3 = vld [vmem:[%s30204_s3 + $0xc50] ss:$52 sps:$4 sm:$0xff]  }
 0x61c   :  { %15145 = vmatpush1.bf16.msra.mxu0 %v22013_v18  ;;  %v22039_v18 = vld [vmem:[%s30204_s3 + $0x56c] ss:$52 sps:$4 sm:$0xff]  }
 0x61d   :  { %15188 = vmatpush1.bf16.msra.mxu1 %v22016_v14  ;;  %15146 = vmatprep.subr.bf16.mxu0 %v22021_v53  ;;  %v22042_v14 = vld [vmem:[%s30204_s3 + $0xbec] ss:$52 sps:$4 sm:$0xff]   ;;  %v22037_v53 = vld [vmem:[%s30204_s3 + $0x568] ss:$52 sps:$4 sm:$0xff]  }
 0x61e   :  { %15189 = vmatprep.subr.bf16.mxu1 %v22024_v38  ;;  %v22040_v38 = vld [vmem:[%s30204_s3 + $0xbe8] ss:$52 sps:$4 sm:$0xff]  }
 0x620   :  { %15147 = vmatpush1.bf16.msra.mxu0 %v22019_v47  ;;  %v22045_v47 = vld [vmem:[%s30204_s3 + $0x504] ss:$52 sps:$4 sm:$0xff]  }
 0x621   :  { %15190 = vmatpush1.bf16.msra.mxu1 %v22022_v22  ;;  %15148 = vmatprep.subr.bf16.mxu0 %v22027_v60  ;;  %v22048_v22 = vld [vmem:[%s30204_s3 + $0xb84] ss:$52 sps:$4 sm:$0xff]   ;;  %v22043_v60 = vld [vmem:[%s30204_s3 + $0x500] ss:$52 sps:$4 sm:$0xff]  }
 0x622   :  { %15191 = vmatprep.subr.bf16.mxu1 %v22030_v15  ;;  %v22046_v15 = vld [vmem:[%s30204_s3 + $0xb80] ss:$52 sps:$4 sm:$0xff]  }
 0x624   :  { %15149 = vmatpush2.bf16.msra.mxu0 %v22025_v42  ;;  %v22051_v42 = vld [vmem:[%s30204_s3 + $0x49c] ss:$52 sps:$4 sm:$0xff]  }
 0x625   :  { %15192 = vmatpush2.bf16.msra.mxu1 %v22028_v29  ;;  %15150 = vmatprep.subr.bf16.mxu0 %v22033_v61  ;;  %v22054_v29 = vld [vmem:[%s30204_s3 + $0xb1c] ss:$52 sps:$4 sm:$0xff]   ;;  %v22049_v61 = vld [vmem:[%s30204_s3 + $0x498] ss:$52 sps:$4 sm:$0xff]  }
 0x626   :  { %15193 = vmatprep.subr.bf16.mxu1 %v22036_v33  ;;  %v22052_v33 = vld [vmem:[%s30204_s3 + $0xb18] ss:$52 sps:$4 sm:$0xff]  }
 0x628   :  { %15151 = vmatpush2.bf16.msra.mxu0 %v22031_v62  ;;  %v22057_v62 = vld [vmem:[%s30204_s3 + $0x434] ss:$52 sps:$4 sm:$0xff]  }
 0x629   :  { %15194 = vmatpush2.bf16.msra.mxu1 %v22034_v3  ;;  %15152 = vmatprep.subr.bf16.mxu0 %v22039_v18  ;;  %v22060_v3 = vld [vmem:[%s30204_s3 + $0xab4] ss:$52 sps:$4 sm:$0xff]   ;;  %v22055_v18 = vld [vmem:[%s30204_s3 + $0x430] ss:$52 sps:$4 sm:$0xff]  }
 0x62a   :  { %15195 = vmatprep.subr.bf16.mxu1 %v22042_v14  ;;  %v22058_v14 = vld [vmem:[%s30204_s3 + $0xab0] ss:$52 sps:$4 sm:$0xff]  }
 0x62c   :  { %15153 = vmatpush2.bf16.msra.mxu0 %v22037_v53  ;;  %v22063_v53 = vld [vmem:[%s30204_s3 + $0x3cc] ss:$52 sps:$4 sm:$0xff]  }
 0x62d   :  { %15196 = vmatpush2.bf16.msra.mxu1 %v22040_v38  ;;  %15154 = vmatprep.subr.bf16.mxu0 %v22045_v47  ;;  %v22066_v38 = vld [vmem:[%s30204_s3 + $0xa4c] ss:$52 sps:$4 sm:$0xff]   ;;  %v22061_v47 = vld [vmem:[%s30204_s3 + $0x3c8] ss:$52 sps:$4 sm:$0xff]  }
 0x62e   :  { %15197 = vmatprep.subr.bf16.mxu1 %v22048_v22  ;;  %v22064_v22 = vld [vmem:[%s30204_s3 + $0xa48] ss:$52 sps:$4 sm:$0xff]  }
 0x630   :  { %15155 = vmatpush2.bf16.msra.mxu0 %v22043_v60  ;;  %v22069_v60 = vld [vmem:[%s30204_s3 + $0x364] ss:$52 sps:$4 sm:$0xff]  }
 0x631   :  { %15198 = vmatpush2.bf16.msra.mxu1 %v22046_v15  ;;  %15156 = vmatprep.subr.bf16.mxu0 %v22051_v42  ;;  %v22072_v15 = vld [vmem:[%s30204_s3 + $0x9e4] ss:$52 sps:$4 sm:$0xff]   ;;  %v22067_v42 = vld [vmem:[%s30204_s3 + $0x360] ss:$52 sps:$4 sm:$0xff]  }
 0x632   :  { %15199 = vmatprep.subr.bf16.mxu1 %v22054_v29  ;;  %v22070_v29 = vld [vmem:[%s30204_s3 + $0x9e0] ss:$52 sps:$4 sm:$0xff]  }
 0x634   :  { %15157 = vmatpush2.bf16.msra.mxu0 %v22049_v61  ;;  %v22075_v61 = vld [vmem:[%s30204_s3 + $0xffc] ss:$52 sps:$4 sm:$0xff]  }
 0x635   :  { %15200 = vmatpush2.bf16.msra.mxu1 %v22052_v33  ;;  %15158 = vmatprep.subr.bf16.mxu0 %v22057_v62  ;;  %v22078_v33 = vld [vmem:[%s30204_s3 + $0x167c] ss:$52 sps:$4 sm:$0xff]   ;;  %v22073_v62 = vld [vmem:[%s30204_s3 + $0xff8] ss:$52 sps:$4 sm:$0xff]  }
 0x636   :  { %15201 = vmatprep.subr.bf16.mxu1 %v22060_v3  ;;  %v22076_v3 = vld [vmem:[%s30204_s3 + $0x1678] ss:$52 sps:$4 sm:$0xff]  }
 0x638   :  { %15159 = vmatpush2.bf16.msra.mxu0 %v22055_v18  ;;  %v22081_v18 = vld [vmem:[%s30204_s3 + $0xf94] ss:$52 sps:$4 sm:$0xff]  }
 0x639   :  { %15202 = vmatpush2.bf16.msra.mxu1 %v22058_v14  ;;  %15160 = vmatprep.subr.bf16.mxu0 %v22063_v53  ;;  %v22084_v14 = vld [vmem:[%s30204_s3 + $0x1614] ss:$52 sps:$4 sm:$0xff]   ;;  %v22079_v53 = vld [vmem:[%s30204_s3 + $0xf90] ss:$52 sps:$4 sm:$0xff]  }
 0x63a   :  { %15203 = vmatprep.subr.bf16.mxu1 %v22066_v38  ;;  %v22082_v38 = vld [vmem:[%s30204_s3 + $0x1610] ss:$52 sps:$4 sm:$0xff]  }
 0x63c   :  { %15161 = vmatpush2.bf16.msra.mxu0 %v22061_v47  ;;  %v22087_v47 = vld [vmem:[%s30204_s3 + $0xf2c] ss:$52 sps:$4 sm:$0xff]  }
 0x63d   :  { %15204 = vmatpush2.bf16.msra.mxu1 %v22064_v22  ;;  %15162 = vmatprep.subr.bf16.mxu0 %v22069_v60  ;;  %v22090_v22 = vld [vmem:[%s30204_s3 + $0x15ac] ss:$52 sps:$4 sm:$0xff]   ;;  %v22085_v60 = vld [vmem:[%s30204_s3 + $0xf28] ss:$52 sps:$4 sm:$0xff]  }
 0x63e   :  { %15205 = vmatprep.subr.bf16.mxu1 %v22072_v15  ;;  %v22088_v15 = vld [vmem:[%s30204_s3 + $0x15a8] ss:$52 sps:$4 sm:$0xff]  }
 0x640   :  { %15163 = vmatpush2.bf16.msra.mxu0 %v22067_v42  ;;  %v22093_v42 = vld [vmem:[%s30204_s3 + $0xec4] ss:$52 sps:$4 sm:$0xff]  }
 0x641   :  { %15206 = vmatpush2.bf16.msra.mxu1 %v22070_v29  ;;  %15218 = vmatprep.subr.bf16.mxu0 %v22075_v61  ;;  %v22096_v29 = vld [vmem:[%s30204_s3 + $0x1544] ss:$52 sps:$4 sm:$0xff]   ;;  %v22091_v61 = vld [vmem:[%s30204_s3 + $0xec0] ss:$52 sps:$4 sm:$0xff]  }
 0x642   :  { %15261 = vmatprep.subr.bf16.mxu1 %v22078_v33  ;;  %v22094_v33 = vld [vmem:[%s30204_s3 + $0x1540] ss:$52 sps:$4 sm:$0xff]  }
 0x643   :  { %15165 = vmatmul.mubr.bf16.vlgmr.msra.gmra.mxu0 %v23969_v13 }
 0x644   :  { %15208 = vmatmul.mubr.bf16.vlgmr.msra.gmra.mxu1 %v24312_v4  ;;  %15219 = vmatpush1.bf16.msra.mxu0 %v22073_v62  ;;  %v22099_v62 = vld [vmem:[%s30204_s3 + $0xe5c] ss:$52 sps:$4 sm:$0xff]  }
 0x645   :  { %15250 = vmatprep.mubr.bf16.mxu0 %v25636_v24  ;;  %15262 = vmatpush1.bf16.msra.mxu1 %v22076_v3  ;;  %v22102_v3 = vld [vmem:[%s30204_s3 + $0x14dc] ss:$52 sps:$4 sm:$0xff]  }
 0x646   :  { %15293 = vmatprep.mubr.bf16.mxu1 %v25645_v37  ;;  %15220 = vmatprep.subr.bf16.mxu0 %v22081_v18  ;;  %v22097_v18 = vld [vmem:[%s30204_s3 + $0xe58] ss:$52 sps:$4 sm:$0xff]  }
 0x647   :  { %15263 = vmatprep.subr.bf16.mxu1 %v22084_v14  ;;  %v22100_v14 = vld [vmem:[%s30204_s3 + $0x14d8] ss:$52 sps:$4 sm:$0xff]  }
 0x648   :  { %15221 = vmatpush1.bf16.msra.mxu0 %v22079_v53  ;;  %v22105_v53 = vld [vmem:[%s30204_s3 + $0xdf4] ss:$52 sps:$4 sm:$0xff]  }
 0x649   :  { %15264 = vmatpush1.bf16.msra.mxu1 %v22082_v38  ;;  %15222 = vmatprep.subr.bf16.mxu0 %v22087_v47  ;;  %v22108_v38 = vld [vmem:[%s30204_s3 + $0x1474] ss:$52 sps:$4 sm:$0xff]   ;;  %v22103_v47 = vld [vmem:[%s30204_s3 + $0xdf0] ss:$52 sps:$4 sm:$0xff]  }
 0x64a   :  { %15265 = vmatprep.subr.bf16.mxu1 %v22090_v22  ;;  %v22106_v22 = vld [vmem:[%s30204_s3 + $0x1470] ss:$52 sps:$4 sm:$0xff]  }
 0x64c   :  { %15223 = vmatpush1.bf16.msra.mxu0 %v22085_v60  ;;  %v22111_v60 = vld [vmem:[%s30204_s3 + $0xd8c] ss:$52 sps:$4 sm:$0xff]  }
 0x64d   :  { %15266 = vmatpush1.bf16.msra.mxu1 %v22088_v15  ;;  %15224 = vmatprep.subr.bf16.mxu0 %v22093_v42  ;;  %v22114_v15 = vld [vmem:[%s30204_s3 + $0x140c] ss:$52 sps:$4 sm:$0xff]   ;;  %v22109_v42 = vld [vmem:[%s30204_s3 + $0xd88] ss:$52 sps:$4 sm:$0xff]  }
 0x64e   :  { %15267 = vmatprep.subr.bf16.mxu1 %v22096_v29  ;;  %v22112_v29 = vld [vmem:[%s30204_s3 + $0x1408] ss:$52 sps:$4 sm:$0xff]  }
 0x650   :  { %15225 = vmatpush1.bf16.msra.mxu0 %v22091_v61  ;;  %v22117_v61 = vld [vmem:[%s30204_s3 + $0xd24] ss:$52 sps:$4 sm:$0xff]  }
 0x651   :  { %15268 = vmatpush1.bf16.msra.mxu1 %v22094_v33  ;;  %15226 = vmatprep.subr.bf16.mxu0 %v22099_v62  ;;  %v22120_v33 = vld [vmem:[%s30204_s3 + $0x13a4] ss:$52 sps:$4 sm:$0xff]   ;;  %v22115_v62 = vld [vmem:[%s30204_s3 + $0xd20] ss:$52 sps:$4 sm:$0xff]  }
 0x652   :  { %15269 = vmatprep.subr.bf16.mxu1 %v22102_v3  ;;  %v22118_v3 = vld [vmem:[%s30204_s3 + $0x13a0] ss:$52 sps:$4 sm:$0xff]  }
 0x654   :  { %15227 = vmatpush1.bf16.msra.mxu0 %v22097_v18  ;;  %v22123_v18 = vld [vmem:[%s30204_s3 + $0x133c] ss:$52 sps:$4 sm:$0xff]  }
 0x655   :  { %15270 = vmatpush1.bf16.msra.mxu1 %v22100_v14  ;;  %15228 = vmatprep.subr.bf16.mxu0 %v22105_v53  ;;  %v22126_v14 = vld [vmem:[%s30204_s3 + $0x19bc] ss:$52 sps:$4 sm:$0xff]   ;;  %v22121_v53 = vld [vmem:[%s30204_s3 + $0x1338] ss:$52 sps:$4 sm:$0xff]  }
 0x656   :  { %15271 = vmatprep.subr.bf16.mxu1 %v22108_v38  ;;  %v22124_v38 = vld [vmem:[%s30204_s3 + $0x19b8] ss:$52 sps:$4 sm:$0xff]  }
 0x658   :  { %15229 = vmatpush1.bf16.msra.mxu0 %v22103_v47  ;;  %v22129_v47 = vld [vmem:[%s30204_s3 + $0x12d4] ss:$52 sps:$4 sm:$0xff]  }
 0x659   :  { %15272 = vmatpush1.bf16.msra.mxu1 %v22106_v22  ;;  %15230 = vmatprep.subr.bf16.mxu0 %v22111_v60  ;;  %v22132_v22 = vld [vmem:[%s30204_s3 + $0x1954] ss:$52 sps:$4 sm:$0xff]   ;;  %v22127_v60 = vld [vmem:[%s30204_s3 + $0x12d0] ss:$52 sps:$4 sm:$0xff]  }
 0x65a   :  { %15273 = vmatprep.subr.bf16.mxu1 %v22114_v15  ;;  %v22130_v15 = vld [vmem:[%s30204_s3 + $0x1950] ss:$52 sps:$4 sm:$0xff]  }
 0x65c   :  { %15231 = vmatpush1.bf16.msra.mxu0 %v22109_v42  ;;  %v22135_v42 = vld [vmem:[%s30204_s3 + $0x126c] ss:$52 sps:$4 sm:$0xff]  }
 0x65d   :  { %15274 = vmatpush1.bf16.msra.mxu1 %v22112_v29  ;;  %15232 = vmatprep.subr.bf16.mxu0 %v22117_v61  ;;  %v22138_v29 = vld [vmem:[%s30204_s3 + $0x18ec] ss:$52 sps:$4 sm:$0xff]   ;;  %v22133_v61 = vld [vmem:[%s30204_s3 + $0x1268] ss:$52 sps:$4 sm:$0xff]  }
 0x65e   :  { %15275 = vmatprep.subr.bf16.mxu1 %v22120_v33  ;;  %v22136_v33 = vld [vmem:[%s30204_s3 + $0x18e8] ss:$52 sps:$4 sm:$0xff]  }
 0x660   :  { %15233 = vmatpush1.bf16.msra.mxu0 %v22115_v62  ;;  %v22141_v62 = vld [vmem:[%s30204_s3 + $0x1204] ss:$52 sps:$4 sm:$0xff]  }
 0x661   :  { %15276 = vmatpush1.bf16.msra.mxu1 %v22118_v3  ;;  %15234 = vmatprep.subr.bf16.mxu0 %v22123_v18  ;;  %v22144_v3 = vld [vmem:[%s30204_s3 + $0x1884] ss:$52 sps:$4 sm:$0xff]   ;;  %v22139_v18 = vld [vmem:[%s30204_s3 + $0x1200] ss:$52 sps:$4 sm:$0xff]  }
 0x662   :  { %15277 = vmatprep.subr.bf16.mxu1 %v22126_v14  ;;  %v22142_v14 = vld [vmem:[%s30204_s3 + $0x1880] ss:$52 sps:$4 sm:$0xff]  }
 0x664   :  { %15235 = vmatpush2.bf16.msra.mxu0 %v22121_v53  ;;  %v22147_v53 = vld [vmem:[%s30204_s3 + $0x119c] ss:$52 sps:$4 sm:$0xff]  }
 0x665   :  { %15278 = vmatpush2.bf16.msra.mxu1 %v22124_v38  ;;  %15236 = vmatprep.subr.bf16.mxu0 %v22129_v47  ;;  %v22150_v38 = vld [vmem:[%s30204_s3 + $0x181c] ss:$52 sps:$4 sm:$0xff]   ;;  %v22145_v47 = vld [vmem:[%s30204_s3 + $0x1198] ss:$52 sps:$4 sm:$0xff]  }
 0x666   :  { %15279 = vmatprep.subr.bf16.mxu1 %v22132_v22  ;;  %v22148_v22 = vld [vmem:[%s30204_s3 + $0x1818] ss:$52 sps:$4 sm:$0xff]  }
 0x668   :  { %15237 = vmatpush2.bf16.msra.mxu0 %v22127_v60  ;;  %v22153_v60 = vld [vmem:[%s30204_s3 + $0x1134] ss:$52 sps:$4 sm:$0xff]  }
 0x669   :  { %15280 = vmatpush2.bf16.msra.mxu1 %v22130_v15  ;;  %15238 = vmatprep.subr.bf16.mxu0 %v22135_v42  ;;  %v22156_v15 = vld [vmem:[%s30204_s3 + $0x17b4] ss:$52 sps:$4 sm:$0xff]   ;;  %v22151_v42 = vld [vmem:[%s30204_s3 + $0x1130] ss:$52 sps:$4 sm:$0xff]  }
 0x66a   :  { %15281 = vmatprep.subr.bf16.mxu1 %v22138_v29  ;;  %v22154_v29 = vld [vmem:[%s30204_s3 + $0x17b0] ss:$52 sps:$4 sm:$0xff]  }
 0x66c   :  { %15239 = vmatpush2.bf16.msra.mxu0 %v22133_v61  ;;  %v22159_v61 = vld [vmem:[%s30204_s3 + $0x10cc] ss:$52 sps:$4 sm:$0xff]  }
 0x66d   :  { %15282 = vmatpush2.bf16.msra.mxu1 %v22136_v33  ;;  %15240 = vmatprep.subr.bf16.mxu0 %v22141_v62  ;;  %v22162_v33 = vld [vmem:[%s30204_s3 + $0x174c] ss:$52 sps:$4 sm:$0xff]   ;;  %v22157_v62 = vld [vmem:[%s30204_s3 + $0x10c8] ss:$52 sps:$4 sm:$0xff]  }
 0x66e   :  { %15283 = vmatprep.subr.bf16.mxu1 %v22144_v3  ;;  %v22160_v3 = vld [vmem:[%s30204_s3 + $0x1748] ss:$52 sps:$4 sm:$0xff]  }
 0x670   :  { %15241 = vmatpush2.bf16.msra.mxu0 %v22139_v18  ;;  %v22165_v18 = vld [vmem:[%s30204_s3 + $0x1064] ss:$52 sps:$4 sm:$0xff]  }
 0x671   :  { %15284 = vmatpush2.bf16.msra.mxu1 %v22142_v14  ;;  %15242 = vmatprep.subr.bf16.mxu0 %v22147_v53  ;;  %v22168_v14 = vld [vmem:[%s30204_s3 + $0x16e4] ss:$52 sps:$4 sm:$0xff]   ;;  %v22163_v53 = vld [vmem:[%s30204_s3 + $0x1060] ss:$52 sps:$4 sm:$0xff]  }
 0x672   :  { %15285 = vmatprep.subr.bf16.mxu1 %v22150_v38  ;;  %v22166_v38 = vld [vmem:[%s30204_s3 + $0x16e0] ss:$52 sps:$4 sm:$0xff]  }
 0x674   :  { %15243 = vmatpush2.bf16.msra.mxu0 %v22145_v47  ;;  %v22171_v47 = vld [vmem:[%s30204_s3 + $0x1cfc] ss:$52 sps:$4 sm:$0xff]  }
 0x675   :  { %15286 = vmatpush2.bf16.msra.mxu1 %v22148_v22  ;;  %15244 = vmatprep.subr.bf16.mxu0 %v22153_v60  ;;  %v22174_v22 = vld [vmem:[%s30204_s3 + $0x237c] ss:$52 sps:$4 sm:$0xff]   ;;  %v22169_v60 = vld [vmem:[%s30204_s3 + $0x1cf8] ss:$52 sps:$4 sm:$0xff]  }
 0x676   :  { %15287 = vmatprep.subr.bf16.mxu1 %v22156_v15  ;;  %v22172_v15 = vld [vmem:[%s30204_s3 + $0x2378] ss:$52 sps:$4 sm:$0xff]  }
 0x678   :  { %15245 = vmatpush2.bf16.msra.mxu0 %v22151_v42  ;;  %v22177_v42 = vld [vmem:[%s30204_s3 + $0x1c94] ss:$52 sps:$4 sm:$0xff]  }
 0x679   :  { %15288 = vmatpush2.bf16.msra.mxu1 %v22154_v29  ;;  %15246 = vmatprep.subr.bf16.mxu0 %v22159_v61  ;;  %v22180_v29 = vld [vmem:[%s30204_s3 + $0x2314] ss:$52 sps:$4 sm:$0xff]   ;;  %v22175_v61 = vld [vmem:[%s30204_s3 + $0x1c90] ss:$52 sps:$4 sm:$0xff]  }
 0x67a   :  { %15289 = vmatprep.subr.bf16.mxu1 %v22162_v33  ;;  %v22178_v33 = vld [vmem:[%s30204_s3 + $0x2310] ss:$52 sps:$4 sm:$0xff]  }
 0x67c   :  { %15247 = vmatpush2.bf16.msra.mxu0 %v22157_v62  ;;  %v22183_v62 = vld [vmem:[%s30204_s3 + $0x1c2c] ss:$52 sps:$4 sm:$0xff]  }
 0x67d   :  { %15290 = vmatpush2.bf16.msra.mxu1 %v22160_v3  ;;  %15248 = vmatprep.subr.bf16.mxu0 %v22165_v18  ;;  %v22186_v3 = vld [vmem:[%s30204_s3 + $0x22ac] ss:$52 sps:$4 sm:$0xff]   ;;  %v22181_v18 = vld [vmem:[%s30204_s3 + $0x1c28] ss:$52 sps:$4 sm:$0xff]  }
 0x67e   :  { %15291 = vmatprep.subr.bf16.mxu1 %v22168_v14  ;;  %v22184_v14 = vld [vmem:[%s30204_s3 + $0x22a8] ss:$52 sps:$4 sm:$0xff]  }
 0x680   :  { %15249 = vmatpush2.bf16.msra.mxu0 %v22163_v53  ;;  %v22189_v53 = vld [vmem:[%s30204_s3 + $0x1bc4] ss:$52 sps:$4 sm:$0xff]  }
 0x681   :  { %15292 = vmatpush2.bf16.msra.mxu1 %v22166_v38  ;;  %15304 = vmatprep.subr.bf16.mxu0 %v22171_v47  ;;  %v22192_v38 = vld [vmem:[%s30204_s3 + $0x2244] ss:$52 sps:$4 sm:$0xff]   ;;  %v22187_v47 = vld [vmem:[%s30204_s3 + $0x1bc0] ss:$52 sps:$4 sm:$0xff]  }
 0x682   :  { %15347 = vmatprep.subr.bf16.mxu1 %v22174_v22  ;;  %v22190_v22 = vld [vmem:[%s30204_s3 + $0x2240] ss:$52 sps:$4 sm:$0xff]  }
 0x683   :  { %15251 = vmatmul.mubr.bf16.vlgmr.msra.gmra.mxu0 %v24755_v59 }
 0x684   :  { %15294 = vmatmul.mubr.bf16.vlgmr.msra.gmra.mxu1 %v25097_v45  ;;  %15305 = vmatpush1.bf16.msra.mxu0 %v22169_v60  ;;  %v22195_v60 = vld [vmem:[%s30204_s3 + $0x1b5c] ss:$52 sps:$4 sm:$0xff]  }
 0x685   :  { %15336 = vmatprep.mubr.bf16.mxu0 %v25859_v12  ;;  %15348 = vmatpush1.bf16.msra.mxu1 %v22172_v15  ;;  %v22198_v15 = vld [vmem:[%s30204_s3 + $0x21dc] ss:$52 sps:$4 sm:$0xff]  }
 0x686   :  { %15379 = vmatprep.mubr.bf16.mxu1 %v25917_v8  ;;  %15306 = vmatprep.subr.bf16.mxu0 %v22177_v42  ;;  %v22193_v42 = vld [vmem:[%s30204_s3 + $0x1b58] ss:$52 sps:$4 sm:$0xff]  }
 0x687   :  { %15349 = vmatprep.subr.bf16.mxu1 %v22180_v29  ;;  %v22196_v29 = vld [vmem:[%s30204_s3 + $0x21d8] ss:$52 sps:$4 sm:$0xff]  }
 0x688   :  { %15307 = vmatpush1.bf16.msra.mxu0 %v22175_v61  ;;  %v22201_v61 = vld [vmem:[%s30204_s3 + $0x1af4] ss:$52 sps:$4 sm:$0xff]  }
 0x689   :  { %15350 = vmatpush1.bf16.msra.mxu1 %v22178_v33  ;;  %15308 = vmatprep.subr.bf16.mxu0 %v22183_v62  ;;  %v22204_v33 = vld [vmem:[%s30204_s3 + $0x2174] ss:$52 sps:$4 sm:$0xff]   ;;  %v22199_v62 = vld [vmem:[%s30204_s3 + $0x1af0] ss:$52 sps:$4 sm:$0xff]  }
 0x68a   :  { %15351 = vmatprep.subr.bf16.mxu1 %v22186_v3  ;;  %v22202_v3 = vld [vmem:[%s30204_s3 + $0x2170] ss:$52 sps:$4 sm:$0xff]  }
 0x68c   :  { %15309 = vmatpush1.bf16.msra.mxu0 %v22181_v18  ;;  %v22207_v18 = vld [vmem:[%s30204_s3 + $0x1a8c] ss:$52 sps:$4 sm:$0xff]  }
 0x68d   :  { %15352 = vmatpush1.bf16.msra.mxu1 %v22184_v14  ;;  %15310 = vmatprep.subr.bf16.mxu0 %v22189_v53  ;;  %v22210_v14 = vld [vmem:[%s30204_s3 + $0x210c] ss:$52 sps:$4 sm:$0xff]   ;;  %v22205_v53 = vld [vmem:[%s30204_s3 + $0x1a88] ss:$52 sps:$4 sm:$0xff]  }
 0x68e   :  { %15353 = vmatprep.subr.bf16.mxu1 %v22192_v38  ;;  %v22208_v38 = vld [vmem:[%s30204_s3 + $0x2108] ss:$52 sps:$4 sm:$0xff]  }
 0x690   :  { %15311 = vmatpush1.bf16.msra.mxu0 %v22187_v47  ;;  %v22213_v47 = vld [vmem:[%s30204_s3 + $0x1a24] ss:$52 sps:$4 sm:$0xff]  }
 0x691   :  { %15354 = vmatpush1.bf16.msra.mxu1 %v22190_v22  ;;  %15312 = vmatprep.subr.bf16.mxu0 %v22195_v60  ;;  %v22216_v22 = vld [vmem:[%s30204_s3 + $0x20a4] ss:$52 sps:$4 sm:$0xff]   ;;  %v22211_v60 = vld [vmem:[%s30204_s3 + $0x1a20] ss:$52 sps:$4 sm:$0xff]  }
 0x692   :  { %15355 = vmatprep.subr.bf16.mxu1 %v22198_v15  ;;  %v22214_v15 = vld [vmem:[%s30204_s3 + $0x20a0] ss:$52 sps:$4 sm:$0xff]  }
 0x694   :  { %15313 = vmatpush1.bf16.msra.mxu0 %v22193_v42  ;;  %v22219_v42 = vld [vmem:[%s30204_s3 + $0x203c] ss:$52 sps:$4 sm:$0xff]  }
 0x695   :  { %15356 = vmatpush1.bf16.msra.mxu1 %v22196_v29  ;;  %15314 = vmatprep.subr.bf16.mxu0 %v22201_v61  ;;  %v22222_v29 = vld [vmem:[%s30204_s3 + $0x26bc] ss:$52 sps:$4 sm:$0xff]   ;;  %v22217_v61 = vld [vmem:[%s30204_s3 + $0x2038] ss:$52 sps:$4 sm:$0xff]  }
 0x696   :  { %15357 = vmatprep.subr.bf16.mxu1 %v22204_v33  ;;  %v22220_v33 = vld [vmem:[%s30204_s3 + $0x26b8] ss:$52 sps:$4 sm:$0xff]  }
 0x698   :  { %15315 = vmatpush1.bf16.msra.mxu0 %v22199_v62  ;;  %v22225_v62 = vld [vmem:[%s30204_s3 + $0x1fd4] ss:$52 sps:$4 sm:$0xff]  }
 0x699   :  { %15358 = vmatpush1.bf16.msra.mxu1 %v22202_v3  ;;  %15316 = vmatprep.subr.bf16.mxu0 %v22207_v18  ;;  %v22228_v3 = vld [vmem:[%s30204_s3 + $0x2654] ss:$52 sps:$4 sm:$0xff]   ;;  %v22223_v18 = vld [vmem:[%s30204_s3 + $0x1fd0] ss:$52 sps:$4 sm:$0xff]  }
 0x69a   :  { %15359 = vmatprep.subr.bf16.mxu1 %v22210_v14  ;;  %v22226_v14 = vld [vmem:[%s30204_s3 + $0x2650] ss:$52 sps:$4 sm:$0xff]  }
 0x69c   :  { %15317 = vmatpush1.bf16.msra.mxu0 %v22205_v53  ;;  %v22231_v53 = vld [vmem:[%s30204_s3 + $0x1f6c] ss:$52 sps:$4 sm:$0xff]  }
 0x69d   :  { %15360 = vmatpush1.bf16.msra.mxu1 %v22208_v38  ;;  %15318 = vmatprep.subr.bf16.mxu0 %v22213_v47  ;;  %v22234_v38 = vld [vmem:[%s30204_s3 + $0x25ec] ss:$52 sps:$4 sm:$0xff]   ;;  %v22229_v47 = vld [vmem:[%s30204_s3 + $0x1f68] ss:$52 sps:$4 sm:$0xff]  }
 0x69e   :  { %15361 = vmatprep.subr.bf16.mxu1 %v22216_v22  ;;  %v22232_v22 = vld [vmem:[%s30204_s3 + $0x25e8] ss:$52 sps:$4 sm:$0xff]  }
 0x6a0   :  { %15319 = vmatpush1.bf16.msra.mxu0 %v22211_v60  ;;  %v22237_v60 = vld [vmem:[%s30204_s3 + $0x1f04] ss:$52 sps:$4 sm:$0xff]  }
 0x6a1   :  { %15362 = vmatpush1.bf16.msra.mxu1 %v22214_v15  ;;  %15320 = vmatprep.subr.bf16.mxu0 %v22219_v42  ;;  %v22240_v15 = vld [vmem:[%s30204_s3 + $0x2584] ss:$52 sps:$4 sm:$0xff]   ;;  %v22235_v42 = vld [vmem:[%s30204_s3 + $0x1f00] ss:$52 sps:$4 sm:$0xff]  }
 0x6a2   :  { %15363 = vmatprep.subr.bf16.mxu1 %v22222_v29  ;;  %v22238_v29 = vld [vmem:[%s30204_s3 + $0x2580] ss:$52 sps:$4 sm:$0xff]  }
 0x6a4   :  { %15321 = vmatpush2.bf16.msra.mxu0 %v22217_v61  ;;  %v22243_v61 = vld [vmem:[%s30204_s3 + $0x1e9c] ss:$52 sps:$4 sm:$0xff]  }
 0x6a5   :  { %15364 = vmatpush2.bf16.msra.mxu1 %v22220_v33  ;;  %15322 = vmatprep.subr.bf16.mxu0 %v22225_v62  ;;  %v22246_v33 = vld [vmem:[%s30204_s3 + $0x251c] ss:$52 sps:$4 sm:$0xff]   ;;  %v22241_v62 = vld [vmem:[%s30204_s3 + $0x1e98] ss:$52 sps:$4 sm:$0xff]  }
 0x6a6   :  { %15365 = vmatprep.subr.bf16.mxu1 %v22228_v3  ;;  %v22244_v3 = vld [vmem:[%s30204_s3 + $0x2518] ss:$52 sps:$4 sm:$0xff]  }
 0x6a8   :  { %15323 = vmatpush2.bf16.msra.mxu0 %v22223_v18  ;;  %v22249_v18 = vld [vmem:[%s30204_s3 + $0x1e34] ss:$52 sps:$4 sm:$0xff]  }
 0x6a9   :  { %15366 = vmatpush2.bf16.msra.mxu1 %v22226_v14  ;;  %15324 = vmatprep.subr.bf16.mxu0 %v22231_v53  ;;  %v22252_v14 = vld [vmem:[%s30204_s3 + $0x24b4] ss:$52 sps:$4 sm:$0xff]   ;;  %v22247_v53 = vld [vmem:[%s30204_s3 + $0x1e30] ss:$52 sps:$4 sm:$0xff]  }
 0x6aa   :  { %15367 = vmatprep.subr.bf16.mxu1 %v22234_v38  ;;  %v22250_v38 = vld [vmem:[%s30204_s3 + $0x24b0] ss:$52 sps:$4 sm:$0xff]  }
 0x6ac   :  { %15325 = vmatpush2.bf16.msra.mxu0 %v22229_v47  ;;  %v22255_v47 = vld [vmem:[%s30204_s3 + $0x1dcc] ss:$52 sps:$4 sm:$0xff]  }
 0x6ad   :  { %15368 = vmatpush2.bf16.msra.mxu1 %v22232_v22  ;;  %15326 = vmatprep.subr.bf16.mxu0 %v22237_v60  ;;  %v22258_v22 = vld [vmem:[%s30204_s3 + $0x244c] ss:$52 sps:$4 sm:$0xff]   ;;  %v22253_v60 = vld [vmem:[%s30204_s3 + $0x1dc8] ss:$52 sps:$4 sm:$0xff]  }
 0x6ae   :  { %15369 = vmatprep.subr.bf16.mxu1 %v22240_v15  ;;  %v22256_v15 = vld [vmem:[%s30204_s3 + $0x2448] ss:$52 sps:$4 sm:$0xff]  }
 0x6b0   :  { %15327 = vmatpush2.bf16.msra.mxu0 %v22235_v42  ;;  %v22261_v42 = vld [vmem:[%s30204_s3 + $0x1d64] ss:$52 sps:$4 sm:$0xff]  }
 0x6b1   :  { %15370 = vmatpush2.bf16.msra.mxu1 %v22238_v29  ;;  %15328 = vmatprep.subr.bf16.mxu0 %v22243_v61  ;;  %v22264_v29 = vld [vmem:[%s30204_s3 + $0x23e4] ss:$52 sps:$4 sm:$0xff]   ;;  %v22259_v61 = vld [vmem:[%s30204_s3 + $0x1d60] ss:$52 sps:$4 sm:$0xff]  }
 0x6b2   :  { %15371 = vmatprep.subr.bf16.mxu1 %v22246_v33  ;;  %v22262_v33 = vld [vmem:[%s30204_s3 + $0x23e0] ss:$52 sps:$4 sm:$0xff]  }
 0x6b4   :  { %15329 = vmatpush2.bf16.msra.mxu0 %v22241_v62  ;;  %v22267_v62 = vld [vmem:[%s30204_s3 + $0x285c] ss:$52 sps:$4 sm:$0xff]  }
 0x6b5   :  { %15372 = vmatpush2.bf16.msra.mxu1 %v22244_v3  ;;  %15330 = vmatprep.subr.bf16.mxu0 %v22249_v18  ;;  %v22270_v3 = vld [vmem:[%s30204_s3 + $0x304] ss:$52 sps:$4 sm:$0xff]  }
 0x6b6   :  { %15373 = vmatprep.subr.bf16.mxu1 %v22252_v14  ;;  %v22265_v18 = vld [vmem:[%s30204_s3 + $0x2858] ss:$52 sps:$4 sm:$0xff]   ;;  %v22268_v14 = vld [vmem:[%s30204_s3 + $0x300] ss:$52 sps:$4 sm:$0xff]  }
 0x6b8   :  { %15331 = vmatpush2.bf16.msra.mxu0 %v22247_v53  ;;  %v22273_v53 = vld [vmem:[%s30204_s3 + $0x27f4] ss:$52 sps:$4 sm:$0xff]  }
 0x6b9   :  { %15374 = vmatpush2.bf16.msra.mxu1 %v22250_v38  ;;  %15332 = vmatprep.subr.bf16.mxu0 %v22255_v47  ;;  %v22276_v38 = vld [vmem:[%s30204_s3 + $0x29c] ss:$52 sps:$4 sm:$0xff]  }
 0x6ba   :  { %15375 = vmatprep.subr.bf16.mxu1 %v22258_v22  ;;  %v22271_v47 = vld [vmem:[%s30204_s3 + $0x27f0] ss:$52 sps:$4 sm:$0xff]   ;;  %v22274_v22 = vld [vmem:[%s30204_s3 + $0x298] ss:$52 sps:$4 sm:$0xff]  }
 0x6bc   :  { %15333 = vmatpush2.bf16.msra.mxu0 %v22253_v60  ;;  %v22279_v60 = vld [vmem:[%s30204_s3 + $0x278c] ss:$52 sps:$4 sm:$0xff]  }
 0x6bd   :  { %15376 = vmatpush2.bf16.msra.mxu1 %v22256_v15  ;;  %15334 = vmatprep.subr.bf16.mxu0 %v22261_v42  ;;  %v22282_v15 = vld [vmem:[%s30204_s3 + $0x234] ss:$52 sps:$4 sm:$0xff]  }
 0x6be   :  { %15377 = vmatprep.subr.bf16.mxu1 %v22264_v29  ;;  %v22277_v42 = vld [vmem:[%s30204_s3 + $0x2788] ss:$52 sps:$4 sm:$0xff]   ;;  %v22280_v29 = vld [vmem:[%s30204_s3 + $0x230] ss:$52 sps:$4 sm:$0xff]  }
 0x6c0   :  { %15335 = vmatpush2.bf16.msra.mxu0 %v22259_v61  ;;  %v22285_v61 = vld [vmem:[%s30204_s3 + $0x2724] ss:$52 sps:$4 sm:$0xff]  }
 0x6c1   :  { %15378 = vmatpush2.bf16.msra.mxu1 %v22262_v33  ;;  %15398 = vmatprep.subr.bf16.mxu0 %v22267_v62  ;;  %v22288_v33 = vld [vmem:[%s30204_s3 + $0x1cc] ss:$52 sps:$4 sm:$0xff]  }
 0x6c2   :  { %15433 = vmatprep.subr.bf16.mxu1 %v22270_v3  ;;  %v22283_v62 = vld [vmem:[%s30204_s3 + $0x2720] ss:$52 sps:$4 sm:$0xff]   ;;  %v22286_v3 = vld [vmem:[%s30204_s3 + $0x1c8] ss:$52 sps:$4 sm:$0xff]  }
 0x6c3   :  { %15337 = vmatmul.mubr.bf16.vlgmr.msra.gmra.mxu0 %v25548_v1 }
 0x6c4   :  { %15380 = vmatmul.mubr.bf16.vlgmr.msra.gmra.mxu1 %v26079_v32  ;;  %15399 = vmatpush1.bf16.msra.mxu0 %v22265_v18  ;;  %v22294_v18 = vld [vmem:[%s30204_s3 + $0x984] ss:$52 sps:$4 sm:$0xff]  }
 0x6c5   :  { %15434 = vmatpush1.bf16.msra.mxu1 %v22268_v14  ;;  %15465 = vmatprep.mubr.bf16.mxu1 %v25397_v52  ;;  %v22291_v14 = vld [vmem:[%s30204_s3 + $0x164] ss:$52 sps:$4 sm:$0xff]  }
 0x6c6   :  { %15400 = vmatprep.subr.bf16.mxu0 %v22273_v53  ;;  %15435 = vmatprep.subr.bf16.mxu1 %v22276_v38  ;;  %v22292_v53 = vld [vmem:[%s30204_s3 + $0x980] ss:$52 sps:$4 sm:$0xff]  }
 0x6c7   :  { %15422 = vmatprep.mubr.bf16.mxu0 %v30227_v63  ;;  %v22289_v38 = vld [vmem:[%s30204_s3 + $0x160] ss:$52 sps:$4 sm:$0xff]  }
 0x6c8   :  { %15401 = vmatpush1.bf16.msra.mxu0 %v22271_v47  ;;  %v22300_v47 = vld [vmem:[%s30204_s3 + $0x91c] ss:$52 sps:$4 sm:$0xff]  }
 0x6c9   :  { %15436 = vmatpush1.bf16.msra.mxu1 %v22274_v22  ;;  %15402 = vmatprep.subr.bf16.mxu0 %v22279_v60  ;;  %v22297_v22 = vld [vmem:[%s30204_s3 + $0xfc] ss:$52 sps:$4 sm:$0xff]   ;;  %v22298_v60 = vld [vmem:[%s30204_s3 + $0x918] ss:$52 sps:$4 sm:$0xff]  }
 0x6ca   :  { %15437 = vmatprep.subr.bf16.mxu1 %v22282_v15  ;;  %v22295_v15 = vld [vmem:[%s30204_s3 + $0xf8] ss:$52 sps:$4 sm:$0xff]  }
 0x6cc   :  { %15403 = vmatpush1.bf16.msra.mxu0 %v22277_v42  ;;  %v22306_v42 = vld [vmem:[%s30204_s3 + $0x8b4] ss:$52 sps:$4 sm:$0xff]  }
 0x6cd   :  { %15438 = vmatpush1.bf16.msra.mxu1 %v22280_v29  ;;  %15404 = vmatprep.subr.bf16.mxu0 %v22285_v61  ;;  %v22303_v29 = vld [vmem:[%s30204_s3 + $0x94] ss:$52 sps:$4 sm:$0xff]   ;;  %v22304_v61 = vld [vmem:[%s30204_s3 + $0x8b0] ss:$52 sps:$4 sm:$0xff]  }
 0x6ce   :  { %15439 = vmatprep.subr.bf16.mxu1 %v22288_v33  ;;  %v22301_v33 = vld [vmem:[%s30204_s3 + $0x90] ss:$52 sps:$4 sm:$0xff]  }
 0x6d0   :  { %15405 = vmatpush1.bf16.msra.mxu0 %v22283_v62  ;;  %v22312_v62 = vld [vmem:[%s30204_s3 + $0x84c] ss:$52 sps:$4 sm:$0xff]  }
 0x6d1   :  { %15440 = vmatpush1.bf16.msra.mxu1 %v22286_v3  ;;  %15476 = vmatprep.subr.bf16.mxu0 %v22294_v18  ;;  %v22309_v3 = vld [vmem:[%s30204_s3 + $0x2c] ss:$52 sps:$4 sm:$0xff]   ;;  %v22310_v18 = vld [vmem:[%s30204_s3 + $0x848] ss:$52 sps:$4 sm:$0xff]  }
 0x6d2   :  { %15441 = vmatprep.subr.bf16.mxu1 %v22291_v14  ;;  %v22307_v14 = vld [vmem:[%s30204_s3 + $0x28] ss:$52 sps:$4 sm:$0xff]  }
 0x6d3   :  { %19202 = vmatmul.mubr.msk.bf16.vlgmr.msra.gmra.mxu0 %vm13924_vm1, %v26130_v21 }
 0x6d4   :  { %15477 = vmatpush1.bf16.msra.mxu0 %v22292_v53  ;;  %15508 = vmatprep.mubr.bf16.mxu0 %v25399_v0  ;;  %v22318_v53 = vld [vmem:[%s30204_s3 + $0x7e4] ss:$52 sps:$4 sm:$0xff]  }
 0x6d5   :  { %15442 = vmatpush1.bf16.msra.mxu1 %v22289_v38  ;;  %15478 = vmatprep.subr.bf16.mxu0 %v22300_v47  ;;  %v22315_v38 = vld [vmem:[%s30204_s3 + $0x644] ss:$52 sps:$4 sm:$0xff]   ;;  %v22316_v47 = vld [vmem:[%s30204_s3 + $0x7e0] ss:$52 sps:$4 sm:$0xff]  }
 0x6d6   :  { %15443 = vmatprep.subr.bf16.mxu1 %v22297_v22  ;;  %v22313_v22 = vld [vmem:[%s30204_s3 + $0x640] ss:$52 sps:$4 sm:$0xff]  }
 0x6d8   :  { %15479 = vmatpush1.bf16.msra.mxu0 %v22298_v60  ;;  %v22324_v60 = vld [vmem:[%s30204_s3 + $0x77c] ss:$52 sps:$4 sm:$0xff]  }
 0x6d9   :  { %15444 = vmatpush1.bf16.msra.mxu1 %v22295_v15  ;;  %15480 = vmatprep.subr.bf16.mxu0 %v22306_v42  ;;  %v22321_v15 = vld [vmem:[%s30204_s3 + $0x5dc] ss:$52 sps:$4 sm:$0xff]   ;;  %v22322_v42 = vld [vmem:[%s30204_s3 + $0x778] ss:$52 sps:$4 sm:$0xff]  }
 0x6da   :  { %15445 = vmatprep.subr.bf16.mxu1 %v22303_v29  ;;  %v22319_v29 = vld [vmem:[%s30204_s3 + $0x5d8] ss:$52 sps:$4 sm:$0xff]  }
 0x6dc   :  { %15481 = vmatpush1.bf16.msra.mxu0 %v22304_v61  ;;  %v22330_v61 = vld [vmem:[%s30204_s3 + $0x714] ss:$52 sps:$4 sm:$0xff]  }
 0x6dd   :  { %15446 = vmatpush1.bf16.msra.mxu1 %v22301_v33  ;;  %15482 = vmatprep.subr.bf16.mxu0 %v22312_v62  ;;  %v22327_v33 = vld [vmem:[%s30204_s3 + $0x574] ss:$52 sps:$4 sm:$0xff]   ;;  %v22328_v62 = vld [vmem:[%s30204_s3 + $0x710] ss:$52 sps:$4 sm:$0xff]  }
 0x6de   :  { %15447 = vmatprep.subr.bf16.mxu1 %v22309_v3  ;;  %v22325_v3 = vld [vmem:[%s30204_s3 + $0x570] ss:$52 sps:$4 sm:$0xff]  }
 0x6e0   :  { %15483 = vmatpush1.bf16.msra.mxu0 %v22310_v18  ;;  %v22336_v18 = vld [vmem:[%s30204_s3 + $0x6ac] ss:$52 sps:$4 sm:$0xff]  }
 0x6e1   :  { %15448 = vmatpush1.bf16.msra.mxu1 %v22307_v14  ;;  %15484 = vmatprep.subr.bf16.mxu0 %v22318_v53  ;;  %v22333_v14 = vld [vmem:[%s30204_s3 + $0x50c] ss:$52 sps:$4 sm:$0xff]   ;;  %v22334_v53 = vld [vmem:[%s30204_s3 + $0x6a8] ss:$52 sps:$4 sm:$0xff]  }
 0x6e2   :  { %15449 = vmatprep.subr.bf16.mxu1 %v22315_v38  ;;  %v22331_v38 = vld [vmem:[%s30204_s3 + $0x508] ss:$52 sps:$4 sm:$0xff]  }
 0x6e4   :  { %15485 = vmatpush1.bf16.msra.mxu0 %v22316_v47  ;;  %v22342_v47 = vld [vmem:[%s30204_s3 + $0xcc4] ss:$52 sps:$4 sm:$0xff]  }
 0x6e5   :  { %15450 = vmatpush2.bf16.msra.mxu1 %v22313_v22  ;;  %15486 = vmatprep.subr.bf16.mxu0 %v22324_v60  ;;  %v22339_v22 = vld [vmem:[%s30204_s3 + $0x4a4] ss:$52 sps:$4 sm:$0xff]   ;;  %v22340_v60 = vld [vmem:[%s30204_s3 + $0xcc0] ss:$52 sps:$4 sm:$0xff]  }
 0x6e6   :  { %15451 = vmatprep.subr.bf16.mxu1 %v22321_v15  ;;  %v22337_v15 = vld [vmem:[%s30204_s3 + $0x4a0] ss:$52 sps:$4 sm:$0xff]  }
 0x6e8   :  { %15487 = vmatpush1.bf16.msra.mxu0 %v22322_v42  ;;  %v22348_v42 = vld [vmem:[%s30204_s3 + $0xc5c] ss:$52 sps:$4 sm:$0xff]  }
 0x6e9   :  { %15452 = vmatpush2.bf16.msra.mxu1 %v22319_v29  ;;  %15488 = vmatprep.subr.bf16.mxu0 %v22330_v61  ;;  %v22345_v29 = vld [vmem:[%s30204_s3 + $0x43c] ss:$52 sps:$4 sm:$0xff]   ;;  %v22346_v61 = vld [vmem:[%s30204_s3 + $0xc58] ss:$52 sps:$4 sm:$0xff]  }
 0x6ea   :  { %15453 = vmatprep.subr.bf16.mxu1 %v22327_v33  ;;  %v22343_v33 = vld [vmem:[%s30204_s3 + $0x438] ss:$52 sps:$4 sm:$0xff]  }
 0x6ec   :  { %15489 = vmatpush1.bf16.msra.mxu0 %v22328_v62  ;;  %v22354_v62 = vld [vmem:[%s30204_s3 + $0xbf4] ss:$52 sps:$4 sm:$0xff]  }
 0x6ed   :  { %15454 = vmatpush2.bf16.msra.mxu1 %v22325_v3  ;;  %15490 = vmatprep.subr.bf16.mxu0 %v22336_v18  ;;  %v22351_v3 = vld [vmem:[%s30204_s3 + $0x3d4] ss:$52 sps:$4 sm:$0xff]   ;;  %v22352_v18 = vld [vmem:[%s30204_s3 + $0xbf0] ss:$52 sps:$4 sm:$0xff]  }
 0x6ee   :  { %15455 = vmatprep.subr.bf16.mxu1 %v22333_v14  ;;  %v22349_v14 = vld [vmem:[%s30204_s3 + $0x3d0] ss:$52 sps:$4 sm:$0xff]  }
 0x6f0   :  { %15491 = vmatpush1.bf16.msra.mxu0 %v22334_v53  ;;  %v22360_v53 = vld [vmem:[%s30204_s3 + $0xb8c] ss:$52 sps:$4 sm:$0xff]  }
 0x6f1   :  { %15456 = vmatpush2.bf16.msra.mxu1 %v22331_v38  ;;  %15492 = vmatprep.subr.bf16.mxu0 %v22342_v47  ;;  %v22357_v38 = vld [vmem:[%s30204_s3 + $0x36c] ss:$52 sps:$4 sm:$0xff]   ;;  %v22358_v47 = vld [vmem:[%s30204_s3 + $0xb88] ss:$52 sps:$4 sm:$0xff]  }
 0x6f2   :  { %15457 = vmatprep.subr.bf16.mxu1 %v22339_v22  ;;  %v22355_v22 = vld [vmem:[%s30204_s3 + $0x368] ss:$52 sps:$4 sm:$0xff]  }
 0x6f4   :  { %15493 = vmatpush2.bf16.msra.mxu0 %v22340_v60  ;;  %v22363_v60 = vld [vmem:[%s30204_s3 + $0xb24] ss:$52 sps:$4 sm:$0xff]  }
 0x6f5   :  { %15458 = vmatpush2.bf16.msra.mxu1 %v22337_v15  ;;  %15494 = vmatprep.subr.bf16.mxu0 %v22348_v42  ;;  %v22366_v15 = vld [vmem:[%s30204_s3 + $0x1004] ss:$52 sps:$4 sm:$0xff]   ;;  %v22361_v42 = vld [vmem:[%s30204_s3 + $0xb20] ss:$52 sps:$4 sm:$0xff]  }
 0x6f6   :  { %15459 = vmatprep.subr.bf16.mxu1 %v22345_v29  ;;  %v22364_v29 = vld [vmem:[%s30204_s3 + $0x1000] ss:$52 sps:$4 sm:$0xff]  }
 0x6f8   :  { %15495 = vmatpush2.bf16.msra.mxu0 %v22346_v61  ;;  %v22369_v61 = vld [vmem:[%s30204_s3 + $0xabc] ss:$52 sps:$4 sm:$0xff]  }
 0x6f9   :  { %15460 = vmatpush2.bf16.msra.mxu1 %v22343_v33  ;;  %15496 = vmatprep.subr.bf16.mxu0 %v22354_v62  ;;  %v22372_v33 = vld [vmem:[%s30204_s3 + $0xf9c] ss:$52 sps:$4 sm:$0xff]   ;;  %v22367_v62 = vld [vmem:[%s30204_s3 + $0xab8] ss:$52 sps:$4 sm:$0xff]  }
 0x6fa   :  { %15461 = vmatprep.subr.bf16.mxu1 %v22351_v3  ;;  %v22370_v3 = vld [vmem:[%s30204_s3 + $0xf98] ss:$52 sps:$4 sm:$0xff]  }
 0x6fc   :  { %15497 = vmatpush2.bf16.msra.mxu0 %v22352_v18  ;;  %v22375_v18 = vld [vmem:[%s30204_s3 + $0xa54] ss:$52 sps:$4 sm:$0xff]  }
 0x6fd   :  { %15462 = vmatpush2.bf16.msra.mxu1 %v22349_v14  ;;  %15498 = vmatprep.subr.bf16.mxu0 %v22360_v53  ;;  %v22378_v14 = vld [vmem:[%s30204_s3 + $0xf34] ss:$52 sps:$4 sm:$0xff]   ;;  %v22373_v53 = vld [vmem:[%s30204_s3 + $0xa50] ss:$52 sps:$4 sm:$0xff]  }
 0x6fe   :  { %15463 = vmatprep.subr.bf16.mxu1 %v22357_v38  ;;  %v22376_v38 = vld [vmem:[%s30204_s3 + $0xf30] ss:$52 sps:$4 sm:$0xff]  }
 0x700   :  { %15499 = vmatpush2.bf16.msra.mxu0 %v22358_v47  ;;  %v22381_v47 = vld [vmem:[%s30204_s3 + $0x9ec] ss:$52 sps:$4 sm:$0xff]  }
 0x701   :  { %15464 = vmatpush2.bf16.msra.mxu1 %v22355_v22  ;;  %15500 = vmatprep.subr.bf16.mxu0 %v22363_v60  ;;  %v22384_v22 = vld [vmem:[%s30204_s3 + $0xecc] ss:$52 sps:$4 sm:$0xff]   ;;  %v22379_v60 = vld [vmem:[%s30204_s3 + $0x9e8] ss:$52 sps:$4 sm:$0xff]  }
 0x702   :  { %15519 = vmatprep.subr.bf16.mxu1 %v22366_v15  ;;  %v22382_v15 = vld [vmem:[%s30204_s3 + $0xec8] ss:$52 sps:$4 sm:$0xff]  }
 0x704   :  { %15466 = vmatmul.mubr.bf16.vlgmr.msra.gmra.mxu1 %v23969_v13  ;;  %15501 = vmatpush2.bf16.msra.mxu0 %v22361_v42  ;;  %v22390_v42 = vld [vmem:[%s30204_s3 + $0x1684] ss:$52 sps:$4 sm:$0xff]  }
 0x705   :  { %15520 = vmatpush1.bf16.msra.mxu1 %v22364_v29  ;;  %15551 = vmatprep.mubr.bf16.mxu1 %v25636_v24  ;;  %v22387_v29 = vld [vmem:[%s30204_s3 + $0xe64] ss:$52 sps:$4 sm:$0xff]  }
 0x706   :  { %15502 = vmatprep.subr.bf16.mxu0 %v22369_v61  ;;  %15521 = vmatprep.subr.bf16.mxu1 %v22372_v33  ;;  %v22388_v61 = vld [vmem:[%s30204_s3 + $0x1680] ss:$52 sps:$4 sm:$0xff]  }
 0x707   :  { %v22385_v33 = vld [vmem:[%s30204_s3 + $0xe60] ss:$52 sps:$4 sm:$0xff]  }
 0x708   :  { %15503 = vmatpush2.bf16.msra.mxu0 %v22367_v62  ;;  %v22396_v62 = vld [vmem:[%s30204_s3 + $0x161c] ss:$52 sps:$4 sm:$0xff]  }
 0x709   :  { %15522 = vmatpush1.bf16.msra.mxu1 %v22370_v3  ;;  %15504 = vmatprep.subr.bf16.mxu0 %v22375_v18  ;;  %v22393_v3 = vld [vmem:[%s30204_s3 + $0xdfc] ss:$52 sps:$4 sm:$0xff]   ;;  %v22394_v18 = vld [vmem:[%s30204_s3 + $0x1618] ss:$52 sps:$4 sm:$0xff]  }
 0x70a   :  { %15523 = vmatprep.subr.bf16.mxu1 %v22378_v14  ;;  %v22391_v14 = vld [vmem:[%s30204_s3 + $0xdf8] ss:$52 sps:$4 sm:$0xff]  }
 0x70c   :  { %15505 = vmatpush2.bf16.msra.mxu0 %v22373_v53  ;;  %v22402_v53 = vld [vmem:[%s30204_s3 + $0x15b4] ss:$52 sps:$4 sm:$0xff]  }
 0x70d   :  { %15524 = vmatpush1.bf16.msra.mxu1 %v22376_v38  ;;  %15506 = vmatprep.subr.bf16.mxu0 %v22381_v47  ;;  %v22399_v38 = vld [vmem:[%s30204_s3 + $0xd94] ss:$52 sps:$4 sm:$0xff]   ;;  %v22400_v47 = vld [vmem:[%s30204_s3 + $0x15b0] ss:$52 sps:$4 sm:$0xff]  }
 0x70e   :  { %15525 = vmatprep.subr.bf16.mxu1 %v22384_v22  ;;  %v22397_v22 = vld [vmem:[%s30204_s3 + $0xd90] ss:$52 sps:$4 sm:$0xff]  }
 0x710   :  { %15507 = vmatpush2.bf16.msra.mxu0 %v22379_v60  ;;  %v22408_v60 = vld [vmem:[%s30204_s3 + $0x154c] ss:$52 sps:$4 sm:$0xff]  }
 0x711   :  { %15526 = vmatpush1.bf16.msra.mxu1 %v22382_v15  ;;  %15562 = vmatprep.subr.bf16.mxu0 %v22390_v42  ;;  %v22405_v15 = vld [vmem:[%s30204_s3 + $0xd2c] ss:$52 sps:$4 sm:$0xff]   ;;  %v22406_v42 = vld [vmem:[%s30204_s3 + $0x1548] ss:$52 sps:$4 sm:$0xff]  }
 0x712   :  { %15527 = vmatprep.subr.bf16.mxu1 %v22387_v29  ;;  %v22403_v29 = vld [vmem:[%s30204_s3 + $0xd28] ss:$52 sps:$4 sm:$0xff]  }
 0x713   :  { %15509 = vmatmul.mubr.bf16.vlgmr.msra.gmra.mxu0 %v24312_v4 }
 0x714   :  { %15563 = vmatpush1.bf16.msra.mxu0 %v22388_v61  ;;  %15594 = vmatprep.mubr.bf16.mxu0 %v25645_v37  ;;  %v22414_v61 = vld [vmem:[%s30204_s3 + $0x14e4] ss:$52 sps:$4 sm:$0xff]  }
 0x715   :  { %15528 = vmatpush1.bf16.msra.mxu1 %v22385_v33  ;;  %15564 = vmatprep.subr.bf16.mxu0 %v22396_v62  ;;  %v22411_v33 = vld [vmem:[%s30204_s3 + $0x1344] ss:$52 sps:$4 sm:$0xff]   ;;  %v22412_v62 = vld [vmem:[%s30204_s3 + $0x14e0] ss:$52 sps:$4 sm:$0xff]  }
 0x716   :  { %15529 = vmatprep.subr.bf16.mxu1 %v22393_v3  ;;  %v22409_v3 = vld [vmem:[%s30204_s3 + $0x1340] ss:$52 sps:$4 sm:$0xff]  }
 0x718   :  { %15565 = vmatpush1.bf16.msra.mxu0 %v22394_v18  ;;  %v22420_v18 = vld [vmem:[%s30204_s3 + $0x147c] ss:$52 sps:$4 sm:$0xff]  }
 0x719   :  { %15530 = vmatpush1.bf16.msra.mxu1 %v22391_v14  ;;  %15566 = vmatprep.subr.bf16.mxu0 %v22402_v53  ;;  %v22417_v14 = vld [vmem:[%s30204_s3 + $0x12dc] ss:$52 sps:$4 sm:$0xff]   ;;  %v22418_v53 = vld [vmem:[%s30204_s3 + $0x1478] ss:$52 sps:$4 sm:$0xff]  }
 0x71a   :  { %15531 = vmatprep.subr.bf16.mxu1 %v22399_v38  ;;  %v22415_v38 = vld [vmem:[%s30204_s3 + $0x12d8] ss:$52 sps:$4 sm:$0xff]  }
 0x71c   :  { %15567 = vmatpush1.bf16.msra.mxu0 %v22400_v47  ;;  %v22426_v47 = vld [vmem:[%s30204_s3 + $0x1414] ss:$52 sps:$4 sm:$0xff]  }
 0x71d   :  { %15532 = vmatpush1.bf16.msra.mxu1 %v22397_v22  ;;  %15568 = vmatprep.subr.bf16.mxu0 %v22408_v60  ;;  %v22423_v22 = vld [vmem:[%s30204_s3 + $0x1274] ss:$52 sps:$4 sm:$0xff]   ;;  %v22424_v60 = vld [vmem:[%s30204_s3 + $0x1410] ss:$52 sps:$4 sm:$0xff]  }
 0x71e   :  { %15533 = vmatprep.subr.bf16.mxu1 %v22405_v15  ;;  %v22421_v15 = vld [vmem:[%s30204_s3 + $0x1270] ss:$52 sps:$4 sm:$0xff]  }
 0x720   :  { %15569 = vmatpush1.bf16.msra.mxu0 %v22406_v42  ;;  %v22432_v42 = vld [vmem:[%s30204_s3 + $0x13ac] ss:$52 sps:$4 sm:$0xff]  }
 0x721   :  { %15534 = vmatpush1.bf16.msra.mxu1 %v22403_v29  ;;  %15570 = vmatprep.subr.bf16.mxu0 %v22414_v61  ;;  %v22429_v29 = vld [vmem:[%s30204_s3 + $0x120c] ss:$52 sps:$4 sm:$0xff]   ;;  %v22430_v61 = vld [vmem:[%s30204_s3 + $0x13a8] ss:$52 sps:$4 sm:$0xff]  }
 0x722   :  { %15535 = vmatprep.subr.bf16.mxu1 %v22411_v33  ;;  %v22427_v33 = vld [vmem:[%s30204_s3 + $0x1208] ss:$52 sps:$4 sm:$0xff]  }
 0x724   :  { %15571 = vmatpush1.bf16.msra.mxu0 %v22412_v62  ;;  %v22438_v62 = vld [vmem:[%s30204_s3 + $0x19c4] ss:$52 sps:$4 sm:$0xff]  }
 0x725   :  { %15536 = vmatpush2.bf16.msra.mxu1 %v22409_v3  ;;  %15572 = vmatprep.subr.bf16.mxu0 %v22420_v18  ;;  %v22435_v3 = vld [vmem:[%s30204_s3 + $0x11a4] ss:$52 sps:$4 sm:$0xff]   ;;  %v22436_v18 = vld [vmem:[%s30204_s3 + $0x19c0] ss:$52 sps:$4 sm:$0xff]  }
 0x726   :  { %15537 = vmatprep.subr.bf16.mxu1 %v22417_v14  ;;  %v22433_v14 = vld [vmem:[%s30204_s3 + $0x11a0] ss:$52 sps:$4 sm:$0xff]  }
 0x728   :  { %15573 = vmatpush1.bf16.msra.mxu0 %v22418_v53  ;;  %v22444_v53 = vld [vmem:[%s30204_s3 + $0x195c] ss:$52 sps:$4 sm:$0xff]  }
 0x729   :  { %15538 = vmatpush2.bf16.msra.mxu1 %v22415_v38  ;;  %15574 = vmatprep.subr.bf16.mxu0 %v22426_v47  ;;  %v22441_v38 = vld [vmem:[%s30204_s3 + $0x113c] ss:$52 sps:$4 sm:$0xff]   ;;  %v22442_v47 = vld [vmem:[%s30204_s3 + $0x1958] ss:$52 sps:$4 sm:$0xff]  }
 0x72a   :  { %15539 = vmatprep.subr.bf16.mxu1 %v22423_v22  ;;  %v22439_v22 = vld [vmem:[%s30204_s3 + $0x1138] ss:$52 sps:$4 sm:$0xff]  }
 0x72c   :  { %15575 = vmatpush1.bf16.msra.mxu0 %v22424_v60  ;;  %v22450_v60 = vld [vmem:[%s30204_s3 + $0x18f4] ss:$52 sps:$4 sm:$0xff]  }
 0x72d   :  { %15540 = vmatpush2.bf16.msra.mxu1 %v22421_v15  ;;  %15576 = vmatprep.subr.bf16.mxu0 %v22432_v42  ;;  %v22447_v15 = vld [vmem:[%s30204_s3 + $0x10d4] ss:$52 sps:$4 sm:$0xff]   ;;  %v22448_v42 = vld [vmem:[%s30204_s3 + $0x18f0] ss:$52 sps:$4 sm:$0xff]  }
 0x72e   :  { %15541 = vmatprep.subr.bf16.mxu1 %v22429_v29  ;;  %v22445_v29 = vld [vmem:[%s30204_s3 + $0x10d0] ss:$52 sps:$4 sm:$0xff]  }
 0x730   :  { %15577 = vmatpush1.bf16.msra.mxu0 %v22430_v61  ;;  %v22456_v61 = vld [vmem:[%s30204_s3 + $0x188c] ss:$52 sps:$4 sm:$0xff]  }
 0x731   :  { %15542 = vmatpush2.bf16.msra.mxu1 %v22427_v33  ;;  %15578 = vmatprep.subr.bf16.mxu0 %v22438_v62  ;;  %v22453_v33 = vld [vmem:[%s30204_s3 + $0x106c] ss:$52 sps:$4 sm:$0xff]   ;;  %v22454_v62 = vld [vmem:[%s30204_s3 + $0x1888] ss:$52 sps:$4 sm:$0xff]  }
 0x732   :  { %15543 = vmatprep.subr.bf16.mxu1 %v22435_v3  ;;  %v22451_v3 = vld [vmem:[%s30204_s3 + $0x1068] ss:$52 sps:$4 sm:$0xff]  }
 0x734   :  { %15579 = vmatpush2.bf16.msra.mxu0 %v22436_v18  ;;  %v22459_v18 = vld [vmem:[%s30204_s3 + $0x1824] ss:$52 sps:$4 sm:$0xff]  }
 0x735   :  { %15544 = vmatpush2.bf16.msra.mxu1 %v22433_v14  ;;  %15580 = vmatprep.subr.bf16.mxu0 %v22444_v53  ;;  %v22462_v14 = vld [vmem:[%s30204_s3 + $0x1d04] ss:$52 sps:$4 sm:$0xff]   ;;  %v22457_v53 = vld [vmem:[%s30204_s3 + $0x1820] ss:$52 sps:$4 sm:$0xff]  }
 0x736   :  { %15545 = vmatprep.subr.bf16.mxu1 %v22441_v38  ;;  %v22460_v38 = vld [vmem:[%s30204_s3 + $0x1d00] ss:$52 sps:$4 sm:$0xff]  }
 0x738   :  { %15581 = vmatpush2.bf16.msra.mxu0 %v22442_v47  ;;  %v22465_v47 = vld [vmem:[%s30204_s3 + $0x17bc] ss:$52 sps:$4 sm:$0xff]  }
 0x739   :  { %15546 = vmatpush2.bf16.msra.mxu1 %v22439_v22  ;;  %15582 = vmatprep.subr.bf16.mxu0 %v22450_v60  ;;  %v22468_v22 = vld [vmem:[%s30204_s3 + $0x1c9c] ss:$52 sps:$4 sm:$0xff]   ;;  %v22463_v60 = vld [vmem:[%s30204_s3 + $0x17b8] ss:$52 sps:$4 sm:$0xff]  }
 0x73a   :  { %15547 = vmatprep.subr.bf16.mxu1 %v22447_v15  ;;  %v22466_v15 = vld [vmem:[%s30204_s3 + $0x1c98] ss:$52 sps:$4 sm:$0xff]  }
 0x73c   :  { %15583 = vmatpush2.bf16.msra.mxu0 %v22448_v42  ;;  %v22471_v42 = vld [vmem:[%s30204_s3 + $0x1754] ss:$52 sps:$4 sm:$0xff]  }
 0x73d   :  { %15548 = vmatpush2.bf16.msra.mxu1 %v22445_v29  ;;  %15584 = vmatprep.subr.bf16.mxu0 %v22456_v61  ;;  %v22474_v29 = vld [vmem:[%s30204_s3 + $0x1c34] ss:$52 sps:$4 sm:$0xff]   ;;  %v22469_v61 = vld [vmem:[%s30204_s3 + $0x1750] ss:$52 sps:$4 sm:$0xff]  }
 0x73e   :  { %15549 = vmatprep.subr.bf16.mxu1 %v22453_v33  ;;  %v22472_v33 = vld [vmem:[%s30204_s3 + $0x1c30] ss:$52 sps:$4 sm:$0xff]  }
 0x740   :  { %15585 = vmatpush2.bf16.msra.mxu0 %v22454_v62  ;;  %v22477_v62 = vld [vmem:[%s30204_s3 + $0x16ec] ss:$52 sps:$4 sm:$0xff]  }
 0x741   :  { %15550 = vmatpush2.bf16.msra.mxu1 %v22451_v3  ;;  %15586 = vmatprep.subr.bf16.mxu0 %v22459_v18  ;;  %v22480_v3 = vld [vmem:[%s30204_s3 + $0x1bcc] ss:$52 sps:$4 sm:$0xff]   ;;  %v22475_v18 = vld [vmem:[%s30204_s3 + $0x16e8] ss:$52 sps:$4 sm:$0xff]  }
 0x742   :  { %15605 = vmatprep.subr.bf16.mxu1 %v22462_v14  ;;  %v22478_v14 = vld [vmem:[%s30204_s3 + $0x1bc8] ss:$52 sps:$4 sm:$0xff]  }
 0x744   :  { %15552 = vmatmul.mubr.bf16.vlgmr.msra.gmra.mxu1 %v24755_v59  ;;  %15587 = vmatpush2.bf16.msra.mxu0 %v22457_v53  ;;  %v22486_v53 = vld [vmem:[%s30204_s3 + $0x2384] ss:$52 sps:$4 sm:$0xff]  }
 0x745   :  { %15606 = vmatpush1.bf16.msra.mxu1 %v22460_v38  ;;  %15637 = vmatprep.mubr.bf16.mxu1 %v25859_v12  ;;  %v22483_v38 = vld [vmem:[%s30204_s3 + $0x1b64] ss:$52 sps:$4 sm:$0xff]  }
 0x746   :  { %15588 = vmatprep.subr.bf16.mxu0 %v22465_v47  ;;  %15607 = vmatprep.subr.bf16.mxu1 %v22468_v22  ;;  %v22484_v47 = vld [vmem:[%s30204_s3 + $0x2380] ss:$52 sps:$4 sm:$0xff]  }
 0x747   :  { %v22481_v22 = vld [vmem:[%s30204_s3 + $0x1b60] ss:$52 sps:$4 sm:$0xff]  }
 0x748   :  { %15589 = vmatpush2.bf16.msra.mxu0 %v22463_v60  ;;  %v22492_v60 = vld [vmem:[%s30204_s3 + $0x231c] ss:$52 sps:$4 sm:$0xff]  }
 0x749   :  { %15608 = vmatpush1.bf16.msra.mxu1 %v22466_v15  ;;  %15590 = vmatprep.subr.bf16.mxu0 %v22471_v42  ;;  %v22489_v15 = vld [vmem:[%s30204_s3 + $0x1afc] ss:$52 sps:$4 sm:$0xff]   ;;  %v22490_v42 = vld [vmem:[%s30204_s3 + $0x2318] ss:$52 sps:$4 sm:$0xff]  }
 0x74a   :  { %15609 = vmatprep.subr.bf16.mxu1 %v22474_v29  ;;  %v22487_v29 = vld [vmem:[%s30204_s3 + $0x1af8] ss:$52 sps:$4 sm:$0xff]  }
 0x74c   :  { %15591 = vmatpush2.bf16.msra.mxu0 %v22469_v61  ;;  %v22498_v61 = vld [vmem:[%s30204_s3 + $0x22b4] ss:$52 sps:$4 sm:$0xff]  }
 0x74d   :  { %15610 = vmatpush1.bf16.msra.mxu1 %v22472_v33  ;;  %15592 = vmatprep.subr.bf16.mxu0 %v22477_v62  ;;  %v22495_v33 = vld [vmem:[%s30204_s3 + $0x1a94] ss:$52 sps:$4 sm:$0xff]   ;;  %v22496_v62 = vld [vmem:[%s30204_s3 + $0x22b0] ss:$52 sps:$4 sm:$0xff]  }
 0x74e   :  { %15611 = vmatprep.subr.bf16.mxu1 %v22480_v3  ;;  %v22493_v3 = vld [vmem:[%s30204_s3 + $0x1a90] ss:$52 sps:$4 sm:$0xff]  }
 0x750   :  { %15593 = vmatpush2.bf16.msra.mxu0 %v22475_v18  ;;  %v22504_v18 = vld [vmem:[%s30204_s3 + $0x224c] ss:$52 sps:$4 sm:$0xff]  }
 0x751   :  { %15612 = vmatpush1.bf16.msra.mxu1 %v22478_v14  ;;  %15648 = vmatprep.subr.bf16.mxu0 %v22486_v53  ;;  %v22501_v14 = vld [vmem:[%s30204_s3 + $0x1a2c] ss:$52 sps:$4 sm:$0xff]   ;;  %v22502_v53 = vld [vmem:[%s30204_s3 + $0x2248] ss:$52 sps:$4 sm:$0xff]  }
 0x752   :  { %15613 = vmatprep.subr.bf16.mxu1 %v22483_v38  ;;  %v22499_v38 = vld [vmem:[%s30204_s3 + $0x1a28] ss:$52 sps:$4 sm:$0xff]  }
 0x753   :  { %15595 = vmatmul.mubr.bf16.vlgmr.msra.gmra.mxu0 %v25097_v45 }
 0x754   :  { %15649 = vmatpush1.bf16.msra.mxu0 %v22484_v47  ;;  %15680 = vmatprep.mubr.bf16.mxu0 %v25917_v8  ;;  %v22510_v47 = vld [vmem:[%s30204_s3 + $0x21e4] ss:$52 sps:$4 sm:$0xff]  }
 0x755   :  { %15614 = vmatpush1.bf16.msra.mxu1 %v22481_v22  ;;  %15650 = vmatprep.subr.bf16.mxu0 %v22492_v60  ;;  %v22507_v22 = vld [vmem:[%s30204_s3 + $0x2044] ss:$52 sps:$4 sm:$0xff]   ;;  %v22508_v60 = vld [vmem:[%s30204_s3 + $0x21e0] ss:$52 sps:$4 sm:$0xff]  }
 0x756   :  { %15615 = vmatprep.subr.bf16.mxu1 %v22489_v15  ;;  %v22505_v15 = vld [vmem:[%s30204_s3 + $0x2040] ss:$52 sps:$4 sm:$0xff]  }
 0x758   :  { %15651 = vmatpush1.bf16.msra.mxu0 %v22490_v42  ;;  %v22516_v42 = vld [vmem:[%s30204_s3 + $0x217c] ss:$52 sps:$4 sm:$0xff]  }
 0x759   :  { %15616 = vmatpush1.bf16.msra.mxu1 %v22487_v29  ;;  %15652 = vmatprep.subr.bf16.mxu0 %v22498_v61  ;;  %v22513_v29 = vld [vmem:[%s30204_s3 + $0x1fdc] ss:$52 sps:$4 sm:$0xff]   ;;  %v22514_v61 = vld [vmem:[%s30204_s3 + $0x2178] ss:$52 sps:$4 sm:$0xff]  }
 0x75a   :  { %15617 = vmatprep.subr.bf16.mxu1 %v22495_v33  ;;  %v22511_v33 = vld [vmem:[%s30204_s3 + $0x1fd8] ss:$52 sps:$4 sm:$0xff]  }
 0x75c   :  { %15653 = vmatpush1.bf16.msra.mxu0 %v22496_v62  ;;  %v22522_v62 = vld [vmem:[%s30204_s3 + $0x2114] ss:$52 sps:$4 sm:$0xff]  }
 0x75d   :  { %15618 = vmatpush1.bf16.msra.mxu1 %v22493_v3  ;;  %15654 = vmatprep.subr.bf16.mxu0 %v22504_v18  ;;  %v22519_v3 = vld [vmem:[%s30204_s3 + $0x1f74] ss:$52 sps:$4 sm:$0xff]   ;;  %v22520_v18 = vld [vmem:[%s30204_s3 + $0x2110] ss:$52 sps:$4 sm:$0xff]  }
 0x75e   :  { %15619 = vmatprep.subr.bf16.mxu1 %v22501_v14  ;;  %v22517_v14 = vld [vmem:[%s30204_s3 + $0x1f70] ss:$52 sps:$4 sm:$0xff]  }
 0x760   :  { %15655 = vmatpush1.bf16.msra.mxu0 %v22502_v53  ;;  %v22528_v53 = vld [vmem:[%s30204_s3 + $0x20ac] ss:$52 sps:$4 sm:$0xff]  }
 0x761   :  { %15620 = vmatpush1.bf16.msra.mxu1 %v22499_v38  ;;  %15656 = vmatprep.subr.bf16.mxu0 %v22510_v47  ;;  %v22525_v38 = vld [vmem:[%s30204_s3 + $0x1f0c] ss:$52 sps:$4 sm:$0xff]   ;;  %v22526_v47 = vld [vmem:[%s30204_s3 + $0x20a8] ss:$52 sps:$4 sm:$0xff]  }
 0x762   :  { %15621 = vmatprep.subr.bf16.mxu1 %v22507_v22  ;;  %v22523_v22 = vld [vmem:[%s30204_s3 + $0x1f08] ss:$52 sps:$4 sm:$0xff]  }
 0x764   :  { %15657 = vmatpush1.bf16.msra.mxu0 %v22508_v60  ;;  %v22534_v60 = vld [vmem:[%s30204_s3 + $0x26c4] ss:$52 sps:$4 sm:$0xff]  }
 0x765   :  { %15622 = vmatpush2.bf16.msra.mxu1 %v22505_v15  ;;  %15658 = vmatprep.subr.bf16.mxu0 %v22516_v42  ;;  %v22531_v15 = vld [vmem:[%s30204_s3 + $0x1ea4] ss:$52 sps:$4 sm:$0xff]   ;;  %v22532_v42 = vld [vmem:[%s30204_s3 + $0x26c0] ss:$52 sps:$4 sm:$0xff]  }
 0x766   :  { %15623 = vmatprep.subr.bf16.mxu1 %v22513_v29  ;;  %v22529_v29 = vld [vmem:[%s30204_s3 + $0x1ea0] ss:$52 sps:$4 sm:$0xff]  }
 0x768   :  { %15659 = vmatpush1.bf16.msra.mxu0 %v22514_v61  ;;  %v22540_v61 = vld [vmem:[%s30204_s3 + $0x265c] ss:$52 sps:$4 sm:$0xff]  }
 0x769   :  { %15624 = vmatpush2.bf16.msra.mxu1 %v22511_v33  ;;  %15660 = vmatprep.subr.bf16.mxu0 %v22522_v62  ;;  %v22537_v33 = vld [vmem:[%s30204_s3 + $0x1e3c] ss:$52 sps:$4 sm:$0xff]   ;;  %v22535_v62 = vld [vmem:[%s30204_s3 + $0x1e38] ss:$52 sps:$4 sm:$0xff]  }
 0x76a   :  { %15625 = vmatprep.subr.bf16.mxu1 %v22519_v3  ;;  %v22538_v3 = vld [vmem:[%s30204_s3 + $0x2658] ss:$52 sps:$4 sm:$0xff]  }
 0x76c   :  { %15661 = vmatpush1.bf16.msra.mxu0 %v22520_v18  ;;  %v22546_v18 = vld [vmem:[%s30204_s3 + $0x25f4] ss:$52 sps:$4 sm:$0xff]  }
 0x76d   :  { %15626 = vmatpush2.bf16.msra.mxu1 %v22517_v14  ;;  %15662 = vmatprep.subr.bf16.mxu0 %v22528_v53  ;;  %v22543_v14 = vld [vmem:[%s30204_s3 + $0x1dd4] ss:$52 sps:$4 sm:$0xff]   ;;  %v22544_v53 = vld [vmem:[%s30204_s3 + $0x25f0] ss:$52 sps:$4 sm:$0xff]  }
 0x76e   :  { %15627 = vmatprep.subr.bf16.mxu1 %v22525_v38  ;;  %v22541_v38 = vld [vmem:[%s30204_s3 + $0x1dd0] ss:$52 sps:$4 sm:$0xff]  }
 0x770   :  { %15663 = vmatpush1.bf16.msra.mxu0 %v22526_v47  ;;  %v22549_v47 = vld [vmem:[%s30204_s3 + $0x1d6c] ss:$52 sps:$4 sm:$0xff]  }
 0x771   :  { %15628 = vmatpush2.bf16.msra.mxu1 %v22523_v22  ;;  %15664 = vmatprep.subr.bf16.mxu0 %v22534_v60  ;;  %v22552_v22 = vld [vmem:[%s30204_s3 + $0x258c] ss:$52 sps:$4 sm:$0xff]   ;;  %v22550_v60 = vld [vmem:[%s30204_s3 + $0x2588] ss:$52 sps:$4 sm:$0xff]  }
 0x772   :  { %15629 = vmatprep.subr.bf16.mxu1 %v22531_v15  ;;  %v22547_v15 = vld [vmem:[%s30204_s3 + $0x1d68] ss:$52 sps:$4 sm:$0xff]  }
 0x774   :  { %15665 = vmatpush2.bf16.msra.mxu0 %v22532_v42  ;;  %v22555_v42 = vld [vmem:[%s30204_s3 + $0x2524] ss:$52 sps:$4 sm:$0xff]  }
 0x775   :  { %15630 = vmatpush2.bf16.msra.mxu1 %v22529_v29  ;;  %15666 = vmatprep.subr.bf16.mxu0 %v22540_v61  ;;  %v22558_v29 = vld [vmem:[%s30204_s3 + $0x2864] ss:$52 sps:$4 sm:$0xff]   ;;  %v22553_v61 = vld [vmem:[%s30204_s3 + $0x2520] ss:$52 sps:$4 sm:$0xff]  }
 0x776   :  { %15631 = vmatprep.subr.bf16.mxu1 %v22537_v33  ;;  %v22556_v33 = vld [vmem:[%s30204_s3 + $0x2860] ss:$52 sps:$4 sm:$0xff]  }
 0x778   :  { %15667 = vmatpush2.bf16.msra.mxu0 %v22538_v3  ;;  %v22564_v3 = vld [vmem:[%s30204_s3 + $0x27fc] ss:$52 sps:$4 sm:$0xff]  }
 0x779   :  { %15632 = vmatpush2.bf16.msra.mxu1 %v22535_v62  ;;  %15668 = vmatprep.subr.bf16.mxu0 %v22546_v18  ;;  %v22561_v62 = vld [vmem:[%s30204_s3 + $0x24bc] ss:$52 sps:$4 sm:$0xff]   ;;  %v22559_v18 = vld [vmem:[%s30204_s3 + $0x24b8] ss:$52 sps:$4 sm:$0xff]  }
 0x77a   :  { %15633 = vmatprep.subr.bf16.mxu1 %v22543_v14  ;;  %v22562_v14 = vld [vmem:[%s30204_s3 + $0x27f8] ss:$52 sps:$4 sm:$0xff]  }
 0x77c   :  { %15669 = vmatpush2.bf16.msra.mxu0 %v22544_v53  ;;  %v22567_v53 = vld [vmem:[%s30204_s3 + $0x2454] ss:$52 sps:$4 sm:$0xff]  }
 0x77d   :  { %15634 = vmatpush2.bf16.msra.mxu1 %v22541_v38  ;;  %15670 = vmatprep.subr.bf16.mxu0 %v22552_v22  ;;  %v22570_v38 = vld [vmem:[%s30204_s3 + $0x2794] ss:$52 sps:$4 sm:$0xff]   ;;  %v22568_v22 = vld [vmem:[%s30204_s3 + $0x2790] ss:$52 sps:$4 sm:$0xff]  }
 0x77e   :  { %15635 = vmatprep.subr.bf16.mxu1 %v22549_v47  ;;  %v22565_v47 = vld [vmem:[%s30204_s3 + $0x2450] ss:$52 sps:$4 sm:$0xff]  }
 0x780   :  { %15671 = vmatpush2.bf16.msra.mxu0 %v22550_v60  ;;  %v22573_v60 = vld [vmem:[%s30204_s3 + $0x23ec] ss:$52 sps:$4 sm:$0xff]  }
 0x781   :  { %15636 = vmatpush2.bf16.msra.mxu1 %v22547_v15  ;;  %15672 = vmatprep.subr.bf16.mxu0 %v22555_v42  ;;  %v22576_v15 = vld [vmem:[%s30204_s3 + $0x272c] ss:$52 sps:$4 sm:$0xff]   ;;  %v22574_v42 = vld [vmem:[%s30204_s3 + $0x2728] ss:$52 sps:$4 sm:$0xff]  }
 0x782   :  { %15699 = vmatprep.subr.bf16.mxu1 %v22558_v29  ;;  %v22577_v29 = vld [vmem:[%s30204_s3 + $0x648] ss:$52 sps:$4 sm:$0xff]  }
 0x784   :  { %15638 = vmatmul.mubr.bf16.vlgmr.msra.gmra.mxu1 %v25548_v1  ;;  %15673 = vmatpush2.bf16.msra.mxu0 %v22553_v61  ;;  %v22578_v61 = vld [vmem:[%s30204_s3 + $0xcc8] ss:$52 sps:$4 sm:$0xff]  }
 0x785   :  { %15700 = vmatpush1.bf16.msra.mxu1 %v22556_v33  ;;  %15674 = vmatprep.subr.bf16.mxu0 %v22561_v62  ;;  %v22579_v33 = vld [vmem:[%s30204_s3 + $0x308] ss:$52 sps:$4 sm:$0xff]  }
 0x786   :  { %15701 = vmatprep.subr.bf16.mxu1 %v22564_v3  ;;  %15723 = vmatprep.mubr.bf16.mxu1 %v30227_v63  ;;  %v22571_v63 = vld [vmem:[%s30204_s3 + $0x23e8] ss:$52 sps:$4 sm:$0xff]   ;;  %v22581_v3 = vld [vmem:[%s30204_s3 + $0x5e0] ss:$52 sps:$4 sm:$0xff]  }
 0x787   :  { %v22580_v62 = vld [vmem:[%s30204_s3 + $0x988] ss:$52 sps:$4 sm:$0xff]  }
 0x788   :  { %15675 = vmatpush2.bf16.msra.mxu0 %v22559_v18  ;;  %v22582_v18 = vld [vmem:[%s30204_s3 + $0xc60] ss:$52 sps:$4 sm:$0xff]  }
 0x789   :  { %15702 = vmatpush1.bf16.msra.mxu1 %v22562_v14  ;;  %15676 = vmatprep.subr.bf16.mxu0 %v22567_v53  ;;  %v22583_v14 = vld [vmem:[%s30204_s3 + $0x2a0] ss:$52 sps:$4 sm:$0xff]  }
 0x78a   :  { %15703 = vmatprep.subr.bf16.mxu1 %v22570_v38  ;;  %v22584_v53 = vld [vmem:[%s30204_s3 + $0x920] ss:$52 sps:$4 sm:$0xff]   ;;  %v22585_v38 = vld [vmem:[%s30204_s3 + $0x578] ss:$52 sps:$4 sm:$0xff]  }
 0x78c   :  { %15677 = vmatpush2.bf16.msra.mxu0 %v22565_v47  ;;  %v22586_v47 = vld [vmem:[%s30204_s3 + $0xbf8] ss:$52 sps:$4 sm:$0xff]  }
 0x78d   :  { %15704 = vmatpush1.bf16.msra.mxu1 %v22568_v22  ;;  %15678 = vmatprep.subr.bf16.mxu0 %v22573_v60  ;;  %v22587_v22 = vld [vmem:[%s30204_s3 + $0x238] ss:$52 sps:$4 sm:$0xff]  }
 0x78e   :  { %15705 = vmatprep.subr.bf16.mxu1 %v22576_v15  ;;  %v22588_v60 = vld [vmem:[%s30204_s3 + $0x8b8] ss:$52 sps:$4 sm:$0xff]   ;;  %v22591_v15 = vld [vmem:[%s30204_s3 + $0x1d0] ss:$52 sps:$4 sm:$0xff]  }
 0x790   :  { %15679 = vmatpush2.bf16.msra.mxu0 %v22571_v63  ;;  %v22592_v63 = vld [vmem:[%s30204_s3 + $0x850] ss:$52 sps:$4 sm:$0xff]  }
 0x791   :  { %15706 = vmatpush1.bf16.msra.mxu1 %v22574_v42  ;;  %19382 = vmatprep.subr.bf16.mxu0 %v22577_v29  ;;  %v22593_v42 = vld [vmem:[%s30204_s3 + $0x4a8] ss:$52 sps:$4 sm:$0xff]  }
 0x792   :  { %19404 = vmatprep.subr.bf16.mxu1 %v22578_v61  ;;  %v22594_v29 = vld [vmem:[%s30204_s3 + $0xb28] ss:$52 sps:$4 sm:$0xff]  }
 0x793   :  { %15681 = vmatmul.mubr.bf16.vlgmr.msra.gmra.mxu0 %v26079_v32  ;;  %v22595_v61 = vld [vmem:[%s30204_s3 + $0x168] ss:$52 sps:$4 sm:$0xff]  }
 0x794   :  { %19203 = vmatmul.mubr.msk.bf16.vlgmr.msra.gmra.mxu1 %vm13924_vm1, %v26130_v21  ;;  %19383 = vmatpush3.bf16.msra.mxu0 %v22579_v33  ;;  %v22596_v33 = vld [vmem:[%s30204_s3 + $0x7e8] ss:$52 sps:$4 sm:$0xff]  }
 0x795   :  { %15766 = vmatprep.mubr.bf16.mxu0 %v25397_v52  ;;  %19405 = vmatpush3.bf16.msra.mxu1 %v22580_v62  ;;  %v22589_v52 = vld [vmem:[%s30204_s3 + $0x510] ss:$52 sps:$4 sm:$0xff]   ;;  %v22597_v62 = vld [vmem:[%s30204_s3 + $0x440] ss:$52 sps:$4 sm:$0xff]  }
 0x796   :  { %15807 = vmatprep.mubr.bf16.mxu1 %v25399_v0  ;;  %19384 = vmatprep.subr.bf16.mxu0 %v22581_v3  ;;  %v22590_v0 = vld [vmem:[%s30204_s3 + $0xb90] ss:$52 sps:$4 sm:$0xff]   ;;  %v22598_v3 = vld [vmem:[%s30204_s3 + $0xac0] ss:$52 sps:$4 sm:$0xff]  }
 0x797   :  { %19406 = vmatprep.subr.bf16.mxu1 %v22582_v18  ;;  %v22599_v18 = vld [vmem:[%s30204_s3 + $0x100] ss:$52 sps:$4 sm:$0xff]  }
 0x798   :  { %19385 = vmatpush3.bf16.msra.mxu0 %v22583_v14  ;;  %v22600_v14 = vld [vmem:[%s30204_s3 + $0x780] ss:$52 sps:$4 sm:$0xff]  }
 0x799   :  { %19407 = vmatpush3.bf16.msra.mxu1 %v22584_v53  ;;  %19386 = vmatprep.subr.bf16.mxu0 %v22585_v38  ;;  %v22601_v53 = vld [vmem:[%s30204_s3 + $0x3d8] ss:$52 sps:$4 sm:$0xff]  }
 0x79a   :  { %19408 = vmatprep.subr.bf16.mxu1 %v22586_v47  ;;  %v22602_v38 = vld [vmem:[%s30204_s3 + $0xa58] ss:$52 sps:$4 sm:$0xff]  }
 0x79b   :  { %v22603_v47 = vld [vmem:[%s30204_s3 + $0x98] ss:$52 sps:$4 sm:$0xff]  }
 0x79c   :  { %19387 = vmatpush3.bf16.msra.mxu0 %v22587_v22  ;;  %v22604_v22 = vld [vmem:[%s30204_s3 + $0x718] ss:$52 sps:$4 sm:$0xff]  }
 0x79d   :  { %19409 = vmatpush3.bf16.msra.mxu1 %v22588_v60  ;;  %19388 = vmatprep.subr.bf16.mxu0 %v22589_v52  ;;  %v22605_v60 = vld [vmem:[%s30204_s3 + $0x370] ss:$52 sps:$4 sm:$0xff]  }
 0x79e   :  { %19410 = vmatprep.subr.bf16.mxu1 %v22590_v0  ;;  %v22606_v52 = vld [vmem:[%s30204_s3 + $0x9f0] ss:$52 sps:$4 sm:$0xff]  }
 0x79f   :  { %v22607_v0 = vld [vmem:[%s30204_s3 + $0x30] ss:$52 sps:$4 sm:$0xff]  }
 0x7a0   :  { %19389 = vmatpush3.bf16.msra.mxu0 %v22591_v15  ;;  %v22608_v15 = vld [vmem:[%s30204_s3 + $0x6b0] ss:$52 sps:$4 sm:$0xff]  }
 0x7a1   :  { %19411 = vmatpush3.bf16.msra.mxu1 %v22592_v63  ;;  %19390 = vmatprep.subr.bf16.mxu0 %v22593_v42  ;;  %v22609_v63 = vld [vmem:[%s30204_s3 + $0x1348] ss:$52 sps:$4 sm:$0xff]  }
 0x7a2   :  { %19412 = vmatprep.subr.bf16.mxu1 %v22594_v29  ;;  %v22610_v42 = vld [vmem:[%s30204_s3 + $0x19c8] ss:$52 sps:$4 sm:$0xff]  }
 0x7a3   :  { %v22611_v29 = vld [vmem:[%s30204_s3 + $0x1008] ss:$52 sps:$4 sm:$0xff]  }
 0x7a4   :  { %19391 = vmatpush3.bf16.msra.mxu0 %v22595_v61  ;;  %v22612_v61 = vld [vmem:[%s30204_s3 + $0x1688] ss:$52 sps:$4 sm:$0xff]  }
 0x7a5   :  { %19413 = vmatpush3.bf16.msra.mxu1 %v22596_v33  ;;  %19392 = vmatprep.subr.bf16.mxu0 %v22597_v62  ;;  %v22613_v33 = vld [vmem:[%s30204_s3 + $0x12e0] ss:$52 sps:$4 sm:$0xff]  }
 0x7a6   :  { %19414 = vmatprep.subr.bf16.mxu1 %v22598_v3  ;;  %v22614_v62 = vld [vmem:[%s30204_s3 + $0x1960] ss:$52 sps:$4 sm:$0xff]  }
 0x7a7   :  { %v22615_v3 = vld [vmem:[%s30204_s3 + $0xfa0] ss:$52 sps:$4 sm:$0xff]  }
 0x7a8   :  { %19393 = vmatpush3.bf16.msra.mxu0 %v22599_v18  ;;  %v22616_v18 = vld [vmem:[%s30204_s3 + $0x1620] ss:$52 sps:$4 sm:$0xff]  }
 0x7a9   :  { %19415 = vmatpush3.bf16.msra.mxu1 %v22600_v14  ;;  %19394 = vmatprep.subr.bf16.mxu0 %v22601_v53  ;;  %v22619_v14 = vld [vmem:[%s30204_s3 + $0xf38] ss:$52 sps:$4 sm:$0xff]   ;;  %v22622_v53 = vld [vmem:[%s30204_s3 + $0x1890] ss:$52 sps:$4 sm:$0xff]  }
 0x7aa   :  { %19416 = vmatprep.subr.bf16.mxu1 %v22602_v38  ;;  %v22623_v38 = vld [vmem:[%s30204_s3 + $0xed0] ss:$52 sps:$4 sm:$0xff]  }
 0x7ac   :  { %19395 = vmatpush3.bf16.msra.mxu0 %v22603_v47  ;;  %v22624_v47 = vld [vmem:[%s30204_s3 + $0x1550] ss:$52 sps:$4 sm:$0xff]  }
 0x7ad   :  { %19417 = vmatpush3.bf16.msra.mxu1 %v22604_v22  ;;  %19396 = vmatprep.subr.bf16.mxu0 %v22605_v60  ;;  %v22625_v22 = vld [vmem:[%s30204_s3 + $0x11a8] ss:$52 sps:$4 sm:$0xff]  }
 0x7ae   :  { %19418 = vmatprep.subr.bf16.mxu1 %v22606_v52  ;;  %v22626_v60 = vld [vmem:[%s30204_s3 + $0x1828] ss:$52 sps:$4 sm:$0xff]  }
 0x7af   :  { %v22627_v52 = vld [vmem:[%s30204_s3 + $0xe68] ss:$52 sps:$4 sm:$0xff]  }
 0x7b0   :  { %19397 = vmatpush3.bf16.msra.mxu0 %v22607_v0  ;;  %v22628_v0 = vld [vmem:[%s30204_s3 + $0x14e8] ss:$52 sps:$4 sm:$0xff]  }
 0x7b1   :  { %19419 = vmatpush3.bf16.msra.mxu1 %v22608_v15  ;;  %19426 = vmatprep.subr.bf16.mxu0 %v22609_v63  ;;  %v22629_v15 = vld [vmem:[%s30204_s3 + $0x1140] ss:$52 sps:$4 sm:$0xff]  }
 0x7b2   :  { %19448 = vmatprep.subr.bf16.mxu1 %v22610_v42  ;;  %v22630_v63 = vld [vmem:[%s30204_s3 + $0x17c0] ss:$52 sps:$4 sm:$0xff]  }
 0x7b3   :  { %15767 = vmatmul.mubr.bf16.vlgmr.msra.gmra.mxu0 %v23969_v13  ;;  %v22617_v13 = vld [vmem:[%s30204_s3 + $0x1278] ss:$52 sps:$4 sm:$0xff]   ;;  %v22631_v42 = vld [vmem:[%s30204_s3 + $0xe00] ss:$52 sps:$4 sm:$0xff]  }
 0x7b4   :  { %15808 = vmatmul.mubr.bf16.vlgmr.msra.gmra.mxu1 %v24312_v4  ;;  %19427 = vmatpush3.bf16.msra.mxu0 %v22611_v29  ;;  %v22618_v4 = vld [vmem:[%s30204_s3 + $0x18f8] ss:$52 sps:$4 sm:$0xff]   ;;  %v22632_v29 = vld [vmem:[%s30204_s3 + $0x1480] ss:$52 sps:$4 sm:$0xff]  }
 0x7b5   :  { %15848 = vmatprep.mubr.bf16.mxu0 %v25636_v24  ;;  %19449 = vmatpush3.bf16.msra.mxu1 %v22612_v61  ;;  %v22620_v24 = vld [vmem:[%s30204_s3 + $0x15b8] ss:$52 sps:$4 sm:$0xff]  }
 0x7b6   :  { %15889 = vmatprep.mubr.bf16.mxu1 %v25645_v37  ;;  %19428 = vmatprep.subr.bf16.mxu0 %v22613_v33  ;;  %v22621_v37 = vld [vmem:[%s30204_s3 + $0x1210] ss:$52 sps:$4 sm:$0xff]   ;;  %v22633_v61 = vld [vmem:[%s30204_s3 + $0x10d8] ss:$52 sps:$4 sm:$0xff]  }
 0x7b7   :  { %19450 = vmatprep.subr.bf16.mxu1 %v22614_v62  ;;  %v22634_v33 = vld [vmem:[%s30204_s3 + $0x1758] ss:$52 sps:$4 sm:$0xff]   ;;  %v29483_v62 = vpop.f32.mrf.mxu1 }
 0x7b8   :  { %19429 = vmatpush3.bf16.msra.mxu0 %v22615_v3  ;;  %v29485_v3 = vpop.f32.mrf.mxu0 }
 0x7b9   :  { %19451 = vmatpush3.bf16.msra.mxu1 %v22616_v18  ;;  %19430 = vmatprep.subr.bf16.mxu0 %v22617_v13  ;;  %v22635_v18 = vld [vmem:[%s30204_s3 + $0xd98] ss:$52 sps:$4 sm:$0xff]  }
 0x7ba   :  { %19452 = vmatprep.subr.bf16.mxu1 %v22618_v4  ;;  %v22636_v13 = vld [vmem:[%s30204_s3 + $0x1418] ss:$52 sps:$4 sm:$0xff]   ;;  %v29493_v4 = vpop.f32.mrf.mxu1 }
 0x7bc   :  { %19431 = vmatpush3.bf16.msra.mxu0 %v22619_v14  ;;  %v29495_v14 = vpop.f32.mrf.mxu0 }
 0x7bd   :  { %19453 = vmatpush3.bf16.msra.mxu1 %v22620_v24  ;;  %19432 = vmatprep.subr.bf16.mxu0 %v22621_v37  ;;  %v22637_v24 = vld [vmem:[%s30204_s3 + $0x1070] ss:$52 sps:$4 sm:$0xff]  }
 0x7be   :  { %19454 = vmatprep.subr.bf16.mxu1 %v22622_v53  ;;  %v22638_v37 = vld [vmem:[%s30204_s3 + $0x16f0] ss:$52 sps:$4 sm:$0xff]  }
 0x7bf   :  { %v22639_v53 = vld [vmem:[%s30204_s3 + $0xd30] ss:$52 sps:$4 sm:$0xff]  }
 0x7c0   :  { %19433 = vmatpush3.bf16.msra.mxu0 %v22623_v38  ;;  %v29506_v38 = vpop.f32.mrf.mxu1 }
 0x7c1   :  { %19455 = vmatpush3.bf16.msra.mxu1 %v22624_v47  ;;  %19434 = vmatprep.subr.bf16.mxu0 %v22625_v22  ;;  %v29508_v47 = vpop.f32.mrf.mxu0  ;;  %v22640_v22 = vld [vmem:[%s30204_s3 + $0x13b0] ss:$52 sps:$4 sm:$0xff]  }
 0x7c2   :  { %19456 = vmatprep.subr.bf16.mxu1 %v22626_v60  ;;  %v22641_v60 = vld [vmem:[%s30204_s3 + $0x2048] ss:$52 sps:$4 sm:$0xff]  }
 0x7c4   :  { %19435 = vmatpush3.bf16.msra.mxu0 %v22627_v52  ;;  %v22642_v52 = vld [vmem:[%s30204_s3 + $0x26c8] ss:$52 sps:$4 sm:$0xff]  }
 0x7c5   :  { %19457 = vmatpush3.bf16.msra.mxu1 %v22628_v0  ;;  %19436 = vmatprep.subr.bf16.mxu0 %v22629_v15  ;;  %v22643_v0 = vld [vmem:[%s30204_s3 + $0x1d08] ss:$52 sps:$4 sm:$0xff]  }
 0x7c6   :  { %19458 = vmatprep.subr.bf16.mxu1 %v22630_v63  ;;  %v22644_v15 = vld [vmem:[%s30204_s3 + $0x2388] ss:$52 sps:$4 sm:$0xff]   ;;  %v29525_v63 = vpop.f32.mrf.mxu1 }
 0x7c8   :  { %19437 = vmatpush3.bf16.msra.mxu0 %v22631_v42  ;;  %v29527_v42 = vpop.f32.mrf.mxu0 }
 0x7c9   :  { %19459 = vmatpush3.bf16.msra.mxu1 %v22632_v29  ;;  %19438 = vmatprep.subr.bf16.mxu0 %v22633_v61  ;;  %v22645_v29 = vld [vmem:[%s30204_s3 + $0x1fe0] ss:$52 sps:$4 sm:$0xff]  }
 0x7ca   :  { %19460 = vmatprep.subr.bf16.mxu1 %v22634_v33  ;;  %v22646_v61 = vld [vmem:[%s30204_s3 + $0x2660] ss:$52 sps:$4 sm:$0xff]   ;;  %v29536_v33 = vpop.f32.mrf.mxu1 }
 0x7cc   :  { %19439 = vmatpush3.bf16.msra.mxu0 %v22635_v18  ;;  %v29538_v18 = vpop.f32.mrf.mxu0 }
 0x7cd   :  { %19461 = vmatpush3.bf16.msra.mxu1 %v22636_v13  ;;  %19440 = vmatprep.subr.bf16.mxu0 %v22637_v24  ;;  %v22647_v13 = vld [vmem:[%s30204_s3 + $0x1ca0] ss:$52 sps:$4 sm:$0xff]   ;;  %v22649_v24 = vld [vmem:[%s30204_s3 + $0x1f78] ss:$52 sps:$4 sm:$0xff]  }
 0x7ce   :  { %19462 = vmatprep.subr.bf16.mxu1 %v22638_v37  ;;  %v29551_v37 = vpop.f32.mrf.mxu1 }
 0x7d0   :  { %19441 = vmatpush3.bf16.msra.mxu0 %v22639_v53  ;;  %v29553_v53 = vpop.f32.mrf.mxu0 }
 0x7d1   :  { %19463 = vmatpush3.bf16.msra.mxu1 %v22640_v22  ;;  %19470 = vmatprep.subr.bf16.mxu0 %v22641_v60  ;;  %v22651_v60 = vld [vmem:[%s30204_s3 + $0x1c38] ss:$52 sps:$4 sm:$0xff]  }
 0x7d2   :  { %19492 = vmatprep.subr.bf16.mxu1 %v22642_v52  ;;  %v22652_v52 = vld [vmem:[%s30204_s3 + $0x22b8] ss:$52 sps:$4 sm:$0xff]  }
 0x7d3   :  { %15849 = vmatmul.mubr.bf16.vlgmr.msra.gmra.mxu0 %v24755_v59  ;;  %v22648_v59 = vld [vmem:[%s30204_s3 + $0x2320] ss:$52 sps:$4 sm:$0xff]  }
 0x7d4   :  { %15890 = vmatmul.mubr.bf16.vlgmr.msra.gmra.mxu1 %v25097_v45  ;;  %19471 = vmatpush3.bf16.msra.mxu0 %v22643_v0  ;;  %v22650_v45 = vld [vmem:[%s30204_s3 + $0x25f8] ss:$52 sps:$4 sm:$0xff]   ;;  %v22653_v0 = vld [vmem:[%s30204_s3 + $0x1f10] ss:$52 sps:$4 sm:$0xff]  }
 0x7d5   :  { %15930 = vmatprep.mubr.bf16.mxu0 %v25859_v12  ;;  %19493 = vmatpush3.bf16.msra.mxu1 %v22644_v15  ;;  %v29562_v12 = vld [vmem:[%s30205_s4] sm:$0xff]  ;;  %v29576_v15 = vpop.f32.mrf.mxu1 }
 0x7d6   :  { %15971 = vmatprep.mubr.bf16.mxu1 %v25917_v8  ;;  %19472 = vmatprep.subr.bf16.mxu0 %v22645_v29  ;;  %v7266_v22 = vrot.slane %v29562_v12, %v25305_v49  ;;  %v29578_v29 = vpop.f32.mrf.mxu0 }
 0x7d7   :  { %19494 = vmatprep.subr.bf16.mxu1 %v22646_v61  ;;  %v22654_v61 = vld [vmem:[%s30204_s3 + $0x2590] ss:$52 sps:$4 sm:$0xff]   ;;  %v29594_v54 = vpop.f32.mrf.mxu1 }
 0x7d8   :  { %19473 = vmatpush3.bf16.msra.mxu0 %v22647_v13  ;;  %v13969_v8 = vadd.f32 %v26487_v23, %v7266_v22  ;;  %v13965_v23 = vadd.f32 %v26299_v11, %v7266_v22  ;;  %v22655_v13 = vld [vmem:[%s30204_s3 + $0x1bd0] ss:$52 sps:$4 sm:$0xff]   ;;  %v29596_v11 = vpop.f32.mrf.mxu0  ;;  %v22658_v22 = vld [vmem:[%s30204_s3 + $0x2528] ss:$52 sps:$4 sm:$0xff]  }
 0x7d9   :  { %19495 = vmatpush3.bf16.msra.mxu1 %v22648_v59  ;;  %19474 = vmatprep.subr.bf16.mxu0 %v22649_v24  ;;  %v22656_v24 = vld [vmem:[%s30204_s3 + $0x2250] ss:$52 sps:$4 sm:$0xff]  }
 0x7da   :  { %19496 = vmatprep.subr.bf16.mxu1 %v22650_v45  ;;  %v14012_v59 = vadd.f32 %v26492_v58, %v13969_v8  ;;  %v22657_v45 = vld [vmem:[%s30204_s3 + $0x1ea8] ss:$52 sps:$4 sm:$0xff]   ;;  %v14008_v58 = vadd.f32 %v26304_v19, %v13965_v23  ;;  %v29613_v19 = vpop.f32.mrf.mxu1  ;;  %v22662_v23 = vld [vmem:[%s30204_s3 + $0x24c0] ss:$52 sps:$4 sm:$0xff]  }
 0x7db   :  { %v22659_v8 = vld [vmem:[%s30204_s3 + $0x1b68] ss:$52 sps:$4 sm:$0xff]  }
 0x7dc   :  { %19475 = vmatpush3.bf16.msra.mxu0 %v22651_v60  ;;  %v14055_v60 = vadd.f32 %v26700_v41, %v14012_v59  ;;  %v29615_v41 = vpop.f32.mrf.mxu0 }
 0x7dd   :  { %19497 = vmatpush3.bf16.msra.mxu1 %v22652_v52  ;;  %19476 = vmatprep.subr.bf16.mxu0 %v22653_v0  ;;  %v14051_v52 = vadd.f32 %v26508_v35, %v14008_v58  ;;  %v22660_v0 = vld [vmem:[%s30204_s3 + $0x21e8] ss:$52 sps:$4 sm:$0xff]  }
 0x7de   :  { %19498 = vmatprep.subr.bf16.mxu1 %v22654_v61  ;;  %v22661_v61 = vld [vmem:[%s30204_s3 + $0x1e40] ss:$52 sps:$4 sm:$0xff]   ;;  %v14098_v35 = vadd.f32 %v26702_v25, %v14055_v60  ;;  %v29623_v59 = vpop.f32.mrf.mxu0  ;;  %v22665_v25 = vld [vmem:[%s30204_s3 + $0x1dd8] ss:$52 sps:$4 sm:$0xff]  }
 0x7df   :  { %v22666_v60 = vld [vmem:[%s30204_s3 + $0x2458] ss:$52 sps:$4 sm:$0xff]  }
 0x7e0   :  { %19477 = vmatpush3.bf16.msra.mxu0 %v22655_v13  ;;  %v29621_v13 = vpop.f32.mrf.mxu1  ;;  %v14141_v58 = vadd.f32 %v26760_v5, %v14098_v35  ;;  %v29642_v5 = vpop.f32.mrf.mxu0  ;;  %v22670_v35 = vld [vmem:[%s30204_s3 + $0x23f0] ss:$52 sps:$4 sm:$0xff]  }
 0x7e1   :  { %19499 = vmatpush3.bf16.msra.mxu1 %v22656_v24  ;;  %19478 = vmatprep.subr.bf16.mxu0 %v22657_v45  ;;  %v22663_v24 = vld [vmem:[%s30204_s3 + $0x1b00] ss:$52 sps:$4 sm:$0xff]   ;;  %v14094_v45 = vadd.f32 %v26513_v55, %v14051_v52  ;;  %v22667_v52 = vld [vmem:[%s30204_s3 + $0x1a98] ss:$52 sps:$4 sm:$0xff]  }
 0x7e2   :  { %19500 = vmatprep.subr.bf16.mxu1 %v22658_v22  ;;  %v22664_v22 = vld [vmem:[%s30204_s3 + $0x2180] ss:$52 sps:$4 sm:$0xff]   ;;  %v29640_v55 = vpop.f32.mrf.mxu1 }
 0x7e4   :  { %19479 = vmatpush3.bf16.msra.mxu0 %v22659_v8  ;;  %v14137_v8 = vadd.f32 %v26712_v6, %v14094_v45  ;;  %v22669_v6 = vld [vmem:[%s30204_s3 + $0x1d70] ss:$52 sps:$4 sm:$0xff]  }
 0x7e5   :  { %19501 = vmatpush3.bf16.msra.mxu1 %v22660_v0  ;;  %19480 = vmatprep.subr.bf16.mxu0 %v22661_v61  ;;  %v14184_v0 = vadd.f32 %v26936_v56, %v14141_v58  ;;  %v22668_v61 = vld [vmem:[%s30204_s3 + $0x2118] ss:$52 sps:$4 sm:$0xff]   ;;  %v29662_v58 = vpop.f32.mrf.mxu1 }
 0x7e6   :  { %19502 = vmatprep.subr.bf16.mxu1 %v22662_v23  ;;  %v7274_v23 = vrot.slane %v29562_v12, %v25313_v28  ;;  %v14180_v56 = vadd.f32 %v26720_v57, %v14137_v8  ;;  %v22672_v57 = vld [vmem:[%s30204_s3 + $0x20b0] ss:$52 sps:$4 sm:$0xff]   ;;  %v22673_v8 = vld [vmem:[%s30206_s5 + $0x78] sm:$0xff]  }
 0x7e8   :  { %19481 = vmatpush3.bf16.msra.mxu0 %v22663_v24  ;;  %v14227_v24 = vadd.f32 %v26968_v50, %v14184_v0  ;;  %v14270_v45 = vadd.f32 %v27118_v43, %v7274_v23  ;;  %v14266_v50 = vadd.f32 %v26960_v48, %v7274_v23  ;;  %v22674_v48 = vld [vmem:[%s30204_s3 + $0x2868] ss:$52 sps:$4 sm:$0xff]   ;;  %v30234_v23 = vmov 0.0  }
 0x7e9   :  { %19503 = vmatpush3.bf16.msra.mxu1 %v22664_v22  ;;  %19482 = vmatprep.subr.bf16.mxu0 %v22665_v25  ;;  %v29664_v22 = vpop.f32.mrf.mxu0  ;;  %v22671_v25 = vld [vmem:[%s30204_s3 + $0x1a30] ss:$52 sps:$4 sm:$0xff]  }
 0x7ea   :  { %19504 = vmatprep.subr.bf16.mxu1 %v22666_v60  ;;  %v14223_v60 = vadd.f32 %v26779_v20, %v14180_v56  ;;  %v14313_v43 = vadd.f32 %v27178_v2, %v14270_v45  ;;  %v14309_v0 = vadd.f32 %v26990_v30, %v14266_v50  ;;  %v22676_v45 = vld [vmem:[%s30206_s5 + $0x70] sm:$0xff]  }
 0x7ec   :  { %19483 = vmatpush3.bf16.msra.mxu0 %v22667_v52  ;;  %v16035_v52 = vmax.f32 %v14227_v24, 0.0  ;;  %v14356_v20 = vadd.f32 %v27328_v16, %v14313_v43  ;;  %v16022_v2 = vmax.f32 %v14223_v60, 0.0  ;;  %v14352_v30 = vadd.f32 %v27133_v26, %v14309_v0  ;;  %v22677_v26 = vld [vmem:[%s30204_s3 + $0x2800] ss:$52 sps:$4 sm:$0xff]   ;;  %v22681_v0 = vld [vmem:[%s30206_s5 + $0x28] sm:$0xff]  }
 0x7ed   :  { %19505 = vmatpush3.bf16.msra.mxu1 %v22668_v61  ;;  %19484 = vmatprep.subr.bf16.mxu0 %v22669_v6  ;;  %v29680_v61 = vpop.f32.mrf.mxu1  ;;  %v29682_v6 = vpop.f32.mrf.mxu0  ;;  %v30235_v43 = vsub.s32 5, %v23667_v17 }
 0x7ee   :  { %19506 = vmatprep.subr.bf16.mxu1 %v22670_v35  ;;  %v22675_v35 = vld [vmem:[%s30206_s5 + $0x38] sm:$0xff]   ;;  %v14399_v16 = vadd.f32 %v27382_v39, %v14356_v20  ;;  %v14395_v60 = vadd.f32 %v27200_v34, %v14352_v30  ;;  %v22678_v39 = vld [vmem:[%s30206_s5 + $0x30] sm:$0xff]  }
 0x7ef   :  { %v29693_v56 = vpop.f32.mrf.mxu1  ;;  %v29695_v24 = vpop.f32.mrf.mxu0  ;;  %v22683_v30 = vld [vmem:[%s30204_s3 + $0x2730] ss:$52 sps:$4 sm:$0xff]  }
 0x7f0   :  { %19485 = vmatpush3.bf16.msra.mxu0 %v22671_v25  ;;  %v16048_v25 = vpack.c.bf16 %v16035_v52, %v16022_v2  ;;  %v14438_v50 = vadd.f32 %v27343_v27, %v14395_v60 }
 0x7f1   :  { %19507 = vmatpush3.bf16.msra.mxu1 %v22672_v57  ;;  %19676 = vmatprep.subr.bf16.mxu0 %v30234_v23  ;;  %v14442_v57 = vadd.f32 %v27384_v31, %v14399_v16  ;;  %v29712_v34 = vpop.f32.mrf.mxu1  ;;  %v29714_v31 = vpop.f32.mrf.mxu0  ;;  %v22684_v16 = vld [vmem:[%s30206_s5 + $0x20] sm:$0xff]  }
 0x7f2   :  { %19519 = vmatprep.subr.bf16.mxu1 %v22673_v8  ;;  %v7282_v8 = vrot.slane %v29562_v12, %v30235_v43  ;;  %v14481_v27 = vadd.f32 %v27401_v9, %v14438_v50  ;;  %v22682_v9 = vld [vmem:[%s30206_s5 + $0x60] sm:$0xff]   ;;  %v30237_v43 = vld [vmem:[#allocation7_spill] sm:$0xff] }
 0x7f3   :  { %15931 = vmatmul.mubr.bf16.vlgmr.msra.gmra.mxu0 %v25548_v1  ;;  %v14485_v1 = vadd.f32 %v27595_v44, %v14442_v57  ;;  %v22680_v44 = vld [vmem:[%s30204_s3 + $0x2798] ss:$52 sps:$4 sm:$0xff]   ;;  %v29737_v2 = vpop.f32.mrf.mxu0  ;;  %v30236_v57 = vld [vmem:[#allocation8_spill] sm:$0xff] }
 0x7f4   :  { %15972 = vmatmul.mubr.bf16.vlgmr.msra.gmra.mxu1 %v26079_v32  ;;  %19677 = vmatpush3.bf16.msra.mxu0 %v22674_v48  ;;  %v22679_v32 = vld [vmem:[%s30206_s5 + $0x68] sm:$0xff]   ;;  %v14571_v52 = vadd.f32 %v27803_v51, %v7282_v8  ;;  %v29735_v48 = vpop.f32.mrf.mxu1  ;;  %v14567_v51 = vadd.f32 %v27613_v36, %v7282_v8  ;;  %v22686_v36 = vld [vmem:[%s30206_s5 + $0xf8] sm:$0xff]  }
 0x7f5   :  { %19520 = vmatpush3.bf16.msra.mxu1 %v22675_v35  ;;  %16902 = vmatprep.mubr.bf16.mxu1 %v16048_v25  ;;  %v14528_v20 = vadd.f32 %v27600_v7, %v14485_v1  ;;  %v14524_v35 = vadd.f32 %v27403_v40, %v14481_v27  ;;  %v29757_v25 = vpop.f32.mrf.mxu0  ;;  %v22690_v27 = vld [vmem:[%s30206_s5 + $0xf0] sm:$0xff]  }
 0x7f6   :  { %19678 = vmatprep.subr.bf16.mxu0 %v30234_v23  ;;  %19521 = vmatprep.subr.bf16.mxu1 %v22676_v45  ;;  %v14614_v7 = vadd.f32 %v27814_v46, %v14571_v52  ;;  %v29755_v40 = vpop.f32.mrf.mxu1  ;;  %v22685_v46 = vld [vmem:[%s30206_s5 + $0x58] sm:$0xff]   ;;  %v14610_v60 = vadd.f32 %v27623_v10, %v14567_v51  ;;  %v22689_v52 = vld [vmem:[%s30206_s5 + $0x50] sm:$0xff]  }
 0x7f7   :  { %19684 = vmatprep.mubr.msk.bf16.mxu0 %vm22807_vm0, %v30234_v23  ;;  %v16037_v45 = vmax.f32 %v14528_v20, 0.0  ;;  %v29766_v1 = vpop.f32.mrf.mxu0  ;;  %v22687_v10 = vld [vmem:[%s30206_s5 + $0x18] sm:$0xff]  }
 0x7f8   :  { %19679 = vmatpush3.bf16.msra.mxu0 %v22677_v26  ;;  %v14657_v26 = vadd.f32 %v30236_v57, %v14614_v7  ;;  %v29764_v50 = vpop.f32.mrf.mxu1  ;;  %v14653_v8 = vadd.f32 %v30237_v43, %v14610_v60  ;;  %v30241_v60 = vld [vmem:[#allocation10_spill] sm:$0xff] }
 0x7f9   :  { %19522 = vmatpush3.bf16.msra.mxu1 %v22678_v39  ;;  %19680 = vmatprep.subr.bf16.mxu0 %v30234_v23  ;;  %v16024_v39 = vmax.f32 %v14524_v35, 0.0  ;;  %v29786_v51 = vpop.f32.mrf.mxu0  ;;  %v22692_v35 = vld [vmem:[%s30206_s5 + $0xb0] sm:$0xff]  }
 0x7fa   :  { %19523 = vmatprep.subr.bf16.mxu1 %v22679_v32  ;;  %v22688_v32 = vld [vmem:[%s30206_s5 + $0xb8] sm:$0xff]  }
 0x7fc   :  { %19681 = vmatpush3.bf16.msra.mxu0 %v22680_v44  ;;  %v16050_v44 = vpack.c.bf16 %v16037_v45, %v16024_v39  ;;  %v22694_v45 = vld [vmem:[%s30206_s5 + $0xe8] sm:$0xff]   ;;  %v29805_v39 = vpop.f32.mrf.mxu0 }
 0x7fd   :  { %19524 = vmatpush3.bf16.msra.mxu1 %v22681_v0  ;;  %19682 = vmatprep.subr.bf16.mxu0 %v30234_v23  ;;  %v30238_v0 = vld [vmem:[#allocation11_spill] sm:$0xff] }
 0x7fe   :  { %19525 = vmatprep.subr.bf16.mxu1 %v22682_v9  ;;  %v14700_v20 = vadd.f32 %v30238_v0, %v14657_v26  ;;  %v29784_v9 = vpop.f32.mrf.mxu1 }
 0x800   :  { %19683 = vmatpush3.bf16.msra.mxu0 %v22683_v30  ;;  %v30239_v30 = vld [vmem:[#allocation9_spill] sm:$0xff]  ;;  %v29803_v26 = vpop.f32.mrf.mxu1 }
 0x801   :  { %19526 = vmatpush3.bf16.msra.mxu1 %v22684_v16  ;;  %19541 = vmatprep.subr.bf16.mxu0 %v22686_v36  ;;  %v14696_v7 = vadd.f32 %v30239_v30, %v14653_v8  ;;  %v30240_v16 = vld [vmem:[#allocation13_spill] sm:$0xff]  ;;  %v22695_v8 = vld [vmem:[%s30206_s5 + $0x8] sm:$0xff]  }
 0x802   :  { %19527 = vmatprep.subr.bf16.mxu1 %v22685_v46  ;;  %v14743_v36 = vadd.f32 %v30240_v16, %v14700_v20  ;;  %v22693_v46 = vld [vmem:[%s30206_s5 + $0x48] sm:$0xff]   ;;  %v29826_v30 = vpop.f32.mrf.mxu1  ;;  %v22700_v16 = vld [vmem:[%s30206_s5 + $0xa0] sm:$0xff]  }
 0x803   :  { %19685 = vmatmul.mubr.msk.bf16.vlgmr.msra.gmra.mxu0 %vm13924_vm1, %v26130_v21  ;;  %v22691_v21 = vld [vmem:[%s30206_s5 + $0x10] sm:$0xff]   ;;  %v14739_v57 = vadd.f32 %v30241_v60, %v14696_v7  ;;  %v29828_v7 = vpop.f32.mrf.mxu0 }
 0x804   :  { %19542 = vmatpush3.bf16.msra.mxu0 %v22688_v32  ;;  %16943 = vmatprep.mubr.bf16.mxu0 %v16050_v44  ;;  %v22696_v32 = vld [vmem:[%s30206_s5 + $0xa8] sm:$0xff]   ;;  %v14786_v43 = vadd.f32 %v29483_v62, %v14743_v36  ;;  %v30243_v62 = vld [vmem:[#allocation12_spill] sm:$0xff]  ;;  %v30244_v36 = vld [vmem:[#allocation14_spill] sm:$0xff]  ;;  %v29842_v60 = vpop.f32.mrf.mxu1 }
 0x805   :  { %19528 = vmatpush3.bf16.msra.mxu1 %v22687_v10  ;;  %19543 = vmatprep.subr.bf16.mxu0 %v22690_v27  ;;  %v22698_v10 = vld [vmem:[%s30206_s5 + $0xe0] sm:$0xff]   ;;  %v30242_v27 = vsub.s32 7, %v23667_v17  ;;  %v14782_v0 = vadd.f32 %v30243_v62, %v14739_v57  ;;  %v29844_v57 = vpop.f32.mrf.mxu0 }
 0x806   :  { %19529 = vmatprep.subr.bf16.mxu1 %v22689_v52  ;;  %v22697_v52 = vld [vmem:[%s30206_s5 + $0x40] sm:$0xff]   ;;  %v14829_v20 = vadd.f32 %v29485_v3, %v14786_v43  ;;  %v22701_v3 = vld [vmem:[%s30206_s5 + $0xd8] sm:$0xff]   ;;  %v29859_v62 = vpop.f32.mrf.mxu1 }
 0x807   :  { %v7290_v44 = vrot.slane %v29562_v12, %v30242_v27  ;;  %v22704_v27 = vld [vmem:[%s30206_s5 + $0x138] sm:$0xff]  }
 0x808   :  { %19544 = vmatpush3.bf16.msra.mxu0 %v22692_v35  ;;  %v16039_v43 = vmax.f32 %v14829_v20, 0.0 }
 0x809   :  { %19530 = vmatpush3.bf16.msra.mxu1 %v22691_v21  ;;  %19545 = vmatprep.subr.bf16.mxu0 %v22694_v45  ;;  %v14872_v35 = vadd.f32 %v29536_v33, %v7290_v44  ;;  %v14825_v21 = vadd.f32 %v30244_v36, %v14782_v0  ;;  %v22699_v45 = vld [vmem:[%s30206_s5] sm:$0xff]   ;;  %v14868_v33 = vadd.f32 %v29506_v38, %v7290_v44  ;;  %v22703_v38 = vld [vmem:[%s30206_s5 + $0x98] sm:$0xff]   ;;  %v22706_v0 = vld [vmem:[%s30206_s5 + $0x170] sm:$0xff]  }
 0x80a   :  { %19531 = vmatprep.subr.bf16.mxu1 %v22693_v46  ;;  %v22708_v36 = vld [vmem:[%s30206_s5 + $0x130] sm:$0xff]  }
 0x80b   :  { %v14915_v46 = vadd.f32 %v29538_v18, %v14872_v35  ;;  %v16026_v18 = vmax.f32 %v14825_v21, 0.0  ;;  %v22709_v21 = vld [vmem:[%s30206_s5 + $0xc8] sm:$0xff]  }
 0x80c   :  { %19546 = vmatpush3.bf16.msra.mxu0 %v22696_v32  ;;  %v22702_v32 = vld [vmem:[%s30206_s5 + $0x178] sm:$0xff]  }
 0x80d   :  { %19532 = vmatpush3.bf16.msra.mxu1 %v22695_v8  ;;  %19547 = vmatprep.subr.bf16.mxu0 %v22698_v10  ;;  %v14911_v8 = vadd.f32 %v29508_v47, %v14868_v33  ;;  %v14958_v10 = vadd.f32 %v29613_v19, %v14915_v46  ;;  %v29861_v47 = vpop.f32.mrf.mxu0  ;;  %v22705_v19 = vld [vmem:[%s30206_s5 + $0xd0] sm:$0xff]   ;;  %v16052_v20 = vpack.c.bf16 %v16039_v43, %v16026_v18  ;;  %v22710_v46 = vld [vmem:[%s30206_s5 + $0x168] sm:$0xff]   ;;  %v22714_v18 = vld [vmem:[%s30206_s5 + $0x160] sm:$0xff]  }
 0x80e   :  { %19533 = vmatprep.subr.bf16.mxu1 %v22697_v52 }
 0x80f   :  { %v14954_v44 = vadd.f32 %v29576_v15, %v14911_v8  ;;  %v15001_v52 = vadd.f32 %v29615_v41, %v14958_v10  ;;  %v22707_v41 = vld [vmem:[%s30206_s5 + $0x90] sm:$0xff]   ;;  %v29890_v33 = vpop.f32.mrf.mxu0  ;;  %v22712_v8 = vld [vmem:[%s30206_s5 + $0x128] sm:$0xff]   ;;  %v22713_v10 = vld [vmem:[%s30206_s5 + $0xc0] sm:$0xff]  }
 0x810   :  { %19548 = vmatpush3.bf16.msra.mxu0 %v22700_v16  ;;  %v30245_v16 = vld [vmem:[#allocation5_spill] sm:$0xff] }
 0x811   :  { %19534 = vmatpush3.bf16.msra.mxu1 %v22699_v45  ;;  %19549 = vmatprep.subr.bf16.mxu0 %v22701_v3  ;;  %v14997_v35 = vadd.f32 %v29578_v29, %v14954_v44  ;;  %v15044_v15 = vadd.f32 %v29680_v61, %v15001_v52  ;;  %v29886_v45 = vld [vmem:[%s30205_s4 + $0x8] sm:$0x1f]  ;;  %v29888_v3 = vpop.f32.mrf.mxu1 }
 0x812   :  { %19563 = vmatprep.subr.bf16.mxu1 %v22702_v32  ;;  %v22711_v32 = vld [vmem:[%s30206_s5 + $0x88] sm:$0xff]  }
 0x813   :  { %v15040_v29 = vadd.f32 %v29640_v55, %v14997_v35  ;;  %v15087_v61 = vadd.f32 %v29682_v6, %v15044_v15  ;;  %v7298_v55 = vrot.slane %v29886_v45, %v25305_v49 }
 0x814   :  { %16903 = vmatmul.mubr.bf16.vlgmr.msra.gmra.mxu1 %v30245_v16  ;;  %19550 = vmatpush3.bf16.msra.mxu0 %v22703_v38  ;;  %v15344_v38 = vpop.f32.mrf.mxu0 }
 0x815   :  { %19564 = vmatpush3.bf16.msra.mxu1 %v22704_v27  ;;  %16984 = vmatprep.mubr.bf16.mxu1 %v16052_v20  ;;  %v15083_v6 = vadd.f32 %v29642_v5, %v15040_v29  ;;  %v15173_v43 = vadd.f32 %v29757_v25, %v7298_v55  ;;  %v15130_v49 = vadd.f32 %v29755_v40, %v15087_v61  ;;  %v15301_v5 = vpop.f32.mrf.mxu1  ;;  %v22715_v40 = vld [vmem:[%s30206_s5 + $0x80] sm:$0xff]   ;;  %v22717_v20 = vld [vmem:[%s30206_s5 + $0x158] sm:$0xff]   ;;  %v22721_v61 = vld [vmem:[%s30206_s5 + $0x150] sm:$0xff]  }
 0x816   :  { %19551 = vmatprep.subr.bf16.mxu0 %v22705_v19  ;;  %19565 = vmatprep.subr.bf16.mxu1 %v22706_v0  ;;  %v15169_v25 = vadd.f32 %v29714_v31, %v7298_v55  ;;  %v29916_v52 = vpop.f32.mrf.mxu0  ;;  %v22716_v0 = vld [vmem:[%s30206_s5 + $0x120] sm:$0xff]   ;;  %v22719_v29 = vld [vmem:[%s30206_s5 + $0x118] sm:$0xff]  }
 0x817   :  { %v15126_v27 = vadd.f32 %v29712_v34, %v15083_v6  ;;  %v29914_v44 = vpop.f32.mrf.mxu1  ;;  %v15216_v19 = vadd.f32 %v29826_v30, %v15173_v43  ;;  %v22718_v34 = vld [vmem:[%s30206_s5 + $0x1f8] sm:$0xff]   ;;  %v16041_v31 = vmax.f32 %v15130_v49, 0.0  ;;  %v30246_v55 = vld [vmem:[#allocation6_spill] sm:$0xff]  ;;  %v22726_v49 = vld [vmem:[%s30206_s5 + $0x1e8] sm:$0xff]  }
 0x818   :  { %19552 = vmatpush3.bf16.msra.mxu0 %v22707_v41  ;;  %v15212_v35 = vadd.f32 %v29784_v9, %v15169_v25  ;;  %v15426_v41 = vpop.f32.mrf.mxu0  ;;  %v22722_v9 = vld [vmem:[%s30206_s5 + $0x1f0] sm:$0xff]  }
 0x819   :  { %19566 = vmatpush3.bf16.msra.mxu1 %v22708_v36  ;;  %19553 = vmatprep.subr.bf16.mxu0 %v22709_v21  ;;  %v15259_v30 = vadd.f32 %v29828_v7, %v15216_v19  ;;  %v16028_v15 = vmax.f32 %v15126_v27, 0.0  ;;  %v15383_v16 = vpop.f32.mrf.mxu1  ;;  %v22720_v36 = vld [vmem:[%s30206_s5 + $0x1b8] sm:$0xff]   ;;  %v30247_v27 = vsub.s32 6, %v23667_v17  ;;  %v22729_v17 = vld [vmem:[%s30206_s5 + $0x140] sm:$0xff]  }
 0x81a   :  { %19567 = vmatprep.subr.bf16.mxu1 %v22710_v46  ;;  %v15255_v21 = vadd.f32 %v29786_v51, %v15212_v35  ;;  %v29949_v6 = vpop.f32.mrf.mxu0  ;;  %v22732_v35 = vld [vmem:[%s30206_s5 + $0x1a0] sm:$0xff]  }
 0x81b   :  { %v16054_v7 = vpack.c.bf16 %v16041_v31, %v16028_v15  ;;  %v15302_v46 = vadd.f32 %v15301_v5, %v15259_v30  ;;  %v29947_v51 = vpop.f32.mrf.mxu1  ;;  %v22725_v5 = vld [vmem:[%s30206_s5 + $0x148] sm:$0xff]  }
 0x81c   :  { %19554 = vmatpush3.bf16.msra.mxu0 %v22711_v32  ;;  %v22724_v32 = vld [vmem:[%s30206_s5 + $0x1b0] sm:$0xff]   ;;  %v15298_v43 = vadd.f32 %v29859_v62, %v15255_v21  ;;  %v15430_v62 = vpop.f32.mrf.mxu0  ;;  %v22731_v21 = vld [vmem:[%s30206_s5 + $0x100] sm:$0xff]  }
 0x81d   :  { %19568 = vmatpush3.bf16.msra.mxu1 %v22712_v8  ;;  %19555 = vmatprep.subr.bf16.mxu0 %v22713_v10  ;;  %v15345_v8 = vadd.f32 %v15344_v38, %v15302_v46  ;;  %v22723_v10 = vld [vmem:[%s30206_s5 + $0x110] sm:$0xff]   ;;  %v15387_v25 = vpop.f32.mrf.mxu1  ;;  %v22728_v38 = vld [vmem:[%s30206_s5 + $0x1a8] sm:$0xff]  }
 0x81e   :  { %19569 = vmatprep.subr.bf16.mxu1 %v22714_v18  ;;  %v15341_v18 = vadd.f32 %v29861_v47, %v15298_v43  ;;  %v22730_v47 = vld [vmem:[%s30206_s5 + $0x1e0] sm:$0xff]  }
 0x81f   :  { %v15388_v19 = vadd.f32 %v15387_v25, %v15345_v8  ;;  %v30248_v8 = vld [vmem:[#allocation15_spill] sm:$0xff] }
 0x820   :  { %19556 = vmatpush3.bf16.msra.mxu0 %v22715_v40  ;;  %v7286_v40 = vrot.slane %v29562_v12, %v30247_v27  ;;  %v15384_v31 = vadd.f32 %v15383_v16, %v15341_v18  ;;  %v30249_v18 = vld [vmem:[#allocation2_spill] sm:$0xff] }
 0x821   :  { %19570 = vmatpush3.bf16.msra.mxu1 %v22716_v0  ;;  %19585 = vmatprep.subr.bf16.mxu0 %v22718_v34  ;;  %v22727_v0 = vld [vmem:[%s30206_s5 + $0x108] sm:$0xff]   ;;  %v29977_v34 = vpop.f32.mrf.mxu1  ;;  %v7294_v25 = vrot.slane %v29886_v45, %v30249_v18 }
 0x822   :  { %19571 = vmatprep.subr.bf16.mxu1 %v22717_v20  ;;  %v14870_v12 = vadd.f32 %v29525_v63, %v7286_v40  ;;  %v15431_v20 = vadd.f32 %v15430_v62, %v15388_v19  ;;  %v14866_v30 = vadd.f32 %v29493_v4, %v7286_v40  ;;  %v22733_v63 = vld [vmem:[%s30206_s5 + $0x1d8] sm:$0xff]   ;;  %v22743_v19 = vld [vmem:[%s30206_s5 + $0x188] sm:$0xff]  }
 0x823   :  { %16944 = vmatmul.mubr.bf16.vlgmr.msra.gmra.mxu0 %v30246_v55  ;;  %v29994_v16 = vpop.f32.mrf.mxu1  ;;  %v22734_v4 = vld [vmem:[%s30206_s5 + $0x278] sm:$0xff]   ;;  %v15171_v27 = vadd.f32 %v29737_v2, %v7294_v25  ;;  %v15167_v2 = vadd.f32 %v29695_v24, %v7294_v25  ;;  %v22748_v24 = vld [vmem:[%s30206_s5 + $0x220] sm:$0xff]  }
 0x824   :  { %19586 = vmatpush3.bf16.msra.mxu0 %v22720_v36  ;;  %17025 = vmatprep.mubr.bf16.mxu0 %v16054_v7  ;;  %v14913_v15 = vadd.f32 %v29527_v42, %v14870_v12  ;;  %v15427_v36 = vadd.f32 %v15426_v41, %v15384_v31  ;;  %v14909_v42 = vadd.f32 %v29495_v14, %v14866_v30  ;;  %v22736_v55 = vld [vmem:[%s30206_s5 + $0x238] sm:$0xff]   ;;  %v22761_v25 = vld [vmem:[%s30206_s5 + $0x240] sm:$0xff]  }
 0x825   :  { %19572 = vmatpush3.bf16.msra.mxu1 %v22719_v29  ;;  %19587 = vmatprep.subr.bf16.mxu0 %v22722_v9  ;;  %v16043_v29 = vmax.f32 %v15431_v20, 0.0  ;;  %v22735_v9 = vld [vmem:[%s30206_s5 + $0x198] sm:$0xff]   ;;  %v30009_v14 = vpop.f32.mrf.mxu1  ;;  %v15214_v31 = vadd.f32 %v29803_v26, %v15171_v27  ;;  %v15210_v26 = vadd.f32 %v29764_v50, %v15167_v2  ;;  %v22764_v27 = vld [vmem:[%s30206_s5 + $0x2a0] sm:$0xff]  }
 0x826   :  { %19573 = vmatprep.subr.bf16.mxu1 %v22721_v61  ;;  %v14956_v41 = vadd.f32 %v29594_v54, %v14913_v15  ;;  %v14952_v7 = vadd.f32 %v29551_v37, %v14909_v42  ;;  %v16030_v46 = vmax.f32 %v15427_v36, 0.0  ;;  %v22737_v54 = vld [vmem:[%s30206_s5 + $0x1d0] sm:$0xff]   ;;  %v22749_v36 = vld [vmem:[%s30206_s5 + $0x258] sm:$0xff]  }
 0x827   :  { %v22738_v37 = vld [vmem:[%s30206_s5 + $0x270] sm:$0xff]   ;;  %v30033_v62 = vpop.f32.mrf.mxu1  ;;  %v15257_v15 = vadd.f32 %v29805_v39, %v15214_v31  ;;  %v22751_v50 = vld [vmem:[%s30206_s5 + $0x218] sm:$0xff]  }
 0x828   :  { %19588 = vmatpush3.bf16.msra.mxu0 %v22724_v32  ;;  %v14999_v61 = vadd.f32 %v29596_v11, %v14956_v41  ;;  %v14995_v11 = vadd.f32 %v29553_v53, %v14952_v7  ;;  %v16056_v43 = vpack.c.bf16 %v16043_v29, %v16030_v46  ;;  %v22740_v53 = vld [vmem:[%s30206_s5 + $0x230] sm:$0xff]   ;;  %v22752_v41 = vld [vmem:[%s30206_s5 + $0x2b8] sm:$0xff]  }
 0x829   :  { %19574 = vmatpush3.bf16.msra.mxu1 %v22723_v10  ;;  %19589 = vmatprep.subr.bf16.mxu0 %v22726_v49  ;;  %v22739_v10 = vld [vmem:[%s30206_s5 + $0x190] sm:$0xff]   ;;  %v30042_v40 = vpop.f32.mrf.mxu1 }
 0x82a   :  { %19575 = vmatprep.subr.bf16.mxu1 %v22725_v5  ;;  %v15042_v32 = vadd.f32 %v29662_v58, %v14999_v61  ;;  %v15038_v49 = vadd.f32 %v29621_v13, %v14995_v11  ;;  %v22741_v58 = vld [vmem:[%s30206_s5 + $0x1c8] sm:$0xff]   ;;  %v22754_v39 = vld [vmem:[%s30206_s5 + $0x2f0] sm:$0xff]  }
 0x82b   :  { %v22742_v13 = vld [vmem:[%s30206_s5 + $0x268] sm:$0xff]   ;;  %v30062_v20 = vpop.f32.mrf.mxu1 }
 0x82c   :  { %19590 = vmatpush3.bf16.msra.mxu0 %v22728_v38  ;;  %v15085_v5 = vadd.f32 %v29664_v22, %v15042_v32  ;;  %v15081_v22 = vadd.f32 %v29623_v59, %v15038_v49  ;;  %v30039_v38 = vpop.f32.mrf.mxu0  ;;  %v22745_v59 = vld [vmem:[%s30206_s5 + $0x1c0] sm:$0xff]   ;;  %v22757_v32 = vld [vmem:[%s30206_s5 + $0x248] sm:$0xff]  }
 0x82d   :  { %19576 = vmatpush3.bf16.msra.mxu1 %v22727_v0  ;;  %19591 = vmatprep.subr.bf16.mxu0 %v22730_v47  ;;  %v22744_v47 = vld [vmem:[%s30206_s5 + $0x228] sm:$0xff]   ;;  %v30079_v42 = vpop.f32.mrf.mxu1 }
 0x82e   :  { %19577 = vmatprep.subr.bf16.mxu1 %v22729_v17  ;;  %v15128_v0 = vadd.f32 %v29735_v48, %v15085_v5  ;;  %v22746_v17 = vld [vmem:[%s30206_s5 + $0x260] sm:$0xff]   ;;  %v15124_v12 = vadd.f32 %v29693_v56, %v15081_v22  ;;  %v30059_v48 = vpop.f32.mrf.mxu0  ;;  %v22750_v56 = vld [vmem:[%s30206_s5 + $0x2f8] sm:$0xff]   ;;  %v30250_v49 = vld [vmem:[#allocation3_spill] sm:$0xff] }
 0x82f   :  { %v7302_v5 = vrot.slane %v29886_v45, %v30250_v49 }
 0x830   :  { %19592 = vmatpush3.bf16.msra.mxu0 %v22732_v35  ;;  %v22747_v35 = vld [vmem:[%s30206_s5 + $0x180] sm:$0xff]   ;;  %v16040_v30 = vmax.f32 %v15128_v0, 0.0 }
 0x831   :  { %19578 = vmatpush3.bf16.msra.mxu1 %v22731_v21  ;;  %19593 = vmatprep.subr.bf16.mxu0 %v22733_v63  ;;  %v16027_v21 = vmax.f32 %v15124_v12, 0.0  ;;  %v15514_v63 = vpop.f32.mrf.mxu0 }
 0x832   :  { %19607 = vmatprep.subr.bf16.mxu1 %v22734_v4  ;;  %v15253_v4 = vadd.f32 %v29766_v1, %v15210_v26  ;;  %v15300_v1 = vadd.f32 %v29888_v3, %v15257_v15  ;;  %v22755_v3 = vld [vmem:[%s30206_s5 + $0x210] sm:$0xff]  }
 0x833   :  { %v16053_v29 = vpack.c.bf16 %v16040_v30, %v16027_v21  ;;  %v15516_v7 = vpop.f32.mrf.mxu0 }
 0x834   :  { %16985 = vmatmul.mubr.bf16.vlgmr.msra.gmra.mxu1 %v30248_v8  ;;  %19594 = vmatpush3.bf16.msra.mxu0 %v22735_v9  ;;  %v22753_v9 = vld [vmem:[%s30206_s5 + $0x250] sm:$0xff]   ;;  %v15296_v61 = vadd.f32 %v29842_v60, %v15253_v4  ;;  %v15343_v46 = vadd.f32 %v29890_v33, %v15300_v1  ;;  %v22758_v60 = vld [vmem:[%s30206_s5 + $0x2e8] sm:$0xff]   ;;  %v7306_v8 = vrot.slane %v29886_v45, %v25313_v28 }
 0x835   :  { %19608 = vmatpush3.bf16.msra.mxu1 %v22736_v55  ;;  %17066 = vmatprep.mubr.bf16.mxu1 %v16056_v43  ;;  %v30096_v55 = vpop.f32.mrf.mxu1 }
 0x836   :  { %19595 = vmatprep.subr.bf16.mxu0 %v22737_v54  ;;  %19609 = vmatprep.subr.bf16.mxu1 %v22738_v37  ;;  %v22756_v54 = vld [vmem:[%s30206_s5 + $0x2b0] sm:$0xff]   ;;  %v15596_v37 = vpop.f32.mrf.mxu0  ;;  %v15339_v33 = vadd.f32 %v29844_v57, %v15296_v61  ;;  %v15386_v43 = vadd.f32 %v29947_v51, %v15343_v46  ;;  %v22762_v51 = vld [vmem:[%s30206_s5 + $0x2e0] sm:$0xff]   ;;  %v15470_v22 = vadd.f32 %v29994_v16, %v7306_v8 }
 0x837   :  { %v15472_v16 = vadd.f32 %v30009_v14, %v7302_v5 }
 0x838   :  { %19596 = vmatpush3.bf16.msra.mxu0 %v22739_v10  ;;  %v22760_v10 = vld [vmem:[%s30206_s5 + $0x2a8] sm:$0xff]   ;;  %v15598_v57 = vpop.f32.mrf.mxu0  ;;  %v15382_v28 = vadd.f32 %v29914_v44, %v15339_v33 }
 0x839   :  { %19610 = vmatpush3.bf16.msra.mxu1 %v22740_v53  ;;  %19597 = vmatprep.subr.bf16.mxu0 %v22741_v58  ;;  %v22759_v53 = vld [vmem:[%s30206_s5 + $0x208] sm:$0xff]   ;;  %v15429_v58 = vadd.f32 %v29949_v6, %v15386_v43  ;;  %v22763_v6 = vld [vmem:[%s30206_s5 + $0x200] sm:$0xff]   ;;  %v15515_v12 = vadd.f32 %v15514_v63, %v15472_v16 }
 0x83a   :  { %19611 = vmatprep.subr.bf16.mxu1 %v22742_v13  ;;  %v15425_v13 = vadd.f32 %v29916_v52, %v15382_v28  ;;  %v15600_v44 = vpop.f32.mrf.mxu0  ;;  %v22765_v52 = vld [vmem:[%s30206_s5 + $0x2d8] sm:$0xff]   ;;  %v22776_v28 = vld [vmem:[%s30206_s5 + $0x300] sm:$0xff]  }
 0x83b   :  { %v16042_v0 = vmax.f32 %v15429_v58, 0.0 }
 0x83c   :  { %19598 = vmatpush3.bf16.msra.mxu0 %v22743_v19  ;;  %v15468_v19 = vadd.f32 %v29977_v34, %v7302_v5  ;;  %v16029_v2 = vmax.f32 %v15425_v13, 0.0  ;;  %v15602_v14 = vpop.f32.mrf.mxu0 }
 0x83d   :  { %19612 = vmatpush3.bf16.msra.mxu1 %v22744_v47  ;;  %19599 = vmatprep.subr.bf16.mxu0 %v22745_v59  ;;  %v15513_v47 = vadd.f32 %v30059_v48, %v15470_v22 }
 0x83e   :  { %19613 = vmatprep.subr.bf16.mxu1 %v22746_v17  ;;  %v15511_v34 = vadd.f32 %v30039_v38, %v15468_v19  ;;  %v15474_v17 = vadd.f32 %v30033_v62, %v7306_v8  ;;  %v22767_v38 = vld [vmem:[%s30206_s5 + $0x2d0] sm:$0xff]   ;;  %v22773_v62 = vld [vmem:[%s30206_s5 + $0x318] sm:$0xff]   ;;  %v16055_v48 = vpack.c.bf16 %v16042_v0, %v16029_v2 }
 0x83f   :  { %v15556_v31 = vadd.f32 %v30062_v20, %v15513_v47 }
 0x840   :  { %19600 = vmatpush3.bf16.msra.mxu0 %v22747_v35  ;;  %v22766_v35 = vld [vmem:[%s30206_s5 + $0x298] sm:$0xff]   ;;  %v15554_v30 = vadd.f32 %v30042_v40, %v15511_v34  ;;  %v15517_v20 = vadd.f32 %v15516_v7, %v15474_v17 }
 0x841   :  { %19614 = vmatpush3.bf16.msra.mxu1 %v22748_v24  ;;  %19629 = vmatprep.subr.bf16.mxu0 %v22750_v56  ;;  %v15558_v24 = vadd.f32 %v30079_v42, %v15515_v12  ;;  %v15599_v56 = vadd.f32 %v15598_v57, %v15556_v31  ;;  %v22769_v42 = vld [vmem:[%s30206_s5 + $0x2c8] sm:$0xff]   ;;  %v30251_v31 = vld [vmem:[#allocation4_spill] sm:$0xff] }
 0x842   :  { %19615 = vmatprep.subr.bf16.mxu1 %v22749_v36  ;;  %v15597_v40 = vadd.f32 %v15596_v37, %v15554_v30  ;;  %v15560_v36 = vadd.f32 %v30096_v55, %v15517_v20 }
 0x843   :  { %17026 = vmatmul.mubr.bf16.vlgmr.msra.gmra.mxu0 %v16053_v29  ;;  %v15601_v21 = vadd.f32 %v15600_v44, %v15558_v24 }
 0x844   :  { %19630 = vmatpush3.bf16.msra.mxu0 %v22752_v41  ;;  %v15639_v11 = vpop.f32.mrf.mxu1  ;;  %v22768_v41 = vld [vmem:[%s30206_s5 + $0x290] sm:$0xff]   ;;  %v15603_v1 = vadd.f32 %v15602_v14, %v15560_v36 }
 0x845   :  { %19616 = vmatpush3.bf16.msra.mxu1 %v22751_v50  ;;  %19631 = vmatprep.subr.bf16.mxu0 %v22754_v39  ;;  %v15640_v29 = vadd.f32 %v15639_v11, %v15597_v40  ;;  %v22774_v39 = vld [vmem:[%s30206_s5 + $0x310] sm:$0xff]   ;;  %v22771_v11 = vld [vmem:[%s30206_s5 + $0x2c0] sm:$0xff]  }
 0x846   :  { %19617 = vmatprep.subr.bf16.mxu1 %v22753_v9  ;;  %v15641_v18 = vpop.f32.mrf.mxu1 }
 0x847   :  { %v15642_v63 = vadd.f32 %v15641_v18, %v15599_v56 }
 0x848   :  { %19632 = vmatpush3.bf16.msra.mxu0 %v22756_v54  ;;  %v15643_v59 = vpop.f32.mrf.mxu1 }
 0x849   :  { %19618 = vmatpush3.bf16.msra.mxu1 %v22755_v3  ;;  %19633 = vmatprep.subr.bf16.mxu0 %v22758_v60  ;;  %v15644_v9 = vadd.f32 %v15643_v59, %v15601_v21  ;;  %v22770_v60 = vld [vmem:[%s30206_s5 + $0x288] sm:$0xff]  }
 0x84a   :  { %19619 = vmatprep.subr.bf16.mxu1 %v22757_v32  ;;  %v15645_v26 = vpop.f32.mrf.mxu1  ;;  %v22775_v32 = vld [vmem:[%s30206_s5 + $0x308] sm:$0xff]  }
 0x84b   :  { %v15646_v54 = vadd.f32 %v15645_v26, %v15603_v1 }
 0x84c   :  { %19634 = vmatpush3.bf16.msra.mxu0 %v22760_v10 }
 0x84d   :  { %19620 = vmatpush3.bf16.msra.mxu1 %v22759_v53  ;;  %19635 = vmatprep.subr.bf16.mxu0 %v22762_v51  ;;  %v22772_v53 = vld [vmem:[%s30206_s5 + $0x280] sm:$0xff]  }
 0x84e   :  { %19621 = vmatprep.subr.bf16.mxu1 %v22761_v25 }
 0x850   :  { %19636 = vmatpush3.bf16.msra.mxu0 %v22764_v27 }
 0x851   :  { %19622 = vmatpush3.bf16.msra.mxu1 %v22763_v6  ;;  %19637 = vmatprep.subr.bf16.mxu0 %v22765_v52 }
 0x852   :  { %19688 = vmatprep.subr.bf16.mxu1 %v30234_v23 }
 0x853   :  { %v15682_v15 = vpop.f32.mrf.mxu0 }
 0x854   :  { %v15725_v4 = vpop.f32.mrf.mxu1  ;;  %17067 = vmatmul.mubr.bf16.vlgmr.msra.gmra.mxu1 %v16055_v48  ;;  %19638 = vmatpush3.bf16.msra.mxu0 %v22766_v35  ;;  %v15683_v46 = vadd.f32 %v15682_v15, %v15640_v29  ;;  %v7310_v35 = vrot.slane %v29886_v45, %v30251_v31  ;;  %v19205_v31 = vld [vmem:[%s30207_s6] ss:$0 sm:$0xff] }
 0x855   :  { %v15684_v50 = vpop.f32.mrf.mxu0  ;;  %19639 = vmatprep.subr.bf16.mxu0 %v22767_v38  ;;  %19689 = vmatpush3.bf16.msra.mxu1 %v22773_v62 }
 0x856   :  { %v15685_v7 = vadd.f32 %v15684_v50, %v15642_v63  ;;  %v15727_v61 = vpop.f32.mrf.mxu1  ;;  %19690 = vmatprep.subr.bf16.mxu1 %v30234_v23  ;;  %19696 = vmatprep.mubr.msk.bf16.mxu1 %vm22807_vm0, %v30234_v23  ;;  %v15726_v49 = vadd.f32 %v15725_v4, %v15683_v46 }
 0x857   :  { %v15686_v55 = vpop.f32.mrf.mxu0 }
 0x858   :  { %v15687_v37 = vadd.f32 %v15686_v55, %v15644_v9  ;;  %v15729_v3 = vpop.f32.mrf.mxu1  ;;  %19640 = vmatpush3.bf16.msra.mxu0 %v22768_v41  ;;  %v15728_v43 = vadd.f32 %v15727_v61, %v15685_v7  ;;  %v16031_v25 = vmax.f32 %v15726_v49, 0.0 }
 0x859   :  { %v15688_v33 = vpop.f32.mrf.mxu0  ;;  %19641 = vmatprep.subr.bf16.mxu0 %v22769_v42  ;;  %19691 = vmatpush3.bf16.msra.mxu1 %v22774_v39 }
 0x85a   :  { %v15730_v8 = vadd.f32 %v15729_v3, %v15687_v37  ;;  %v15689_v10 = vadd.f32 %v15688_v33, %v15646_v54  ;;  %19692 = vmatprep.subr.bf16.mxu1 %v30234_v23  ;;  %v15731_v5 = vpop.f32.mrf.mxu1  ;;  %v16032_v58 = vmax.f32 %v15728_v43, 0.0 }
 0x85c   :  { %v15732_v57 = vadd.f32 %v15731_v5, %v15689_v10  ;;  %19642 = vmatpush3.bf16.msra.mxu0 %v22770_v60  ;;  %v16044_v51 = vmax.f32 %v15730_v8, 0.0 }
 0x85d   :  { %19643 = vmatprep.subr.bf16.mxu0 %v22771_v11  ;;  %19693 = vmatpush3.bf16.msra.mxu1 %v22775_v32 }
 0x85e   :  { %v16045_v18 = vmax.f32 %v15732_v57, 0.0  ;;  %19694 = vmatprep.subr.bf16.mxu1 %v30234_v23  ;;  %v16057_v22 = vpack.c.bf16 %v16044_v51, %v16031_v25 }
 0x860   :  { %v16058_v13 = vpack.c.bf16 %v16045_v18, %v16032_v58  ;;  %19644 = vmatpush3.bf16.msra.mxu0 %v22772_v53 }
 0x861   :  { %19695 = vmatpush3.bf16.msra.mxu1 %v22776_v28 }
 0x862   :  { %17107 = vmatprep.mubr.bf16.mxu0 %v16058_v13 }
 0x863   :  { %17108 = vmatmul.mubr.bf16.vlgmr.msra.gmra.mxu0 %v16057_v22 }
 0x873   :  { %v19398_v27 = vpop.f32.mrf.mxu0 }
 0x874   :  { %v19420_v19 = vpop.f32.mrf.mxu1 }
 0x875   :  { %v19399_v44 = vpop.f32.mrf.mxu0 }
 0x876   :  { %v19421_v6 = vpop.f32.mrf.mxu1  ;;  %v19400_v30 = vadd.f32 %v19399_v44, %v19398_v27 }
 0x877   :  { %v19401_v52 = vpop.f32.mrf.mxu0  ;;  %v19422_v26 = vadd.f32 %v19421_v6, %v19420_v19 }
 0x878   :  { %v19423_v0 = vpop.f32.mrf.mxu1  ;;  %v15769_v20 = vadd.f32 %v19400_v30, %v7310_v35 }
 0x879   :  { %v19402_v16 = vpop.f32.mrf.mxu0 }
 0x87a   :  { %v19424_v47 = vpop.f32.mrf.mxu1  ;;  %v19403_v38 = vadd.f32 %v19402_v16, %v19401_v52  ;;  %v15810_v21 = vadd.f32 %v19422_v26, %v15769_v20 }
 0x87b   :  { %v19425_v63 = vadd.f32 %v19424_v47, %v19423_v0 }
 0x87c   :  { %v15772_v40 = vadd.f32 %v19403_v38, %v7310_v35 }
 0x87e   :  { %v15813_v29 = vadd.f32 %v19425_v63, %v15772_v40 }
 0x893   :  { %v19442_v59 = vpop.f32.mrf.mxu0 }
 0x894   :  { %v19464_v34 = vpop.f32.mrf.mxu1 }
 0x895   :  { %v19443_v2 = vpop.f32.mrf.mxu0 }
 0x896   :  { %v19465_v17 = vpop.f32.mrf.mxu1  ;;  %v19444_v15 = vadd.f32 %v19443_v2, %v19442_v59 }
 0x897   :  { %v19445_v23 = vpop.f32.mrf.mxu0  ;;  %v19466_v45 = vadd.f32 %v19465_v17, %v19464_v34 }
 0x898   :  { %v19467_v12 = vpop.f32.mrf.mxu1  ;;  %v15851_v50 = vadd.f32 %v19444_v15, %v15810_v21 }
 0x899   :  { %v19446_v14 = vpop.f32.mrf.mxu0 }
 0x89a   :  { %v19468_v62 = vpop.f32.mrf.mxu1  ;;  %v19447_v4 = vadd.f32 %v19446_v14, %v19445_v23  ;;  %v15892_v7 = vadd.f32 %v19466_v45, %v15851_v50 }
 0x89b   :  { %v19469_v61 = vadd.f32 %v19468_v62, %v19467_v12 }
 0x89c   :  { %v15854_v39 = vadd.f32 %v19447_v4, %v15813_v29 }
 0x89e   :  { %v15895_v55 = vadd.f32 %v19469_v61, %v15854_v39 }
 0x8b3   :  { %v19486_v48 = vpop.f32.mrf.mxu0 }
 0x8b4   :  { %v19508_v24 = vpop.f32.mrf.mxu1 }
 0x8b5   :  { %v19487_v56 = vpop.f32.mrf.mxu0 }
 0x8b6   :  { %v19509_v41 = vpop.f32.mrf.mxu1  ;;  %v19488_v1 = vadd.f32 %v19487_v56, %v19486_v48 }
 0x8b7   :  { %v19489_v36 = vpop.f32.mrf.mxu0  ;;  %v19510_v3 = vadd.f32 %v19509_v41, %v19508_v24 }
 0x8b8   :  { %v19511_v9 = vpop.f32.mrf.mxu1  ;;  %v15933_v54 = vadd.f32 %v19488_v1, %v15892_v7 }
 0x8b9   :  { %v19490_v42 = vpop.f32.mrf.mxu0 }
 0x8ba   :  { %v19491_v46 = vadd.f32 %v19490_v42, %v19489_v36  ;;  %v19512_v37 = vpop.f32.mrf.mxu1  ;;  %v15974_v32 = vadd.f32 %v19510_v3, %v15933_v54 }
 0x8bb   :  { %v19513_v11 = vadd.f32 %v19512_v37, %v19511_v9 }
 0x8bc   :  { %v15936_v60 = vadd.f32 %v19491_v46, %v15895_v55 }
 0x8be   :  { %v15977_v10 = vadd.f32 %v19513_v11, %v15936_v60 }
 0x8c3   :  { %v16014_v33 = vpop.f32.mrf.mxu0 }
 0x8c4   :  { %v16015_v8 = vadd.f32 %v16014_v33, %v15974_v32 }
 0x8c5   :  { %v19686_v43 = vpop.f32.mrf.mxu0 }
 0x8c6   :  { %v16033_v53 = vmax.f32 %v16015_v8, 0.0 }
 0x8c7   :  { %v16017_v49 = vpop.f32.mrf.mxu0 }
 0x8c8   :  { %v16018_v5 = vadd.f32 %v16017_v49, %v15977_v10 }
 0x8c9   :  { %v19687_v57 = vpop.f32.mrf.mxu0 }
 0x8ca   :  { %v16046_v51 = vmax.f32 %v16018_v5, 0.0 }
 0x8cc   :  { %v16059_v28 = vpack.c.bf16 %v16046_v51, %v16033_v53 }
 0x8ce   :  { %19697 = vmatmul.mubr.msk.bf16.vlgmr.msra.gmra.mxu1 %vm13924_vm1, %v16059_v28 }
 0x8d4   :  { %v19535_v58 = vpop.f32.mrf.mxu1 }
 0x8d6   :  { %v19536_v25 = vpop.f32.mrf.mxu1 }
 0x8d7   :  { %v19537_v12 = vadd.f32 %v19536_v25, %v19535_v58 }
 0x8d8   :  { %v19538_v22 = vpop.f32.mrf.mxu1 }
 0x8d9   :  { %v16905_v38 = vadd.f32 %v19537_v12, %v19205_v31 }
 0x8da   :  { %v19539_v19 = vpop.f32.mrf.mxu1 }
 0x8db   :  { %v19540_v62 = vadd.f32 %v19539_v19, %v19538_v22 }
 0x8dd   :  { %v16908_v15 = vadd.f32 %v19540_v62, %v19205_v31 }
 0x8e3   :  { %v19557_v18 = vpop.f32.mrf.mxu0 }
 0x8e5   :  { %v19558_v13 = vpop.f32.mrf.mxu0 }
 0x8e6   :  { %v19559_v30 = vadd.f32 %v19558_v13, %v19557_v18 }
 0x8e7   :  { %v19560_v27 = vpop.f32.mrf.mxu0 }
 0x8e8   :  { %v16946_v24 = vadd.f32 %v19559_v30, %v16905_v38 }
 0x8e9   :  { %v19561_v44 = vpop.f32.mrf.mxu0 }
 0x8ea   :  { %v19562_v56 = vadd.f32 %v19561_v44, %v19560_v27 }
 0x8ec   :  { %v16949_v41 = vadd.f32 %v19562_v56, %v16908_v15 }
 0x8f4   :  { %v19579_v6 = vpop.f32.mrf.mxu1 }
 0x8f6   :  { %v19580_v0 = vpop.f32.mrf.mxu1 }
 0x8f7   :  { %v19581_v48 = vadd.f32 %v19580_v0, %v19579_v6 }
 0x8f8   :  { %v19582_v47 = vpop.f32.mrf.mxu1 }
 0x8f9   :  { %v16987_v36 = vadd.f32 %v19581_v48, %v16946_v24 }
 0x8fa   :  { %v19583_v34 = vpop.f32.mrf.mxu1 }
 0x8fb   :  { %v19584_v21 = vadd.f32 %v19583_v34, %v19582_v47 }
 0x8fd   :  { %v16990_v39 = vadd.f32 %v19584_v21, %v16949_v41 }
 0x903   :  { %v19601_v52 = vpop.f32.mrf.mxu0 }
 0x905   :  { %v19602_v16 = vpop.f32.mrf.mxu0 }
 0x906   :  { %v19603_v26 = vadd.f32 %v19602_v16, %v19601_v52 }
 0x907   :  { %v19604_v59 = vpop.f32.mrf.mxu0 }
 0x908   :  { %v17028_v29 = vadd.f32 %v19603_v26, %v16987_v36 }
 0x909   :  { %v19605_v2 = vpop.f32.mrf.mxu0 }
 0x90a   :  { %v19606_v50 = vadd.f32 %v19605_v2, %v19604_v59 }
 0x90c   :  { %v17031_v7 = vadd.f32 %v19606_v50, %v16990_v39 }
 0x914   :  { %v19623_v17 = vpop.f32.mrf.mxu1 }
 0x916   :  { %v19624_v35 = vpop.f32.mrf.mxu1 }
 0x917   :  { %v19625_v63 = vadd.f32 %v19624_v35, %v19623_v17 }
 0x918   :  { %v19626_v20 = vpop.f32.mrf.mxu1 }
 0x919   :  { %v17069_v1 = vadd.f32 %v19625_v63, %v17028_v29 }
 0x91a   :  { %v19627_v4 = vpop.f32.mrf.mxu1 }
 0x91b   :  { %v19628_v9 = vadd.f32 %v19627_v4, %v19626_v20 }
 0x91d   :  { %v17072_v54 = vadd.f32 %v19628_v9, %v17031_v7 }
 0x923   :  { %v19645_v23 = vpop.f32.mrf.mxu0 }
 0x925   :  { %v19646_v14 = vpop.f32.mrf.mxu0 }
 0x926   :  { %v19647_v42 = vadd.f32 %v19646_v14, %v19645_v23 }
 0x927   :  { %v19648_v40 = vpop.f32.mrf.mxu0 }
 0x928   :  { %v17110_v46 = vadd.f32 %v19647_v42, %v17069_v1 }
 0x929   :  { %v19649_v45 = vpop.f32.mrf.mxu0 }
 0x92a   :  { %v19650_v61 = vadd.f32 %v19649_v45, %v19648_v40 }
 0x92c   :  { %v17113_v60 = vadd.f32 %v19650_v61, %v17072_v54 }
 0x98e   :  { %v17150_v55 = vpop.f32.mrf.mxu1 }
 0x98f   :  { %v17151_v37 = vadd.f32 %v17150_v55, %v17110_v46 }
 0x990   :  { %v19698_v3 = vpop.f32.mrf.mxu1 }
 0x991   :  { %17157 = vst [vmem:[%s30208_s7] sm:$0xff] %v17151_v37 }
 0x992   :  { %v17153_v33 = vpop.f32.mrf.mxu1 }
 0x993   :  { %v17154_v11 = vadd.f32 %v17153_v33, %v17113_v60 }
 0x994   :  { %v19699_v32 = vpop.f32.mrf.mxu1 }
 0x995   :  { %17158 = vst [vmem:[%s30208_s7 + $0x8] sm:$0xff] %v17154_v11 }

</bundles_post_ra>
